<compile_context>
chip_gen: v7x
topology: tpu7x:2x2x1
jax: 0.10.0
libtpu: 0.0.40
codegen_flags: <defaults>
</compile_context>

<pallas_src>
import math

import numpy as np
import jax
import jax.numpy as jnp
from jax.experimental import pallas as pl
from jax.experimental.pallas import tpu as pltpu


_N = 2          # batch size baked into the selection matrices at init
_VMEM = pl.BlockSpec(memory_space=pltpu.MemorySpace.VMEM)


# ----------------------------------------------------------------------------
# Fused kernel
# ----------------------------------------------------------------------------
def _elu(x):
    # ELU(alpha=1): x if x > 0 else exp(x) - 1   (f32 VPU + EUP)
    return jnp.where(x > 0, x, jnp.exp(jnp.minimum(x, 0.0)) - 1.0)


def _vae_kernel(*refs):
    """Whole VAE forward in one kernel.

    refs = (x0, eps, <39 packed layer params>, y_out, mu_out, log_std_out).
    Every layer: out = ELU?( sum_t L[t] @ X @ R[t] + b ) on the stacked
    (N*H, W*C) layout; 1x1 layers skip the (identity) L matmul.
    """
    x_ref, eps_ref = refs[0], refs[1]
    y_ref, mu_ref, ls_ref = refs[-3:]
    it = iter(refs[2:-3])

    def tap_layer(x, elu):
        l_ref, r_ref, b_ref = next(it), next(it), next(it)
        xb = x.astype(jnp.bfloat16)
        acc = None
        for t in range(l_ref.shape[0]):
            rows = jnp.dot(l_ref[t], xb, preferred_element_type=jnp.float32)
            out = jnp.dot(rows.astype(jnp.bfloat16), r_ref[t],
                          preferred_element_type=jnp.float32)
            acc = out if acc is None else acc + out
        acc = acc + b_ref[...]
        return _elu(acc) if elu else acc

    def pw_layer(x, elu):
        r_ref, b_ref = next(it), next(it)
        out = jnp.dot(x.astype(jnp.bfloat16), r_ref[...],
                      preferred_element_type=jnp.float32) + b_ref[...]
        return _elu(out) if elu else out

    x = x_ref[...]                        # (N*16, 16*3) f32
    # head[0]: two plain 3x3 convs (no activation between / after)
    x = tap_layer(x, elu=False)           # -> (N*16, 16*8)
    x = tap_layer(x, elu=False)           # -> (N*16, 16*16)
    # head[1]: grouped 3x3 s2 + ELU, 1x1 + ELU
    x = tap_layer(x, elu=True)            # -> (N*8, 8*32)
    x = pw_layer(x, elu=True)
    # head[2]: grouped 3x3 s2 + ELU, 1x1 + ELU
    x = tap_layer(x, elu=True)            # -> (N*4, 4*64)
    x3 = pw_layer(x, elu=True)
    # head[3] (mu) + head[4] (log_std), lane-fused
    a = pw_layer(x3, elu=True)            # c0 (1,7)/(1,5) both heads -> (N*4, 256)
    a = tap_layer(a, elu=True)            # c1 (7,1)/(5,1) both heads -> (N, 512)
    a = pw_layer(a, elu=True)             # c2 1x1 both heads (block-diag 512x512)
    mu = a[:, :256]
    log_std = a[:, 256:]
    # reparametrize: z = mu + eps * exp(0.5 * log_std)
    z = mu + eps_ref[...] * jnp.exp(log_std * 0.5)
    # tail[0] ConvT(256->64,7,5,3,g64) + tail[1] ELU
    y = tap_layer(z, elu=True)            # -> (N*4, 4*64)
    y = pw_layer(y, elu=True)             # tail[2] 1x1 + ELU
    y = tap_layer(y, elu=True)            # tail[3] ConvT s2 + tail[4] ELU -> (N*8, 8*32)
    y = pw_layer(y, elu=True)             # tail[5] 1x1 + ELU
    y = tap_layer(y, elu=False)           # tail[6] ConvT s2 (no act) -> (N*16, 16*16)
    y = tap_layer(y, elu=False)           # tail[7] 3x3 conv -> (N*16, 16*3)

    assert next(it, None) is None         # all packed params consumed (trace-time)
    y_ref[...] = y
    mu_ref[...] = mu
    ls_ref[...] = log_std


# ----------------------------------------------------------------------------
# Host-side (numpy, once at init): build L / R / bias for every layer
# ----------------------------------------------------------------------------
def _conv_lrb(w, b, n, h, wdt, sh, sw, ph, pw, groups):
    """Conv2d -> (L, R, bias) for the stacked (n*h, wdt*Cin) layout."""
    w = np.asarray(w, np.float32)
    b = np.asarray(b, np.float32)
    cout, cin_g, kh, kw = w.shape
    cin = cin_g * groups
    cout_g = cout // groups
    ho = (h + 2 * ph - kh) // sh + 1
    wo = (wdt + 2 * pw - kw) // sw + 1
    L = np.zeros((kh, n * ho, n * h), np.float32)
    for bn in range(n):
        for i in range(ho):
            for ky in range(kh):
                hh = i * sh - ph + ky
                if 0 <= hh < h:
                    L[ky, bn * ho + i, bn * h + hh] = 1.0
    R = np.zeros((kh, wdt * cin, wo * cout), np.float32)
    for ky in range(kh):
        for j in range(wo):
            for kx in range(kw):
                ww = j * sw - pw + kx
                if not 0 <= ww < wdt:
                    continue
                for co in range(cout):
                    ci0 = (co // cout_g) * cin_g
                    for m in range(cin_g):
                        R[ky, ww * cin + ci0 + m, j * cout + co] = w[co, m, ky, kx]
    bias = np.tile(b, wo).reshape(1, wo * cout)
    return L, R, bias


def _convT_lrb(w, b, n, h, wdt, sh, sw, ph, pw, groups, ho, wo):
    """ConvTranspose2d (output size (ho, wo) given) -> (L, R, bias)."""
    w = np.asarray(w, np.float32)
    b = np.asarray(b, np.float32)
    cin, cout_g, kh, kw = w.shape
    cout = cout_g * groups
    cin_g = cin // groups
    L = np.zeros((kh, n * ho, n * h), np.float32)
    for bn in range(n):
        for i in range(ho):
            for ky in range(kh):
                num = i + ph - ky
                if num % sh or not 0 <= num // sh < h:
                    continue
                L[ky, bn * ho + i, bn * h + num // sh] = 1.0
    R = np.zeros((kh, wdt * cin, wo * cout), np.float32)
    for ky in range(kh):
        for j in range(wo):
            for wi in range(wdt):
                kx = j + pw - wi * sw
                if not 0 <= kx < kw:
                    continue
                for co in range(cout):
                    g = co // cout_g
                    for m in range(cin_g):
                        R[ky, wi * cin + g * cin_g + m, j * cout + co] = \
                            w[g * cin_g + m, co - g * cout_g, ky, kx]
    bias = np.tile(b, wo).reshape(1, wo * cout)
    return L, R, bias


def _keep_nonzero_taps(L, R):
    keep = [k for k in range(L.shape[0]) if L[k].any()]
    return L[keep], R[keep]


# Synthetic PyTorch-like raw weights -------------------------------------------------
def _uniform(key, shape, bound):
    return np.asarray(jax.random.uniform(key, shape, jnp.float32, -bound, bound))


def _conv_raw(key, cout, cin_g, kh, kw):
    k1, k2 = jax.random.split(key)
    bound = 1.0 / math.sqrt(cin_g * kh * kw)
    return _uniform(k1, (cout, cin_g, kh, kw), bound), _uniform(k2, (cout,), bound)


def _convT_raw(key, cin, cout_g, kh, kw, groups):
    k1, k2 = jax.random.split(key)
    bound = 1.0 / math.sqrt(cout_g * kh * kw)
    return (_uniform(k1, (cin, cout_g, kh, kw), bound),
            _uniform(k2, (cout_g * groups,), bound))


def init_params(key, n_batch=_N):
    """Build the flat, kernel-ordered list of (L, R, bias) operands (bf16/f32)."""
    n = n_batch
    keys = iter(jax.random.split(key, 32))
    flat = []

    def add_tap(L, R, b):
        flat.extend([jnp.asarray(L, jnp.bfloat16), jnp.asarray(R, jnp.bfloat16),
                     jnp.asarray(b, jnp.float32)])

    def add_pw(R, b):
        flat.extend([jnp.asarray(R, jnp.bfloat16), jnp.asarray(b, jnp.float32)])

    # head[0]: Conv(3->8,3x3,p1), Conv(8->16,3x3,p1)  (kept separate: composing
    # into a 5x5 is inexact at the zero-padded borders)
    w, b = _conv_raw(next(keys), 8, 3, 3, 3)
    add_tap(*_conv_lrb(w, b, n, 16, 16, 1, 1, 1, 1, 1))
    w, b = _conv_raw(next(keys), 16, 8, 3, 3)
    add_tap(*_conv_lrb(w, b, n, 16, 16, 1, 1, 1, 1, 1))
    # head[1]: Conv(16->32,3x3,s2,p1,g16)+ELU, Conv(32->32,1x1)+ELU
    w, b = _conv_raw(next(keys), 32, 1, 3, 3)
    add_tap(*_conv_lrb(w, b, n, 16, 16, 2, 2, 1, 1, 16))
    w, b = _conv_raw(next(keys), 32, 32, 1, 1)
    _, R, bb = _conv_lrb(w, b, n, 8, 8, 1, 1, 0, 0, 1)
    add_pw(R[0], bb)
    # head[2]: Conv(32->64,3x3,s2,p1,g32)+ELU, Conv(64->64,1x1)+ELU
    w, b = _conv_raw(next(keys), 64, 1, 3, 3)
    add_tap(*_conv_lrb(w, b, n, 8, 8, 2, 2, 1, 1, 32))
    w, b = _conv_raw(next(keys), 64, 64, 1, 1)
    _, R, bb = _conv_lrb(w, b, n, 4, 4, 1, 1, 0, 0, 1)
    add_pw(R[0], bb)
    # head[3] (mu) and head[4] (log_std), lane-fused (out lanes = [h3 | h4])
    # c0: Conv(64->128,(1,7),(1,5),p(0,3),g64): 4x4x64 -> 4x1x128 per head
    w3, b3 = _conv_raw(next(keys), 128, 1, 1, 7)
    w4, b4 = _conv_raw(next(keys), 128, 1, 1, 7)
    _, R3, bb3 = _conv_lrb(w3, b3, n, 4, 4, 1, 5, 0, 3, 64)
    _, R4, bb4 = _conv_lrb(w4, b4, n, 4, 4, 1, 5, 0, 3, 64)
    Rc0 = np.zeros((256, 256), np.float32)
    Rc0[:, :128], Rc0[:, 128:] = R3[0], R4[0]
    add_pw(Rc0, np.concatenate([bb3, bb4], axis=1))
    # c1: Conv(128->256,(7,1),(5,1),p(3,0),g128): 4x1x128 -> 1x1x256 per head
    w3, b3 = _conv_raw(next(keys), 256, 1, 7, 1)
    w4, b4 = _conv_raw(next(keys), 256, 1, 7, 1)
    L3, R3, bb3 = _conv_lrb(w3, b3, n, 4, 1, 5, 1, 3, 0, 128)
    _, R4, bb4 = _conv_lrb(w4, b4, n, 4, 1, 5, 1, 3, 0, 128)
    keep = [k for k in range(7) if L3[k].any()]          # only 4 of 7 taps land
    Rc1 = np.zeros((len(keep), 256, 512), np.float32)
    Rc1[:, :128, :256], Rc1[:, 128:, 256:] = R3[keep], R4[keep]
    add_tap(L3[keep], Rc1, np.concatenate([bb3, bb4], axis=1))
    # c2: Conv(256->256,1x1)+ELU per head, fused as one block-diagonal 512x512 GEMM
    w3, b3 = _conv_raw(next(keys), 256, 256, 1, 1)
    w4, b4 = _conv_raw(next(keys), 256, 256, 1, 1)
    _, R3, bb3 = _conv_lrb(w3, b3, n, 1, 1, 1, 1, 0, 0, 1)
    _, R4, bb4 = _conv_lrb(w4, b4, n, 1, 1, 1, 1, 0, 0, 1)
    Rc2 = np.zeros((512, 512), np.float32)
    Rc2[:256, :256], Rc2[256:, 256:] = R3[0], R4[0]
    add_pw(Rc2, np.concatenate([bb3, bb4], axis=1))
    # tail[0]: ConvT(256->64,7x7,s5,p3,g64), output_size 4x4 (+ tail[1] ELU folded)
    w, b = _convT_raw(next(keys), 256, 1, 7, 7, 64)
    L, R, bb = _convT_lrb(w, b, n, 1, 1, 5, 5, 3, 3, 64, 4, 4)
    L, R = _keep_nonzero_taps(L, R)
    add_tap(L, R, bb)
    # tail[2]: Conv(64->64,1x1)+ELU
    w, b = _conv_raw(next(keys), 64, 64, 1, 1)
    _, R, bb = _conv_lrb(w, b, n, 4, 4, 1, 1, 0, 0, 1)
    add_pw(R[0], bb)
    # tail[3]: ConvT(64->32,3x3,s2,p1,g32), output_size 8x8 (+ tail[4] ELU folded)
    w, b = _convT_raw(next(keys), 64, 1, 3, 3, 32)
    add_tap(*_convT_lrb(w, b, n, 4, 4, 2, 2, 1, 1, 32, 8, 8))
    # tail[5]: Conv(32->32,1x1)+ELU
    w, b = _conv_raw(next(keys), 32, 32, 1, 1)
    _, R, bb = _conv_lrb(w, b, n, 8, 8, 1, 1, 0, 0, 1)
    add_pw(R[0], bb)
    # tail[6]: ConvT(32->16,3x3,s2,p1,g16), output_size 16x16 (no activation)
    w, b = _convT_raw(next(keys), 32, 1, 3, 3, 16)
    add_tap(*_convT_lrb(w, b, n, 8, 8, 2, 2, 1, 1, 16, 16, 16))
    # tail[7]: Conv(16->3,3x3,p1)
    w, b = _conv_raw(next(keys), 3, 16, 3, 3)
    add_tap(*_conv_lrb(w, b, n, 16, 16, 1, 1, 1, 1, 1))
    return tuple(flat)


# ----------------------------------------------------------------------------
# Forward wrapper (NCHW at the module boundary, one pallas_call inside)
# ----------------------------------------------------------------------------
def _vae_forward(params, x0, eps):
    n = x0.shape[0]
    assert n * 16 == params[0].shape[1], "batch size must match init_params"
    x = jnp.transpose(x0, (0, 2, 3, 1)).reshape(n * 16, 16 * 3)   # stacked layout
    y, mu, log_std = pl.pallas_call(
        _vae_kernel,
        out_shape=(jax.ShapeDtypeStruct((n * 16, 16 * 3), jnp.float32),
                   jax.ShapeDtypeStruct((n, 256), jnp.float32),
                   jax.ShapeDtypeStruct((n, 256), jnp.float32)),
        in_specs=[_VMEM] * (2 + len(params)),
        out_specs=(_VMEM, _VMEM, _VMEM),
    )(x, eps.reshape(n, 256), *params)
    y = y.reshape(n, 16, 16, 3).transpose(0, 3, 1, 2)              # NHWC -> NCHW
    return y, mu.reshape(n, 256, 1, 1), log_std.reshape(n, 256, 1, 1)


vae_forward = jax.jit(_vae_forward)


if __name__ == "__main__":
    key = jax.random.PRNGKey(0)
    pkey, xkey, ekey = jax.random.split(key, 3)
    params = init_params(pkey)

    # Input: NCHW (batch=2, channels=3, 16x16) -> latent (2, 256, 1, 1)
    x0 = jax.random.normal(xkey, (_N, 3, 16, 16), jnp.float32)
    # TODO(synk): torch.randn_like inside reparametrize has no in-kernel torch RNG
    # equivalent; eps is drawn deterministically here and fed to the fused kernel.
    eps = jax.random.normal(ekey, (_N, 256, 1, 1), jnp.float32)

    y, mu, log_std = vae_forward(params, x0, eps)
    jax.block_until_ready((y, mu, log_std))

    assert y.shape == (_N, 3, 16, 16), y.shape
    assert mu.shape == (_N, 256, 1, 1), mu.shape
    assert log_std.shape == (_N, 256, 1, 1), log_std.shape
    assert bool(jnp.all(jnp.isfinite(y)))
    assert bool(jnp.all(jnp.isfinite(mu))) and bool(jnp.all(jnp.isfinite(log_std)))
    # head[3]/head[4] end with ELU in the reference module, so mu/log_std > -1.
    assert bool(jnp.all(mu >= -1.0)) and bool(jnp.all(log_std >= -1.0))
    print("KERNEL_OK")
</pallas_src>

<mosaic_0001>
module attributes {stable_mosaic.version = 11 : i64} {
  func.func @_vae_kernel(%arg0: memref<32x48xf32, #tpu.memory_space<vmem>>, %arg1: memref<2x256xf32, #tpu.memory_space<vmem>>, %arg2: memref<3x32x32xbf16, #tpu.memory_space<vmem>>, %arg3: memref<3x48x128xbf16, #tpu.memory_space<vmem>>, %arg4: memref<1x128xf32, #tpu.memory_space<vmem>>, %arg5: memref<3x32x32xbf16, #tpu.memory_space<vmem>>, %arg6: memref<3x128x256xbf16, #tpu.memory_space<vmem>>, %arg7: memref<1x256xf32, #tpu.memory_space<vmem>>, %arg8: memref<3x16x32xbf16, #tpu.memory_space<vmem>>, %arg9: memref<3x256x256xbf16, #tpu.memory_space<vmem>>, %arg10: memref<1x256xf32, #tpu.memory_space<vmem>>, %arg11: memref<256x256xbf16, #tpu.memory_space<vmem>>, %arg12: memref<1x256xf32, #tpu.memory_space<vmem>>, %arg13: memref<3x8x16xbf16, #tpu.memory_space<vmem>>, %arg14: memref<3x256x256xbf16, #tpu.memory_space<vmem>>, %arg15: memref<1x256xf32, #tpu.memory_space<vmem>>, %arg16: memref<256x256xbf16, #tpu.memory_space<vmem>>, %arg17: memref<1x256xf32, #tpu.memory_space<vmem>>, %arg18: memref<256x256xbf16, #tpu.memory_space<vmem>>, %arg19: memref<1x256xf32, #tpu.memory_space<vmem>>, %arg20: memref<4x2x8xbf16, #tpu.memory_space<vmem>>, %arg21: memref<4x256x512xbf16, #tpu.memory_space<vmem>>, %arg22: memref<1x512xf32, #tpu.memory_space<vmem>>, %arg23: memref<512x512xbf16, #tpu.memory_space<vmem>>, %arg24: memref<1x512xf32, #tpu.memory_space<vmem>>, %arg25: memref<4x8x2xbf16, #tpu.memory_space<vmem>>, %arg26: memref<4x256x256xbf16, #tpu.memory_space<vmem>>, %arg27: memref<1x256xf32, #tpu.memory_space<vmem>>, %arg28: memref<256x256xbf16, #tpu.memory_space<vmem>>, %arg29: memref<1x256xf32, #tpu.memory_space<vmem>>, %arg30: memref<3x16x8xbf16, #tpu.memory_space<vmem>>, %arg31: memref<3x256x256xbf16, #tpu.memory_space<vmem>>, %arg32: memref<1x256xf32, #tpu.memory_space<vmem>>, %arg33: memref<256x256xbf16, #tpu.memory_space<vmem>>, %arg34: memref<1x256xf32, #tpu.memory_space<vmem>>, %arg35: memref<3x32x16xbf16, #tpu.memory_space<vmem>>, %arg36: memref<3x256x256xbf16, #tpu.memory_space<vmem>>, %arg37: memref<1x256xf32, #tpu.memory_space<vmem>>, %arg38: memref<3x32x32xbf16, #tpu.memory_space<vmem>>, %arg39: memref<3x256x48xbf16, #tpu.memory_space<vmem>>, %arg40: memref<1x48xf32, #tpu.memory_space<vmem>>, %arg41: memref<32x48xf32, #tpu.memory_space<vmem>>, %arg42: memref<2x256xf32, #tpu.memory_space<vmem>>, %arg43: memref<2x256xf32, #tpu.memory_space<vmem>>) attributes {dimension_semantics = [], scalar_prefetch = 0 : i64, scratch_operands = 0 : i64, tpu.core_type = #tpu.core_type<tc>} {
    %c0 = arith.constant 0 : index
    %c0_0 = arith.constant 0 : index
    %0 = vector.load %arg0[%c0, %c0_0] : memref<32x48xf32, #tpu.memory_space<vmem>>, vector<32x48xf32>
    %1 = arith.truncf %0 : vector<32x48xf32> to vector<32x48xbf16>
    %c0_1 = arith.constant 0 : index
    %c0_2 = arith.constant 0 : index
    %c0_3 = arith.constant 0 : index
    %2 = vector.load %arg2[%c0_1, %c0_2, %c0_3] : memref<3x32x32xbf16, #tpu.memory_space<vmem>>, vector<1x32x32xbf16>
    %3 = vector.shape_cast %2 : vector<1x32x32xbf16> to vector<32x32xbf16>
    %cst = arith.constant dense<0.000000e+00> : vector<32x48xf32>
    %4 = tpu.matmul %3, %1, %cst {dimension_numbers = #tpu.dot_dimension_numbers<[1], [0], [0], [1], [0, 0, 1, 1], [], []>} : vector<32x32xbf16>, vector<32x48xbf16>, vector<32x48xf32> -> vector<32x48xf32>
    %5 = arith.truncf %4 : vector<32x48xf32> to vector<32x48xbf16>
    %c0_4 = arith.constant 0 : index
    %c0_5 = arith.constant 0 : index
    %c0_6 = arith.constant 0 : index
    %6 = vector.load %arg3[%c0_4, %c0_5, %c0_6] : memref<3x48x128xbf16, #tpu.memory_space<vmem>>, vector<1x48x128xbf16>
    %7 = vector.shape_cast %6 : vector<1x48x128xbf16> to vector<48x128xbf16>
    %cst_7 = arith.constant dense<0.000000e+00> : vector<32x128xf32>
    %8 = tpu.matmul %5, %7, %cst_7 {dimension_numbers = #tpu.dot_dimension_numbers<[1], [0], [0], [1], [0, 0, 1, 1], [], []>} : vector<32x48xbf16>, vector<48x128xbf16>, vector<32x128xf32> -> vector<32x128xf32>
    %c1 = arith.constant 1 : index
    %c0_8 = arith.constant 0 : index
    %c0_9 = arith.constant 0 : index
    %9 = vector.load %arg2[%c1, %c0_8, %c0_9] : memref<3x32x32xbf16, #tpu.memory_space<vmem>>, vector<1x32x32xbf16>
    %10 = vector.shape_cast %9 : vector<1x32x32xbf16> to vector<32x32xbf16>
    %cst_10 = arith.constant dense<0.000000e+00> : vector<32x48xf32>
    %11 = tpu.matmul %10, %1, %cst_10 {dimension_numbers = #tpu.dot_dimension_numbers<[1], [0], [0], [1], [0, 0, 1, 1], [], []>} : vector<32x32xbf16>, vector<32x48xbf16>, vector<32x48xf32> -> vector<32x48xf32>
    %12 = arith.truncf %11 : vector<32x48xf32> to vector<32x48xbf16>
    %c1_11 = arith.constant 1 : index
    %c0_12 = arith.constant 0 : index
    %c0_13 = arith.constant 0 : index
    %13 = vector.load %arg3[%c1_11, %c0_12, %c0_13] : memref<3x48x128xbf16, #tpu.memory_space<vmem>>, vector<1x48x128xbf16>
    %14 = vector.shape_cast %13 : vector<1x48x128xbf16> to vector<48x128xbf16>
    %cst_14 = arith.constant dense<0.000000e+00> : vector<32x128xf32>
    %15 = tpu.matmul %12, %14, %cst_14 {dimension_numbers = #tpu.dot_dimension_numbers<[1], [0], [0], [1], [0, 0, 1, 1], [], []>} : vector<32x48xbf16>, vector<48x128xbf16>, vector<32x128xf32> -> vector<32x128xf32>
    %16 = arith.addf %8, %15 : vector<32x128xf32>
    %c2 = arith.constant 2 : index
    %c0_15 = arith.constant 0 : index
    %c0_16 = arith.constant 0 : index
    %17 = vector.load %arg2[%c2, %c0_15, %c0_16] : memref<3x32x32xbf16, #tpu.memory_space<vmem>>, vector<1x32x32xbf16>
    %18 = vector.shape_cast %17 : vector<1x32x32xbf16> to vector<32x32xbf16>
    %cst_17 = arith.constant dense<0.000000e+00> : vector<32x48xf32>
    %19 = tpu.matmul %18, %1, %cst_17 {dimension_numbers = #tpu.dot_dimension_numbers<[1], [0], [0], [1], [0, 0, 1, 1], [], []>} : vector<32x32xbf16>, vector<32x48xbf16>, vector<32x48xf32> -> vector<32x48xf32>
    %20 = arith.truncf %19 : vector<32x48xf32> to vector<32x48xbf16>
    %c2_18 = arith.constant 2 : index
    %c0_19 = arith.constant 0 : index
    %c0_20 = arith.constant 0 : index
    %21 = vector.load %arg3[%c2_18, %c0_19, %c0_20] : memref<3x48x128xbf16, #tpu.memory_space<vmem>>, vector<1x48x128xbf16>
    %22 = vector.shape_cast %21 : vector<1x48x128xbf16> to vector<48x128xbf16>
    %cst_21 = arith.constant dense<0.000000e+00> : vector<32x128xf32>
    %23 = tpu.matmul %20, %22, %cst_21 {dimension_numbers = #tpu.dot_dimension_numbers<[1], [0], [0], [1], [0, 0, 1, 1], [], []>} : vector<32x48xbf16>, vector<48x128xbf16>, vector<32x128xf32> -> vector<32x128xf32>
    %24 = arith.addf %16, %23 : vector<32x128xf32>
    %c0_22 = arith.constant 0 : index
    %c0_23 = arith.constant 0 : index
    %25 = vector.load %arg4[%c0_22, %c0_23] : memref<1x128xf32, #tpu.memory_space<vmem>>, vector<1x128xf32>
    %26 = vector.broadcast %25 : vector<1x128xf32> to vector<32x128xf32>
    %27 = arith.addf %24, %26 : vector<32x128xf32>
    %28 = arith.truncf %27 : vector<32x128xf32> to vector<32x128xbf16>
    %c0_24 = arith.constant 0 : index
    %c0_25 = arith.constant 0 : index
    %c0_26 = arith.constant 0 : index
    %29 = vector.load %arg5[%c0_24, %c0_25, %c0_26] : memref<3x32x32xbf16, #tpu.memory_space<vmem>>, vector<1x32x32xbf16>
    %30 = vector.shape_cast %29 : vector<1x32x32xbf16> to vector<32x32xbf16>
    %cst_27 = arith.constant dense<0.000000e+00> : vector<32x128xf32>
    %31 = tpu.matmul %30, %28, %cst_27 {dimension_numbers = #tpu.dot_dimension_numbers<[1], [0], [0], [1], [0, 0, 1, 1], [], []>} : vector<32x32xbf16>, vector<32x128xbf16>, vector<32x128xf32> -> vector<32x128xf32>
    %32 = arith.truncf %31 : vector<32x128xf32> to vector<32x128xbf16>
    %c0_28 = arith.constant 0 : index
    %c0_29 = arith.constant 0 : index
    %c0_30 = arith.constant 0 : index
    %33 = vector.load %arg6[%c0_28, %c0_29, %c0_30] : memref<3x128x256xbf16, #tpu.memory_space<vmem>>, vector<1x128x256xbf16>
    %34 = vector.shape_cast %33 : vector<1x128x256xbf16> to vector<128x256xbf16>
    %cst_31 = arith.constant dense<0.000000e+00> : vector<32x256xf32>
    %35 = tpu.matmul %32, %34, %cst_31 {dimension_numbers = #tpu.dot_dimension_numbers<[1], [0], [0], [1], [0, 0, 1, 1], [], []>} : vector<32x128xbf16>, vector<128x256xbf16>, vector<32x256xf32> -> vector<32x256xf32>
    %c1_32 = arith.constant 1 : index
    %c0_33 = arith.constant 0 : index
    %c0_34 = arith.constant 0 : index
    %36 = vector.load %arg5[%c1_32, %c0_33, %c0_34] : memref<3x32x32xbf16, #tpu.memory_space<vmem>>, vector<1x32x32xbf16>
    %37 = vector.shape_cast %36 : vector<1x32x32xbf16> to vector<32x32xbf16>
    %cst_35 = arith.constant dense<0.000000e+00> : vector<32x128xf32>
    %38 = tpu.matmul %37, %28, %cst_35 {dimension_numbers = #tpu.dot_dimension_numbers<[1], [0], [0], [1], [0, 0, 1, 1], [], []>} : vector<32x32xbf16>, vector<32x128xbf16>, vector<32x128xf32> -> vector<32x128xf32>
    %39 = arith.truncf %38 : vector<32x128xf32> to vector<32x128xbf16>
    %c1_36 = arith.constant 1 : index
    %c0_37 = arith.constant 0 : index
    %c0_38 = arith.constant 0 : index
    %40 = vector.load %arg6[%c1_36, %c0_37, %c0_38] : memref<3x128x256xbf16, #tpu.memory_space<vmem>>, vector<1x128x256xbf16>
    %41 = vector.shape_cast %40 : vector<1x128x256xbf16> to vector<128x256xbf16>
    %cst_39 = arith.constant dense<0.000000e+00> : vector<32x256xf32>
    %42 = tpu.matmul %39, %41, %cst_39 {dimension_numbers = #tpu.dot_dimension_numbers<[1], [0], [0], [1], [0, 0, 1, 1], [], []>} : vector<32x128xbf16>, vector<128x256xbf16>, vector<32x256xf32> -> vector<32x256xf32>
    %43 = arith.addf %35, %42 : vector<32x256xf32>
    %c2_40 = arith.constant 2 : index
    %c0_41 = arith.constant 0 : index
    %c0_42 = arith.constant 0 : index
    %44 = vector.load %arg5[%c2_40, %c0_41, %c0_42] : memref<3x32x32xbf16, #tpu.memory_space<vmem>>, vector<1x32x32xbf16>
    %45 = vector.shape_cast %44 : vector<1x32x32xbf16> to vector<32x32xbf16>
    %cst_43 = arith.constant dense<0.000000e+00> : vector<32x128xf32>
    %46 = tpu.matmul %45, %28, %cst_43 {dimension_numbers = #tpu.dot_dimension_numbers<[1], [0], [0], [1], [0, 0, 1, 1], [], []>} : vector<32x32xbf16>, vector<32x128xbf16>, vector<32x128xf32> -> vector<32x128xf32>
    %47 = arith.truncf %46 : vector<32x128xf32> to vector<32x128xbf16>
    %c2_44 = arith.constant 2 : index
    %c0_45 = arith.constant 0 : index
    %c0_46 = arith.constant 0 : index
    %48 = vector.load %arg6[%c2_44, %c0_45, %c0_46] : memref<3x128x256xbf16, #tpu.memory_space<vmem>>, vector<1x128x256xbf16>
    %49 = vector.shape_cast %48 : vector<1x128x256xbf16> to vector<128x256xbf16>
    %cst_47 = arith.constant dense<0.000000e+00> : vector<32x256xf32>
    %50 = tpu.matmul %47, %49, %cst_47 {dimension_numbers = #tpu.dot_dimension_numbers<[1], [0], [0], [1], [0, 0, 1, 1], [], []>} : vector<32x128xbf16>, vector<128x256xbf16>, vector<32x256xf32> -> vector<32x256xf32>
    %51 = arith.addf %43, %50 : vector<32x256xf32>
    %c0_48 = arith.constant 0 : index
    %c0_49 = arith.constant 0 : index
    %52 = vector.load %arg7[%c0_48, %c0_49] : memref<1x256xf32, #tpu.memory_space<vmem>>, vector<1x256xf32>
    %53 = vector.broadcast %52 : vector<1x256xf32> to vector<32x256xf32>
    %54 = arith.addf %51, %53 : vector<32x256xf32>
    %55 = arith.truncf %54 : vector<32x256xf32> to vector<32x256xbf16>
    %c0_50 = arith.constant 0 : index
    %c0_51 = arith.constant 0 : index
    %c0_52 = arith.constant 0 : index
    %56 = vector.load %arg8[%c0_50, %c0_51, %c0_52] : memref<3x16x32xbf16, #tpu.memory_space<vmem>>, vector<1x16x32xbf16>
    %57 = vector.shape_cast %56 : vector<1x16x32xbf16> to vector<16x32xbf16>
    %cst_53 = arith.constant dense<0.000000e+00> : vector<16x256xf32>
    %58 = tpu.matmul %57, %55, %cst_53 {dimension_numbers = #tpu.dot_dimension_numbers<[1], [0], [0], [1], [0, 0, 1, 1], [], []>} : vector<16x32xbf16>, vector<32x256xbf16>, vector<16x256xf32> -> vector<16x256xf32>
    %59 = arith.truncf %58 : vector<16x256xf32> to vector<16x256xbf16>
    %c0_54 = arith.constant 0 : index
    %c0_55 = arith.constant 0 : index
    %c0_56 = arith.constant 0 : index
    %60 = vector.load %arg9[%c0_54, %c0_55, %c0_56] : memref<3x256x256xbf16, #tpu.memory_space<vmem>>, vector<1x256x256xbf16>
    %61 = vector.shape_cast %60 : vector<1x256x256xbf16> to vector<256x256xbf16>
    %cst_57 = arith.constant dense<0.000000e+00> : vector<16x256xf32>
    %62 = tpu.matmul %59, %61, %cst_57 {dimension_numbers = #tpu.dot_dimension_numbers<[1], [0], [0], [1], [0, 0, 1, 1], [], []>} : vector<16x256xbf16>, vector<256x256xbf16>, vector<16x256xf32> -> vector<16x256xf32>
    %c1_58 = arith.constant 1 : index
    %c0_59 = arith.constant 0 : index
    %c0_60 = arith.constant 0 : index
    %63 = vector.load %arg8[%c1_58, %c0_59, %c0_60] : memref<3x16x32xbf16, #tpu.memory_space<vmem>>, vector<1x16x32xbf16>
    %64 = vector.shape_cast %63 : vector<1x16x32xbf16> to vector<16x32xbf16>
    %cst_61 = arith.constant dense<0.000000e+00> : vector<16x256xf32>
    %65 = tpu.matmul %64, %55, %cst_61 {dimension_numbers = #tpu.dot_dimension_numbers<[1], [0], [0], [1], [0, 0, 1, 1], [], []>} : vector<16x32xbf16>, vector<32x256xbf16>, vector<16x256xf32> -> vector<16x256xf32>
    %66 = arith.truncf %65 : vector<16x256xf32> to vector<16x256xbf16>
    %c1_62 = arith.constant 1 : index
    %c0_63 = arith.constant 0 : index
    %c0_64 = arith.constant 0 : index
    %67 = vector.load %arg9[%c1_62, %c0_63, %c0_64] : memref<3x256x256xbf16, #tpu.memory_space<vmem>>, vector<1x256x256xbf16>
    %68 = vector.shape_cast %67 : vector<1x256x256xbf16> to vector<256x256xbf16>
    %cst_65 = arith.constant dense<0.000000e+00> : vector<16x256xf32>
    %69 = tpu.matmul %66, %68, %cst_65 {dimension_numbers = #tpu.dot_dimension_numbers<[1], [0], [0], [1], [0, 0, 1, 1], [], []>} : vector<16x256xbf16>, vector<256x256xbf16>, vector<16x256xf32> -> vector<16x256xf32>
    %70 = arith.addf %62, %69 : vector<16x256xf32>
    %c2_66 = arith.constant 2 : index
    %c0_67 = arith.constant 0 : index
    %c0_68 = arith.constant 0 : index
    %71 = vector.load %arg8[%c2_66, %c0_67, %c0_68] : memref<3x16x32xbf16, #tpu.memory_space<vmem>>, vector<1x16x32xbf16>
    %72 = vector.shape_cast %71 : vector<1x16x32xbf16> to vector<16x32xbf16>
    %cst_69 = arith.constant dense<0.000000e+00> : vector<16x256xf32>
    %73 = tpu.matmul %72, %55, %cst_69 {dimension_numbers = #tpu.dot_dimension_numbers<[1], [0], [0], [1], [0, 0, 1, 1], [], []>} : vector<16x32xbf16>, vector<32x256xbf16>, vector<16x256xf32> -> vector<16x256xf32>
    %74 = arith.truncf %73 : vector<16x256xf32> to vector<16x256xbf16>
    %c2_70 = arith.constant 2 : index
    %c0_71 = arith.constant 0 : index
    %c0_72 = arith.constant 0 : index
    %75 = vector.load %arg9[%c2_70, %c0_71, %c0_72] : memref<3x256x256xbf16, #tpu.memory_space<vmem>>, vector<1x256x256xbf16>
    %76 = vector.shape_cast %75 : vector<1x256x256xbf16> to vector<256x256xbf16>
    %cst_73 = arith.constant dense<0.000000e+00> : vector<16x256xf32>
    %77 = tpu.matmul %74, %76, %cst_73 {dimension_numbers = #tpu.dot_dimension_numbers<[1], [0], [0], [1], [0, 0, 1, 1], [], []>} : vector<16x256xbf16>, vector<256x256xbf16>, vector<16x256xf32> -> vector<16x256xf32>
    %78 = arith.addf %70, %77 : vector<16x256xf32>
    %c0_74 = arith.constant 0 : index
    %c0_75 = arith.constant 0 : index
    %79 = vector.load %arg10[%c0_74, %c0_75] : memref<1x256xf32, #tpu.memory_space<vmem>>, vector<1x256xf32>
    %80 = vector.broadcast %79 : vector<1x256xf32> to vector<16x256xf32>
    %81 = arith.addf %78, %80 : vector<16x256xf32>
    %cst_76 = arith.constant 0.000000e+00 : f32
    %82 = vector.broadcast %cst_76 : f32 to vector<16x256xf32>
    %83 = arith.cmpf ogt, %81, %82 : vector<16x256xf32>
    %cst_77 = arith.constant 0.000000e+00 : f32
    %84 = vector.broadcast %cst_77 : f32 to vector<16x256xf32>
    %85 = arith.minimumf %81, %84 : vector<16x256xf32>
    %86 = math.exp %85 : vector<16x256xf32>
    %cst_78 = arith.constant 1.000000e+00 : f32
    %87 = vector.broadcast %cst_78 : f32 to vector<16x256xf32>
    %88 = arith.subf %86, %87 : vector<16x256xf32>
    %89 = arith.select %83, %81, %88 : vector<16x256xi1>, vector<16x256xf32>
    %90 = arith.truncf %89 : vector<16x256xf32> to vector<16x256xbf16>
    %c0_79 = arith.constant 0 : index
    %c0_80 = arith.constant 0 : index
    %91 = vector.load %arg11[%c0_79, %c0_80] : memref<256x256xbf16, #tpu.memory_space<vmem>>, vector<256x256xbf16>
    %cst_81 = arith.constant dense<0.000000e+00> : vector<16x256xf32>
    %92 = tpu.matmul %90, %91, %cst_81 {dimension_numbers = #tpu.dot_dimension_numbers<[1], [0], [0], [1], [0, 0, 1, 1], [], []>} : vector<16x256xbf16>, vector<256x256xbf16>, vector<16x256xf32> -> vector<16x256xf32>
    %c0_82 = arith.constant 0 : index
    %c0_83 = arith.constant 0 : index
    %93 = vector.load %arg12[%c0_82, %c0_83] : memref<1x256xf32, #tpu.memory_space<vmem>>, vector<1x256xf32>
    %94 = vector.broadcast %93 : vector<1x256xf32> to vector<16x256xf32>
    %95 = arith.addf %92, %94 : vector<16x256xf32>
    %cst_84 = arith.constant 0.000000e+00 : f32
    %96 = vector.broadcast %cst_84 : f32 to vector<16x256xf32>
    %97 = arith.cmpf ogt, %95, %96 : vector<16x256xf32>
    %cst_85 = arith.constant 0.000000e+00 : f32
    %98 = vector.broadcast %cst_85 : f32 to vector<16x256xf32>
    %99 = arith.minimumf %95, %98 : vector<16x256xf32>
    %100 = math.exp %99 : vector<16x256xf32>
    %cst_86 = arith.constant 1.000000e+00 : f32
    %101 = vector.broadcast %cst_86 : f32 to vector<16x256xf32>
    %102 = arith.subf %100, %101 : vector<16x256xf32>
    %103 = arith.select %97, %95, %102 : vector<16x256xi1>, vector<16x256xf32>
    %104 = arith.truncf %103 : vector<16x256xf32> to vector<16x256xbf16>
    %c0_87 = arith.constant 0 : index
    %c0_88 = arith.constant 0 : index
    %c0_89 = arith.constant 0 : index
    %105 = vector.load %arg13[%c0_87, %c0_88, %c0_89] : memref<3x8x16xbf16, #tpu.memory_space<vmem>>, vector<1x8x16xbf16>
    %106 = vector.shape_cast %105 : vector<1x8x16xbf16> to vector<8x16xbf16>
    %cst_90 = arith.constant dense<0.000000e+00> : vector<8x256xf32>
    %107 = tpu.matmul %106, %104, %cst_90 {dimension_numbers = #tpu.dot_dimension_numbers<[1], [0], [0], [1], [0, 0, 1, 1], [], []>} : vector<8x16xbf16>, vector<16x256xbf16>, vector<8x256xf32> -> vector<8x256xf32>
    %108 = arith.truncf %107 : vector<8x256xf32> to vector<8x256xbf16>
    %c0_91 = arith.constant 0 : index
    %c0_92 = arith.constant 0 : index
    %c0_93 = arith.constant 0 : index
    %109 = vector.load %arg14[%c0_91, %c0_92, %c0_93] : memref<3x256x256xbf16, #tpu.memory_space<vmem>>, vector<1x256x256xbf16>
    %110 = vector.shape_cast %109 : vector<1x256x256xbf16> to vector<256x256xbf16>
    %cst_94 = arith.constant dense<0.000000e+00> : vector<8x256xf32>
    %111 = tpu.matmul %108, %110, %cst_94 {dimension_numbers = #tpu.dot_dimension_numbers<[1], [0], [0], [1], [0, 0, 1, 1], [], []>} : vector<8x256xbf16>, vector<256x256xbf16>, vector<8x256xf32> -> vector<8x256xf32>
    %c1_95 = arith.constant 1 : index
    %c0_96 = arith.constant 0 : index
    %c0_97 = arith.constant 0 : index
    %112 = vector.load %arg13[%c1_95, %c0_96, %c0_97] : memref<3x8x16xbf16, #tpu.memory_space<vmem>>, vector<1x8x16xbf16>
    %113 = vector.shape_cast %112 : vector<1x8x16xbf16> to vector<8x16xbf16>
    %cst_98 = arith.constant dense<0.000000e+00> : vector<8x256xf32>
    %114 = tpu.matmul %113, %104, %cst_98 {dimension_numbers = #tpu.dot_dimension_numbers<[1], [0], [0], [1], [0, 0, 1, 1], [], []>} : vector<8x16xbf16>, vector<16x256xbf16>, vector<8x256xf32> -> vector<8x256xf32>
    %115 = arith.truncf %114 : vector<8x256xf32> to vector<8x256xbf16>
    %c1_99 = arith.constant 1 : index
    %c0_100 = arith.constant 0 : index
    %c0_101 = arith.constant 0 : index
    %116 = vector.load %arg14[%c1_99, %c0_100, %c0_101] : memref<3x256x256xbf16, #tpu.memory_space<vmem>>, vector<1x256x256xbf16>
    %117 = vector.shape_cast %116 : vector<1x256x256xbf16> to vector<256x256xbf16>
    %cst_102 = arith.constant dense<0.000000e+00> : vector<8x256xf32>
    %118 = tpu.matmul %115, %117, %cst_102 {dimension_numbers = #tpu.dot_dimension_numbers<[1], [0], [0], [1], [0, 0, 1, 1], [], []>} : vector<8x256xbf16>, vector<256x256xbf16>, vector<8x256xf32> -> vector<8x256xf32>
    %119 = arith.addf %111, %118 : vector<8x256xf32>
    %c2_103 = arith.constant 2 : index
    %c0_104 = arith.constant 0 : index
    %c0_105 = arith.constant 0 : index
    %120 = vector.load %arg13[%c2_103, %c0_104, %c0_105] : memref<3x8x16xbf16, #tpu.memory_space<vmem>>, vector<1x8x16xbf16>
    %121 = vector.shape_cast %120 : vector<1x8x16xbf16> to vector<8x16xbf16>
    %cst_106 = arith.constant dense<0.000000e+00> : vector<8x256xf32>
    %122 = tpu.matmul %121, %104, %cst_106 {dimension_numbers = #tpu.dot_dimension_numbers<[1], [0], [0], [1], [0, 0, 1, 1], [], []>} : vector<8x16xbf16>, vector<16x256xbf16>, vector<8x256xf32> -> vector<8x256xf32>
    %123 = arith.truncf %122 : vector<8x256xf32> to vector<8x256xbf16>
    %c2_107 = arith.constant 2 : index
    %c0_108 = arith.constant 0 : index
    %c0_109 = arith.constant 0 : index
    %124 = vector.load %arg14[%c2_107, %c0_108, %c0_109] : memref<3x256x256xbf16, #tpu.memory_space<vmem>>, vector<1x256x256xbf16>
    %125 = vector.shape_cast %124 : vector<1x256x256xbf16> to vector<256x256xbf16>
    %cst_110 = arith.constant dense<0.000000e+00> : vector<8x256xf32>
    %126 = tpu.matmul %123, %125, %cst_110 {dimension_numbers = #tpu.dot_dimension_numbers<[1], [0], [0], [1], [0, 0, 1, 1], [], []>} : vector<8x256xbf16>, vector<256x256xbf16>, vector<8x256xf32> -> vector<8x256xf32>
    %127 = arith.addf %119, %126 : vector<8x256xf32>
    %c0_111 = arith.constant 0 : index
    %c0_112 = arith.constant 0 : index
    %128 = vector.load %arg15[%c0_111, %c0_112] : memref<1x256xf32, #tpu.memory_space<vmem>>, vector<1x256xf32>
    %129 = vector.broadcast %128 : vector<1x256xf32> to vector<8x256xf32>
    %130 = arith.addf %127, %129 : vector<8x256xf32>
    %cst_113 = arith.constant 0.000000e+00 : f32
    %131 = vector.broadcast %cst_113 : f32 to vector<8x256xf32>
    %132 = arith.cmpf ogt, %130, %131 : vector<8x256xf32>
    %cst_114 = arith.constant 0.000000e+00 : f32
    %133 = vector.broadcast %cst_114 : f32 to vector<8x256xf32>
    %134 = arith.minimumf %130, %133 : vector<8x256xf32>
    %135 = math.exp %134 : vector<8x256xf32>
    %cst_115 = arith.constant 1.000000e+00 : f32
    %136 = vector.broadcast %cst_115 : f32 to vector<8x256xf32>
    %137 = arith.subf %135, %136 : vector<8x256xf32>
    %138 = arith.select %132, %130, %137 : vector<8x256xi1>, vector<8x256xf32>
    %139 = arith.truncf %138 : vector<8x256xf32> to vector<8x256xbf16>
    %c0_116 = arith.constant 0 : index
    %c0_117 = arith.constant 0 : index
    %140 = vector.load %arg16[%c0_116, %c0_117] : memref<256x256xbf16, #tpu.memory_space<vmem>>, vector<256x256xbf16>
    %cst_118 = arith.constant dense<0.000000e+00> : vector<8x256xf32>
    %141 = tpu.matmul %139, %140, %cst_118 {dimension_numbers = #tpu.dot_dimension_numbers<[1], [0], [0], [1], [0, 0, 1, 1], [], []>} : vector<8x256xbf16>, vector<256x256xbf16>, vector<8x256xf32> -> vector<8x256xf32>
    %c0_119 = arith.constant 0 : index
    %c0_120 = arith.constant 0 : index
    %142 = vector.load %arg17[%c0_119, %c0_120] : memref<1x256xf32, #tpu.memory_space<vmem>>, vector<1x256xf32>
    %143 = vector.broadcast %142 : vector<1x256xf32> to vector<8x256xf32>
    %144 = arith.addf %141, %143 : vector<8x256xf32>
    %cst_121 = arith.constant 0.000000e+00 : f32
    %145 = vector.broadcast %cst_121 : f32 to vector<8x256xf32>
    %146 = arith.cmpf ogt, %144, %145 : vector<8x256xf32>
    %cst_122 = arith.constant 0.000000e+00 : f32
    %147 = vector.broadcast %cst_122 : f32 to vector<8x256xf32>
    %148 = arith.minimumf %144, %147 : vector<8x256xf32>
    %149 = math.exp %148 : vector<8x256xf32>
    %cst_123 = arith.constant 1.000000e+00 : f32
    %150 = vector.broadcast %cst_123 : f32 to vector<8x256xf32>
    %151 = arith.subf %149, %150 : vector<8x256xf32>
    %152 = arith.select %146, %144, %151 : vector<8x256xi1>, vector<8x256xf32>
    %153 = arith.truncf %152 : vector<8x256xf32> to vector<8x256xbf16>
    %c0_124 = arith.constant 0 : index
    %c0_125 = arith.constant 0 : index
    %154 = vector.load %arg18[%c0_124, %c0_125] : memref<256x256xbf16, #tpu.memory_space<vmem>>, vector<256x256xbf16>
    %cst_126 = arith.constant dense<0.000000e+00> : vector<8x256xf32>
    %155 = tpu.matmul %153, %154, %cst_126 {dimension_numbers = #tpu.dot_dimension_numbers<[1], [0], [0], [1], [0, 0, 1, 1], [], []>} : vector<8x256xbf16>, vector<256x256xbf16>, vector<8x256xf32> -> vector<8x256xf32>
    %c0_127 = arith.constant 0 : index
    %c0_128 = arith.constant 0 : index
    %156 = vector.load %arg19[%c0_127, %c0_128] : memref<1x256xf32, #tpu.memory_space<vmem>>, vector<1x256xf32>
    %157 = vector.broadcast %156 : vector<1x256xf32> to vector<8x256xf32>
    %158 = arith.addf %155, %157 : vector<8x256xf32>
    %cst_129 = arith.constant 0.000000e+00 : f32
    %159 = vector.broadcast %cst_129 : f32 to vector<8x256xf32>
    %160 = arith.cmpf ogt, %158, %159 : vector<8x256xf32>
    %cst_130 = arith.constant 0.000000e+00 : f32
    %161 = vector.broadcast %cst_130 : f32 to vector<8x256xf32>
    %162 = arith.minimumf %158, %161 : vector<8x256xf32>
    %163 = math.exp %162 : vector<8x256xf32>
    %cst_131 = arith.constant 1.000000e+00 : f32
    %164 = vector.broadcast %cst_131 : f32 to vector<8x256xf32>
    %165 = arith.subf %163, %164 : vector<8x256xf32>
    %166 = arith.select %160, %158, %165 : vector<8x256xi1>, vector<8x256xf32>
    %167 = arith.truncf %166 : vector<8x256xf32> to vector<8x256xbf16>
    %c0_132 = arith.constant 0 : index
    %c0_133 = arith.constant 0 : index
    %c0_134 = arith.constant 0 : index
    %168 = vector.load %arg20[%c0_132, %c0_133, %c0_134] : memref<4x2x8xbf16, #tpu.memory_space<vmem>>, vector<1x2x8xbf16>
    %169 = vector.shape_cast %168 : vector<1x2x8xbf16> to vector<2x8xbf16>
    %cst_135 = arith.constant dense<0.000000e+00> : vector<2x256xf32>
    %170 = tpu.matmul %169, %167, %cst_135 {dimension_numbers = #tpu.dot_dimension_numbers<[1], [0], [0], [1], [0, 0, 1, 1], [], []>} : vector<2x8xbf16>, vector<8x256xbf16>, vector<2x256xf32> -> vector<2x256xf32>
    %171 = arith.truncf %170 : vector<2x256xf32> to vector<2x256xbf16>
    %c0_136 = arith.constant 0 : index
    %c0_137 = arith.constant 0 : index
    %c0_138 = arith.constant 0 : index
    %172 = vector.load %arg21[%c0_136, %c0_137, %c0_138] : memref<4x256x512xbf16, #tpu.memory_space<vmem>>, vector<1x256x512xbf16>
    %173 = vector.shape_cast %172 : vector<1x256x512xbf16> to vector<256x512xbf16>
    %cst_139 = arith.constant dense<0.000000e+00> : vector<2x512xf32>
    %174 = tpu.matmul %171, %173, %cst_139 {dimension_numbers = #tpu.dot_dimension_numbers<[1], [0], [0], [1], [0, 0, 1, 1], [], []>} : vector<2x256xbf16>, vector<256x512xbf16>, vector<2x512xf32> -> vector<2x512xf32>
    %c1_140 = arith.constant 1 : index
    %c0_141 = arith.constant 0 : index
    %c0_142 = arith.constant 0 : index
    %175 = vector.load %arg20[%c1_140, %c0_141, %c0_142] : memref<4x2x8xbf16, #tpu.memory_space<vmem>>, vector<1x2x8xbf16>
    %176 = vector.shape_cast %175 : vector<1x2x8xbf16> to vector<2x8xbf16>
    %cst_143 = arith.constant dense<0.000000e+00> : vector<2x256xf32>
    %177 = tpu.matmul %176, %167, %cst_143 {dimension_numbers = #tpu.dot_dimension_numbers<[1], [0], [0], [1], [0, 0, 1, 1], [], []>} : vector<2x8xbf16>, vector<8x256xbf16>, vector<2x256xf32> -> vector<2x256xf32>
    %178 = arith.truncf %177 : vector<2x256xf32> to vector<2x256xbf16>
    %c1_144 = arith.constant 1 : index
    %c0_145 = arith.constant 0 : index
    %c0_146 = arith.constant 0 : index
    %179 = vector.load %arg21[%c1_144, %c0_145, %c0_146] : memref<4x256x512xbf16, #tpu.memory_space<vmem>>, vector<1x256x512xbf16>
    %180 = vector.shape_cast %179 : vector<1x256x512xbf16> to vector<256x512xbf16>
    %cst_147 = arith.constant dense<0.000000e+00> : vector<2x512xf32>
    %181 = tpu.matmul %178, %180, %cst_147 {dimension_numbers = #tpu.dot_dimension_numbers<[1], [0], [0], [1], [0, 0, 1, 1], [], []>} : vector<2x256xbf16>, vector<256x512xbf16>, vector<2x512xf32> -> vector<2x512xf32>
    %182 = arith.addf %174, %181 : vector<2x512xf32>
    %c2_148 = arith.constant 2 : index
    %c0_149 = arith.constant 0 : index
    %c0_150 = arith.constant 0 : index
    %183 = vector.load %arg20[%c2_148, %c0_149, %c0_150] : memref<4x2x8xbf16, #tpu.memory_space<vmem>>, vector<1x2x8xbf16>
    %184 = vector.shape_cast %183 : vector<1x2x8xbf16> to vector<2x8xbf16>
    %cst_151 = arith.constant dense<0.000000e+00> : vector<2x256xf32>
    %185 = tpu.matmul %184, %167, %cst_151 {dimension_numbers = #tpu.dot_dimension_numbers<[1], [0], [0], [1], [0, 0, 1, 1], [], []>} : vector<2x8xbf16>, vector<8x256xbf16>, vector<2x256xf32> -> vector<2x256xf32>
    %186 = arith.truncf %185 : vector<2x256xf32> to vector<2x256xbf16>
    %c2_152 = arith.constant 2 : index
    %c0_153 = arith.constant 0 : index
    %c0_154 = arith.constant 0 : index
    %187 = vector.load %arg21[%c2_152, %c0_153, %c0_154] : memref<4x256x512xbf16, #tpu.memory_space<vmem>>, vector<1x256x512xbf16>
    %188 = vector.shape_cast %187 : vector<1x256x512xbf16> to vector<256x512xbf16>
    %cst_155 = arith.constant dense<0.000000e+00> : vector<2x512xf32>
    %189 = tpu.matmul %186, %188, %cst_155 {dimension_numbers = #tpu.dot_dimension_numbers<[1], [0], [0], [1], [0, 0, 1, 1], [], []>} : vector<2x256xbf16>, vector<256x512xbf16>, vector<2x512xf32> -> vector<2x512xf32>
    %190 = arith.addf %182, %189 : vector<2x512xf32>
    %c3 = arith.constant 3 : index
    %c0_156 = arith.constant 0 : index
    %c0_157 = arith.constant 0 : index
    %191 = vector.load %arg20[%c3, %c0_156, %c0_157] : memref<4x2x8xbf16, #tpu.memory_space<vmem>>, vector<1x2x8xbf16>
    %192 = vector.shape_cast %191 : vector<1x2x8xbf16> to vector<2x8xbf16>
    %cst_158 = arith.constant dense<0.000000e+00> : vector<2x256xf32>
    %193 = tpu.matmul %192, %167, %cst_158 {dimension_numbers = #tpu.dot_dimension_numbers<[1], [0], [0], [1], [0, 0, 1, 1], [], []>} : vector<2x8xbf16>, vector<8x256xbf16>, vector<2x256xf32> -> vector<2x256xf32>
    %194 = arith.truncf %193 : vector<2x256xf32> to vector<2x256xbf16>
    %c3_159 = arith.constant 3 : index
    %c0_160 = arith.constant 0 : index
    %c0_161 = arith.constant 0 : index
    %195 = vector.load %arg21[%c3_159, %c0_160, %c0_161] : memref<4x256x512xbf16, #tpu.memory_space<vmem>>, vector<1x256x512xbf16>
    %196 = vector.shape_cast %195 : vector<1x256x512xbf16> to vector<256x512xbf16>
    %cst_162 = arith.constant dense<0.000000e+00> : vector<2x512xf32>
    %197 = tpu.matmul %194, %196, %cst_162 {dimension_numbers = #tpu.dot_dimension_numbers<[1], [0], [0], [1], [0, 0, 1, 1], [], []>} : vector<2x256xbf16>, vector<256x512xbf16>, vector<2x512xf32> -> vector<2x512xf32>
    %198 = arith.addf %190, %197 : vector<2x512xf32>
    %c0_163 = arith.constant 0 : index
    %c0_164 = arith.constant 0 : index
    %199 = vector.load %arg22[%c0_163, %c0_164] : memref<1x512xf32, #tpu.memory_space<vmem>>, vector<1x512xf32>
    %200 = vector.broadcast %199 : vector<1x512xf32> to vector<2x512xf32>
    %201 = arith.addf %198, %200 : vector<2x512xf32>
    %cst_165 = arith.constant 0.000000e+00 : f32
    %202 = vector.broadcast %cst_165 : f32 to vector<2x512xf32>
    %203 = arith.cmpf ogt, %201, %202 : vector<2x512xf32>
    %cst_166 = arith.constant 0.000000e+00 : f32
    %204 = vector.broadcast %cst_166 : f32 to vector<2x512xf32>
    %205 = arith.minimumf %201, %204 : vector<2x512xf32>
    %206 = math.exp %205 : vector<2x512xf32>
    %cst_167 = arith.constant 1.000000e+00 : f32
    %207 = vector.broadcast %cst_167 : f32 to vector<2x512xf32>
    %208 = arith.subf %206, %207 : vector<2x512xf32>
    %209 = arith.select %203, %201, %208 : vector<2x512xi1>, vector<2x512xf32>
    %210 = arith.truncf %209 : vector<2x512xf32> to vector<2x512xbf16>
    %c0_168 = arith.constant 0 : index
    %c0_169 = arith.constant 0 : index
    %211 = vector.load %arg23[%c0_168, %c0_169] : memref<512x512xbf16, #tpu.memory_space<vmem>>, vector<512x512xbf16>
    %cst_170 = arith.constant dense<0.000000e+00> : vector<2x512xf32>
    %212 = tpu.matmul %210, %211, %cst_170 {dimension_numbers = #tpu.dot_dimension_numbers<[1], [0], [0], [1], [0, 0, 1, 1], [], []>} : vector<2x512xbf16>, vector<512x512xbf16>, vector<2x512xf32> -> vector<2x512xf32>
    %c0_171 = arith.constant 0 : index
    %c0_172 = arith.constant 0 : index
    %213 = vector.load %arg24[%c0_171, %c0_172] : memref<1x512xf32, #tpu.memory_space<vmem>>, vector<1x512xf32>
    %214 = vector.broadcast %213 : vector<1x512xf32> to vector<2x512xf32>
    %215 = arith.addf %212, %214 : vector<2x512xf32>
    %cst_173 = arith.constant 0.000000e+00 : f32
    %216 = vector.broadcast %cst_173 : f32 to vector<2x512xf32>
    %217 = arith.cmpf ogt, %215, %216 : vector<2x512xf32>
    %cst_174 = arith.constant 0.000000e+00 : f32
    %218 = vector.broadcast %cst_174 : f32 to vector<2x512xf32>
    %219 = arith.minimumf %215, %218 : vector<2x512xf32>
    %220 = math.exp %219 : vector<2x512xf32>
    %cst_175 = arith.constant 1.000000e+00 : f32
    %221 = vector.broadcast %cst_175 : f32 to vector<2x512xf32>
    %222 = arith.subf %220, %221 : vector<2x512xf32>
    %223 = arith.select %217, %215, %222 : vector<2x512xi1>, vector<2x512xf32>
    %224 = vector.extract_strided_slice %223 {offsets = [0, 0], sizes = [2, 256], strides = [1, 1]} : vector<2x512xf32> to vector<2x256xf32>
    %225 = vector.extract_strided_slice %223 {offsets = [0, 256], sizes = [2, 256], strides = [1, 1]} : vector<2x512xf32> to vector<2x256xf32>
    %c0_176 = arith.constant 0 : index
    %c0_177 = arith.constant 0 : index
    %226 = vector.load %arg1[%c0_176, %c0_177] : memref<2x256xf32, #tpu.memory_space<vmem>>, vector<2x256xf32>
    %cst_178 = arith.constant 5.000000e-01 : f32
    %227 = vector.broadcast %cst_178 : f32 to vector<2x256xf32>
    %228 = arith.mulf %225, %227 : vector<2x256xf32>
    %229 = math.exp %228 : vector<2x256xf32>
    %230 = arith.mulf %226, %229 : vector<2x256xf32>
    %231 = arith.addf %224, %230 : vector<2x256xf32>
    %232 = arith.truncf %231 : vector<2x256xf32> to vector<2x256xbf16>
    %c0_179 = arith.constant 0 : index
    %c0_180 = arith.constant 0 : index
    %c0_181 = arith.constant 0 : index
    %233 = vector.load %arg25[%c0_179, %c0_180, %c0_181] : memref<4x8x2xbf16, #tpu.memory_space<vmem>>, vector<1x8x2xbf16>
    %234 = vector.shape_cast %233 : vector<1x8x2xbf16> to vector<8x2xbf16>
    %cst_182 = arith.constant dense<0.000000e+00> : vector<8x256xf32>
    %235 = tpu.matmul %234, %232, %cst_182 {dimension_numbers = #tpu.dot_dimension_numbers<[1], [0], [0], [1], [0, 0, 1, 1], [], []>} : vector<8x2xbf16>, vector<2x256xbf16>, vector<8x256xf32> -> vector<8x256xf32>
    %236 = arith.truncf %235 : vector<8x256xf32> to vector<8x256xbf16>
    %c0_183 = arith.constant 0 : index
    %c0_184 = arith.constant 0 : index
    %c0_185 = arith.constant 0 : index
    %237 = vector.load %arg26[%c0_183, %c0_184, %c0_185] : memref<4x256x256xbf16, #tpu.memory_space<vmem>>, vector<1x256x256xbf16>
    %238 = vector.shape_cast %237 : vector<1x256x256xbf16> to vector<256x256xbf16>
    %cst_186 = arith.constant dense<0.000000e+00> : vector<8x256xf32>
    %239 = tpu.matmul %236, %238, %cst_186 {dimension_numbers = #tpu.dot_dimension_numbers<[1], [0], [0], [1], [0, 0, 1, 1], [], []>} : vector<8x256xbf16>, vector<256x256xbf16>, vector<8x256xf32> -> vector<8x256xf32>
    %c1_187 = arith.constant 1 : index
    %c0_188 = arith.constant 0 : index
    %c0_189 = arith.constant 0 : index
    %240 = vector.load %arg25[%c1_187, %c0_188, %c0_189] : memref<4x8x2xbf16, #tpu.memory_space<vmem>>, vector<1x8x2xbf16>
    %241 = vector.shape_cast %240 : vector<1x8x2xbf16> to vector<8x2xbf16>
    %cst_190 = arith.constant dense<0.000000e+00> : vector<8x256xf32>
    %242 = tpu.matmul %241, %232, %cst_190 {dimension_numbers = #tpu.dot_dimension_numbers<[1], [0], [0], [1], [0, 0, 1, 1], [], []>} : vector<8x2xbf16>, vector<2x256xbf16>, vector<8x256xf32> -> vector<8x256xf32>
    %243 = arith.truncf %242 : vector<8x256xf32> to vector<8x256xbf16>
    %c1_191 = arith.constant 1 : index
    %c0_192 = arith.constant 0 : index
    %c0_193 = arith.constant 0 : index
    %244 = vector.load %arg26[%c1_191, %c0_192, %c0_193] : memref<4x256x256xbf16, #tpu.memory_space<vmem>>, vector<1x256x256xbf16>
    %245 = vector.shape_cast %244 : vector<1x256x256xbf16> to vector<256x256xbf16>
    %cst_194 = arith.constant dense<0.000000e+00> : vector<8x256xf32>
    %246 = tpu.matmul %243, %245, %cst_194 {dimension_numbers = #tpu.dot_dimension_numbers<[1], [0], [0], [1], [0, 0, 1, 1], [], []>} : vector<8x256xbf16>, vector<256x256xbf16>, vector<8x256xf32> -> vector<8x256xf32>
    %247 = arith.addf %239, %246 : vector<8x256xf32>
    %c2_195 = arith.constant 2 : index
    %c0_196 = arith.constant 0 : index
    %c0_197 = arith.constant 0 : index
    %248 = vector.load %arg25[%c2_195, %c0_196, %c0_197] : memref<4x8x2xbf16, #tpu.memory_space<vmem>>, vector<1x8x2xbf16>
    %249 = vector.shape_cast %248 : vector<1x8x2xbf16> to vector<8x2xbf16>
    %cst_198 = arith.constant dense<0.000000e+00> : vector<8x256xf32>
    %250 = tpu.matmul %249, %232, %cst_198 {dimension_numbers = #tpu.dot_dimension_numbers<[1], [0], [0], [1], [0, 0, 1, 1], [], []>} : vector<8x2xbf16>, vector<2x256xbf16>, vector<8x256xf32> -> vector<8x256xf32>
    %251 = arith.truncf %250 : vector<8x256xf32> to vector<8x256xbf16>
    %c2_199 = arith.constant 2 : index
    %c0_200 = arith.constant 0 : index
    %c0_201 = arith.constant 0 : index
    %252 = vector.load %arg26[%c2_199, %c0_200, %c0_201] : memref<4x256x256xbf16, #tpu.memory_space<vmem>>, vector<1x256x256xbf16>
    %253 = vector.shape_cast %252 : vector<1x256x256xbf16> to vector<256x256xbf16>
    %cst_202 = arith.constant dense<0.000000e+00> : vector<8x256xf32>
    %254 = tpu.matmul %251, %253, %cst_202 {dimension_numbers = #tpu.dot_dimension_numbers<[1], [0], [0], [1], [0, 0, 1, 1], [], []>} : vector<8x256xbf16>, vector<256x256xbf16>, vector<8x256xf32> -> vector<8x256xf32>
    %255 = arith.addf %247, %254 : vector<8x256xf32>
    %c3_203 = arith.constant 3 : index
    %c0_204 = arith.constant 0 : index
    %c0_205 = arith.constant 0 : index
    %256 = vector.load %arg25[%c3_203, %c0_204, %c0_205] : memref<4x8x2xbf16, #tpu.memory_space<vmem>>, vector<1x8x2xbf16>
    %257 = vector.shape_cast %256 : vector<1x8x2xbf16> to vector<8x2xbf16>
    %cst_206 = arith.constant dense<0.000000e+00> : vector<8x256xf32>
    %258 = tpu.matmul %257, %232, %cst_206 {dimension_numbers = #tpu.dot_dimension_numbers<[1], [0], [0], [1], [0, 0, 1, 1], [], []>} : vector<8x2xbf16>, vector<2x256xbf16>, vector<8x256xf32> -> vector<8x256xf32>
    %259 = arith.truncf %258 : vector<8x256xf32> to vector<8x256xbf16>
    %c3_207 = arith.constant 3 : index
    %c0_208 = arith.constant 0 : index
    %c0_209 = arith.constant 0 : index
    %260 = vector.load %arg26[%c3_207, %c0_208, %c0_209] : memref<4x256x256xbf16, #tpu.memory_space<vmem>>, vector<1x256x256xbf16>
    %261 = vector.shape_cast %260 : vector<1x256x256xbf16> to vector<256x256xbf16>
    %cst_210 = arith.constant dense<0.000000e+00> : vector<8x256xf32>
    %262 = tpu.matmul %259, %261, %cst_210 {dimension_numbers = #tpu.dot_dimension_numbers<[1], [0], [0], [1], [0, 0, 1, 1], [], []>} : vector<8x256xbf16>, vector<256x256xbf16>, vector<8x256xf32> -> vector<8x256xf32>
    %263 = arith.addf %255, %262 : vector<8x256xf32>
    %c0_211 = arith.constant 0 : index
    %c0_212 = arith.constant 0 : index
    %264 = vector.load %arg27[%c0_211, %c0_212] : memref<1x256xf32, #tpu.memory_space<vmem>>, vector<1x256xf32>
    %265 = vector.broadcast %264 : vector<1x256xf32> to vector<8x256xf32>
    %266 = arith.addf %263, %265 : vector<8x256xf32>
    %cst_213 = arith.constant 0.000000e+00 : f32
    %267 = vector.broadcast %cst_213 : f32 to vector<8x256xf32>
    %268 = arith.cmpf ogt, %266, %267 : vector<8x256xf32>
    %cst_214 = arith.constant 0.000000e+00 : f32
    %269 = vector.broadcast %cst_214 : f32 to vector<8x256xf32>
    %270 = arith.minimumf %266, %269 : vector<8x256xf32>
    %271 = math.exp %270 : vector<8x256xf32>
    %cst_215 = arith.constant 1.000000e+00 : f32
    %272 = vector.broadcast %cst_215 : f32 to vector<8x256xf32>
    %273 = arith.subf %271, %272 : vector<8x256xf32>
    %274 = arith.select %268, %266, %273 : vector<8x256xi1>, vector<8x256xf32>
    %275 = arith.truncf %274 : vector<8x256xf32> to vector<8x256xbf16>
    %c0_216 = arith.constant 0 : index
    %c0_217 = arith.constant 0 : index
    %276 = vector.load %arg28[%c0_216, %c0_217] : memref<256x256xbf16, #tpu.memory_space<vmem>>, vector<256x256xbf16>
    %cst_218 = arith.constant dense<0.000000e+00> : vector<8x256xf32>
    %277 = tpu.matmul %275, %276, %cst_218 {dimension_numbers = #tpu.dot_dimension_numbers<[1], [0], [0], [1], [0, 0, 1, 1], [], []>} : vector<8x256xbf16>, vector<256x256xbf16>, vector<8x256xf32> -> vector<8x256xf32>
    %c0_219 = arith.constant 0 : index
    %c0_220 = arith.constant 0 : index
    %278 = vector.load %arg29[%c0_219, %c0_220] : memref<1x256xf32, #tpu.memory_space<vmem>>, vector<1x256xf32>
    %279 = vector.broadcast %278 : vector<1x256xf32> to vector<8x256xf32>
    %280 = arith.addf %277, %279 : vector<8x256xf32>
    %cst_221 = arith.constant 0.000000e+00 : f32
    %281 = vector.broadcast %cst_221 : f32 to vector<8x256xf32>
    %282 = arith.cmpf ogt, %280, %281 : vector<8x256xf32>
    %cst_222 = arith.constant 0.000000e+00 : f32
    %283 = vector.broadcast %cst_222 : f32 to vector<8x256xf32>
    %284 = arith.minimumf %280, %283 : vector<8x256xf32>
    %285 = math.exp %284 : vector<8x256xf32>
    %cst_223 = arith.constant 1.000000e+00 : f32
    %286 = vector.broadcast %cst_223 : f32 to vector<8x256xf32>
    %287 = arith.subf %285, %286 : vector<8x256xf32>
    %288 = arith.select %282, %280, %287 : vector<8x256xi1>, vector<8x256xf32>
    %289 = arith.truncf %288 : vector<8x256xf32> to vector<8x256xbf16>
    %c0_224 = arith.constant 0 : index
    %c0_225 = arith.constant 0 : index
    %c0_226 = arith.constant 0 : index
    %290 = vector.load %arg30[%c0_224, %c0_225, %c0_226] : memref<3x16x8xbf16, #tpu.memory_space<vmem>>, vector<1x16x8xbf16>
    %291 = vector.shape_cast %290 : vector<1x16x8xbf16> to vector<16x8xbf16>
    %cst_227 = arith.constant dense<0.000000e+00> : vector<16x256xf32>
    %292 = tpu.matmul %291, %289, %cst_227 {dimension_numbers = #tpu.dot_dimension_numbers<[1], [0], [0], [1], [0, 0, 1, 1], [], []>} : vector<16x8xbf16>, vector<8x256xbf16>, vector<16x256xf32> -> vector<16x256xf32>
    %293 = arith.truncf %292 : vector<16x256xf32> to vector<16x256xbf16>
    %c0_228 = arith.constant 0 : index
    %c0_229 = arith.constant 0 : index
    %c0_230 = arith.constant 0 : index
    %294 = vector.load %arg31[%c0_228, %c0_229, %c0_230] : memref<3x256x256xbf16, #tpu.memory_space<vmem>>, vector<1x256x256xbf16>
    %295 = vector.shape_cast %294 : vector<1x256x256xbf16> to vector<256x256xbf16>
    %cst_231 = arith.constant dense<0.000000e+00> : vector<16x256xf32>
    %296 = tpu.matmul %293, %295, %cst_231 {dimension_numbers = #tpu.dot_dimension_numbers<[1], [0], [0], [1], [0, 0, 1, 1], [], []>} : vector<16x256xbf16>, vector<256x256xbf16>, vector<16x256xf32> -> vector<16x256xf32>
    %c1_232 = arith.constant 1 : index
    %c0_233 = arith.constant 0 : index
    %c0_234 = arith.constant 0 : index
    %297 = vector.load %arg30[%c1_232, %c0_233, %c0_234] : memref<3x16x8xbf16, #tpu.memory_space<vmem>>, vector<1x16x8xbf16>
    %298 = vector.shape_cast %297 : vector<1x16x8xbf16> to vector<16x8xbf16>
    %cst_235 = arith.constant dense<0.000000e+00> : vector<16x256xf32>
    %299 = tpu.matmul %298, %289, %cst_235 {dimension_numbers = #tpu.dot_dimension_numbers<[1], [0], [0], [1], [0, 0, 1, 1], [], []>} : vector<16x8xbf16>, vector<8x256xbf16>, vector<16x256xf32> -> vector<16x256xf32>
    %300 = arith.truncf %299 : vector<16x256xf32> to vector<16x256xbf16>
    %c1_236 = arith.constant 1 : index
    %c0_237 = arith.constant 0 : index
    %c0_238 = arith.constant 0 : index
    %301 = vector.load %arg31[%c1_236, %c0_237, %c0_238] : memref<3x256x256xbf16, #tpu.memory_space<vmem>>, vector<1x256x256xbf16>
    %302 = vector.shape_cast %301 : vector<1x256x256xbf16> to vector<256x256xbf16>
    %cst_239 = arith.constant dense<0.000000e+00> : vector<16x256xf32>
    %303 = tpu.matmul %300, %302, %cst_239 {dimension_numbers = #tpu.dot_dimension_numbers<[1], [0], [0], [1], [0, 0, 1, 1], [], []>} : vector<16x256xbf16>, vector<256x256xbf16>, vector<16x256xf32> -> vector<16x256xf32>
    %304 = arith.addf %296, %303 : vector<16x256xf32>
    %c2_240 = arith.constant 2 : index
    %c0_241 = arith.constant 0 : index
    %c0_242 = arith.constant 0 : index
    %305 = vector.load %arg30[%c2_240, %c0_241, %c0_242] : memref<3x16x8xbf16, #tpu.memory_space<vmem>>, vector<1x16x8xbf16>
    %306 = vector.shape_cast %305 : vector<1x16x8xbf16> to vector<16x8xbf16>
    %cst_243 = arith.constant dense<0.000000e+00> : vector<16x256xf32>
    %307 = tpu.matmul %306, %289, %cst_243 {dimension_numbers = #tpu.dot_dimension_numbers<[1], [0], [0], [1], [0, 0, 1, 1], [], []>} : vector<16x8xbf16>, vector<8x256xbf16>, vector<16x256xf32> -> vector<16x256xf32>
    %308 = arith.truncf %307 : vector<16x256xf32> to vector<16x256xbf16>
    %c2_244 = arith.constant 2 : index
    %c0_245 = arith.constant 0 : index
    %c0_246 = arith.constant 0 : index
    %309 = vector.load %arg31[%c2_244, %c0_245, %c0_246] : memref<3x256x256xbf16, #tpu.memory_space<vmem>>, vector<1x256x256xbf16>
    %310 = vector.shape_cast %309 : vector<1x256x256xbf16> to vector<256x256xbf16>
    %cst_247 = arith.constant dense<0.000000e+00> : vector<16x256xf32>
    %311 = tpu.matmul %308, %310, %cst_247 {dimension_numbers = #tpu.dot_dimension_numbers<[1], [0], [0], [1], [0, 0, 1, 1], [], []>} : vector<16x256xbf16>, vector<256x256xbf16>, vector<16x256xf32> -> vector<16x256xf32>
    %312 = arith.addf %304, %311 : vector<16x256xf32>
    %c0_248 = arith.constant 0 : index
    %c0_249 = arith.constant 0 : index
    %313 = vector.load %arg32[%c0_248, %c0_249] : memref<1x256xf32, #tpu.memory_space<vmem>>, vector<1x256xf32>
    %314 = vector.broadcast %313 : vector<1x256xf32> to vector<16x256xf32>
    %315 = arith.addf %312, %314 : vector<16x256xf32>
    %cst_250 = arith.constant 0.000000e+00 : f32
    %316 = vector.broadcast %cst_250 : f32 to vector<16x256xf32>
    %317 = arith.cmpf ogt, %315, %316 : vector<16x256xf32>
    %cst_251 = arith.constant 0.000000e+00 : f32
    %318 = vector.broadcast %cst_251 : f32 to vector<16x256xf32>
    %319 = arith.minimumf %315, %318 : vector<16x256xf32>
    %320 = math.exp %319 : vector<16x256xf32>
    %cst_252 = arith.constant 1.000000e+00 : f32
    %321 = vector.broadcast %cst_252 : f32 to vector<16x256xf32>
    %322 = arith.subf %320, %321 : vector<16x256xf32>
    %323 = arith.select %317, %315, %322 : vector<16x256xi1>, vector<16x256xf32>
    %324 = arith.truncf %323 : vector<16x256xf32> to vector<16x256xbf16>
    %c0_253 = arith.constant 0 : index
    %c0_254 = arith.constant 0 : index
    %325 = vector.load %arg33[%c0_253, %c0_254] : memref<256x256xbf16, #tpu.memory_space<vmem>>, vector<256x256xbf16>
    %cst_255 = arith.constant dense<0.000000e+00> : vector<16x256xf32>
    %326 = tpu.matmul %324, %325, %cst_255 {dimension_numbers = #tpu.dot_dimension_numbers<[1], [0], [0], [1], [0, 0, 1, 1], [], []>} : vector<16x256xbf16>, vector<256x256xbf16>, vector<16x256xf32> -> vector<16x256xf32>
    %c0_256 = arith.constant 0 : index
    %c0_257 = arith.constant 0 : index
    %327 = vector.load %arg34[%c0_256, %c0_257] : memref<1x256xf32, #tpu.memory_space<vmem>>, vector<1x256xf32>
    %328 = vector.broadcast %327 : vector<1x256xf32> to vector<16x256xf32>
    %329 = arith.addf %326, %328 : vector<16x256xf32>
    %cst_258 = arith.constant 0.000000e+00 : f32
    %330 = vector.broadcast %cst_258 : f32 to vector<16x256xf32>
    %331 = arith.cmpf ogt, %329, %330 : vector<16x256xf32>
    %cst_259 = arith.constant 0.000000e+00 : f32
    %332 = vector.broadcast %cst_259 : f32 to vector<16x256xf32>
    %333 = arith.minimumf %329, %332 : vector<16x256xf32>
    %334 = math.exp %333 : vector<16x256xf32>
    %cst_260 = arith.constant 1.000000e+00 : f32
    %335 = vector.broadcast %cst_260 : f32 to vector<16x256xf32>
    %336 = arith.subf %334, %335 : vector<16x256xf32>
    %337 = arith.select %331, %329, %336 : vector<16x256xi1>, vector<16x256xf32>
    %338 = arith.truncf %337 : vector<16x256xf32> to vector<16x256xbf16>
    %c0_261 = arith.constant 0 : index
    %c0_262 = arith.constant 0 : index
    %c0_263 = arith.constant 0 : index
    %339 = vector.load %arg35[%c0_261, %c0_262, %c0_263] : memref<3x32x16xbf16, #tpu.memory_space<vmem>>, vector<1x32x16xbf16>
    %340 = vector.shape_cast %339 : vector<1x32x16xbf16> to vector<32x16xbf16>
    %cst_264 = arith.constant dense<0.000000e+00> : vector<32x256xf32>
    %341 = tpu.matmul %340, %338, %cst_264 {dimension_numbers = #tpu.dot_dimension_numbers<[1], [0], [0], [1], [0, 0, 1, 1], [], []>} : vector<32x16xbf16>, vector<16x256xbf16>, vector<32x256xf32> -> vector<32x256xf32>
    %342 = arith.truncf %341 : vector<32x256xf32> to vector<32x256xbf16>
    %c0_265 = arith.constant 0 : index
    %c0_266 = arith.constant 0 : index
    %c0_267 = arith.constant 0 : index
    %343 = vector.load %arg36[%c0_265, %c0_266, %c0_267] : memref<3x256x256xbf16, #tpu.memory_space<vmem>>, vector<1x256x256xbf16>
    %344 = vector.shape_cast %343 : vector<1x256x256xbf16> to vector<256x256xbf16>
    %cst_268 = arith.constant dense<0.000000e+00> : vector<32x256xf32>
    %345 = tpu.matmul %342, %344, %cst_268 {dimension_numbers = #tpu.dot_dimension_numbers<[1], [0], [0], [1], [0, 0, 1, 1], [], []>} : vector<32x256xbf16>, vector<256x256xbf16>, vector<32x256xf32> -> vector<32x256xf32>
    %c1_269 = arith.constant 1 : index
    %c0_270 = arith.constant 0 : index
    %c0_271 = arith.constant 0 : index
    %346 = vector.load %arg35[%c1_269, %c0_270, %c0_271] : memref<3x32x16xbf16, #tpu.memory_space<vmem>>, vector<1x32x16xbf16>
    %347 = vector.shape_cast %346 : vector<1x32x16xbf16> to vector<32x16xbf16>
    %cst_272 = arith.constant dense<0.000000e+00> : vector<32x256xf32>
    %348 = tpu.matmul %347, %338, %cst_272 {dimension_numbers = #tpu.dot_dimension_numbers<[1], [0], [0], [1], [0, 0, 1, 1], [], []>} : vector<32x16xbf16>, vector<16x256xbf16>, vector<32x256xf32> -> vector<32x256xf32>
    %349 = arith.truncf %348 : vector<32x256xf32> to vector<32x256xbf16>
    %c1_273 = arith.constant 1 : index
    %c0_274 = arith.constant 0 : index
    %c0_275 = arith.constant 0 : index
    %350 = vector.load %arg36[%c1_273, %c0_274, %c0_275] : memref<3x256x256xbf16, #tpu.memory_space<vmem>>, vector<1x256x256xbf16>
    %351 = vector.shape_cast %350 : vector<1x256x256xbf16> to vector<256x256xbf16>
    %cst_276 = arith.constant dense<0.000000e+00> : vector<32x256xf32>
    %352 = tpu.matmul %349, %351, %cst_276 {dimension_numbers = #tpu.dot_dimension_numbers<[1], [0], [0], [1], [0, 0, 1, 1], [], []>} : vector<32x256xbf16>, vector<256x256xbf16>, vector<32x256xf32> -> vector<32x256xf32>
    %353 = arith.addf %345, %352 : vector<32x256xf32>
    %c2_277 = arith.constant 2 : index
    %c0_278 = arith.constant 0 : index
    %c0_279 = arith.constant 0 : index
    %354 = vector.load %arg35[%c2_277, %c0_278, %c0_279] : memref<3x32x16xbf16, #tpu.memory_space<vmem>>, vector<1x32x16xbf16>
    %355 = vector.shape_cast %354 : vector<1x32x16xbf16> to vector<32x16xbf16>
    %cst_280 = arith.constant dense<0.000000e+00> : vector<32x256xf32>
    %356 = tpu.matmul %355, %338, %cst_280 {dimension_numbers = #tpu.dot_dimension_numbers<[1], [0], [0], [1], [0, 0, 1, 1], [], []>} : vector<32x16xbf16>, vector<16x256xbf16>, vector<32x256xf32> -> vector<32x256xf32>
    %357 = arith.truncf %356 : vector<32x256xf32> to vector<32x256xbf16>
    %c2_281 = arith.constant 2 : index
    %c0_282 = arith.constant 0 : index
    %c0_283 = arith.constant 0 : index
    %358 = vector.load %arg36[%c2_281, %c0_282, %c0_283] : memref<3x256x256xbf16, #tpu.memory_space<vmem>>, vector<1x256x256xbf16>
    %359 = vector.shape_cast %358 : vector<1x256x256xbf16> to vector<256x256xbf16>
    %cst_284 = arith.constant dense<0.000000e+00> : vector<32x256xf32>
    %360 = tpu.matmul %357, %359, %cst_284 {dimension_numbers = #tpu.dot_dimension_numbers<[1], [0], [0], [1], [0, 0, 1, 1], [], []>} : vector<32x256xbf16>, vector<256x256xbf16>, vector<32x256xf32> -> vector<32x256xf32>
    %361 = arith.addf %353, %360 : vector<32x256xf32>
    %c0_285 = arith.constant 0 : index
    %c0_286 = arith.constant 0 : index
    %362 = vector.load %arg37[%c0_285, %c0_286] : memref<1x256xf32, #tpu.memory_space<vmem>>, vector<1x256xf32>
    %363 = vector.broadcast %362 : vector<1x256xf32> to vector<32x256xf32>
    %364 = arith.addf %361, %363 : vector<32x256xf32>
    %365 = arith.truncf %364 : vector<32x256xf32> to vector<32x256xbf16>
    %c0_287 = arith.constant 0 : index
    %c0_288 = arith.constant 0 : index
    %c0_289 = arith.constant 0 : index
    %366 = vector.load %arg38[%c0_287, %c0_288, %c0_289] : memref<3x32x32xbf16, #tpu.memory_space<vmem>>, vector<1x32x32xbf16>
    %367 = vector.shape_cast %366 : vector<1x32x32xbf16> to vector<32x32xbf16>
    %cst_290 = arith.constant dense<0.000000e+00> : vector<32x256xf32>
    %368 = tpu.matmul %367, %365, %cst_290 {dimension_numbers = #tpu.dot_dimension_numbers<[1], [0], [0], [1], [0, 0, 1, 1], [], []>} : vector<32x32xbf16>, vector<32x256xbf16>, vector<32x256xf32> -> vector<32x256xf32>
    %369 = arith.truncf %368 : vector<32x256xf32> to vector<32x256xbf16>
    %c0_291 = arith.constant 0 : index
    %c0_292 = arith.constant 0 : index
    %c0_293 = arith.constant 0 : index
    %370 = vector.load %arg39[%c0_291, %c0_292, %c0_293] : memref<3x256x48xbf16, #tpu.memory_space<vmem>>, vector<1x256x48xbf16>
    %371 = vector.shape_cast %370 : vector<1x256x48xbf16> to vector<256x48xbf16>
    %cst_294 = arith.constant dense<0.000000e+00> : vector<32x48xf32>
    %372 = tpu.matmul %369, %371, %cst_294 {dimension_numbers = #tpu.dot_dimension_numbers<[1], [0], [0], [1], [0, 0, 1, 1], [], []>} : vector<32x256xbf16>, vector<256x48xbf16>, vector<32x48xf32> -> vector<32x48xf32>
    %c1_295 = arith.constant 1 : index
    %c0_296 = arith.constant 0 : index
    %c0_297 = arith.constant 0 : index
    %373 = vector.load %arg38[%c1_295, %c0_296, %c0_297] : memref<3x32x32xbf16, #tpu.memory_space<vmem>>, vector<1x32x32xbf16>
    %374 = vector.shape_cast %373 : vector<1x32x32xbf16> to vector<32x32xbf16>
    %cst_298 = arith.constant dense<0.000000e+00> : vector<32x256xf32>
    %375 = tpu.matmul %374, %365, %cst_298 {dimension_numbers = #tpu.dot_dimension_numbers<[1], [0], [0], [1], [0, 0, 1, 1], [], []>} : vector<32x32xbf16>, vector<32x256xbf16>, vector<32x256xf32> -> vector<32x256xf32>
    %376 = arith.truncf %375 : vector<32x256xf32> to vector<32x256xbf16>
    %c1_299 = arith.constant 1 : index
    %c0_300 = arith.constant 0 : index
    %c0_301 = arith.constant 0 : index
    %377 = vector.load %arg39[%c1_299, %c0_300, %c0_301] : memref<3x256x48xbf16, #tpu.memory_space<vmem>>, vector<1x256x48xbf16>
    %378 = vector.shape_cast %377 : vector<1x256x48xbf16> to vector<256x48xbf16>
    %cst_302 = arith.constant dense<0.000000e+00> : vector<32x48xf32>
    %379 = tpu.matmul %376, %378, %cst_302 {dimension_numbers = #tpu.dot_dimension_numbers<[1], [0], [0], [1], [0, 0, 1, 1], [], []>} : vector<32x256xbf16>, vector<256x48xbf16>, vector<32x48xf32> -> vector<32x48xf32>
    %380 = arith.addf %372, %379 : vector<32x48xf32>
    %c2_303 = arith.constant 2 : index
    %c0_304 = arith.constant 0 : index
    %c0_305 = arith.constant 0 : index
    %381 = vector.load %arg38[%c2_303, %c0_304, %c0_305] : memref<3x32x32xbf16, #tpu.memory_space<vmem>>, vector<1x32x32xbf16>
    %382 = vector.shape_cast %381 : vector<1x32x32xbf16> to vector<32x32xbf16>
    %cst_306 = arith.constant dense<0.000000e+00> : vector<32x256xf32>
    %383 = tpu.matmul %382, %365, %cst_306 {dimension_numbers = #tpu.dot_dimension_numbers<[1], [0], [0], [1], [0, 0, 1, 1], [], []>} : vector<32x32xbf16>, vector<32x256xbf16>, vector<32x256xf32> -> vector<32x256xf32>
    %384 = arith.truncf %383 : vector<32x256xf32> to vector<32x256xbf16>
    %c2_307 = arith.constant 2 : index
    %c0_308 = arith.constant 0 : index
    %c0_309 = arith.constant 0 : index
    %385 = vector.load %arg39[%c2_307, %c0_308, %c0_309] : memref<3x256x48xbf16, #tpu.memory_space<vmem>>, vector<1x256x48xbf16>
    %386 = vector.shape_cast %385 : vector<1x256x48xbf16> to vector<256x48xbf16>
    %cst_310 = arith.constant dense<0.000000e+00> : vector<32x48xf32>
    %387 = tpu.matmul %384, %386, %cst_310 {dimension_numbers = #tpu.dot_dimension_numbers<[1], [0], [0], [1], [0, 0, 1, 1], [], []>} : vector<32x256xbf16>, vector<256x48xbf16>, vector<32x48xf32> -> vector<32x48xf32>
    %388 = arith.addf %380, %387 : vector<32x48xf32>
    %c0_311 = arith.constant 0 : index
    %c0_312 = arith.constant 0 : index
    %389 = vector.load %arg40[%c0_311, %c0_312] : memref<1x48xf32, #tpu.memory_space<vmem>>, vector<1x48xf32>
    %390 = vector.broadcast %389 : vector<1x48xf32> to vector<32x48xf32>
    %391 = arith.addf %388, %390 : vector<32x48xf32>
    %c0_313 = arith.constant 0 : index
    %c0_314 = arith.constant 0 : index
    %392 = vector.load %arg41[%c0_313, %c0_314] : memref<32x48xf32, #tpu.memory_space<vmem>>, vector<32x48xf32>
    tpu.vector_store %arg41[%c0_313, %c0_314], %391 {strides = array<i32>} : memref<32x48xf32, #tpu.memory_space<vmem>>, vector<32x48xf32>,
    %c0_315 = arith.constant 0 : index
    %c0_316 = arith.constant 0 : index
    %393 = vector.load %arg42[%c0_315, %c0_316] : memref<2x256xf32, #tpu.memory_space<vmem>>, vector<2x256xf32>
    tpu.vector_store %arg42[%c0_315, %c0_316], %224 {strides = array<i32>} : memref<2x256xf32, #tpu.memory_space<vmem>>, vector<2x256xf32>,
    %c0_317 = arith.constant 0 : index
    %c0_318 = arith.constant 0 : index
    %394 = vector.load %arg43[%c0_317, %c0_318] : memref<2x256xf32, #tpu.memory_space<vmem>>, vector<2x256xf32>
    tpu.vector_store %arg43[%c0_317, %c0_318], %225 {strides = array<i32>} : memref<2x256xf32, #tpu.memory_space<vmem>>, vector<2x256xf32>,
    return
  }
}

</mosaic_0001>

<bundles_post_ra>
// kernel: _vae_forward.1
= control target key start
LH: loop header
LB: loop body
LE: loop exit
PB: predicated region body
PF: predicated region fallthrough
CT: control target
= control target key end

     0   :  { %s16225_s6 = smov 1   ;;  %s16226_s10 = smov 2   ;;  %s17324_s0 = inlined_call_operand.smem [shape: u32[44], index: -1, kind: input, shape index: {}] }
   0x1   :  { %s16316_s5 = sld [smem:[%s17324_s0]]   ;;  %s16227_s14 = smov 3  }
   0x2   :  { %s16321_s9 = sld [smem:[%s17324_s0 + %s16225_s6]]   ;;  %s16228_s18 = smov 4  }
   0x3   :  { %s16326_s13 = sld [smem:[%s17324_s0 + %s16226_s10]]   ;;  %s16229_s22 = smov 5  }
   0x4   :  { %s16331_s17 = sld [smem:[%s17324_s0 + %s16227_s14]]   ;;  %s16230_s26 = smov 6  }
   0x5   :  { %s16336_s21 = sld [smem:[%s17324_s0 + %s16228_s18]]   ;;  %s16231_s30 = smov 7  }
   0x6   :  { %s16341_s25 = sld [smem:[%s17324_s0 + %s16229_s22]]   ;;  %s16232_s4 = smov 8  }
   0x7   :  { %17348 = sst [smem:[#allocation65_spill]] %s16316_s5  ;;  %s16233_s10 = smov 9  }
   0x8   :  { %17349 = sst [smem:[#allocation66_spill]] %s16321_s9  ;;  %s16234_s15 = smov 10  }
   0x9   :  { %17350 = sst [smem:[#allocation67_spill]] %s16326_s13  ;;  %s16235_s20 = smov 11  }
   0xa   :  { %s16346_s29 = sld [smem:[%s17324_s0 + %s16230_s26]]   ;;  %s16236_s26 = smov 12  }
   0xb   :  { %17351 = sst [smem:[#allocation68_spill]] %s16336_s21  ;;  %s16237_s1 = smov 13  }
   0xc   :  { %17352 = sst [smem:[#allocation69_spill]] %s16341_s25  ;;  %s16238_s7 = smov 14  }
   0xd   :  { %s16351_s3 = sld [smem:[%s17324_s0 + %s16231_s30]]   ;;  %s16240_s22 = smov 16  }
   0xe   :  { %s16356_s8 = sld [smem:[%s17324_s0 + %s16232_s4]]   ;;  %s16241_s28 = smov 17  }
   0xf   :  { %s16361_s14 = sld [smem:[%s17324_s0 + %s16233_s10]]  }
  0x10   :  { %s16366_s19 = sld [smem:[%s17324_s0 + %s16234_s15]]   ;;  %s16239_s15 = smov 15  }
  0x11   :  { %s16371_s24 = sld [smem:[%s17324_s0 + %s16235_s20]]  }
  0x12   :  { %s16376_s30 = sld [smem:[%s17324_s0 + %s16236_s26]]  }
  0x13   :  { %17353 = sst [smem:[#allocation70_spill]] %s16351_s3 }
  0x14   :  { %s16381_s6 = sld [smem:[%s17324_s0 + %s16237_s1]]  }
  0x15   :  { %17354 = sst [smem:[#allocation71_spill]] %s16361_s14 }
  0x16   :  { %s16386_s12 = sld [smem:[%s17324_s0 + %s16238_s7]]   ;;  %s16242_s7 = smov 18  }
  0x17   :  { %17355 = sst [smem:[#allocation72_spill]] %s16371_s24 }
  0x18   :  { %s16391_s20 = sld [smem:[%s17324_s0 + %s16239_s15]]   ;;  %s16243_s15 = smov 19  }
  0x19   :  { %s16396_s27 = sld [smem:[%s17324_s0 + %s16240_s22]]   ;;  %s16244_s22 = smov 20  }
  0x1a   :  { %17356 = sst [smem:[#allocation73_spill]] %s16381_s6 }
  0x1b   :  { %s16401_s4 = sld [smem:[%s17324_s0 + %s16241_s28]]   ;;  %s16245_s28 = smov 21  }
  0x1c   :  { %s16406_s9 = sld [smem:[%s17324_s0 + %s16242_s7]]   ;;  %s16246_s7 = smov 22  }
  0x1d   :  { %s16411_s21 = sld [smem:[%s17324_s0 + %s16243_s15]]   ;;  %s16247_s15 = smov 23  }
  0x1e   :  { %17357 = sst [smem:[#allocation74_spill]] %s16391_s20 }
  0x1f   :  { %s16416_s5 = sld [smem:[%s17324_s0 + %s16244_s22]]   ;;  %s16248_s22 = smov 24  }
  0x20   :  { %s16426_s20 = sld [smem:[%s17324_s0 + %s16246_s7]]   ;;  %s16250_s7 = smov 26  }
  0x21   :  { %17358 = sst [smem:[#allocation75_spill]] %s16401_s4 }
  0x22   :  { %s16421_s4 = sld [smem:[%s17324_s0 + %s16245_s28]]   ;;  %s16249_s28 = smov 25  }
  0x23   :  { %17359 = sst [smem:[#allocation76_spill]] %s16411_s21 }
  0x24   :  { %s16431_s21 = sld [smem:[%s17324_s0 + %s16247_s15]]   ;;  %s16251_s15 = smov 27  }
  0x25   :  { %s16436_s6 = sld [smem:[%s17324_s0 + %s16248_s22]]   ;;  %s16252_s22 = smov 28  }
  0x26   :  { %s16446_s24 = sld [smem:[%s17324_s0 + %s16250_s7]]   ;;  %s16254_s7 = smov 30  }
  0x27   :  { %s16466_s14 = sld [smem:[%s17324_s0 + %s16254_s7]]   ;;  %s16258_s7 = smov 34  }
  0x28   :  { %17360 = sst [smem:[#allocation77_spill]] %s16421_s4 }
  0x29   :  { %s16441_s4 = sld [smem:[%s17324_s0 + %s16249_s28]]   ;;  %s16253_s28 = smov 29  }
  0x2a   :  { %17361 = sst [smem:[#allocation78_spill]] %s16431_s21 }
  0x2b   :  { %17362 = sst [smem:[#allocation79_spill]] %s16436_s6 }
  0x2c   :  { %s16451_s21 = sld [smem:[%s17324_s0 + %s16251_s15]]   ;;  %s16255_s15 = smov 31  }
  0x2d   :  { %s16456_s6 = sld [smem:[%s17324_s0 + %s16252_s22]]   ;;  %s16256_s22 = smov 32  }
  0x2e   :  { %17366 = sst [smem:[#allocation83_spill]] %s16466_s14 }
  0x2f   :  { %17363 = sst [smem:[#allocation80_spill]] %s16441_s4 }
  0x30   :  { %s16461_s4 = sld [smem:[%s17324_s0 + %s16253_s28]]   ;;  %s16257_s28 = smov 33  }
  0x31   :  { %s16476_s3 = sld [smem:[%s17324_s0 + %s16256_s22]]   ;;  %s16260_s22 = smov 36  }
  0x32   :  { %17364 = sst [smem:[#allocation81_spill]] %s16451_s21 }
  0x33   :  { %s16471_s21 = sld [smem:[%s17324_s0 + %s16255_s15]]   ;;  %s16259_s15 = smov 35  }
  0x34   :  { %s16486_s14 = sld [smem:[%s17324_s0 + %s16258_s7]]   ;;  %s16262_s7 = smov 38  }
  0x35   :  { %s16491_s25 = sld [smem:[%s17324_s0 + %s16259_s15]]   ;;  %s16263_s15 = smov 39  }
  0x36   :  { %17365 = sst [smem:[#allocation82_spill]] %s16461_s4 }
  0x37   :  { %17367 = sst [smem:[#allocation84_spill]] %s16476_s3 }
  0x38   :  { %s16481_s4 = sld [smem:[%s17324_s0 + %s16257_s28]]   ;;  %s16261_s28 = smov 37  }
  0x39   :  { %s16496_s3 = sld [smem:[%s17324_s0 + %s16260_s22]]   ;;  %s16264_s22 = smov 40  }
  0x3a   :  { %17368 = sst [smem:[#allocation85_spill]] %s16486_s14 }
  0x3b   :  { %17369 = sst [smem:[#allocation86_spill]] %s16491_s25 }
  0x3c   :  { %s16501_s13 = sld [smem:[%s17324_s0 + %s16261_s28]]   ;;  %s16265_s28 = smov 41  }
  0x3d   :  { %s16506_s14 = sld [smem:[%s17324_s0 + %s16262_s7]]   ;;  %s16266_s7 = smov 42  }
  0x3e   :  { %s16511_s25 = sld [smem:[%s17324_s0 + %s16263_s15]]   ;;  %s16267_s15 = smov 43  }
  0x3f   :  { %17370 = sst [smem:[#allocation87_spill]] %s16496_s3 }
  0x40   :  { %s16516_s3 = sld [smem:[%s17324_s0 + %s16264_s22]]  }
  0x42   :  { %17371 = sst [smem:[#allocation88_spill]] %s16501_s13 }
  0x43   :  { %17372 = sst [smem:[#allocation89_spill]] %s16506_s14 }
  0x44   :  { %17373 = sst [smem:[#allocation90_spill]] %s16511_s25 }
  0x45   :  { %s16521_s13 = sld [smem:[%s17324_s0 + %s16265_s28]]  }
  0x46   :  { %s16526_s14 = sld [smem:[%s17324_s0 + %s16266_s7]]  }
  0x47   :  { %s16531_s25 = sld [smem:[%s17324_s0 + %s16267_s15]]  }
  0x48   :  { %93 = vsyncpa [#allocation3], 0 }
  0x49   :  { %94 = vsyncpa [#allocation5], 0 }
  0x4a   :  { %95 = vsyncpa [#allocation8], 0 }
  0x4b   :  { %96 = vsyncpa [#allocation11], 0 }
  0x4c   :  { %97 = vsyncpa [#allocation14], 0 }
  0x4d   :  { %98 = vsyncpa [#allocation17], 0 }
  0x4e   :  { %99 = vsyncpa [#allocation20], 0 }
  0x4f   :  { %100 = vsyncpa [#allocation23], 0 }
  0x50   :  { %101 = vsyncpa [#allocation26], 0 }
  0x51   :  { %102 = vsyncpa [#allocation29], 0 }
  0x52   :  { %103 = vsyncpa [#allocation32], 0 }
  0x53   :  { %104 = vsyncpa [#allocation35], 0 }
  0x54   :  { %105 = vsyncpa [#allocation38], 0 }
  0x55   :  { %106 = vsyncpa [#allocation41], 0 }
  0x56   :  { %107 = vsyncpa [#allocation44], 0 }
  0x57   :  { %108 = vsyncpa [#allocation47], 0  ;;  %s16268_s0 = smov [#allocation4]   ;;  %s16269_s23 = smov [#allocation7]  }
  0x58   :  { %s130_s22 = sshll.u32 %s16268_s0, 4  ;;  %s156_s26 = sshll.u32 %s16269_s23, 4  ;;  %s131_s22 = int_to_ptr.vmem [resolvable:$true] %s130_s22  ;;  %s16533_s26 = int_to_ptr.vmem [resolvable:$true] %s156_s26 }
  0x59   :  { %s15511_s28 = scalar_lea.hbm %s16331_s17, 1152 }
  0x5a   :  { %p15512_p0 = scmp.ne.s32.totalorder %s16331_s17, %s15511_s28  ;;  %p15515_p1 = scmp.lt.u32.totalorder %s15511_s28, %s16331_s17 }
  0x5c   :  { %p15517_p2 = pnand %p15515_p1, %p15512_p0 }
  0x5e   :  { %15520 = shalt.err (!%p15517_p2)
}
  0x5f   :  { %s15521_s1 = scalar_lea.vmem %s131_s22, 1152  ;;  %p15526_p4 = scmp.lt.s32.totalorder %s131_s22, %s131_s22 }
  0x60   :  { %p15522_p3 = scmp.ne.s32.totalorder %s131_s22, %s15521_s1  ;;  %p15527_p5 = scmp.lt.s32.totalorder %s15521_s1, %s15521_s1 }
  0x62   :  { %p15528_p6 = por %p15527_p5, %p15526_p4 }
  0x64   :  { %p15529_p7 = pnand %p15528_p6, %p15522_p3 }
  0x66   :  { %15532 = shalt.err (!%p15529_p7)
}
  0x67   :  { %s16270_s2 = smov 64   ;;  %s16271_s7 = smov 4  }
  0x68   :  { %136 = dma.hbm_to_vmem [thread:$0]  %s16331_s17, 1152, %s131_s22, [#allocation5], %s16270_s2, %s16270_s2, %s16271_s7  }
  0x69   :  { %s15533_s10 = scalar_lea.hbm %s16346_s29, 6144 }
  0x6a   :  { %p15534_p8 = scmp.ne.s32.totalorder %s16346_s29, %s15533_s10  ;;  %p15537_p9 = scmp.lt.u32.totalorder %s15533_s10, %s16346_s29 }
  0x6c   :  { %p15539_p10 = pnand %p15537_p9, %p15534_p8 }
  0x6e   :  { %15542 = shalt.err (!%p15539_p10)
}
  0x6f   :  { %s15543_s11 = scalar_lea.vmem %s16533_s26, 6144  ;;  %p15548_p12 = scmp.lt.s32.totalorder %s16533_s26, %s16533_s26 }
  0x70   :  { %p15544_p11 = scmp.ne.s32.totalorder %s16533_s26, %s15543_s11  ;;  %p15549_p13 = scmp.lt.s32.totalorder %s15543_s11, %s15543_s11 }
  0x72   :  { %p15550_p0 = por %p15549_p13, %p15548_p12 }
  0x74   :  { %p15551_p1 = pnand %p15550_p0, %p15544_p11 }
  0x76   :  { %15554 = shalt.err (!%p15551_p1)
}
  0x77   :  { %s16272_s15 = smov 128   ;;  %s16273_s17 = smov 8  }
  0x78   :  { %162 = dma.hbm_to_vmem [thread:$0]  %s16346_s29, 6144, %s16533_s26, [#allocation8], %s16272_s15, %s16272_s15, %s16273_s17  }
  0x79   :  { %s16274_s16 = smov [#allocation10]   ;;  %s16275_s0 = smov [#allocation13]  }
  0x7a   :  { %s178_s18 = sshll.u32 %s16274_s16, 4  ;;  %s203_s22 = sshll.u32 %s16275_s0, 4  ;;  %s179_s18 = int_to_ptr.vmem [resolvable:$true] %s178_s18  ;;  %s204_s22 = int_to_ptr.vmem [resolvable:$true] %s203_s22 }
  0x7b   :  { %s15555_s23 = scalar_lea.hbm %s16356_s8, 384 }
  0x7c   :  { %p15556_p2 = scmp.ne.s32.totalorder %s16356_s8, %s15555_s23  ;;  %p15559_p3 = scmp.lt.u32.totalorder %s15555_s23, %s16356_s8 }
  0x7e   :  { %p15561_p4 = pnand %p15559_p3, %p15556_p2 }
  0x80   :  { %15564 = shalt.err (!%p15561_p4)
}
  0x81   :  { %s15565_s28 = scalar_lea.vmem %s179_s18, 384  ;;  %p15570_p6 = scmp.lt.s32.totalorder %s179_s18, %s179_s18 }
  0x82   :  { %p15566_p5 = scmp.ne.s32.totalorder %s179_s18, %s15565_s28  ;;  %p15571_p7 = scmp.lt.s32.totalorder %s15565_s28, %s15565_s28 }
  0x84   :  { %p15572_p8 = por %p15571_p7, %p15570_p6 }
  0x86   :  { %p15573_p9 = pnand %p15572_p8, %p15566_p5 }
  0x88   :  { %15576 = shalt.err (!%p15573_p9)
}
  0x89   :  { %184 = dma.hbm_to_vmem [thread:$0]  %s16356_s8, 384, %s179_s18, [#allocation11], %s16270_s2, %s16270_s2, %s16271_s7  }
  0x8a   :  { %s15577_s29 = scalar_lea.hbm %s16366_s19, 32 }
  0x8b   :  { %p15578_p10 = scmp.ne.s32.totalorder %s16366_s19, %s15577_s29  ;;  %p15581_p11 = scmp.lt.u32.totalorder %s15577_s29, %s16366_s19 }
  0x8d   :  { %p15583_p12 = pnand %p15581_p11, %p15578_p10 }
  0x8f   :  { %15586 = shalt.err (!%p15583_p12)
}
  0x90   :  { %s15587_s26 = scalar_lea.vmem %s204_s22, 32  ;;  %p15592_p0 = scmp.lt.s32.totalorder %s204_s22, %s204_s22 }
  0x91   :  { %p15588_p13 = scmp.ne.s32.totalorder %s204_s22, %s15587_s26  ;;  %p15593_p1 = scmp.lt.s32.totalorder %s15587_s26, %s15587_s26 }
  0x93   :  { %p15594_p2 = por %p15593_p1, %p15592_p0 }
  0x95   :  { %p15595_p3 = pnand %p15594_p2, %p15588_p13 }
  0x97   :  { %15598 = shalt.err (!%p15595_p3)
}
  0x98   :  { %206 = dma.hbm_to_vmem [thread:$0]  %s16366_s19, 32, %s204_s22, [#allocation14]  }
  0x99   :  { %s16276_s1 = smov [#allocation16]   ;;  %s16277_s8 = smov [#allocation19]  }
  0x9a   :  { %s225_s10 = sshll.u32 %s16276_s1, 4  ;;  %s246_s11 = sshll.u32 %s16277_s8, 4  ;;  %s226_s10 = int_to_ptr.vmem [resolvable:$true] %s225_s10  ;;  %s16565_s11 = int_to_ptr.vmem [resolvable:$true] %s246_s11 }
  0x9b   :  { %s15599_s16 = scalar_lea.hbm %s16376_s30, 32 }
  0x9c   :  { %p15600_p4 = scmp.ne.s32.totalorder %s16376_s30, %s15599_s16  ;;  %p15603_p5 = scmp.lt.u32.totalorder %s15599_s16, %s16376_s30 }
  0x9e   :  { %p15605_p6 = pnand %p15603_p5, %p15600_p4 }
  0xa0   :  { %15608 = shalt.err (!%p15605_p6)
}
  0xa1   :  { %s15609_s18 = scalar_lea.vmem %s226_s10, 32  ;;  %p15614_p8 = scmp.lt.s32.totalorder %s226_s10, %s226_s10 }
  0xa2   :  { %p15610_p7 = scmp.ne.s32.totalorder %s226_s10, %s15609_s18  ;;  %p15615_p9 = scmp.lt.s32.totalorder %s15609_s18, %s15609_s18 }
  0xa4   :  { %p15616_p10 = por %p15615_p9, %p15614_p8 }
  0xa6   :  { %p15617_p11 = pnand %p15616_p10, %p15610_p7 }
  0xa8   :  { %15620 = shalt.err (!%p15617_p11)
}
  0xa9   :  { %228 = dma.hbm_to_vmem [thread:$0]  %s16376_s30, 32, %s226_s10, [#allocation17]  }
  0xaa   :  { %s15621_s19 = scalar_lea.hbm %s16386_s12, 12288 }
  0xab   :  { %p15622_p12 = scmp.ne.s32.totalorder %s16386_s12, %s15621_s19  ;;  %p15625_p13 = scmp.lt.u32.totalorder %s15621_s19, %s16386_s12 }
  0xad   :  { %p15627_p0 = pnand %p15625_p13, %p15622_p12 }
  0xaf   :  { %15630 = shalt.err (!%p15627_p0)
}
  0xb0   :  { %s15631_s0 = scalar_lea.vmem %s16565_s11, 12288  ;;  %p15636_p2 = scmp.lt.s32.totalorder %s16565_s11, %s16565_s11 }
  0xb1   :  { %p15632_p1 = scmp.ne.s32.totalorder %s16565_s11, %s15631_s0  ;;  %p15637_p3 = scmp.lt.s32.totalorder %s15631_s0, %s15631_s0 }
  0xb3   :  { %p15638_p4 = por %p15637_p3, %p15636_p2 }
  0xb5   :  { %p15639_p5 = pnand %p15638_p4, %p15632_p1 }
  0xb7   :  { %15642 = shalt.err (!%p15639_p5)
}
  0xb8   :  { %252 = dma.hbm_to_vmem [thread:$0]  %s16386_s12, 12288, %s16565_s11, [#allocation20], %s16272_s15, %s16272_s15, %s16273_s17  }
  0xb9   :  { %s16278_s30 = smov [#allocation22]   ;;  %s16279_s23 = smov [#allocation25]  }
  0xba   :  { %s268_s22 = sshll.u32 %s16278_s30, 4  ;;  %s290_s28 = sshll.u32 %s16279_s23, 4  ;;  %s269_s22 = int_to_ptr.vmem [resolvable:$true] %s268_s22  ;;  %s16583_s28 = int_to_ptr.vmem [resolvable:$true] %s290_s28 }
  0xbb   :  { %s15643_s29 = scalar_lea.hbm %s16396_s27, 4096 }
  0xbc   :  { %p15644_p6 = scmp.ne.s32.totalorder %s16396_s27, %s15643_s29  ;;  %p15647_p7 = scmp.lt.u32.totalorder %s15643_s29, %s16396_s27 }
  0xbe   :  { %p15649_p8 = pnand %p15647_p7, %p15644_p6 }
  0xc0   :  { %15652 = shalt.err (!%p15649_p8)
}
  0xc1   :  { %s15653_s26 = scalar_lea.vmem %s269_s22, 4096  ;;  %p15658_p10 = scmp.lt.s32.totalorder %s269_s22, %s269_s22 }
  0xc2   :  { %p15654_p9 = scmp.ne.s32.totalorder %s269_s22, %s15653_s26  ;;  %p15659_p11 = scmp.lt.s32.totalorder %s15653_s26, %s15653_s26 }
  0xc4   :  { %p15660_p12 = por %p15659_p11, %p15658_p10 }
  0xc6   :  { %p15661_p13 = pnand %p15660_p12, %p15654_p9 }
  0xc8   :  { %15664 = shalt.err (!%p15661_p13)
}
  0xc9   :  { %274 = dma.hbm_to_vmem [thread:$0]  %s16396_s27, 4096, %s269_s22, [#allocation23], %s16272_s15, %s16272_s15, %s16273_s17  }
  0xca   :  { %s15665_s12 = scalar_lea.hbm %s16406_s9, 4096 }
  0xcb   :  { %p15666_p0 = scmp.ne.s32.totalorder %s16406_s9, %s15665_s12  ;;  %p15669_p1 = scmp.lt.u32.totalorder %s15665_s12, %s16406_s9 }
  0xcd   :  { %p15671_p2 = pnand %p15669_p1, %p15666_p0 }
  0xcf   :  { %15674 = shalt.err (!%p15671_p2)
}
  0xd0   :  { %s15675_s1 = scalar_lea.vmem %s16583_s28, 4096  ;;  %p15680_p4 = scmp.lt.s32.totalorder %s16583_s28, %s16583_s28 }
  0xd1   :  { %p15676_p3 = scmp.ne.s32.totalorder %s16583_s28, %s15675_s1  ;;  %p15681_p5 = scmp.lt.s32.totalorder %s15675_s1, %s15675_s1 }
  0xd3   :  { %p15682_p6 = por %p15681_p5, %p15680_p4 }
  0xd5   :  { %p15683_p7 = pnand %p15682_p6, %p15676_p3 }
  0xd7   :  { %15686 = shalt.err (!%p15683_p7)
}
  0xd8   :  { %296 = dma.hbm_to_vmem [thread:$0]  %s16406_s9, 4096, %s16583_s28, [#allocation26], %s16272_s15, %s16272_s15, %s16273_s17  }
  0xd9   :  { %s16280_s27 = smov [#allocation28]   ;;  %s15687_s8 = scalar_lea.hbm %s16416_s5, 64 }
  0xda   :  { %s312_s10 = sshll.u32 %s16280_s27, 4  ;;  %p15688_p8 = scmp.ne.s32.totalorder %s16416_s5, %s15687_s8  ;;  %s313_s10 = int_to_ptr.vmem [resolvable:$true] %s312_s10 }
  0xdb   :  { %p15691_p9 = scmp.lt.u32.totalorder %s15687_s8, %s16416_s5 }
  0xdd   :  { %p15693_p10 = pnand %p15691_p9, %p15688_p8 }
  0xdf   :  { %15696 = shalt.err (!%p15693_p10)
}
  0xe0   :  { %s15697_s11 = scalar_lea.vmem %s313_s10, 64  ;;  %p15702_p12 = scmp.lt.s32.totalorder %s313_s10, %s313_s10 }
  0xe1   :  { %p15698_p11 = scmp.ne.s32.totalorder %s313_s10, %s15697_s11  ;;  %p15703_p13 = scmp.lt.s32.totalorder %s15697_s11, %s15697_s11 }
  0xe3   :  { %p15704_p0 = por %p15703_p13, %p15702_p12 }
  0xe5   :  { %p15705_p1 = pnand %p15704_p0, %p15698_p11 }
  0xe7   :  { %15708 = shalt.err (!%p15705_p1)
}
  0xe8   :  { %s16281_s16 = smov 16   ;;  %s16282_s9 = smov 1  }
  0xe9   :  { %318 = dma.hbm_to_vmem [thread:$0]  %s16416_s5, 64, %s313_s10, [#allocation29], %s16281_s16, %s16281_s16, %s16282_s9  }
  0xea   :  { %s16283_s18 = smov [#allocation31]   ;;  %s16284_s0 = smov [#allocation34]  }
  0xeb   :  { %s337_s19 = sshll.u32 %s16283_s18, 4  ;;  %s360_s30 = sshll.u32 %s16284_s0, 4  ;;  %s338_s19 = int_to_ptr.vmem [resolvable:$true] %s337_s19  ;;  %s361_s30 = int_to_ptr.vmem [resolvable:$true] %s360_s30 }
  0xec   :  { %s15709_s22 = scalar_lea.hbm %s16426_s20, 64 }
  0xed   :  { %p15710_p2 = scmp.ne.s32.totalorder %s16426_s20, %s15709_s22  ;;  %p15713_p3 = scmp.lt.u32.totalorder %s15709_s22, %s16426_s20 }
  0xef   :  { %p15715_p4 = pnand %p15713_p3, %p15710_p2 }
  0xf1   :  { %15718 = shalt.err (!%p15715_p4)
}
  0xf2   :  { %s15719_s23 = scalar_lea.vmem %s338_s19, 64  ;;  %p15724_p6 = scmp.lt.s32.totalorder %s338_s19, %s338_s19 }
  0xf3   :  { %p15720_p5 = scmp.ne.s32.totalorder %s338_s19, %s15719_s23  ;;  %p15725_p7 = scmp.lt.s32.totalorder %s15719_s23, %s15719_s23 }
  0xf5   :  { %p15726_p8 = por %p15725_p7, %p15724_p6 }
  0xf7   :  { %p15727_p9 = pnand %p15726_p8, %p15720_p5 }
  0xf9   :  { %15730 = shalt.err (!%p15727_p9)
}
  0xfa   :  { %340 = dma.hbm_to_vmem [thread:$0]  %s16426_s20, 64, %s338_s19, [#allocation32]  }
  0xfb   :  { %s15731_s5 = scalar_lea.hbm %s16446_s24, 16384 }
  0xfc   :  { %p15732_p10 = scmp.ne.s32.totalorder %s16446_s24, %s15731_s5  ;;  %p15735_p11 = scmp.lt.u32.totalorder %s15731_s5, %s16446_s24 }
  0xfe   :  { %p15737_p12 = pnand %p15735_p11, %p15732_p10 }
 0x100   :  { %15740 = shalt.err (!%p15737_p12)
}
 0x101   :  { %s15741_s28 = scalar_lea.vmem %s361_s30, 16384  ;;  %p15746_p0 = scmp.lt.s32.totalorder %s361_s30, %s361_s30 }
 0x102   :  { %p15742_p13 = scmp.ne.s32.totalorder %s361_s30, %s15741_s28  ;;  %p15747_p1 = scmp.lt.s32.totalorder %s15741_s28, %s15741_s28 }
 0x104   :  { %p15748_p2 = por %p15747_p1, %p15746_p0 }
 0x106   :  { %p15749_p3 = pnand %p15748_p2, %p15742_p13 }
 0x108   :  { %15752 = shalt.err (!%p15749_p3)
}
 0x109   :  { %366 = dma.hbm_to_vmem [thread:$0]  %s16446_s24, 16384, %s361_s30, [#allocation35], %s16272_s15, %s16272_s15, %s16273_s17  }
 0x10a   :  { %s16285_s20 = smov [#allocation37]   ;;  %s16286_s26 = smov [#allocation40]  }
 0x10b   :  { %s382_s29 = sshll.u32 %s16285_s20, 4  ;;  %s406_s12 = sshll.u32 %s16286_s26, 4  ;;  %s383_s29 = int_to_ptr.vmem [resolvable:$true] %s382_s29  ;;  %s407_s12 = int_to_ptr.vmem [resolvable:$true] %s406_s12 }
 0x10c   :  { %s15753_s1 = scalar_lea.hbm %s16456_s6, 4096 }
 0x10d   :  { %p15754_p4 = scmp.ne.s32.totalorder %s16456_s6, %s15753_s1  ;;  %p15757_p5 = scmp.lt.u32.totalorder %s15753_s1, %s16456_s6 }
 0x10f   :  { %p15759_p6 = pnand %p15757_p5, %p15754_p4 }
 0x111   :  { %15762 = shalt.err (!%p15759_p6)
}
 0x112   :  { %s15763_s27 = scalar_lea.vmem %s383_s29, 4096  ;;  %p15768_p8 = scmp.lt.s32.totalorder %s383_s29, %s383_s29 }
 0x113   :  { %p15764_p7 = scmp.ne.s32.totalorder %s383_s29, %s15763_s27  ;;  %p15769_p9 = scmp.lt.s32.totalorder %s15763_s27, %s15763_s27 }
 0x115   :  { %p15770_p10 = por %p15769_p9, %p15768_p8 }
 0x117   :  { %p15771_p11 = pnand %p15770_p10, %p15764_p7 }
 0x119   :  { %15774 = shalt.err (!%p15771_p11)
}
 0x11a   :  { %388 = dma.hbm_to_vmem [thread:$0]  %s16456_s6, 4096, %s383_s29, [#allocation38], %s16272_s15, %s16272_s15, %s16273_s17  }
 0x11b   :  { %s15775_s24 = scalar_lea.hbm %s16471_s21, 12288 }
 0x11c   :  { %p15776_p12 = scmp.ne.s32.totalorder %s16471_s21, %s15775_s24  ;;  %p15779_p13 = scmp.lt.u32.totalorder %s15775_s24, %s16471_s21 }
 0x11e   :  { %p15781_p0 = pnand %p15779_p13, %p15776_p12 }
 0x120   :  { %15784 = shalt.err (!%p15781_p0)
}
 0x121   :  { %s15785_s10 = scalar_lea.vmem %s407_s12, 12288  ;;  %p15790_p2 = scmp.lt.s32.totalorder %s407_s12, %s407_s12 }
 0x122   :  { %p15786_p1 = scmp.ne.s32.totalorder %s407_s12, %s15785_s10  ;;  %p15791_p3 = scmp.lt.s32.totalorder %s15785_s10, %s15785_s10 }
 0x124   :  { %p15792_p4 = por %p15791_p3, %p15790_p2 }
 0x126   :  { %p15793_p5 = pnand %p15792_p4, %p15786_p1 }
 0x128   :  { %15796 = shalt.err (!%p15793_p5)
}
 0x129   :  { %412 = dma.hbm_to_vmem [thread:$0]  %s16471_s21, 12288, %s407_s12, [#allocation41], %s16272_s15, %s16272_s15, %s16273_s17  }
 0x12a   :  { %s16287_s6 = smov [#allocation43]   ;;  %s16288_s11 = smov [#allocation46]  }
 0x12b   :  { %s428_s8 = sshll.u32 %s16287_s6, 4  ;;  %s452_s9 = sshll.u32 %s16288_s11, 4  ;;  %s429_s8 = int_to_ptr.vmem [resolvable:$true] %s428_s8  ;;  %s453_s9 = int_to_ptr.vmem [resolvable:$true] %s452_s9 }
 0x12c   :  { %s15797_s18 = scalar_lea.hbm %s16481_s4, 4096 }
 0x12d   :  { %p15798_p6 = scmp.ne.s32.totalorder %s16481_s4, %s15797_s18  ;;  %p15801_p7 = scmp.lt.u32.totalorder %s15797_s18, %s16481_s4 }
 0x12f   :  { %p15803_p8 = pnand %p15801_p7, %p15798_p6 }
 0x131   :  { %15806 = shalt.err (!%p15803_p8)
}
 0x132   :  { %s15807_s19 = scalar_lea.vmem %s429_s8, 4096  ;;  %p15812_p10 = scmp.lt.s32.totalorder %s429_s8, %s429_s8 }
 0x133   :  { %p15808_p9 = scmp.ne.s32.totalorder %s429_s8, %s15807_s19  ;;  %p15813_p11 = scmp.lt.s32.totalorder %s15807_s19, %s15807_s19 }
 0x135   :  { %p15814_p12 = por %p15813_p11, %p15812_p10 }
 0x137   :  { %p15815_p13 = pnand %p15814_p12, %p15808_p9 }
 0x139   :  { %15818 = shalt.err (!%p15815_p13)
}
 0x13a   :  { %s17374_s21 = sld [smem:[#allocation87_spill]] }
 0x13b   :  { %434 = dma.hbm_to_vmem [thread:$0]  %s16481_s4, 4096, %s429_s8, [#allocation44], %s16272_s15, %s16272_s15, %s16273_s17  }
 0x140   :  { %s15819_s0 = scalar_lea.hbm %s17374_s21, 12288 }
 0x141   :  { %p15820_p0 = scmp.ne.s32.totalorder %s17374_s21, %s15819_s0  ;;  %p15823_p1 = scmp.lt.u32.totalorder %s15819_s0, %s17374_s21 }
 0x143   :  { %p15825_p2 = pnand %p15823_p1, %p15820_p0 }
 0x145   :  { %15828 = shalt.err (!%p15825_p2)
}
 0x146   :  { %s15829_s30 = scalar_lea.vmem %s453_s9, 12288  ;;  %p15834_p4 = scmp.lt.s32.totalorder %s453_s9, %s453_s9 }
 0x147   :  { %p15830_p3 = scmp.ne.s32.totalorder %s453_s9, %s15829_s30  ;;  %p15835_p5 = scmp.lt.s32.totalorder %s15829_s30, %s15829_s30 }
 0x149   :  { %p15836_p6 = por %p15835_p5, %p15834_p4 }
 0x14b   :  { %p15837_p7 = pnand %p15836_p6, %p15830_p3 }
 0x14d   :  { %15840 = shalt.err (!%p15837_p7)
}
 0x14e   :  { %s17375_s22 = sld [smem:[#allocation67_spill]]  ;;  %s16289_s4 = smov [#allocation2]  }
 0x14f   :  { %458 = dma.hbm_to_vmem [thread:$0]  %s17374_s21, 12288, %s453_s9, [#allocation47], %s16272_s15, %s16272_s15, %s16273_s17  }
 0x150   :  { %s118_s23 = sshll.u32 %s16289_s4, 4  ;;  %s16290_s5 = smov [#allocation6]   ;;  %s119_s23 = int_to_ptr.vmem [resolvable:$true] %s118_s23 }
 0x151   :  { %s144_s28 = sshll.u32 %s16290_s5, 4  ;;  %s145_s28 = int_to_ptr.vmem [resolvable:$true] %s144_s28 }
 0x154   :  { %s15841_s20 = scalar_lea.hbm %s17375_s22, 768 }
 0x155   :  { %p15842_p8 = scmp.ne.s32.totalorder %s17375_s22, %s15841_s20  ;;  %p15845_p9 = scmp.lt.u32.totalorder %s15841_s20, %s17375_s22 }
 0x157   :  { %p15847_p10 = pnand %p15845_p9, %p15842_p8 }
 0x159   :  { %15850 = shalt.err (!%p15847_p10)
}
 0x15a   :  { %s15851_s29 = scalar_lea.vmem %s119_s23, 768  ;;  %p15856_p12 = scmp.lt.s32.totalorder %s119_s23, %s119_s23 }
 0x15b   :  { %p15852_p11 = scmp.ne.s32.totalorder %s119_s23, %s15851_s29  ;;  %p15857_p13 = scmp.lt.s32.totalorder %s15851_s29, %s15851_s29 }
 0x15d   :  { %p15858_p0 = por %p15857_p13, %p15856_p12 }
 0x15f   :  { %p15859_p1 = pnand %p15858_p0, %p15852_p11 }
 0x161   :  { %15862 = shalt.err (!%p15859_p1)
}
 0x162   :  { %s17376_s26 = sld [smem:[#allocation69_spill]] }
 0x163   :  { %124 = dma.hbm_to_vmem [thread:$0]  %s17375_s22, 768, %s119_s23, [#allocation3], %s16270_s2, %s16270_s2, %s16271_s7  }
 0x168   :  { %s15863_s12 = scalar_lea.hbm %s17376_s26, 768 }
 0x169   :  { %p15864_p2 = scmp.ne.s32.totalorder %s17376_s26, %s15863_s12  ;;  %p15867_p3 = scmp.lt.u32.totalorder %s15863_s12, %s17376_s26 }
 0x16b   :  { %p15869_p4 = pnand %p15867_p3, %p15864_p2 }
 0x16d   :  { %15872 = shalt.err (!%p15869_p4)
}
 0x16e   :  { %s15873_s1 = scalar_lea.vmem %s145_s28, 768  ;;  %p15878_p6 = scmp.lt.s32.totalorder %s145_s28, %s145_s28 }
 0x16f   :  { %p15874_p5 = scmp.ne.s32.totalorder %s145_s28, %s15873_s1  ;;  %p15879_p7 = scmp.lt.s32.totalorder %s15873_s1, %s15873_s1 }
 0x171   :  { %p15880_p8 = por %p15879_p7, %p15878_p6 }
 0x173   :  { %p15881_p9 = pnand %p15880_p8, %p15874_p5 }
 0x175   :  { %15884 = shalt.err (!%p15881_p9)
}
 0x176   :  { %s17377_s27 = sld [smem:[#allocation70_spill]]  ;;  %s16291_s24 = smov [#allocation9]  }
 0x177   :  { %150 = dma.hbm_to_vmem [thread:$0]  %s17376_s26, 768, %s145_s28, [#allocation5], %s16270_s2, %s16270_s2, %s16271_s7  }
 0x178   :  { %s169_s10 = sshll.u32 %s16291_s24, 4  ;;  %s16292_s6 = smov [#allocation12]   ;;  %s170_s10 = int_to_ptr.vmem [resolvable:$true] %s169_s10 }
 0x179   :  { %s190_s8 = sshll.u32 %s16292_s6, 4  ;;  %s191_s8 = int_to_ptr.vmem [resolvable:$true] %s190_s8 }
 0x17c   :  { %s15885_s11 = scalar_lea.hbm %s17377_s27, 32 }
 0x17d   :  { %p15886_p10 = scmp.ne.s32.totalorder %s17377_s27, %s15885_s11  ;;  %p15889_p11 = scmp.lt.u32.totalorder %s15885_s11, %s17377_s27 }
 0x17f   :  { %p15891_p12 = pnand %p15889_p11, %p15886_p10 }
 0x181   :  { %15894 = shalt.err (!%p15891_p12)
}
 0x182   :  { %s15895_s9 = scalar_lea.vmem %s170_s10, 32  ;;  %p15900_p0 = scmp.lt.s32.totalorder %s170_s10, %s170_s10 }
 0x183   :  { %p15896_p13 = scmp.ne.s32.totalorder %s170_s10, %s15895_s9  ;;  %p15901_p1 = scmp.lt.s32.totalorder %s15895_s9, %s15895_s9 }
 0x185   :  { %p15902_p2 = por %p15901_p1, %p15900_p0 }
 0x187   :  { %p15903_p3 = pnand %p15902_p2, %p15896_p13 }
 0x189   :  { %15906 = shalt.err (!%p15903_p3)
}
 0x18a   :  { %s17378_s18 = sld [smem:[#allocation71_spill]] }
 0x18b   :  { %172 = dma.hbm_to_vmem [thread:$0]  %s17377_s27, 32, %s170_s10, [#allocation8]  }
 0x190   :  { %s15907_s19 = scalar_lea.hbm %s17378_s18, 12288 }
 0x191   :  { %p15908_p4 = scmp.ne.s32.totalorder %s17378_s18, %s15907_s19  ;;  %p15911_p5 = scmp.lt.u32.totalorder %s15907_s19, %s17378_s18 }
 0x193   :  { %p15913_p6 = pnand %p15911_p5, %p15908_p4 }
 0x195   :  { %15916 = shalt.err (!%p15913_p6)
}
 0x196   :  { %s15917_s21 = scalar_lea.vmem %s191_s8, 12288  ;;  %p15922_p8 = scmp.lt.s32.totalorder %s191_s8, %s191_s8 }
 0x197   :  { %p15918_p7 = scmp.ne.s32.totalorder %s191_s8, %s15917_s21  ;;  %p15923_p9 = scmp.lt.s32.totalorder %s15917_s21, %s15917_s21 }
 0x199   :  { %p15924_p10 = por %p15923_p9, %p15922_p8 }
 0x19b   :  { %p15925_p11 = pnand %p15924_p10, %p15918_p7 }
 0x19d   :  { %15928 = shalt.err (!%p15925_p11)
}
 0x19e   :  { %s17379_s0 = sld [smem:[#allocation72_spill]]  ;;  %s16293_s30 = smov [#allocation15]  }
 0x19f   :  { %196 = dma.hbm_to_vmem [thread:$0]  %s17378_s18, 12288, %s191_s8, [#allocation11], %s16272_s15, %s16272_s15, %s16273_s17  }
 0x1a0   :  { %s212_s22 = sshll.u32 %s16293_s30, 4  ;;  %s16294_s4 = smov [#allocation18]   ;;  %s213_s22 = int_to_ptr.vmem [resolvable:$true] %s212_s22 }
 0x1a1   :  { %s234_s23 = sshll.u32 %s16294_s4, 4  ;;  %s235_s23 = int_to_ptr.vmem [resolvable:$true] %s234_s23 }
 0x1a4   :  { %s15929_s5 = scalar_lea.hbm %s17379_s0, 4096 }
 0x1a5   :  { %p15930_p12 = scmp.ne.s32.totalorder %s17379_s0, %s15929_s5  ;;  %p15933_p13 = scmp.lt.u32.totalorder %s15929_s5, %s17379_s0 }
 0x1a7   :  { %p15935_p0 = pnand %p15933_p13, %p15930_p12 }
 0x1a9   :  { %15938 = shalt.err (!%p15935_p0)
}
 0x1aa   :  { %s15939_s28 = scalar_lea.vmem %s213_s22, 4096  ;;  %p15944_p2 = scmp.lt.s32.totalorder %s213_s22, %s213_s22 }
 0x1ab   :  { %p15940_p1 = scmp.ne.s32.totalorder %s213_s22, %s15939_s28  ;;  %p15945_p3 = scmp.lt.s32.totalorder %s15939_s28, %s15939_s28 }
 0x1ad   :  { %p15946_p4 = por %p15945_p3, %p15944_p2 }
 0x1af   :  { %p15947_p5 = pnand %p15946_p4, %p15940_p1 }
 0x1b1   :  { %15950 = shalt.err (!%p15947_p5)
}
 0x1b2   :  { %s17380_s20 = sld [smem:[#allocation73_spill]] }
 0x1b3   :  { %218 = dma.hbm_to_vmem [thread:$0]  %s17379_s0, 4096, %s213_s22, [#allocation14], %s16272_s15, %s16272_s15, %s16273_s17  }
 0x1b8   :  { %s15951_s29 = scalar_lea.hbm %s17380_s20, 192 }
 0x1b9   :  { %p15952_p6 = scmp.ne.s32.totalorder %s17380_s20, %s15951_s29  ;;  %p15955_p7 = scmp.lt.u32.totalorder %s15951_s29, %s17380_s20 }
 0x1bb   :  { %p15957_p8 = pnand %p15955_p7, %p15952_p6 }
 0x1bd   :  { %15960 = shalt.err (!%p15957_p8)
}
 0x1be   :  { %s15961_s26 = scalar_lea.vmem %s235_s23, 192  ;;  %p15966_p10 = scmp.lt.s32.totalorder %s235_s23, %s235_s23 }
 0x1bf   :  { %p15962_p9 = scmp.ne.s32.totalorder %s235_s23, %s15961_s26  ;;  %p15967_p11 = scmp.lt.s32.totalorder %s15961_s26, %s15961_s26 }
 0x1c1   :  { %p15968_p12 = por %p15967_p11, %p15966_p10 }
 0x1c3   :  { %p15969_p13 = pnand %p15968_p12, %p15962_p9 }
 0x1c5   :  { %15972 = shalt.err (!%p15969_p13)
}
 0x1c6   :  { %s17381_s12 = sld [smem:[#allocation74_spill]]  ;;  %s16295_s15 = smov [#allocation21]  }
 0x1c7   :  { %240 = dma.hbm_to_vmem [thread:$0]  %s17380_s20, 192, %s235_s23, [#allocation17], %s16270_s2, %s16270_s2, %s16271_s7  }
 0x1c8   :  { %s259_s17 = sshll.u32 %s16295_s15, 4  ;;  %s16296_s1 = smov [#allocation24]   ;;  %s260_s17 = int_to_ptr.vmem [resolvable:$true] %s259_s17 }
 0x1c9   :  { %s281_s27 = sshll.u32 %s16296_s1, 4  ;;  %s282_s27 = int_to_ptr.vmem [resolvable:$true] %s281_s27 }
 0x1cc   :  { %s15973_s24 = scalar_lea.hbm %s17381_s12, 32 }
 0x1cd   :  { %p15974_p0 = scmp.ne.s32.totalorder %s17381_s12, %s15973_s24  ;;  %p15977_p1 = scmp.lt.u32.totalorder %s15973_s24, %s17381_s12 }
 0x1cf   :  { %p15979_p2 = pnand %p15977_p1, %p15974_p0 }
 0x1d1   :  { %15982 = shalt.err (!%p15979_p2)
}
 0x1d2   :  { %s15983_s10 = scalar_lea.vmem %s260_s17, 32  ;;  %p15988_p4 = scmp.lt.s32.totalorder %s260_s17, %s260_s17 }
 0x1d3   :  { %p15984_p3 = scmp.ne.s32.totalorder %s260_s17, %s15983_s10  ;;  %p15989_p5 = scmp.lt.s32.totalorder %s15983_s10, %s15983_s10 }
 0x1d5   :  { %p15990_p6 = por %p15989_p5, %p15988_p4 }
 0x1d7   :  { %p15991_p7 = pnand %p15990_p6, %p15984_p3 }
 0x1d9   :  { %15994 = shalt.err (!%p15991_p7)
}
 0x1da   :  { %s17382_s6 = sld [smem:[#allocation75_spill]] }
 0x1db   :  { %262 = dma.hbm_to_vmem [thread:$0]  %s17381_s12, 32, %s260_s17, [#allocation20]  }
 0x1e0   :  { %s15995_s8 = scalar_lea.hbm %s17382_s6, 32 }
 0x1e1   :  { %p15996_p8 = scmp.ne.s32.totalorder %s17382_s6, %s15995_s8  ;;  %p15999_p9 = scmp.lt.u32.totalorder %s15995_s8, %s17382_s6 }
 0x1e3   :  { %p16001_p10 = pnand %p15999_p9, %p15996_p8 }
 0x1e5   :  { %16004 = shalt.err (!%p16001_p10)
}
 0x1e6   :  { %s16005_s11 = scalar_lea.vmem %s282_s27, 32  ;;  %p16010_p12 = scmp.lt.s32.totalorder %s282_s27, %s282_s27 }
 0x1e7   :  { %p16006_p11 = scmp.ne.s32.totalorder %s282_s27, %s16005_s11  ;;  %p16011_p13 = scmp.lt.s32.totalorder %s16005_s11, %s16005_s11 }
 0x1e9   :  { %p16012_p0 = por %p16011_p13, %p16010_p12 }
 0x1eb   :  { %p16013_p1 = pnand %p16012_p0, %p16006_p11 }
 0x1ed   :  { %16016 = shalt.err (!%p16013_p1)
}
 0x1ee   :  { %s17383_s9 = sld [smem:[#allocation76_spill]]  ;;  %s16297_s18 = smov [#allocation27]  }
 0x1ef   :  { %284 = dma.hbm_to_vmem [thread:$0]  %s17382_s6, 32, %s282_s27, [#allocation23]  }
 0x1f0   :  { %s303_s19 = sshll.u32 %s16297_s18, 4  ;;  %s16298_s21 = smov [#allocation30]   ;;  %s304_s19 = int_to_ptr.vmem [resolvable:$true] %s303_s19 }
 0x1f1   :  { %s324_s0 = sshll.u32 %s16298_s21, 4  ;;  %s325_s0 = int_to_ptr.vmem [resolvable:$true] %s324_s0 }
 0x1f4   :  { %s16017_s30 = scalar_lea.hbm %s17383_s9, 32 }
 0x1f5   :  { %p16018_p2 = scmp.ne.s32.totalorder %s17383_s9, %s16017_s30  ;;  %p16021_p3 = scmp.lt.u32.totalorder %s16017_s30, %s17383_s9 }
 0x1f7   :  { %p16023_p4 = pnand %p16021_p3, %p16018_p2 }
 0x1f9   :  { %16026 = shalt.err (!%p16023_p4)
}
 0x1fa   :  { %s16027_s22 = scalar_lea.vmem %s304_s19, 32  ;;  %p16032_p6 = scmp.lt.s32.totalorder %s304_s19, %s304_s19 }
 0x1fb   :  { %p16028_p5 = scmp.ne.s32.totalorder %s304_s19, %s16027_s22  ;;  %p16033_p7 = scmp.lt.s32.totalorder %s16027_s22, %s16027_s22 }
 0x1fd   :  { %p16034_p8 = por %p16033_p7, %p16032_p6 }
 0x1ff   :  { %p16035_p9 = pnand %p16034_p8, %p16028_p5 }
 0x201   :  { %16038 = shalt.err (!%p16035_p9)
}
 0x202   :  { %s17384_s4 = sld [smem:[#allocation77_spill]] }
 0x203   :  { %306 = dma.hbm_to_vmem [thread:$0]  %s17383_s9, 32, %s304_s19, [#allocation26]  }
 0x208   :  { %s16039_s23 = scalar_lea.hbm %s17384_s4, 32768 }
 0x209   :  { %p16040_p10 = scmp.ne.s32.totalorder %s17384_s4, %s16039_s23  ;;  %p16043_p11 = scmp.lt.u32.totalorder %s16039_s23, %s17384_s4 }
 0x20b   :  { %p16045_p12 = pnand %p16043_p11, %p16040_p10 }
 0x20d   :  { %16048 = shalt.err (!%p16045_p12)
}
 0x20e   :  { %s16049_s5 = scalar_lea.vmem %s325_s0, 32768  ;;  %p16054_p0 = scmp.lt.s32.totalorder %s325_s0, %s325_s0 }
 0x20f   :  { %p16050_p13 = scmp.ne.s32.totalorder %s325_s0, %s16049_s5  ;;  %p16055_p1 = scmp.lt.s32.totalorder %s16049_s5, %s16049_s5 }
 0x211   :  { %p16056_p2 = por %p16055_p1, %p16054_p0 }
 0x213   :  { %p16057_p3 = pnand %p16056_p2, %p16050_p13 }
 0x215   :  { %16060 = shalt.err (!%p16057_p3)
}
 0x216   :  { %s16299_s28 = smov 256   ;;  %s17385_s20 = sld [smem:[#allocation79_spill]] }
 0x217   :  { %330 = dma.hbm_to_vmem [thread:$0]  %s17384_s4, 32768, %s325_s0, [#allocation29], %s16299_s28, %s16299_s28, %s16281_s16  }
 0x218   :  { %s16300_s29 = smov [#allocation33]   ;;  %s16301_s12 = smov [#allocation36]  }
 0x219   :  { %s349_s26 = sshll.u32 %s16300_s29, 4  ;;  %s373_s15 = sshll.u32 %s16301_s12, 4  ;;  %s350_s26 = int_to_ptr.vmem [resolvable:$true] %s349_s26  ;;  %s374_s15 = int_to_ptr.vmem [resolvable:$true] %s373_s15 }
 0x21c   :  { %s16061_s17 = scalar_lea.hbm %s17385_s20, 64 }
 0x21d   :  { %p16062_p4 = scmp.ne.s32.totalorder %s17385_s20, %s16061_s17  ;;  %p16065_p5 = scmp.lt.u32.totalorder %s16061_s17, %s17385_s20 }
 0x21f   :  { %p16067_p6 = pnand %p16065_p5, %p16062_p4 }
 0x221   :  { %16070 = shalt.err (!%p16067_p6)
}
 0x222   :  { %s16071_s1 = scalar_lea.vmem %s350_s26, 64  ;;  %p16076_p8 = scmp.lt.s32.totalorder %s350_s26, %s350_s26 }
 0x223   :  { %p16072_p7 = scmp.ne.s32.totalorder %s350_s26, %s16071_s1  ;;  %p16077_p9 = scmp.lt.s32.totalorder %s16071_s1, %s16071_s1 }
 0x225   :  { %p16078_p10 = por %p16077_p9, %p16076_p8 }
 0x227   :  { %p16079_p11 = pnand %p16078_p10, %p16072_p7 }
 0x229   :  { %16082 = shalt.err (!%p16079_p11)
}
 0x22a   :  { %s17386_s16 = sld [smem:[#allocation81_spill]] }
 0x22b   :  { %352 = dma.hbm_to_vmem [thread:$0]  %s17385_s20, 64, %s350_s26, [#allocation32]  }
 0x230   :  { %s16083_s27 = scalar_lea.hbm %s17386_s16, 32 }
 0x231   :  { %p16084_p12 = scmp.ne.s32.totalorder %s17386_s16, %s16083_s27  ;;  %p16087_p13 = scmp.lt.u32.totalorder %s16083_s27, %s17386_s16 }
 0x233   :  { %p16089_p0 = pnand %p16087_p13, %p16084_p12 }
 0x235   :  { %16092 = shalt.err (!%p16089_p0)
}
 0x236   :  { %s16093_s24 = scalar_lea.vmem %s374_s15, 32  ;;  %p16098_p2 = scmp.lt.s32.totalorder %s374_s15, %s374_s15 }
 0x237   :  { %p16094_p1 = scmp.ne.s32.totalorder %s374_s15, %s16093_s24  ;;  %p16099_p3 = scmp.lt.s32.totalorder %s16093_s24, %s16093_s24 }
 0x239   :  { %p16100_p4 = por %p16099_p3, %p16098_p2 }
 0x23b   :  { %p16101_p5 = pnand %p16100_p4, %p16094_p1 }
 0x23d   :  { %16104 = shalt.err (!%p16101_p5)
}
 0x23e   :  { %s17387_s10 = sld [smem:[#allocation82_spill]]  ;;  %s16302_s6 = smov [#allocation39]  }
 0x23f   :  { %376 = dma.hbm_to_vmem [thread:$0]  %s17386_s16, 32, %s374_s15, [#allocation35]  }
 0x240   :  { %s395_s8 = sshll.u32 %s16302_s6, 4  ;;  %s16303_s11 = smov [#allocation42]   ;;  %s396_s8 = int_to_ptr.vmem [resolvable:$true] %s395_s8 }
 0x241   :  { %s419_s9 = sshll.u32 %s16303_s11, 4  ;;  %s420_s9 = int_to_ptr.vmem [resolvable:$true] %s419_s9 }
 0x244   :  { %s16105_s18 = scalar_lea.hbm %s17387_s10, 32 }
 0x245   :  { %p16106_p6 = scmp.ne.s32.totalorder %s17387_s10, %s16105_s18  ;;  %p16109_p7 = scmp.lt.u32.totalorder %s16105_s18, %s17387_s10 }
 0x247   :  { %p16111_p8 = pnand %p16109_p7, %p16106_p6 }
 0x249   :  { %16114 = shalt.err (!%p16111_p8)
}
 0x24a   :  { %s16115_s19 = scalar_lea.vmem %s396_s8, 32  ;;  %p16120_p10 = scmp.lt.s32.totalorder %s396_s8, %s396_s8 }
 0x24b   :  { %p16116_p9 = scmp.ne.s32.totalorder %s396_s8, %s16115_s19  ;;  %p16121_p11 = scmp.lt.s32.totalorder %s16115_s19, %s16115_s19 }
 0x24d   :  { %p16122_p12 = por %p16121_p11, %p16120_p10 }
 0x24f   :  { %p16123_p13 = pnand %p16122_p12, %p16116_p9 }
 0x251   :  { %16126 = shalt.err (!%p16123_p13)
}
 0x252   :  { %s17388_s21 = sld [smem:[#allocation84_spill]] }
 0x253   :  { %398 = dma.hbm_to_vmem [thread:$0]  %s17387_s10, 32, %s396_s8, [#allocation38]  }
 0x258   :  { %s16127_s0 = scalar_lea.hbm %s17388_s21, 32 }
 0x259   :  { %p16128_p0 = scmp.ne.s32.totalorder %s17388_s21, %s16127_s0  ;;  %p16131_p1 = scmp.lt.u32.totalorder %s16127_s0, %s17388_s21 }
 0x25b   :  { %p16133_p2 = pnand %p16131_p1, %p16128_p0 }
 0x25d   :  { %16136 = shalt.err (!%p16133_p2)
}
 0x25e   :  { %s16137_s30 = scalar_lea.vmem %s420_s9, 32  ;;  %p16142_p4 = scmp.lt.s32.totalorder %s420_s9, %s420_s9 }
 0x25f   :  { %p16138_p3 = scmp.ne.s32.totalorder %s420_s9, %s16137_s30  ;;  %p16143_p5 = scmp.lt.s32.totalorder %s16137_s30, %s16137_s30 }
 0x261   :  { %p16144_p6 = por %p16143_p5, %p16142_p4 }
 0x263   :  { %p16145_p7 = pnand %p16144_p6, %p16138_p3 }
 0x265   :  { %16148 = shalt.err (!%p16145_p7)
}
 0x266   :  { %s17389_s22 = sld [smem:[#allocation85_spill]]  ;;  %s16304_s4 = smov [#allocation45]  }
 0x267   :  { %422 = dma.hbm_to_vmem [thread:$0]  %s17388_s21, 32, %s420_s9, [#allocation41]  }
 0x268   :  { %s441_s23 = sshll.u32 %s16304_s4, 4  ;;  %s16305_s5 = smov [#allocation48]   ;;  %s442_s23 = int_to_ptr.vmem [resolvable:$true] %s441_s23 }
 0x269   :  { %s466_s28 = sshll.u32 %s16305_s5, 4  ;;  %s16721_s28 = int_to_ptr.vmem [resolvable:$true] %s466_s28 }
 0x26c   :  { %s16149_s20 = scalar_lea.hbm %s17389_s22, 32 }
 0x26d   :  { %p16150_p8 = scmp.ne.s32.totalorder %s17389_s22, %s16149_s20  ;;  %p16153_p9 = scmp.lt.u32.totalorder %s16149_s20, %s17389_s22 }
 0x26f   :  { %p16155_p10 = pnand %p16153_p9, %p16150_p8 }
 0x271   :  { %16158 = shalt.err (!%p16155_p10)
}
 0x272   :  { %s16159_s29 = scalar_lea.vmem %s442_s23, 32  ;;  %p16164_p12 = scmp.lt.s32.totalorder %s442_s23, %s442_s23 }
 0x273   :  { %p16160_p11 = scmp.ne.s32.totalorder %s442_s23, %s16159_s29  ;;  %p16165_p13 = scmp.lt.s32.totalorder %s16159_s29, %s16159_s29 }
 0x275   :  { %p16166_p0 = por %p16165_p13, %p16164_p12 }
 0x277   :  { %p16167_p1 = pnand %p16166_p0, %p16160_p11 }
 0x279   :  { %16170 = shalt.err (!%p16167_p1)
}
 0x27a   :  { %s17390_s26 = sld [smem:[#allocation89_spill]] }
 0x27b   :  { %444 = dma.hbm_to_vmem [thread:$0]  %s17389_s22, 32, %s442_s23, [#allocation44]  }
 0x280   :  { %s16171_s12 = scalar_lea.hbm %s17390_s26, 768 }
 0x281   :  { %p16172_p2 = scmp.ne.s32.totalorder %s17390_s26, %s16171_s12  ;;  %p16175_p3 = scmp.lt.u32.totalorder %s16171_s12, %s17390_s26 }
 0x283   :  { %p16177_p4 = pnand %p16175_p3, %p16172_p2 }
 0x285   :  { %16180 = shalt.err (!%p16177_p4)
}
 0x286   :  { %s16181_s15 = scalar_lea.vmem %s16721_s28, 768  ;;  %p16186_p6 = scmp.lt.s32.totalorder %s16721_s28, %s16721_s28 }
 0x287   :  { %p16182_p5 = scmp.ne.s32.totalorder %s16721_s28, %s16181_s15  ;;  %p16187_p7 = scmp.lt.s32.totalorder %s16181_s15, %s16181_s15 }
 0x289   :  { %p16188_p8 = por %p16187_p7, %p16186_p6 }
 0x28b   :  { %p16189_p9 = pnand %p16188_p8, %p16182_p5 }
 0x28d   :  { %16192 = shalt.err (!%p16189_p9)
}
 0x28e   :  { %472 = dma.hbm_to_vmem [thread:$0]  %s17390_s26, 768, %s16721_s28, [#allocation47], %s16270_s2, %s16270_s2, %s16271_s7  }
 0x28f   :  { %16193 = dma.done.wait [#allocation3], 768  }
 0x290   :  { %16194 = vsyncadd [#allocation3], 4294966528 }
 0x291   :  { %16195 = dma.done.wait [#allocation5], 1920  }
 0x292   :  { %16196 = vsyncadd [#allocation5], 4294965376 }
 0x293   :  { %16197 = dma.done.wait [#allocation8], 6176  }
 0x294   :  { %16198 = vsyncadd [#allocation8], 4294961120 }
 0x295   :  { %16199 = dma.done.wait [#allocation11], 12672  }
 0x296   :  { %16200 = vsyncadd [#allocation11], 4294954624 }
 0x297   :  { %16201 = dma.done.wait [#allocation14], 4128  }
 0x298   :  { %16202 = vsyncadd [#allocation14], 4294963168 }
 0x299   :  { %16203 = dma.done.wait [#allocation17], 224  }
 0x29a   :  { %16204 = vsyncadd [#allocation17], 4294967072 }
 0x29b   :  { %16205 = dma.done.wait [#allocation20], 12320  }
 0x29c   :  { %16206 = vsyncadd [#allocation20], 4294954976 }
 0x29d   :  { %16207 = dma.done.wait [#allocation23], 4128  }
 0x29e   :  { %16208 = vsyncadd [#allocation23], 4294963168 }
 0x29f   :  { %16209 = dma.done.wait [#allocation26], 4128  }
 0x2a0   :  { %16210 = vsyncadd [#allocation26], 4294963168 }
 0x2a1   :  { %16211 = dma.done.wait [#allocation29], 32832  }
 0x2a2   :  { %16212 = vsyncadd [#allocation29], 4294934464 }
 0x2a3   :  { %16213 = dma.done.wait [#allocation32], 128  }
 0x2a4   :  { %16214 = vsyncadd [#allocation32], 4294967168 }
 0x2a5   :  { %16215 = dma.done.wait [#allocation35], 16416  }
 0x2a6   :  { %16216 = vsyncadd [#allocation35], 4294950880 }
 0x2a7   :  { %16217 = dma.done.wait [#allocation38], 4128  }
 0x2a8   :  { %16218 = vsyncadd [#allocation38], 4294963168 }
 0x2a9   :  { %16219 = dma.done.wait [#allocation41], 12320  }
 0x2aa   :  { %16220 = vsyncadd [#allocation41], 4294954976 }
 0x2ab   :  { %16221 = dma.done.wait [#allocation44], 4128  }
 0x2ac   :  { %16222 = vsyncadd [#allocation44], 4294963168 }
 0x2ad   :  { %16223 = dma.done.wait [#allocation47], 13056  }
 0x2ae   :  { %16224 = vsyncadd [#allocation47], 4294954240  ;;  %s17391_s2 = sld [smem:[#allocation65_spill]]  ;;  %vm591_vm0 = vcmask 261120   ;;  %v13696_v6 = vld [vmem:[#allocation2] sm:$0xff]   ;;  %v13697_v7 = vld [vmem:[#allocation2 + $0x8] sm:$0xff]  }
 0x2af   :  { %13471 = vmatprep.mubr.msk.bf16.mxu1 %vm591_vm0, %v13696_v6  ;;  %v13698_v8 = vld [vmem:[#allocation2 + $0x10] sm:$0xff]   ;;  %v13699_v9 = vld [vmem:[#allocation2 + $0x18] sm:$0xff]   ;;  %v13700_v10 = vld [vmem:[#allocation2 + $0x20] sm:$0xff]   ;;  %vm752_vm1 = vcmask 392192   ;;  %s17392_s7 = sld [smem:[#allocation68_spill]]  ;;  %vm2940_vm10 = vcmask 130048  }
 0x2b0   :  { %v13701_v11 = vld [vmem:[#allocation2 + $0x28] sm:$0xff]   ;;  %v13703_v13 = vld [vmem:[#allocation4 + $0x20] sm:$0xff]   ;;  %v13704_v14 = vld [vmem:[#allocation4 + $0x28] sm:$0xff]   ;;  %s17393_s17 = sld [smem:[#allocation78_spill]]  ;;  %s17394_s1 = sld [smem:[#allocation66_spill]] }
 0x2b1   :  { %v13702_v12 = vld [vmem:[#allocation4 + $0x18] sm:$0xff]   ;;  %v13705_v15 = vld [vmem:[#allocation4] sm:$0xff]   ;;  %v13706_v27 = vld [vmem:[#allocation4 + $0x8] sm:$0xff]   ;;  %s17395_s16 = sld [smem:[#allocation80_spill]]  ;;  %s17399_s24 = sld [smem:[#allocation90_spill]] }
 0x2b2   :  { %13483 = vmatprep.subr.bf16.mxu0 %v13702_v12  ;;  %v13707_v29 = vld [vmem:[#allocation4 + $0x10] sm:$0xff]   ;;  %v13709_v37 = vld [vmem:[#allocation4 + $0x38] sm:$0xff]   ;;  %v13710_v38 = vld [vmem:[#allocation4 + $0x40] sm:$0xff]   ;;  %s17398_s27 = sld [smem:[#allocation88_spill]] }
 0x2b3   :  { %13484 = vmatpush3.bf16.msra.mxu0 %v13702_v12  ;;  %v13708_v33 = vld [vmem:[#allocation4 + $0x30] sm:$0xff]   ;;  %v13711_v39 = vld [vmem:[#allocation6] sm:$0xff]   ;;  %v13713_v54 = vld [vmem:[#allocation6 + $0x10] sm:$0xff]  }
 0x2b4   :  { %v571_v0 = vld [vmem:[%s17391_s2] sm:$0xff]  ;;  %v572_v1 = vld [vmem:[%s17391_s2 + $0x8] sm:$0xff]  ;;  %v573_v2 = vld [vmem:[%s17391_s2 + $0x10] sm:$0xff]  ;;  %13485 = vmatprep.subr.bf16.mxu0 %v13703_v13 }
 0x2b5   :  { %v575_v3 = vpack.c.bf16 %v572_v1, %v571_v0  ;;  %v574_v4 = vld [vmem:[%s17391_s2 + $0x18] sm:$0xff]  ;;  %v12005_v42 = vld [vmem:[%s17392_s7] ss:$0 sm:$0xff]  ;;  %v13719_v55 = vld [vmem:[#allocation7 + $0x84] ss:$8 sps:$4 sm:$0xff]  }
 0x2b6   :  { %v576_v5 = vpack.c.bf16 %v574_v4, %v573_v2  ;;  %v13715_v40 = vld [vmem:[#allocation6 + $0x20] sm:$0xff]   ;;  %v13712_v52 = vld [vmem:[#allocation6 + $0x8] sm:$0xff]   ;;  %v13714_v56 = vld [vmem:[#allocation6 + $0x18] sm:$0xff]  }
 0x2b7   :  { %13467 = vmatprep.subr.bf16.mxu1 %v575_v3  ;;  %13486 = vmatpush3.bf16.msra.mxu0 %v13703_v13  ;;  %v13716_v53 = vld [vmem:[#allocation6 + $0x28] sm:$0xff]   ;;  %v13717_v57 = vld [vmem:[#allocation7 + $0x80] ss:$8 sps:$4 sm:$0xff]   ;;  %v13725_v60 = vld [vmem:[#allocation7 + $0xa4] ss:$8 sps:$4 sm:$0xff]  }
 0x2b8   :  { %13468 = vmatpush3.bf16.msra.mxu1 %v575_v3  ;;  %13487 = vmatprep.subr.bf16.mxu0 %v13704_v14  ;;  %v13722_v58 = vld [vmem:[#allocation7 + $0x94] ss:$8 sps:$4 sm:$0xff]   ;;  %v13720_v59 = vld [vmem:[#allocation7 + $0x90] ss:$8 sps:$4 sm:$0xff]   ;;  %v13723_v61 = vld [vmem:[#allocation7 + $0xa0] ss:$8 sps:$4 sm:$0xff]  }
 0x2b9   :  { %13469 = vmatprep.subr.bf16.mxu1 %v576_v5  ;;  %v13728_v62 = vld [vmem:[#allocation7 + $0xb4] ss:$8 sps:$4 sm:$0xff]   ;;  %v13726_v63 = vld [vmem:[#allocation7 + $0xb0] ss:$8 sps:$4 sm:$0xff]   ;;  %v13731_v0 = vld [vmem:[#allocation7 + $0xc4] ss:$8 sps:$4 sm:$0xff]  }
 0x2ba   :  { %v13729_v1 = vld [vmem:[#allocation7 + $0xc0] ss:$8 sps:$4 sm:$0xff]   ;;  %v13734_v2 = vld [vmem:[#allocation7 + $0xd4] ss:$8 sps:$4 sm:$0xff]   ;;  %v13737_v4 = vld [vmem:[#allocation7 + $0xe4] ss:$8 sps:$4 sm:$0xff]  }
 0x2bb   :  { %13488 = vmatpush3.bf16.msra.mxu0 %v13704_v14  ;;  %v13740_v6 = vld [vmem:[#allocation7 + $0xf4] ss:$8 sps:$4 sm:$0xff]  }
 0x2bc   :  { %13470 = vmatpush3.bf16.msra.mxu1 %v576_v5  ;;  %13493 = vmatprep.subr.bf16.mxu0 %v13705_v15 }
 0x2bd   :  { %13475 = vmatprep.subr.bf16.mxu1 %v575_v3 }
 0x2bf   :  { %13472 = vmatmul.mubr.msk.bf16.vlgmr.msra.gmra.mrb[0].mxu1 %vm591_vm0, %v13697_v7  ;;  %v13738_v7 = vld [vmem:[#allocation7 + $0xf0] ss:$8 sps:$4 sm:$0xff]  }
 0x2c0   :  { %13476 = vmatpush3.bf16.msra.mxu1 %v575_v3  ;;  %13479 = vmatprep.mubr.msk.bf16.mxu1 %vm591_vm0, %v13698_v8  ;;  %v13743_v8 = vld [vmem:[#allocation7 + $0x4] ss:$8 sps:$4 sm:$0xff]  }
 0x2c1   :  { %13477 = vmatprep.subr.bf16.mxu1 %v576_v5 }
 0x2c4   :  { %13478 = vmatpush3.bf16.msra.mxu1 %v576_v5 }
 0x2c5   :  { %13503 = vmatprep.subr.bf16.mxu1 %v575_v3 }
 0x2c7   :  { %13480 = vmatmul.mubr.msk.bf16.vlgmr.msra.gmra.mrb[4].mxu1 %vm591_vm0, %v13699_v9  ;;  %v16306_v9 = vmov 0  }
 0x2c8   :  { %13504 = vmatpush3.bf16.msra.mxu1 %v575_v3  ;;  %13507 = vmatprep.mubr.msk.bf16.mxu1 %vm591_vm0, %v13700_v10  ;;  %v13732_v3 = vld [vmem:[#allocation7 + $0xd0] ss:$8 sps:$4 sm:$0xff]  }
 0x2c9   :  { %13505 = vmatprep.subr.bf16.mxu1 %v576_v5 }
 0x2cc   :  { %13506 = vmatpush3.bf16.msra.mxu1 %v576_v5  ;;  %v13735_v5 = vld [vmem:[#allocation7 + $0xe0] ss:$8 sps:$4 sm:$0xff]  }
 0x2cf   :  { %13508 = vmatmul.mubr.msk.bf16.vlgmr.msra.gmra.mrb[8].mxu1 %vm591_vm0, %v13701_v11 }
 0x2d0   :  { %13525 = vmatprep.mubr.msk.bf16.mxu1 %vm591_vm0, %v13711_v39  ;;  %v13761_v39 = vld [vmem:[#allocation7 + $0x64] ss:$8 sps:$4 sm:$0xff]  }
 0x392   :  { %v13473_v16 = vpop.f32.mrb[0].mxu1 }
 0x393   :  { %v632_v17 = vpop.f32.mrb[1].mxu1 }
 0x394   :  { %v13474_v18 = vpop.f32.mrb[2].mxu1 }
 0x395   :  { %v648_v19 = vpack.c.bf16 %v13474_v18, %v13473_v16  ;;  %v635_v20 = vpop.f32.mrb[3].mxu1 }
 0x396   :  { %v647_v21 = vpack.c.bf16 %v635_v20, %v632_v17 }
 0x39a   :  { %v13481_v22 = vpop.f32.mrb[4].mxu1 }
 0x39b   :  { %v710_v23 = vpop.f32.mrb[5].mxu1 }
 0x39c   :  { %v13482_v24 = vpop.f32.mrb[6].mxu1 }
 0x39d   :  { %v726_v25 = vpack.c.bf16 %v13482_v24, %v13481_v22  ;;  %v713_v26 = vpop.f32.mrb[7].mxu1 }
 0x39e   :  { %v725_v28 = vpack.c.bf16 %v713_v26, %v710_v23 }
 0x3a0   :  { %13489 = vmatprep.mubr.msk.bf16.mxu0 %vm752_vm1, %v725_v28 }
 0x3a1   :  { %13490 = vmatmul.mubr.msk.bf16.vlgmr.msra.gmra.mrb[0].mxu0 %vm752_vm1, %v726_v25 }
 0x3a2   :  { %13494 = vmatpush3.bf16.msra.mxu0 %v13705_v15  ;;  %13499 = vmatprep.mubr.msk.bf16.mxu0 %vm752_vm1, %v647_v21  ;;  %v13509_v30 = vpop.f32.mrb[8].mxu1 }
 0x3a3   :  { %13495 = vmatprep.subr.bf16.mxu0 %v13706_v27  ;;  %v936_v31 = vpop.f32.mrb[9].mxu1 }
 0x3a4   :  { %v13510_v32 = vpop.f32.mrb[10].mxu1 }
 0x3a5   :  { %v952_v34 = vpack.c.bf16 %v13510_v32, %v13509_v30  ;;  %v939_v35 = vpop.f32.mrb[11].mxu1  ;;  %v13744_v30 = vld [vmem:[#allocation7 + $0x10] ss:$8 sps:$4 sm:$0xff]   ;;  %v13747_v32 = vld [vmem:[#allocation7 + $0x20] ss:$8 sps:$4 sm:$0xff]  }
 0x3a6   :  { %13496 = vmatpush3.bf16.msra.mxu0 %v13706_v27  ;;  %v951_v36 = vpack.c.bf16 %v939_v35, %v936_v31  ;;  %v13741_v27 = vld [vmem:[#allocation7] ss:$8 sps:$4 sm:$0xff]   ;;  %v13749_v31 = vld [vmem:[#allocation7 + $0x24] ss:$8 sps:$4 sm:$0xff]  }
 0x3a7   :  { %13497 = vmatprep.subr.bf16.mxu0 %v13707_v29  ;;  %v13755_v35 = vld [vmem:[#allocation7 + $0x44] ss:$8 sps:$4 sm:$0xff]  }
 0x3aa   :  { %13498 = vmatpush3.bf16.msra.mxu0 %v13707_v29  ;;  %v13746_v29 = vld [vmem:[#allocation7 + $0x14] ss:$8 sps:$4 sm:$0xff]  }
 0x3ab   :  { %13511 = vmatprep.subr.bf16.mxu0 %v13708_v33 }
 0x3ad   :  { %13500 = vmatmul.mubr.msk.bf16.vlgmr.msra.gmra.mrb[0].mxu0 %vm752_vm1, %v648_v19 }
 0x3ae   :  { %13512 = vmatpush3.bf16.msra.mxu0 %v13708_v33  ;;  %13517 = vmatprep.mubr.msk.bf16.mxu0 %vm752_vm1, %v951_v36  ;;  %v13752_v33 = vld [vmem:[#allocation7 + $0x34] ss:$8 sps:$4 sm:$0xff]   ;;  %v13753_v36 = vld [vmem:[#allocation7 + $0x40] ss:$8 sps:$4 sm:$0xff]  }
 0x3af   :  { %13513 = vmatprep.subr.bf16.mxu0 %v13709_v37 }
 0x3b2   :  { %13514 = vmatpush3.bf16.msra.mxu0 %v13709_v37  ;;  %v13758_v37 = vld [vmem:[#allocation7 + $0x54] ss:$8 sps:$4 sm:$0xff]  }
 0x3b3   :  { %13515 = vmatprep.subr.bf16.mxu0 %v13710_v38 }
 0x3b6   :  { %13516 = vmatpush3.bf16.msra.mxu0 %v13710_v38  ;;  %v13756_v38 = vld [vmem:[#allocation7 + $0x50] ss:$8 sps:$4 sm:$0xff]  }
 0x3b9   :  { %13518 = vmatmul.mubr.msk.bf16.vlgmr.msra.gmra.mrb[0].mxu0 %vm752_vm1, %v952_v34  ;;  %v13750_v34 = vld [vmem:[#allocation7 + $0x30] ss:$8 sps:$4 sm:$0xff]  }
 0x3ba   :  { %13541 = vmatprep.mubr.msk.bf16.mxu0 %vm591_vm0, %v13715_v40  ;;  %v13759_v40 = vld [vmem:[#allocation7 + $0x60] ss:$8 sps:$4 sm:$0xff]  }
 0x48c   :  { %v13519_v41 = vpop.f32.mrb[0].mxu0 }
 0x48d   :  { %v1018_v43 = vpop.f32.mrb[1].mxu0  ;;  %v1046_v45 = vadd.f32 %v13519_v41, %v12005_v42  ;;  %v13764_v41 = vld [vmem:[#allocation7 + $0x74] ss:$8 sps:$4 sm:$0xff]  }
 0x48e   :  { %v13520_v44 = vpop.f32.mrb[2].mxu0  ;;  %v1044_v48 = vadd.f32 %v12005_v42, %v1018_v43  ;;  %v13767_v43 = vld [vmem:[#allocation7 + $0x104] ss:$8 sps:$4 sm:$0xff]  }
 0x48f   :  { %v1047_v46 = vadd.f32 %v13520_v44, %v12005_v42  ;;  %v1021_v47 = vpop.f32.mrb[3].mxu0  ;;  %v13765_v44 = vld [vmem:[#allocation7 + $0x100] ss:$8 sps:$4 sm:$0xff]  }
 0x490   :  { %v1045_v49 = vadd.f32 %v12005_v42, %v1021_v47  ;;  %v13762_v42 = vld [vmem:[#allocation7 + $0x70] ss:$8 sps:$4 sm:$0xff]   ;;  %v13773_v47 = vld [vmem:[#allocation7 + $0x124] ss:$8 sps:$4 sm:$0xff]  }
 0x491   :  { %v1049_v50 = vpack.c.bf16 %v1047_v46, %v1046_v45  ;;  %v13770_v45 = vld [vmem:[#allocation7 + $0x114] ss:$8 sps:$4 sm:$0xff]   ;;  %v13768_v46 = vld [vmem:[#allocation7 + $0x110] ss:$8 sps:$4 sm:$0xff]  }
 0x492   :  { %v1048_v51 = vpack.c.bf16 %v1045_v49, %v1044_v48  ;;  %v13771_v48 = vld [vmem:[#allocation7 + $0x120] ss:$8 sps:$4 sm:$0xff]   ;;  %v13776_v49 = vld [vmem:[#allocation7 + $0x134] ss:$8 sps:$4 sm:$0xff]  }
 0x494   :  { %13521 = vmatprep.subr.bf16.mxu1 %v1048_v51  ;;  %13537 = vmatprep.subr.bf16.mxu0 %v1048_v51 }
 0x495   :  { %13522 = vmatpush3.bf16.msra.mxu1 %v1048_v51  ;;  %13538 = vmatpush3.bf16.msra.mxu0 %v1048_v51 }
 0x496   :  { %13523 = vmatprep.subr.bf16.mxu1 %v1049_v50  ;;  %13539 = vmatprep.subr.bf16.mxu0 %v1049_v50 }
 0x499   :  { %13524 = vmatpush3.bf16.msra.mxu1 %v1049_v50  ;;  %13540 = vmatpush3.bf16.msra.mxu0 %v1049_v50 }
 0x49a   :  { %13529 = vmatprep.subr.bf16.mxu1 %v1048_v51 }
 0x49c   :  { %13526 = vmatmul.mubr.msk.bf16.vlgmr.msra.gmra.mrb[12].mxu1 %vm591_vm0, %v13712_v52  ;;  %13542 = vmatmul.mubr.msk.bf16.vlgmr.msra.gmra.mrb[4].mxu0 %vm591_vm0, %v13716_v53  ;;  %v13777_v52 = vld [vmem:[#allocation7 + $0x140] ss:$8 sps:$4 sm:$0xff]   ;;  %v13782_v53 = vld [vmem:[#allocation7 + $0x154] ss:$8 sps:$4 sm:$0xff]  }
 0x49d   :  { %13530 = vmatpush3.bf16.msra.mxu1 %v1048_v51  ;;  %13533 = vmatprep.mubr.msk.bf16.mxu1 %vm591_vm0, %v13713_v54  ;;  %v13779_v51 = vld [vmem:[#allocation7 + $0x144] ss:$8 sps:$4 sm:$0xff]   ;;  %v13780_v54 = vld [vmem:[#allocation7 + $0x150] ss:$8 sps:$4 sm:$0xff]  }
 0x49e   :  { %13531 = vmatprep.subr.bf16.mxu1 %v1049_v50  ;;  %1788 = vmatprep.mubr.bf16.mxu0 %v16306_v9 }
 0x4a1   :  { %13532 = vmatpush3.bf16.msra.mxu1 %v1049_v50  ;;  %v13774_v50 = vld [vmem:[#allocation7 + $0x130] ss:$8 sps:$4 sm:$0xff]  }
 0x4a2   :  { %1306 = vmatprep.subr.bf16.mxu1 %v13719_v55  ;;  %v13785_v55 = vld [vmem:[#allocation7 + $0x164] ss:$8 sps:$4 sm:$0xff]  }
 0x4a4   :  { %13534 = vmatmul.mubr.msk.bf16.vlgmr.msra.gmra.mrb[16].mxu1 %vm591_vm0, %v13714_v56  ;;  %v13783_v56 = vld [vmem:[#allocation7 + $0x160] ss:$8 sps:$4 sm:$0xff]  }
 0x4a5   :  { %1307 = vmatpush1.bf16.msra.mxu1 %v13717_v57  ;;  %1338 = vmatprep.mubr.bf16.mxu1 %v16306_v9  ;;  %v13788_v57 = vld [vmem:[#allocation7 + $0x174] ss:$8 sps:$4 sm:$0xff]  }
 0x4a6   :  { %1308 = vmatprep.subr.bf16.mxu1 %v13722_v58  ;;  %v13786_v58 = vld [vmem:[#allocation7 + $0x170] ss:$8 sps:$4 sm:$0xff]  }
 0x4a9   :  { %1309 = vmatpush1.bf16.msra.mxu1 %v13720_v59  ;;  %v1724_v59 = vlaneseq }
 0x4aa   :  { %1310 = vmatprep.subr.bf16.mxu1 %v13725_v60 }
 0x4ab   :  { %v16791_v60 = vshrl.u32 %v1724_v59, 7 }
 0x4ad   :  { %1311 = vmatpush1.bf16.msra.mxu1 %v13723_v61  ;;  %v16794_v61 = vsub.s32 0, %v16791_v60 }
 0x4ae   :  { %1312 = vmatprep.subr.bf16.mxu1 %v13728_v62  ;;  %v1722_v62 = vld [vmem:[#allocation9] sm:$0x3] }
 0x4b1   :  { %1313 = vmatpush1.bf16.msra.mxu1 %v13726_v63  ;;  %v16797_v63 = vsub.s32 1, %v16791_v60 }
 0x4b2   :  { %1314 = vmatprep.subr.bf16.mxu1 %v13731_v0  ;;  %v1727_v0 = vrot.slane %v1722_v62, %v16794_v61 }
 0x4b5   :  { %1315 = vmatpush1.bf16.msra.mxu1 %v13729_v1 }
 0x4b6   :  { %1316 = vmatprep.subr.bf16.mxu1 %v13734_v2  ;;  %v1731_v2 = vrot.slane %v1722_v62, %v16797_v63 }
 0x4b9   :  { %1317 = vmatpush1.bf16.msra.mxu1 %v13732_v3 }
 0x4ba   :  { %1318 = vmatprep.subr.bf16.mxu1 %v13737_v4 }
 0x4bd   :  { %1319 = vmatpush1.bf16.msra.mxu1 %v13735_v5 }
 0x4be   :  { %1320 = vmatprep.subr.bf16.mxu1 %v13740_v6 }
 0x4c1   :  { %1321 = vmatpush1.bf16.msra.mxu1 %v13738_v7 }
 0x4c2   :  { %1439 = vmatprep.subr.bf16.mxu1 %v13743_v8 }
 0x56f   :  { %v16764_v10 = vpop.f32.mrb[12].mxu1  ;;  %v16766_v11 = vpop.f32.mrb[4].mxu0 }
 0x570   :  { %v1104_v12 = vpop.f32.mrb[13].mxu1  ;;  %v16768_v13 = vpop.f32.mrb[5].mxu0 }
 0x571   :  { %v13528_v14 = vpop.f32.mrb[14].mxu1  ;;  %v16770_v15 = vpop.f32.mrb[6].mxu0 }
 0x572   :  { %v1120_v16 = vpack.c.bf16 %v13528_v14, %v16764_v10  ;;  %v1107_v17 = vpop.f32.mrb[15].mxu1  ;;  %v1563_v18 = vpack.c.bf16 %v16770_v15, %v16766_v11  ;;  %v16775_v19 = vpop.f32.mrb[7].mxu0 }
 0x573   :  { %v1119_v20 = vpack.c.bf16 %v1107_v17, %v1104_v12  ;;  %v1562_v21 = vpack.c.bf16 %v16775_v19, %v16768_v13 }
 0x577   :  { %v13535_v22 = vpop.f32.mrb[16].mxu1 }
 0x578   :  { %v1192_v23 = vpop.f32.mrb[17].mxu1 }
 0x579   :  { %v13536_v24 = vpop.f32.mrb[18].mxu1 }
 0x57a   :  { %v1208_v25 = vpack.c.bf16 %v13536_v24, %v13535_v22  ;;  %v1195_v26 = vpop.f32.mrb[19].mxu1  ;;  %v13791_v24 = vld [vmem:[#allocation10 + $0x10] sm:$0xff]  }
 0x57b   :  { %v1207_v28 = vpack.c.bf16 %v1195_v26, %v1192_v23  ;;  %v13789_v23 = vld [vmem:[#allocation10] sm:$0xff]   ;;  %v13790_v26 = vld [vmem:[#allocation10 + $0x8] sm:$0xff]  }
 0x57d   :  { %1339 = vmatmul.mubr.bf16.vlgmr.msra.gmra.mrb[20].mxu1 %v1207_v28  ;;  %v13797_v28 = vld [vmem:[#allocation12 + $0x114] ss:$8 sps:$4 sm:$0xff]  }
 0x57e   :  { %1440 = vmatpush1.bf16.msra.mxu1 %v13741_v27  ;;  %1348 = vmatprep.mubr.bf16.mxu1 %v16306_v9  ;;  %v13792_v27 = vld [vmem:[#allocation12 + $0x100] ss:$8 sps:$4 sm:$0xff]  }
 0x57f   :  { %1441 = vmatprep.subr.bf16.mxu1 %v13746_v29  ;;  %v13795_v29 = vld [vmem:[#allocation12 + $0x110] ss:$8 sps:$4 sm:$0xff]  }
 0x582   :  { %1442 = vmatpush1.bf16.msra.mxu1 %v13744_v30  ;;  %v13800_v30 = vld [vmem:[#allocation12 + $0x124] ss:$8 sps:$4 sm:$0xff]  }
 0x583   :  { %1443 = vmatprep.subr.bf16.mxu1 %v13749_v31  ;;  %v13798_v31 = vld [vmem:[#allocation12 + $0x120] ss:$8 sps:$4 sm:$0xff]  }
 0x585   :  { %1349 = vmatmul.mubr.bf16.gmra.mrb[24].mxu1 %v1208_v25  ;;  %v13794_v25 = vld [vmem:[#allocation12 + $0x104] ss:$8 sps:$4 sm:$0xff]  }
 0x586   :  { %1444 = vmatpush1.bf16.msra.mxu1 %v13747_v32  ;;  %1471 = vmatprep.mubr.bf16.mxu1 %v16306_v9  ;;  %v13803_v32 = vld [vmem:[#allocation12 + $0x134] ss:$8 sps:$4 sm:$0xff]  }
 0x587   :  { %1445 = vmatprep.subr.bf16.mxu1 %v13752_v33  ;;  %v13801_v33 = vld [vmem:[#allocation12 + $0x130] ss:$8 sps:$4 sm:$0xff]  }
 0x58a   :  { %1446 = vmatpush1.bf16.msra.mxu1 %v13750_v34  ;;  %v13806_v34 = vld [vmem:[#allocation12 + $0x144] ss:$8 sps:$4 sm:$0xff]  }
 0x58b   :  { %1447 = vmatprep.subr.bf16.mxu1 %v13755_v35  ;;  %v13804_v35 = vld [vmem:[#allocation12 + $0x140] ss:$8 sps:$4 sm:$0xff]  }
 0x58e   :  { %1448 = vmatpush1.bf16.msra.mxu1 %v13753_v36  ;;  %v13809_v36 = vld [vmem:[#allocation12 + $0x154] ss:$8 sps:$4 sm:$0xff]  }
 0x58f   :  { %1449 = vmatprep.subr.bf16.mxu1 %v13758_v37  ;;  %v13807_v37 = vld [vmem:[#allocation12 + $0x150] ss:$8 sps:$4 sm:$0xff]  }
 0x592   :  { %1450 = vmatpush1.bf16.msra.mxu1 %v13756_v38  ;;  %v13812_v38 = vld [vmem:[#allocation12 + $0x164] ss:$8 sps:$4 sm:$0xff]  }
 0x593   :  { %1451 = vmatprep.subr.bf16.mxu1 %v13761_v39  ;;  %v13810_v39 = vld [vmem:[#allocation12 + $0x160] ss:$8 sps:$4 sm:$0xff]  }
 0x596   :  { %1452 = vmatpush1.bf16.msra.mxu1 %v13759_v40  ;;  %v13815_v40 = vld [vmem:[#allocation12 + $0x174] ss:$8 sps:$4 sm:$0xff]  }
 0x597   :  { %1453 = vmatprep.subr.bf16.mxu1 %v13764_v41  ;;  %v13813_v41 = vld [vmem:[#allocation12 + $0x170] ss:$8 sps:$4 sm:$0xff]  }
 0x59a   :  { %1454 = vmatpush1.bf16.msra.mxu1 %v13762_v42  ;;  %v13818_v42 = vld [vmem:[#allocation12 + $0x184] ss:$8 sps:$4 sm:$0xff]  }
 0x59b   :  { %1661 = vmatprep.subr.bf16.mxu1 %v13767_v43  ;;  %v13816_v43 = vld [vmem:[#allocation12 + $0x180] ss:$8 sps:$4 sm:$0xff]  }
 0x59d   :  { %1472 = vmatmul.mubr.bf16.vlgmr.msra.gmra.mrb[20].mxu1 %v1119_v20 }
 0x59e   :  { %1662 = vmatpush1.bf16.msra.mxu1 %v13765_v44  ;;  %1481 = vmatprep.mubr.bf16.mxu1 %v16306_v9  ;;  %v13821_v44 = vld [vmem:[#allocation12 + $0x194] ss:$8 sps:$4 sm:$0xff]  }
 0x59f   :  { %1663 = vmatprep.subr.bf16.mxu1 %v13770_v45  ;;  %v13819_v45 = vld [vmem:[#allocation12 + $0x190] ss:$8 sps:$4 sm:$0xff]  }
 0x5a2   :  { %1664 = vmatpush1.bf16.msra.mxu1 %v13768_v46  ;;  %v13824_v46 = vld [vmem:[#allocation12 + $0x1a4] ss:$8 sps:$4 sm:$0xff]  }
 0x5a3   :  { %1665 = vmatprep.subr.bf16.mxu1 %v13773_v47  ;;  %v13822_v47 = vld [vmem:[#allocation12 + $0x1a0] ss:$8 sps:$4 sm:$0xff]  }
 0x5a5   :  { %1482 = vmatmul.mubr.bf16.gmra.mrb[24].mxu1 %v1120_v16 }
 0x5a6   :  { %1666 = vmatpush1.bf16.msra.mxu1 %v13771_v48  ;;  %1693 = vmatprep.mubr.bf16.mxu1 %v16306_v9  ;;  %v13827_v48 = vld [vmem:[#allocation12 + $0x1b4] ss:$8 sps:$4 sm:$0xff]  }
 0x5a7   :  { %1667 = vmatprep.subr.bf16.mxu1 %v13776_v49  ;;  %v13825_v49 = vld [vmem:[#allocation12 + $0x1b0] ss:$8 sps:$4 sm:$0xff]  }
 0x5aa   :  { %1668 = vmatpush1.bf16.msra.mxu1 %v13774_v50  ;;  %v13830_v50 = vld [vmem:[#allocation12 + $0x1c4] ss:$8 sps:$4 sm:$0xff]  }
 0x5ab   :  { %1669 = vmatprep.subr.bf16.mxu1 %v13779_v51  ;;  %v13828_v51 = vld [vmem:[#allocation12 + $0x1c0] ss:$8 sps:$4 sm:$0xff]  }
 0x5ae   :  { %1670 = vmatpush1.bf16.msra.mxu1 %v13777_v52  ;;  %v13833_v52 = vld [vmem:[#allocation12 + $0x1d4] ss:$8 sps:$4 sm:$0xff]  }
 0x5af   :  { %1671 = vmatprep.subr.bf16.mxu1 %v13782_v53  ;;  %v13831_v53 = vld [vmem:[#allocation12 + $0x1d0] ss:$8 sps:$4 sm:$0xff]  }
 0x5b2   :  { %1672 = vmatpush1.bf16.msra.mxu1 %v13780_v54  ;;  %v13834_v54 = vld [vmem:[#allocation12 + $0x1e0] ss:$8 sps:$4 sm:$0xff]  }
 0x5b3   :  { %1673 = vmatprep.subr.bf16.mxu1 %v13785_v55  ;;  %v13836_v55 = vld [vmem:[#allocation12 + $0x1e4] ss:$8 sps:$4 sm:$0xff]  }
 0x5b6   :  { %1674 = vmatpush1.bf16.msra.mxu1 %v13783_v56  ;;  %v13839_v56 = vld [vmem:[#allocation12 + $0x1f4] ss:$8 sps:$4 sm:$0xff]  }
 0x5b7   :  { %1675 = vmatprep.subr.bf16.mxu1 %v13788_v57  ;;  %v13837_v57 = vld [vmem:[#allocation12 + $0x1f0] ss:$8 sps:$4 sm:$0xff]  }
 0x5ba   :  { %1676 = vmatpush1.bf16.msra.mxu1 %v13786_v58  ;;  %v13842_v58 = vld [vmem:[#allocation12 + $0x4] ss:$8 sps:$4 sm:$0xff]  }
 0x5bd   :  { %1694 = vmatmul.mubr.bf16.vlgmr.msra.gmra.mrb[20].mxu1 %v1562_v21 }
 0x5be   :  { %1703 = vmatprep.mubr.bf16.mxu1 %v16306_v9 }
 0x5c5   :  { %1704 = vmatmul.mubr.bf16.gmra.mrb[24].mxu1 %v1563_v18 }
 0x5c6   :  { %2371 = vmatprep.mubr.bf16.mxu1 %v16306_v9 }
 0x690   :  { %v1695_v1 = vpop.f32.mrb[20].mxu1 }
 0x691   :  { %v1697_v3 = vpop.f32.mrb[21].mxu1  ;;  %v1734_v5 = vadd.f32 %v1727_v0, %v1695_v1 }
 0x692   :  { %v1699_v4 = vpop.f32.mrb[22].mxu1  ;;  %v1735_v8 = vadd.f32 %v1731_v2, %v1697_v3 }
 0x693   :  { %v1736_v6 = vadd.f32 %v1727_v0, %v1699_v4  ;;  %v1701_v7 = vpop.f32.mrb[23].mxu1 }
 0x694   :  { %v1737_v10 = vadd.f32 %v1731_v2, %v1701_v7 }
 0x695   :  { %v1742_v11 = vpack.c.bf16 %v1736_v6, %v1734_v5 }
 0x696   :  { %v1743_v12 = vpack.c.bf16 %v1737_v10, %v1735_v8 }
 0x698   :  { %v1705_v13 = vpop.f32.mrb[24].mxu1  ;;  %1756 = vmatprep.subr.bf16.mxu0 %v1743_v12  ;;  %2339 = vmatprep.subr.bf16.mxu1 %v1743_v12 }
 0x699   :  { %v1707_v14 = vpop.f32.mrb[25].mxu1  ;;  %1757 = vmatpush1.bf16.msra.mxu0 %v1742_v11  ;;  %2340 = vmatpush1.bf16.msra.mxu1 %v1742_v11  ;;  %v1738_v16 = vadd.f32 %v1727_v0, %v1705_v13 }
 0x69a   :  { %v1709_v15 = vpop.f32.mrb[26].mxu1  ;;  %v1739_v19 = vadd.f32 %v1731_v2, %v1707_v14 }
 0x69b   :  { %v1740_v17 = vadd.f32 %v1727_v0, %v1709_v15  ;;  %v1711_v18 = vpop.f32.mrb[27].mxu1 }
 0x69c   :  { %v1741_v20 = vadd.f32 %v1731_v2, %v1711_v18  ;;  %v13845_v18 = vld [vmem:[#allocation12 + $0x14] ss:$8 sps:$4 sm:$0xff]  }
 0x69d   :  { %v1744_v21 = vpack.c.bf16 %v1740_v17, %v1738_v16  ;;  %v13840_v17 = vld [vmem:[#allocation12] ss:$8 sps:$4 sm:$0xff]  }
 0x69e   :  { %v1745_v22 = vpack.c.bf16 %v1741_v20, %v1739_v19  ;;  %v13936_v19 = vld [vmem:[#allocation15] ss:$8 sps:$4 sm:$0xff]   ;;  %v13938_v20 = vld [vmem:[#allocation15 + $0x4] ss:$8 sps:$4 sm:$0xff]  }
 0x6a0   :  { %1758 = vmatprep.subr.bf16.mxu0 %v1745_v22  ;;  %2341 = vmatprep.subr.bf16.mxu1 %v1745_v22 }
 0x6a1   :  { %1759 = vmatpush1.bf16.msra.mxu0 %v1744_v21  ;;  %2342 = vmatpush1.bf16.msra.mxu1 %v1744_v21 }
 0x6a2   :  { %1844 = vmatprep.subr.bf16.mxu0 %v1743_v12  ;;  %2870 = vmatprep.subr.bf16.mxu1 %v13938_v20  ;;  %v13891_v20 = vld [vmem:[#allocation12 + $0x210] ss:$8 sps:$4 sm:$0xff]  }
 0x6a4   :  { %12067 = vmatmul.mubr.msk.bf16.vlgmr.msra.gmra.mrb[8].mxu0 %vm591_vm0, %v13789_v23  ;;  %12135 = vmatmul.mubr.msk.bf16.vlgmr.msra.gmra.mrb[28].mxu1 %vm591_vm0, %v13791_v24  ;;  %v13848_v23 = vld [vmem:[#allocation12 + $0x24] ss:$8 sps:$4 sm:$0xff]   ;;  %v13939_v24 = vld [vmem:[#allocation15 + $0x10] ss:$8 sps:$4 sm:$0xff]  }
 0x6a5   :  { %1845 = vmatpush1.bf16.msra.mxu0 %v1742_v11  ;;  %1876 = vmatprep.mubr.bf16.mxu0 %v16306_v9 }
 0x6a6   :  { %1846 = vmatprep.subr.bf16.mxu0 %v1745_v22  ;;  %v13941_v22 = vld [vmem:[#allocation15 + $0x14] ss:$8 sps:$4 sm:$0xff]   ;;  %2871 = vmatpush1.bf16.msra.mxu1 %v13936_v19 }
 0x6a7   :  { %2872 = vmatprep.subr.bf16.mxu1 %v13941_v22  ;;  %v13893_v19 = vld [vmem:[#allocation12 + $0x214] ss:$8 sps:$4 sm:$0xff]   ;;  %v13894_v22 = vld [vmem:[#allocation12 + $0x220] ss:$8 sps:$4 sm:$0xff]  }
 0x6a9   :  { %1847 = vmatpush1.bf16.msra.mxu0 %v1744_v21  ;;  %v13843_v21 = vld [vmem:[#allocation12 + $0x10] ss:$8 sps:$4 sm:$0xff]  }
 0x6aa   :  { %2082 = vmatprep.subr.bf16.mxu0 %v13794_v25  ;;  %v13944_v25 = vld [vmem:[#allocation15 + $0x24] ss:$8 sps:$4 sm:$0xff]   ;;  %2873 = vmatpush1.bf16.msra.mxu1 %v13939_v24 }
 0x6ab   :  { %2874 = vmatprep.subr.bf16.mxu1 %v13944_v25  ;;  %v13897_v24 = vld [vmem:[#allocation12 + $0x230] ss:$8 sps:$4 sm:$0xff]   ;;  %v13902_v25 = vld [vmem:[#allocation12 + $0x244] ss:$8 sps:$4 sm:$0xff]  }
 0x6ac   :  { %12069 = vmatmul.mubr.msk.bf16.vlgmr.msra.gmra.mrb[12].mxu0 %vm591_vm0, %v13790_v26  ;;  %v13846_v26 = vld [vmem:[#allocation12 + $0x20] ss:$8 sps:$4 sm:$0xff]  }
 0x6ad   :  { %2083 = vmatpush1.bf16.msra.mxu0 %v13792_v27  ;;  %v13851_v27 = vld [vmem:[#allocation12 + $0x34] ss:$8 sps:$4 sm:$0xff]  }
 0x6ae   :  { %2084 = vmatprep.subr.bf16.mxu0 %v13797_v28  ;;  %v13942_v28 = vld [vmem:[#allocation15 + $0x20] ss:$8 sps:$4 sm:$0xff]  }
 0x6af   :  { %2875 = vmatpush1.bf16.msra.mxu1 %v13942_v28  ;;  %v13912_v28 = vld [vmem:[#allocation12 + $0x280] ss:$8 sps:$4 sm:$0xff]  }
 0x6b1   :  { %2085 = vmatpush1.bf16.msra.mxu0 %v13795_v29  ;;  %v13947_v29 = vld [vmem:[#allocation15 + $0x34] ss:$8 sps:$4 sm:$0xff]  }
 0x6b2   :  { %2086 = vmatprep.subr.bf16.mxu0 %v13800_v30  ;;  %v13849_v30 = vld [vmem:[#allocation12 + $0x30] ss:$8 sps:$4 sm:$0xff]   ;;  %2876 = vmatprep.subr.bf16.mxu1 %v13947_v29  ;;  %v13917_v29 = vld [vmem:[#allocation12 + $0x294] ss:$8 sps:$4 sm:$0xff]  }
 0x6b5   :  { %2087 = vmatpush1.bf16.msra.mxu0 %v13798_v31  ;;  %v13854_v31 = vld [vmem:[#allocation12 + $0x44] ss:$8 sps:$4 sm:$0xff]  }
 0x6b6   :  { %2088 = vmatprep.subr.bf16.mxu0 %v13803_v32  ;;  %v13945_v32 = vld [vmem:[#allocation15 + $0x30] ss:$8 sps:$4 sm:$0xff]  }
 0x6b7   :  { %2877 = vmatpush1.bf16.msra.mxu1 %v13945_v32  ;;  %v13918_v32 = vld [vmem:[#allocation12 + $0x2a0] ss:$8 sps:$4 sm:$0xff]  }
 0x6b9   :  { %2089 = vmatpush1.bf16.msra.mxu0 %v13801_v33  ;;  %v13950_v33 = vld [vmem:[#allocation15 + $0x44] ss:$8 sps:$4 sm:$0xff]  }
 0x6ba   :  { %2090 = vmatprep.subr.bf16.mxu0 %v13806_v34  ;;  %v13852_v34 = vld [vmem:[#allocation12 + $0x40] ss:$8 sps:$4 sm:$0xff]   ;;  %2878 = vmatprep.subr.bf16.mxu1 %v13950_v33  ;;  %v13923_v33 = vld [vmem:[#allocation12 + $0x2b4] ss:$8 sps:$4 sm:$0xff]  }
 0x6bd   :  { %2091 = vmatpush1.bf16.msra.mxu0 %v13804_v35  ;;  %v13857_v35 = vld [vmem:[#allocation12 + $0x54] ss:$8 sps:$4 sm:$0xff]  }
 0x6be   :  { %2092 = vmatprep.subr.bf16.mxu0 %v13809_v36  ;;  %v13948_v36 = vld [vmem:[#allocation15 + $0x40] ss:$8 sps:$4 sm:$0xff]  }
 0x6bf   :  { %2879 = vmatpush1.bf16.msra.mxu1 %v13948_v36  ;;  %v13924_v36 = vld [vmem:[#allocation12 + $0x2c0] ss:$8 sps:$4 sm:$0xff]  }
 0x6c1   :  { %2093 = vmatpush1.bf16.msra.mxu0 %v13807_v37  ;;  %v13953_v37 = vld [vmem:[#allocation15 + $0x54] ss:$8 sps:$4 sm:$0xff]  }
 0x6c2   :  { %2094 = vmatprep.subr.bf16.mxu0 %v13812_v38  ;;  %v13855_v38 = vld [vmem:[#allocation12 + $0x50] ss:$8 sps:$4 sm:$0xff]   ;;  %2880 = vmatprep.subr.bf16.mxu1 %v13953_v37  ;;  %v13929_v37 = vld [vmem:[#allocation12 + $0x2d4] ss:$8 sps:$4 sm:$0xff]  }
 0x6c5   :  { %2095 = vmatpush1.bf16.msra.mxu0 %v13810_v39  ;;  %v13860_v39 = vld [vmem:[#allocation12 + $0x64] ss:$8 sps:$4 sm:$0xff]  }
 0x6c6   :  { %2096 = vmatprep.subr.bf16.mxu0 %v13815_v40  ;;  %v13951_v40 = vld [vmem:[#allocation15 + $0x50] ss:$8 sps:$4 sm:$0xff]  }
 0x6c7   :  { %2881 = vmatpush1.bf16.msra.mxu1 %v13951_v40  ;;  %v13930_v40 = vld [vmem:[#allocation12 + $0x2e0] ss:$8 sps:$4 sm:$0xff]  }
 0x6c9   :  { %2097 = vmatpush1.bf16.msra.mxu0 %v13813_v41  ;;  %v13956_v41 = vld [vmem:[#allocation15 + $0x64] ss:$8 sps:$4 sm:$0xff]  }
 0x6ca   :  { %2098 = vmatprep.subr.bf16.mxu0 %v13818_v42  ;;  %v13858_v42 = vld [vmem:[#allocation12 + $0x60] ss:$8 sps:$4 sm:$0xff]   ;;  %2882 = vmatprep.subr.bf16.mxu1 %v13956_v41  ;;  %v13935_v41 = vld [vmem:[#allocation12 + $0x2f4] ss:$8 sps:$4 sm:$0xff]  }
 0x6cd   :  { %2099 = vmatpush1.bf16.msra.mxu0 %v13816_v43  ;;  %v13863_v43 = vld [vmem:[#allocation12 + $0x74] ss:$8 sps:$4 sm:$0xff]  }
 0x6ce   :  { %2100 = vmatprep.subr.bf16.mxu0 %v13821_v44  ;;  %v13954_v44 = vld [vmem:[#allocation15 + $0x60] ss:$8 sps:$4 sm:$0xff]  }
 0x6cf   :  { %2883 = vmatpush1.bf16.msra.mxu1 %v13954_v44  ;;  %v13966_v44 = vld [vmem:[#allocation15 + $0xa0] ss:$8 sps:$4 sm:$0xff]  }
 0x6d1   :  { %2101 = vmatpush1.bf16.msra.mxu0 %v13819_v45  ;;  %v13959_v45 = vld [vmem:[#allocation15 + $0x74] ss:$8 sps:$4 sm:$0xff]  }
 0x6d2   :  { %2102 = vmatprep.subr.bf16.mxu0 %v13824_v46  ;;  %v13861_v46 = vld [vmem:[#allocation12 + $0x70] ss:$8 sps:$4 sm:$0xff]   ;;  %2884 = vmatprep.subr.bf16.mxu1 %v13959_v45 }
 0x6d3   :  { %v13971_v45 = vld [vmem:[#allocation15 + $0xb4] ss:$8 sps:$4 sm:$0xff]  }
 0x6d5   :  { %2103 = vmatpush1.bf16.msra.mxu0 %v13822_v47  ;;  %v13866_v47 = vld [vmem:[#allocation12 + $0x84] ss:$8 sps:$4 sm:$0xff]  }
 0x6d6   :  { %2104 = vmatprep.subr.bf16.mxu0 %v13827_v48  ;;  %v13957_v48 = vld [vmem:[#allocation15 + $0x70] ss:$8 sps:$4 sm:$0xff]  }
 0x6d7   :  { %2885 = vmatpush1.bf16.msra.mxu1 %v13957_v48  ;;  %v13972_v48 = vld [vmem:[#allocation15 + $0xc0] ss:$8 sps:$4 sm:$0xff]  }
 0x6d9   :  { %2105 = vmatpush1.bf16.msra.mxu0 %v13825_v49  ;;  %v13962_v49 = vld [vmem:[#allocation15 + $0x84] ss:$8 sps:$4 sm:$0xff]  }
 0x6da   :  { %2106 = vmatprep.subr.bf16.mxu0 %v13830_v50  ;;  %v13864_v50 = vld [vmem:[#allocation12 + $0x80] ss:$8 sps:$4 sm:$0xff]   ;;  %2886 = vmatprep.subr.bf16.mxu1 %v13962_v49 }
 0x6db   :  { %v13977_v49 = vld [vmem:[#allocation15 + $0xd4] ss:$8 sps:$4 sm:$0xff]  }
 0x6dd   :  { %2107 = vmatpush1.bf16.msra.mxu0 %v13828_v51  ;;  %v13869_v51 = vld [vmem:[#allocation12 + $0x94] ss:$8 sps:$4 sm:$0xff]  }
 0x6de   :  { %2108 = vmatprep.subr.bf16.mxu0 %v13833_v52  ;;  %v13960_v52 = vld [vmem:[#allocation15 + $0x80] ss:$8 sps:$4 sm:$0xff]  }
 0x6df   :  { %2887 = vmatpush1.bf16.msra.mxu1 %v13960_v52  ;;  %v13978_v52 = vld [vmem:[#allocation15 + $0xe0] ss:$8 sps:$4 sm:$0xff]  }
 0x6e1   :  { %2109 = vmatpush1.bf16.msra.mxu0 %v13831_v53  ;;  %v13965_v53 = vld [vmem:[#allocation15 + $0x94] ss:$8 sps:$4 sm:$0xff]  }
 0x6e2   :  { %2110 = vmatprep.subr.bf16.mxu0 %v13836_v55  ;;  %v13872_v55 = vld [vmem:[#allocation12 + $0xa4] ss:$8 sps:$4 sm:$0xff]   ;;  %2888 = vmatprep.subr.bf16.mxu1 %v13965_v53 }
 0x6e5   :  { %2111 = vmatpush1.bf16.msra.mxu0 %v13834_v54  ;;  %v13867_v54 = vld [vmem:[#allocation12 + $0x90] ss:$8 sps:$4 sm:$0xff]  }
 0x6e6   :  { %2112 = vmatprep.subr.bf16.mxu0 %v13839_v56  ;;  %v13963_v56 = vld [vmem:[#allocation15 + $0x90] ss:$8 sps:$4 sm:$0xff]  }
 0x6e7   :  { %2889 = vmatpush1.bf16.msra.mxu1 %v13963_v56 }
 0x6e9   :  { %2113 = vmatpush1.bf16.msra.mxu0 %v13837_v57  ;;  %v13870_v57 = vld [vmem:[#allocation12 + $0xa0] ss:$8 sps:$4 sm:$0xff]  }
 0x6ea   :  { %2285 = vmatprep.subr.bf16.mxu0 %v13842_v58  ;;  %v13875_v58 = vld [vmem:[#allocation12 + $0xb4] ss:$8 sps:$4 sm:$0xff]  }
 0x777   :  { %v16805_v59 = vpop.f32.mrb[8].mxu0  ;;  %v16811_v4 = vpop.f32.mrb[28].mxu1 }
 0x778   :  { %v1792_v62 = vpop.f32.mrb[9].mxu0  ;;  %v16813_v5 = vpop.f32.mrb[29].mxu1 }
 0x779   :  { %v16807_v0 = vpop.f32.mrb[10].mxu0  ;;  %v16815_v6 = vpop.f32.mrb[30].mxu1 }
 0x77a   :  { %v1799_v1 = vpack.c.bf16 %v16807_v0, %v16805_v59  ;;  %v1796_v2 = vpop.f32.mrb[11].mxu0  ;;  %v2382_v7 = vpack.c.bf16 %v16815_v6, %v16811_v4  ;;  %v16819_v8 = vpop.f32.mrb[31].mxu1  ;;  %v13905_v59 = vld [vmem:[#allocation12 + $0x254] ss:$8 sps:$4 sm:$0xff]   ;;  %v13903_v0 = vld [vmem:[#allocation12 + $0x250] ss:$8 sps:$4 sm:$0xff]  }
 0x77b   :  { %v1800_v3 = vpack.c.bf16 %v1796_v2, %v1792_v62  ;;  %v2383_v11 = vpack.c.bf16 %v16819_v8, %v16813_v5  ;;  %v13873_v62 = vld [vmem:[#allocation12 + $0xb0] ss:$8 sps:$4 sm:$0xff]   ;;  %v13878_v2 = vld [vmem:[#allocation12 + $0xc4] ss:$8 sps:$4 sm:$0xff]   ;;  %v13906_v5 = vld [vmem:[#allocation12 + $0x260] ss:$8 sps:$4 sm:$0xff]  }
 0x77c   :  { %v13911_v8 = vld [vmem:[#allocation12 + $0x274] ss:$8 sps:$4 sm:$0xff]  }
 0x77d   :  { %v13983_v4 = vld [vmem:[#allocation15 + $0xf4] ss:$8 sps:$4 sm:$0xff]   ;;  %v13981_v6 = vld [vmem:[#allocation15 + $0xf0] ss:$8 sps:$4 sm:$0xff]  }
 0x77f   :  { %v1878_v10 = vpop.f32.mrb[12].mxu0 }
 0x780   :  { %v1880_v12 = vpop.f32.mrb[13].mxu0 }
 0x781   :  { %v1882_v13 = vpop.f32.mrb[14].mxu0 }
 0x782   :  { %v1887_v14 = vpack.c.bf16 %v1882_v13, %v1878_v10  ;;  %v1884_v15 = vpop.f32.mrb[15].mxu0  ;;  %v13881_v10 = vld [vmem:[#allocation12 + $0xd4] ss:$8 sps:$4 sm:$0xff]   ;;  %v13884_v13 = vld [vmem:[#allocation12 + $0xe4] ss:$8 sps:$4 sm:$0xff]  }
 0x783   :  { %v1888_v16 = vpack.c.bf16 %v1884_v15, %v1880_v12  ;;  %v13879_v12 = vld [vmem:[#allocation12 + $0xd0] ss:$8 sps:$4 sm:$0xff]   ;;  %v13887_v15 = vld [vmem:[#allocation12 + $0xf4] ss:$8 sps:$4 sm:$0xff]  }
 0x785   :  { %2114 = vmatprep.mubr.bf16.mxu0 %v1888_v16  ;;  %v13885_v16 = vld [vmem:[#allocation12 + $0xf0] ss:$8 sps:$4 sm:$0xff]  }
 0x786   :  { %2115 = vmatmul.mubr.bf16.vlgmr.msra.gmra.mrb[16].mxu0 %v1887_v14  ;;  %v13882_v14 = vld [vmem:[#allocation12 + $0xe0] ss:$8 sps:$4 sm:$0xff]  }
 0x787   :  { %2286 = vmatpush1.bf16.msra.mxu0 %v13840_v17  ;;  %2317 = vmatprep.mubr.bf16.mxu0 %v1800_v3  ;;  %v13876_v3 = vld [vmem:[#allocation12 + $0xc0] ss:$8 sps:$4 sm:$0xff]   ;;  %v13890_v17 = vld [vmem:[#allocation12 + $0x204] ss:$8 sps:$4 sm:$0xff]  }
 0x788   :  { %2287 = vmatprep.subr.bf16.mxu0 %v13845_v18  ;;  %v13888_v18 = vld [vmem:[#allocation12 + $0x200] ss:$8 sps:$4 sm:$0xff]  }
 0x78b   :  { %2288 = vmatpush1.bf16.msra.mxu0 %v13843_v21  ;;  %v13896_v21 = vld [vmem:[#allocation12 + $0x224] ss:$8 sps:$4 sm:$0xff]  }
 0x78c   :  { %2289 = vmatprep.subr.bf16.mxu0 %v13848_v23  ;;  %v13899_v23 = vld [vmem:[#allocation12 + $0x234] ss:$8 sps:$4 sm:$0xff]  }
 0x78f   :  { %2290 = vmatpush1.bf16.msra.mxu0 %v13846_v26  ;;  %v13900_v26 = vld [vmem:[#allocation12 + $0x240] ss:$8 sps:$4 sm:$0xff]  }
 0x790   :  { %2291 = vmatprep.subr.bf16.mxu0 %v13851_v27  ;;  %v13914_v27 = vld [vmem:[#allocation12 + $0x284] ss:$8 sps:$4 sm:$0xff]  }
 0x793   :  { %2292 = vmatpush1.bf16.msra.mxu0 %v13849_v30  ;;  %v13915_v30 = vld [vmem:[#allocation12 + $0x290] ss:$8 sps:$4 sm:$0xff]  }
 0x794   :  { %2293 = vmatprep.subr.bf16.mxu0 %v13854_v31  ;;  %v13920_v31 = vld [vmem:[#allocation12 + $0x2a4] ss:$8 sps:$4 sm:$0xff]  }
 0x797   :  { %2294 = vmatpush1.bf16.msra.mxu0 %v13852_v34  ;;  %v13921_v34 = vld [vmem:[#allocation12 + $0x2b0] ss:$8 sps:$4 sm:$0xff]  }
 0x798   :  { %2295 = vmatprep.subr.bf16.mxu0 %v13857_v35  ;;  %v13926_v35 = vld [vmem:[#allocation12 + $0x2c4] ss:$8 sps:$4 sm:$0xff]  }
 0x79b   :  { %2296 = vmatpush1.bf16.msra.mxu0 %v13855_v38  ;;  %v13927_v38 = vld [vmem:[#allocation12 + $0x2d0] ss:$8 sps:$4 sm:$0xff]  }
 0x79c   :  { %2297 = vmatprep.subr.bf16.mxu0 %v13860_v39  ;;  %v13932_v39 = vld [vmem:[#allocation12 + $0x2e4] ss:$8 sps:$4 sm:$0xff]  }
 0x79f   :  { %2298 = vmatpush1.bf16.msra.mxu0 %v13858_v42  ;;  %v13933_v42 = vld [vmem:[#allocation12 + $0x2f0] ss:$8 sps:$4 sm:$0xff]  }
 0x7a0   :  { %2299 = vmatprep.subr.bf16.mxu0 %v13863_v43  ;;  %v13968_v43 = vld [vmem:[#allocation15 + $0xa4] ss:$8 sps:$4 sm:$0xff]  }
 0x7a1   :  { %2890 = vmatprep.subr.bf16.mxu1 %v13968_v43  ;;  %v14055_v43 = vld [vmem:[#allocation19 + $0x74] ss:$8 sps:$4 sm:$0xff]  }
 0x7a2   :  { %2891 = vmatpush1.bf16.msra.mxu1 %v13966_v44 }
 0x7a3   :  { %2300 = vmatpush1.bf16.msra.mxu0 %v13861_v46  ;;  %v13969_v46 = vld [vmem:[#allocation15 + $0xb0] ss:$8 sps:$4 sm:$0xff]   ;;  %2892 = vmatprep.subr.bf16.mxu1 %v13971_v45 }
 0x7a4   :  { %2301 = vmatprep.subr.bf16.mxu0 %v13866_v47  ;;  %v13974_v47 = vld [vmem:[#allocation15 + $0xc4] ss:$8 sps:$4 sm:$0xff]  }
 0x7a6   :  { %2893 = vmatpush1.bf16.msra.mxu1 %v13969_v46  ;;  %v14053_v46 = vld [vmem:[#allocation19 + $0x70] ss:$8 sps:$4 sm:$0xff]  }
 0x7a7   :  { %2302 = vmatpush1.bf16.msra.mxu0 %v13864_v50  ;;  %2894 = vmatprep.subr.bf16.mxu1 %v13974_v47  ;;  %v13975_v50 = vld [vmem:[#allocation15 + $0xd0] ss:$8 sps:$4 sm:$0xff]  }
 0x7a8   :  { %2303 = vmatprep.subr.bf16.mxu0 %v13869_v51  ;;  %v13980_v51 = vld [vmem:[#allocation15 + $0xe4] ss:$8 sps:$4 sm:$0xff]  }
 0x7aa   :  { %2895 = vmatpush1.bf16.msra.mxu1 %v13972_v48  ;;  %v14058_v48 = vld [vmem:[#allocation19 + $0x84] ss:$8 sps:$4 sm:$0xff]  }
 0x7ab   :  { %2304 = vmatpush1.bf16.msra.mxu0 %v13867_v54  ;;  %2896 = vmatprep.subr.bf16.mxu1 %v13977_v49 }
 0x7ac   :  { %2305 = vmatprep.subr.bf16.mxu0 %v13872_v55 }
 0x7ae   :  { %2897 = vmatpush1.bf16.msra.mxu1 %v13975_v50 }
 0x7af   :  { %2306 = vmatpush1.bf16.msra.mxu0 %v13870_v57  ;;  %2898 = vmatprep.subr.bf16.mxu1 %v13980_v51 }
 0x7b0   :  { %2307 = vmatprep.subr.bf16.mxu0 %v13875_v58 }
 0x7b2   :  { %2899 = vmatpush1.bf16.msra.mxu1 %v13978_v52 }
 0x7b3   :  { %2308 = vmatpush1.bf16.msra.mxu0 %v13873_v62  ;;  %2900 = vmatprep.subr.bf16.mxu1 %v13983_v4 }
 0x7b4   :  { %2309 = vmatprep.subr.bf16.mxu0 %v13878_v2 }
 0x7b6   :  { %2901 = vmatpush1.bf16.msra.mxu1 %v13981_v6 }
 0x7b7   :  { %2310 = vmatpush1.bf16.msra.mxu0 %v13876_v3 }
 0x7b8   :  { %2311 = vmatprep.subr.bf16.mxu0 %v13881_v10 }
 0x7bb   :  { %2312 = vmatpush1.bf16.msra.mxu0 %v13879_v12 }
 0x7bc   :  { %2313 = vmatprep.subr.bf16.mxu0 %v13884_v13 }
 0x7bf   :  { %2314 = vmatpush1.bf16.msra.mxu0 %v13882_v14 }
 0x7c0   :  { %2315 = vmatprep.subr.bf16.mxu0 %v13887_v15 }
 0x7c3   :  { %2316 = vmatpush1.bf16.msra.mxu0 %v13885_v16 }
 0x7c4   :  { %2577 = vmatprep.subr.bf16.mxu0 %v13890_v17 }
 0x7c6   :  { %2318 = vmatmul.mubr.bf16.vlgmr.msra.gmra.mrb[16].mxu0 %v1799_v1  ;;  %v13908_v1 = vld [vmem:[#allocation12 + $0x264] ss:$8 sps:$4 sm:$0xff]  }
 0x7c7   :  { %2578 = vmatpush1.bf16.msra.mxu0 %v13888_v18  ;;  %2609 = vmatprep.mubr.bf16.mxu0 %v2383_v11  ;;  %v13909_v11 = vld [vmem:[#allocation12 + $0x270] ss:$8 sps:$4 sm:$0xff]  }
 0x7c8   :  { %2579 = vmatprep.subr.bf16.mxu0 %v13893_v19 }
 0x7cb   :  { %2580 = vmatpush1.bf16.msra.mxu0 %v13891_v20 }
 0x7cc   :  { %2581 = vmatprep.subr.bf16.mxu0 %v13896_v21 }
 0x7cf   :  { %2582 = vmatpush1.bf16.msra.mxu0 %v13894_v22 }
 0x7d0   :  { %2583 = vmatprep.subr.bf16.mxu0 %v13899_v23 }
 0x7d3   :  { %2584 = vmatpush1.bf16.msra.mxu0 %v13897_v24 }
 0x7d4   :  { %2585 = vmatprep.subr.bf16.mxu0 %v13902_v25 }
 0x7d7   :  { %2586 = vmatpush1.bf16.msra.mxu0 %v13900_v26 }
 0x7d8   :  { %2587 = vmatprep.subr.bf16.mxu0 %v13905_v59 }
 0x7db   :  { %2588 = vmatpush1.bf16.msra.mxu0 %v13903_v0 }
 0x7dc   :  { %2589 = vmatprep.subr.bf16.mxu0 %v13908_v1 }
 0x7df   :  { %2590 = vmatpush1.bf16.msra.mxu0 %v13906_v5 }
 0x7e0   :  { %2591 = vmatprep.subr.bf16.mxu0 %v13911_v8 }
 0x7e3   :  { %2592 = vmatpush1.bf16.msra.mxu0 %v13909_v11 }
 0x7e4   :  { %2593 = vmatprep.subr.bf16.mxu0 %v13914_v27 }
 0x7e7   :  { %2594 = vmatpush1.bf16.msra.mxu0 %v13912_v28  ;;  %v14032_v28 = vld [vmem:[#allocation19] ss:$8 sps:$4 sm:$0xff]  }
 0x7e8   :  { %2595 = vmatprep.subr.bf16.mxu0 %v13917_v29  ;;  %v14034_v29 = vld [vmem:[#allocation19 + $0x4] ss:$8 sps:$4 sm:$0xff]  }
 0x7eb   :  { %2596 = vmatpush1.bf16.msra.mxu0 %v13915_v30  ;;  %v14037_v30 = vld [vmem:[#allocation19 + $0x14] ss:$8 sps:$4 sm:$0xff]  }
 0x7ec   :  { %2597 = vmatprep.subr.bf16.mxu0 %v13920_v31  ;;  %v14035_v31 = vld [vmem:[#allocation19 + $0x10] ss:$8 sps:$4 sm:$0xff]  }
 0x7ef   :  { %2598 = vmatpush1.bf16.msra.mxu0 %v13918_v32  ;;  %v14040_v32 = vld [vmem:[#allocation19 + $0x24] ss:$8 sps:$4 sm:$0xff]  }
 0x7f0   :  { %2599 = vmatprep.subr.bf16.mxu0 %v13923_v33  ;;  %v14038_v33 = vld [vmem:[#allocation19 + $0x20] ss:$8 sps:$4 sm:$0xff]  }
 0x7f3   :  { %2600 = vmatpush1.bf16.msra.mxu0 %v13921_v34  ;;  %v14043_v34 = vld [vmem:[#allocation19 + $0x34] ss:$8 sps:$4 sm:$0xff]  }
 0x7f4   :  { %2601 = vmatprep.subr.bf16.mxu0 %v13926_v35  ;;  %v14041_v35 = vld [vmem:[#allocation19 + $0x30] ss:$8 sps:$4 sm:$0xff]  }
 0x7f7   :  { %2602 = vmatpush1.bf16.msra.mxu0 %v13924_v36  ;;  %v14046_v36 = vld [vmem:[#allocation19 + $0x44] ss:$8 sps:$4 sm:$0xff]  }
 0x7f8   :  { %2603 = vmatprep.subr.bf16.mxu0 %v13929_v37  ;;  %v14044_v37 = vld [vmem:[#allocation19 + $0x40] ss:$8 sps:$4 sm:$0xff]  }
 0x7fb   :  { %2604 = vmatpush1.bf16.msra.mxu0 %v13927_v38  ;;  %v14049_v38 = vld [vmem:[#allocation19 + $0x54] ss:$8 sps:$4 sm:$0xff]  }
 0x7fc   :  { %2605 = vmatprep.subr.bf16.mxu0 %v13932_v39  ;;  %v14047_v39 = vld [vmem:[#allocation19 + $0x50] ss:$8 sps:$4 sm:$0xff]  }
 0x7ff   :  { %2606 = vmatpush1.bf16.msra.mxu0 %v13930_v40  ;;  %v14052_v40 = vld [vmem:[#allocation19 + $0x64] ss:$8 sps:$4 sm:$0xff]  }
 0x800   :  { %2607 = vmatprep.subr.bf16.mxu0 %v13935_v41  ;;  %v2698_v41 = vld [vmem:[#allocation16] sm:$0x3] }
 0x801   :  { %v2703_v44 = vrot.slane %v2698_v41, %v16794_v61  ;;  %v2707_v45 = vrot.slane %v2698_v41, %v16797_v63  ;;  %v13998_v41 = vld [vmem:[#allocation19 + $0x144] ss:$8 sps:$4 sm:$0xff]  }
 0x803   :  { %2608 = vmatpush1.bf16.msra.mxu0 %v13933_v42  ;;  %v14050_v42 = vld [vmem:[#allocation19 + $0x60] ss:$8 sps:$4 sm:$0xff]  }
 0x804   :  { %3461 = vmatprep.subr.bf16.mxu0 %v14034_v29  ;;  %v14076_v29 = vld [vmem:[#allocation19 + $0xe4] ss:$8 sps:$4 sm:$0xff]  }
 0x806   :  { %2610 = vmatmul.mubr.bf16.vlgmr.msra.gmra.mrb[16].mxu0 %v2382_v7  ;;  %v2624_v7 = vld [vmem:[#allocation13] sm:$0x3] }
 0x807   :  { %v2629_v53 = vrot.slane %v2624_v7, %v16794_v61  ;;  %v2633_v54 = vrot.slane %v2624_v7, %v16797_v63  ;;  %3462 = vmatpush1.bf16.msra.mxu0 %v14032_v28 }
 0x808   :  { %3463 = vmatprep.subr.bf16.mxu0 %v14037_v30  ;;  %v2939_v30 = vld [vmem:[#allocation18] sm:$0xf] }
 0x80b   :  { %3464 = vmatpush1.bf16.msra.mxu0 %v14035_v31  ;;  %v13986_v31 = vld [vmem:[#allocation19 + $0x104] ss:$8 sps:$4 sm:$0xff]  }
 0x80c   :  { %3465 = vmatprep.subr.bf16.mxu0 %v14040_v32  ;;  %v14074_v32 = vld [vmem:[#allocation19 + $0xe0] ss:$8 sps:$4 sm:$0xff]  }
 0x80f   :  { %3466 = vmatpush1.bf16.msra.mxu0 %v14038_v33  ;;  %v13984_v33 = vld [vmem:[#allocation19 + $0x100] ss:$8 sps:$4 sm:$0xff]  }
 0x810   :  { %3467 = vmatprep.subr.bf16.mxu0 %v14043_v34  ;;  %v3020_v34 = vld [vmem:[#allocation18 + $0x4] sm:$0xf] }
 0x813   :  { %3468 = vmatpush1.bf16.msra.mxu0 %v14041_v35  ;;  %v13989_v35 = vld [vmem:[#allocation19 + $0x114] ss:$8 sps:$4 sm:$0xff]  }
 0x814   :  { %3469 = vmatprep.subr.bf16.mxu0 %v14046_v36  ;;  %v13987_v36 = vld [vmem:[#allocation19 + $0x110] ss:$8 sps:$4 sm:$0xff]  }
 0x817   :  { %3470 = vmatpush1.bf16.msra.mxu0 %v14044_v37  ;;  %v13992_v37 = vld [vmem:[#allocation19 + $0x124] ss:$8 sps:$4 sm:$0xff]  }
 0x818   :  { %3471 = vmatprep.subr.bf16.mxu0 %v14049_v38  ;;  %v13990_v38 = vld [vmem:[#allocation19 + $0x120] ss:$8 sps:$4 sm:$0xff]  }
 0x81b   :  { %3472 = vmatpush1.bf16.msra.mxu0 %v14047_v39  ;;  %v13995_v39 = vld [vmem:[#allocation19 + $0x134] ss:$8 sps:$4 sm:$0xff]  }
 0x81c   :  { %3473 = vmatprep.subr.bf16.mxu0 %v14052_v40  ;;  %v13993_v40 = vld [vmem:[#allocation19 + $0x130] ss:$8 sps:$4 sm:$0xff]  }
 0x81f   :  { %3474 = vmatpush1.bf16.msra.mxu0 %v14050_v42  ;;  %v13996_v42 = vld [vmem:[#allocation19 + $0x140] ss:$8 sps:$4 sm:$0xff]  }
 0x820   :  { %3475 = vmatprep.subr.bf16.mxu0 %v14055_v43  ;;  %v14001_v43 = vld [vmem:[#allocation19 + $0x154] ss:$8 sps:$4 sm:$0xff]  }
 0x823   :  { %3476 = vmatpush1.bf16.msra.mxu0 %v14053_v46  ;;  %v14002_v46 = vld [vmem:[#allocation19 + $0x160] ss:$8 sps:$4 sm:$0xff]  }
 0x824   :  { %3477 = vmatprep.subr.bf16.mxu0 %v14058_v48  ;;  %v14005_v48 = vld [vmem:[#allocation19 + $0x170] ss:$8 sps:$4 sm:$0xff]  }
 0x8d9   :  { %v2611_v55 = vpop.f32.mrb[16].mxu0 }
 0x8da   :  { %v2636_v56 = vadd.f32 %v2629_v53, %v2611_v55  ;;  %v2613_v57 = vpop.f32.mrb[17].mxu0 }
 0x8db   :  { %v2637_v58 = vadd.f32 %v2633_v54, %v2613_v57  ;;  %v2615_v62 = vpop.f32.mrb[18].mxu0 }
 0x8dc   :  { %v2644_v2 = vmin.f32 %v2636_v56, 0.0  ;;  %v2638_v3 = vadd.f32 %v2629_v53, %v2615_v62  ;;  %v2617_v10 = vpop.f32.mrb[19].mxu0  ;;  %vm2640_vm2 = vcmp.gt.f32.partialorder %v2636_v56, 0.0  ;;  %v14056_v53 = vld [vmem:[#allocation19 + $0x80] ss:$8 sps:$4 sm:$0xff]  }
 0x8dd   :  { %v2645_v12 = vmin.f32 %v2637_v58, 0.0  ;;  %v2639_v13 = vadd.f32 %v2633_v54, %v2617_v10  ;;  %vm2641_vm4 = vcmp.gt.f32.partialorder %v2637_v58, 0.0  ;;  %3478 = vmatpush1.bf16.msra.mxu0 %v14056_v53  ;;  %v14059_v10 = vld [vmem:[#allocation19 + $0x90] ss:$8 sps:$4 sm:$0xff]  }
 0x8de   :  { %v2648_v14 = vmul.f32 1.442695, %v2644_v2  ;;  %v2646_v15 = vmin.f32 %v2638_v3, 0.0  ;;  %vm2642_vm3 = vcmp.gt.f32.partialorder %v2638_v3, 0.0  ;;  %v14017_v53 = vld [vmem:[#allocation19 + $0x1b0] ss:$8 sps:$4 sm:$0xff]  }
 0x8df   :  { %v2650_v16 = vmul.f32 1.442695, %v2645_v12  ;;  %v2647_v17 = vmin.f32 %v2639_v13, 0.0  ;;  %vm2643_vm5 = vcmp.gt.f32.partialorder %v2639_v13, 0.0 }
 0x8e0   :  { %15439 = vpow2.f32 %v2648_v14  ;;  %v2652_v18 = vmul.f32 1.442695, %v2646_v15  ;;  %v14062_v14 = vld [vmem:[#allocation19 + $0xa0] ss:$8 sps:$4 sm:$0xff]   ;;  %v14067_v15 = vld [vmem:[#allocation19 + $0xb4] ss:$8 sps:$4 sm:$0xff]  }
 0x8e1   :  { %15441 = vpow2.f32 %v2650_v16  ;;  %v2654_v19 = vmul.f32 1.442695, %v2647_v17  ;;  %v14065_v16 = vld [vmem:[#allocation19 + $0xb0] ss:$8 sps:$4 sm:$0xff]   ;;  %v14070_v17 = vld [vmem:[#allocation19 + $0xc4] ss:$8 sps:$4 sm:$0xff]  }
 0x8e2   :  { %15443 = vpow2.f32 %v2652_v18 }
 0x8e3   :  { %15445 = vpow2.f32 %v2654_v19 }
 0x8ea   :  { %v15440_v20 = vpop.eup %15439 }
 0x8eb   :  { %v15442_v21 = vpop.eup %15441  ;;  %v12168_v22 = vadd.f32 -1.0, %v15440_v20 }
 0x8ec   :  { %v15444_v23 = vpop.eup %15443  ;;  %v12169_v24 = vadd.f32 -1.0, %v15442_v21 }
 0x8ed   :  { %v15446_v25 = vpop.eup %15445  ;;  %v12170_v26 = vadd.f32 -1.0, %v15444_v23  ;;  %v2660_v0 = vsel %vm2640_vm2, %v2636_v56, %v12168_v22  ;;  %v14061_v56 = vld [vmem:[#allocation19 + $0x94] ss:$8 sps:$4 sm:$0xff]   ;;  %v14068_v23 = vld [vmem:[#allocation19 + $0xc0] ss:$8 sps:$4 sm:$0xff]  }
 0x8ee   :  { %v12171_v59 = vadd.f32 -1.0, %v15446_v25  ;;  %v2661_v8 = vsel %vm2641_vm4, %v2637_v58, %v12169_v24  ;;  %3479 = vmatprep.subr.bf16.mxu0 %v14061_v56  ;;  %v14025_v56 = vld [vmem:[#allocation19 + $0x1d4] ss:$8 sps:$4 sm:$0xff]   ;;  %vm4333_vm4 = vcmask 64512  }
 0x8ef   :  { %v2662_v1 = vsel %vm2642_vm3, %v2638_v3, %v12170_v26  ;;  %3480 = vmatpush1.bf16.msra.mxu0 %v14059_v10  ;;  %v14073_v26 = vld [vmem:[#allocation19 + $0xd4] ss:$8 sps:$4 sm:$0xff]   ;;  %vm4337_vm3 = vcmask 1043456  }
 0x8f0   :  { %v2664_v5 = vpack.c.bf16 %v2662_v1, %v2660_v0  ;;  %v2663_v11 = vsel %vm2643_vm5, %v2639_v13, %v12171_v59  ;;  %v14064_v13 = vld [vmem:[#allocation19 + $0xa4] ss:$8 sps:$4 sm:$0xff]   ;;  %v14079_v10 = vld [vmem:[#allocation19 + $0xf4] ss:$8 sps:$4 sm:$0xff]  }
 0x8f1   :  { %v2665_v27 = vpack.c.bf16 %v2663_v11, %v2661_v8  ;;  %3481 = vmatprep.subr.bf16.mxu0 %v14064_v13 }
 0x8f3   :  { %2902 = vmatprep.mubr.bf16.mxu1 %v2665_v27  ;;  %3482 = vmatpush1.bf16.msra.mxu0 %v14062_v14  ;;  %v14071_v27 = vld [vmem:[#allocation19 + $0xd0] ss:$8 sps:$4 sm:$0xff]  }
 0x8f4   :  { %2903 = vmatmul.mubr.bf16.vlgmr.msra.gmra.mrb[32].mxu1 %v2664_v5  ;;  %3483 = vmatprep.subr.bf16.mxu0 %v14067_v15 }
 0x8f5   :  { %2976 = vmatprep.mubr.bf16.mxu1 %v16306_v9 }
 0x8f7   :  { %3484 = vmatpush1.bf16.msra.mxu0 %v14065_v16 }
 0x8f8   :  { %3485 = vmatprep.subr.bf16.mxu0 %v14070_v17 }
 0x8fb   :  { %3486 = vmatpush1.bf16.msra.mxu0 %v14068_v23 }
 0x8fc   :  { %3487 = vmatprep.subr.bf16.mxu0 %v14073_v26  ;;  %v3503_v26 = vld [vmem:[#allocation18 + $0x8] sm:$0xf] }
 0x8ff   :  { %3488 = vmatpush1.bf16.msra.mxu0 %v14071_v27  ;;  %v14091_v27 = vld [vmem:[#allocation19 + $0x234] ss:$8 sps:$4 sm:$0xff]  }
 0x900   :  { %3489 = vmatprep.subr.bf16.mxu0 %v14076_v29  ;;  %v14092_v29 = vld [vmem:[#allocation19 + $0x240] ss:$8 sps:$4 sm:$0xff]  }
 0x903   :  { %3490 = vmatpush1.bf16.msra.mxu0 %v14074_v32  ;;  %v14100_v32 = vld [vmem:[#allocation19 + $0x264] ss:$8 sps:$4 sm:$0xff]  }
 0x904   :  { %3491 = vmatprep.subr.bf16.mxu0 %v14079_v10  ;;  %v14146_v10 = vld [vmem:[#allocation22 + $0x60] ss:$8 sps:$4 sm:$0xff]  }
 0x9c7   :  { %v2904_v47 = vpop.f32.mrb[32].mxu1 }
 0x9c8   :  { %v2905_v49 = vadd.f32 %v2904_v47, %v2703_v44  ;;  %v2906_v50 = vpop.f32.mrb[33].mxu1  ;;  %v14007_v47 = vld [vmem:[#allocation19 + $0x174] ss:$8 sps:$4 sm:$0xff]  }
 0x9c9   :  { %v2907_v51 = vadd.f32 %v2906_v50, %v2707_v45  ;;  %v2908_v52 = vpop.f32.mrb[34].mxu1  ;;  %v14008_v50 = vld [vmem:[#allocation19 + $0x180] ss:$8 sps:$4 sm:$0xff]  }
 0x9ca   :  { %v2917_v4 = vmin.f32 %v2905_v49, 0.0  ;;  %v2909_v6 = vadd.f32 %v2908_v52, %v2703_v44  ;;  %v2910_v7 = vpop.f32.mrb[35].mxu1  ;;  %vm2913_vm6 = vcmp.gt.f32.partialorder %v2905_v49, 0.0  ;;  %v13999_v44 = vld [vmem:[#allocation19 + $0x150] ss:$8 sps:$4 sm:$0xff]  }
 0x9cb   :  { %v2918_v54 = vmin.f32 %v2907_v51, 0.0  ;;  %v2911_v55 = vadd.f32 %v2910_v7, %v2707_v45  ;;  %vm2914_vm8 = vcmp.gt.f32.partialorder %v2907_v51, 0.0  ;;  %v14004_v45 = vld [vmem:[#allocation19 + $0x164] ss:$8 sps:$4 sm:$0xff]   ;;  %v14011_v52 = vld [vmem:[#allocation19 + $0x190] ss:$8 sps:$4 sm:$0xff]  }
 0x9cc   :  { %v2921_v57 = vmul.f32 1.442695, %v2917_v4  ;;  %v2919_v58 = vmin.f32 %v2909_v6, 0.0  ;;  %vm2915_vm7 = vcmp.gt.f32.partialorder %v2909_v6, 0.0  ;;  %v14016_v4 = vld [vmem:[#allocation19 + $0x1a4] ss:$8 sps:$4 sm:$0xff]  }
 0x9cd   :  { %v2923_v62 = vmul.f32 1.442695, %v2918_v54  ;;  %v2920_v2 = vmin.f32 %v2911_v55, 0.0  ;;  %vm2916_vm9 = vcmp.gt.f32.partialorder %v2911_v55, 0.0  ;;  %v14019_v7 = vld [vmem:[#allocation19 + $0x1b4] ss:$8 sps:$4 sm:$0xff]  }
 0x9ce   :  { %15447 = vpow2.f32 %v2921_v57  ;;  %v2925_v3 = vmul.f32 1.442695, %v2919_v58  ;;  %v14022_v54 = vld [vmem:[#allocation19 + $0x1c4] ss:$8 sps:$4 sm:$0xff]   ;;  %v14023_v57 = vld [vmem:[#allocation19 + $0x1d0] ss:$8 sps:$4 sm:$0xff]  }
 0x9cf   :  { %15449 = vpow2.f32 %v2923_v62  ;;  %v2927_v12 = vmul.f32 1.442695, %v2920_v2  ;;  %v14028_v58 = vld [vmem:[#allocation19 + $0x1e4] ss:$8 sps:$4 sm:$0xff]   ;;  %v14026_v62 = vld [vmem:[#allocation19 + $0x1e0] ss:$8 sps:$4 sm:$0xff]  }
 0x9d0   :  { %15451 = vpow2.f32 %v2925_v3  ;;  %v14031_v2 = vld [vmem:[#allocation19 + $0x1f4] ss:$8 sps:$4 sm:$0xff]   ;;  %v14029_v3 = vld [vmem:[#allocation19 + $0x1f0] ss:$8 sps:$4 sm:$0xff]  }
 0x9d1   :  { %15453 = vpow2.f32 %v2927_v12  ;;  %v14077_v12 = vld [vmem:[#allocation19 + $0xf0] ss:$8 sps:$4 sm:$0xff]  }
 0x9d2   :  { %3492 = vmatpush1.bf16.msra.mxu0 %v14077_v12  ;;  %v14151_v12 = vld [vmem:[#allocation22 + $0x74] ss:$8 sps:$4 sm:$0xff]  }
 0x9d8   :  { %v15448_v18 = vpop.eup %15447 }
 0x9d9   :  { %v15450_v19 = vpop.eup %15449  ;;  %v12204_v20 = vadd.f32 -1.0, %v15448_v18 }
 0x9da   :  { %v15452_v21 = vpop.eup %15451  ;;  %v12205_v22 = vadd.f32 -1.0, %v15450_v19 }
 0x9db   :  { %v15454_v24 = vpop.eup %15453  ;;  %v12206_v25 = vadd.f32 -1.0, %v15452_v21  ;;  %v2933_v0 = vsel %vm2913_vm6, %v2905_v49, %v12204_v20  ;;  %v14010_v49 = vld [vmem:[#allocation19 + $0x184] ss:$8 sps:$4 sm:$0xff]  }
 0x9dc   :  { %v12207_v59 = vadd.f32 -1.0, %v15454_v24  ;;  %v2934_v8 = vsel %vm2914_vm8, %v2907_v51, %v12205_v22  ;;  %v14013_v51 = vld [vmem:[#allocation19 + $0x194] ss:$8 sps:$4 sm:$0xff]  }
 0x9dd   :  { %v2935_v1 = vsel %vm2915_vm7, %v2909_v6, %v12206_v25  ;;  %v14014_v6 = vld [vmem:[#allocation19 + $0x1a0] ss:$8 sps:$4 sm:$0xff]   ;;  %v14082_v25 = vld [vmem:[#allocation19 + $0x204] ss:$8 sps:$4 sm:$0xff]  }
 0x9de   :  { %v16837_v5 = vpack.c.bf16 %v2935_v1, %v2933_v0  ;;  %v2936_v11 = vsel %vm2916_vm9, %v2911_v55, %v12207_v59  ;;  %v14020_v55 = vld [vmem:[#allocation19 + $0x1c0] ss:$8 sps:$4 sm:$0xff]   ;;  %v14085_v0 = vld [vmem:[#allocation19 + $0x214] ss:$8 sps:$4 sm:$0xff]   ;;  %v14083_v1 = vld [vmem:[#allocation19 + $0x210] ss:$8 sps:$4 sm:$0xff]  }
 0x9df   :  { %v16839_v28 = vpack.c.bf16 %v2936_v11, %v2934_v8  ;;  %v14080_v59 = vld [vmem:[#allocation19 + $0x200] ss:$8 sps:$4 sm:$0xff]   ;;  %v14088_v8 = vld [vmem:[#allocation19 + $0x224] ss:$8 sps:$4 sm:$0xff]  }
 0x9e0   :  { %v14086_v11 = vld [vmem:[#allocation19 + $0x220] ss:$8 sps:$4 sm:$0xff]  }
 0x9e1   :  { %2944 = vmatprep.subr.bf16.mxu1 %v16839_v28 }
 0x9e2   :  { %2945 = vmatpush1.bf16.msra.mxu1 %v16837_v5 }
 0x9e3   :  { %3024 = vmatprep.subr.bf16.mxu1 %v16839_v28 }
 0x9e5   :  { %12208 = vmatmul.mubr.msk.bf16.vlgmr.msra.gmra.mrb[36].mxu1 %vm2940_vm10, %v2939_v30  ;;  %v14097_v30 = vld [vmem:[#allocation19 + $0x254] ss:$8 sps:$4 sm:$0xff]  }
 0x9e6   :  { %3025 = vmatpush1.bf16.msra.mxu1 %v16837_v5  ;;  %3056 = vmatprep.mubr.bf16.mxu1 %v16306_v9 }
 0x9e7   :  { %3260 = vmatprep.subr.bf16.mxu1 %v13986_v31  ;;  %v14095_v31 = vld [vmem:[#allocation19 + $0x250] ss:$8 sps:$4 sm:$0xff]  }
 0x9ed   :  { %12209 = vmatmul.mubr.msk.bf16.vlgmr.msra.gmra.mrb[40].mxu1 %vm2940_vm10, %v3020_v34  ;;  %v14103_v34 = vld [vmem:[#allocation19 + $0x274] ss:$8 sps:$4 sm:$0xff]  }
 0x9ee   :  { %3261 = vmatpush1.bf16.msra.mxu1 %v13984_v33  ;;  %v14098_v33 = vld [vmem:[#allocation19 + $0x260] ss:$8 sps:$4 sm:$0xff]  }
 0x9ef   :  { %3262 = vmatprep.subr.bf16.mxu1 %v13989_v35  ;;  %v14101_v35 = vld [vmem:[#allocation19 + $0x270] ss:$8 sps:$4 sm:$0xff]  }
 0x9f2   :  { %3263 = vmatpush1.bf16.msra.mxu1 %v13987_v36  ;;  %v14106_v36 = vld [vmem:[#allocation19 + $0x284] ss:$8 sps:$4 sm:$0xff]  }
 0x9f3   :  { %3264 = vmatprep.subr.bf16.mxu1 %v13992_v37  ;;  %v14104_v37 = vld [vmem:[#allocation19 + $0x280] ss:$8 sps:$4 sm:$0xff]  }
 0x9f6   :  { %3265 = vmatpush1.bf16.msra.mxu1 %v13990_v38  ;;  %v14109_v38 = vld [vmem:[#allocation19 + $0x294] ss:$8 sps:$4 sm:$0xff]  }
 0x9f7   :  { %3266 = vmatprep.subr.bf16.mxu1 %v13995_v39  ;;  %v14107_v39 = vld [vmem:[#allocation19 + $0x290] ss:$8 sps:$4 sm:$0xff]  }
 0x9fa   :  { %3267 = vmatpush1.bf16.msra.mxu1 %v13993_v40  ;;  %v14112_v40 = vld [vmem:[#allocation19 + $0x2a4] ss:$8 sps:$4 sm:$0xff]  }
 0x9fb   :  { %3268 = vmatprep.subr.bf16.mxu1 %v13998_v41  ;;  %v14110_v41 = vld [vmem:[#allocation19 + $0x2a0] ss:$8 sps:$4 sm:$0xff]  }
 0x9fe   :  { %3269 = vmatpush1.bf16.msra.mxu1 %v13996_v42  ;;  %v14115_v42 = vld [vmem:[#allocation19 + $0x2b4] ss:$8 sps:$4 sm:$0xff]  }
 0x9ff   :  { %3270 = vmatprep.subr.bf16.mxu1 %v14001_v43  ;;  %v14113_v43 = vld [vmem:[#allocation19 + $0x2b0] ss:$8 sps:$4 sm:$0xff]  }
 0xa02   :  { %3271 = vmatpush1.bf16.msra.mxu1 %v13999_v44  ;;  %v14116_v44 = vld [vmem:[#allocation19 + $0x2c0] ss:$8 sps:$4 sm:$0xff]  }
 0xa03   :  { %3272 = vmatprep.subr.bf16.mxu1 %v14004_v45  ;;  %v14118_v45 = vld [vmem:[#allocation19 + $0x2c4] ss:$8 sps:$4 sm:$0xff]  }
 0xa06   :  { %3273 = vmatpush1.bf16.msra.mxu1 %v14002_v46  ;;  %v14121_v46 = vld [vmem:[#allocation19 + $0x2d4] ss:$8 sps:$4 sm:$0xff]  }
 0xa07   :  { %3274 = vmatprep.subr.bf16.mxu1 %v14007_v47  ;;  %v14119_v47 = vld [vmem:[#allocation19 + $0x2d0] ss:$8 sps:$4 sm:$0xff]  }
 0xa0a   :  { %3275 = vmatpush1.bf16.msra.mxu1 %v14005_v48  ;;  %v14122_v48 = vld [vmem:[#allocation19 + $0x2e0] ss:$8 sps:$4 sm:$0xff]  }
 0xa0b   :  { %3276 = vmatprep.subr.bf16.mxu1 %v14010_v49  ;;  %v14124_v49 = vld [vmem:[#allocation19 + $0x2e4] ss:$8 sps:$4 sm:$0xff]  }
 0xa0e   :  { %3277 = vmatpush1.bf16.msra.mxu1 %v14008_v50  ;;  %v14127_v50 = vld [vmem:[#allocation19 + $0x2f4] ss:$8 sps:$4 sm:$0xff]  }
 0xa0f   :  { %3278 = vmatprep.subr.bf16.mxu1 %v14013_v51  ;;  %v14125_v51 = vld [vmem:[#allocation19 + $0x2f0] ss:$8 sps:$4 sm:$0xff]  }
 0xa12   :  { %3279 = vmatpush1.bf16.msra.mxu1 %v14011_v52  ;;  %v14128_v52 = vld [vmem:[#allocation22] ss:$8 sps:$4 sm:$0xff]  }
 0xa13   :  { %3280 = vmatprep.subr.bf16.mxu1 %v14016_v4  ;;  %v14130_v4 = vld [vmem:[#allocation22 + $0x4] ss:$8 sps:$4 sm:$0xff]  }
 0xa14   :  { %4018 = vmatprep.subr.bf16.mxu0 %v14130_v4  ;;  %v14194_v4 = vld [vmem:[#allocation25 + $0x60] ss:$8 sps:$4 sm:$0xff]  }
 0xa16   :  { %3281 = vmatpush1.bf16.msra.mxu1 %v14014_v6  ;;  %v14133_v6 = vld [vmem:[#allocation22 + $0x14] ss:$8 sps:$4 sm:$0xff]  }
 0xa17   :  { %3282 = vmatprep.subr.bf16.mxu1 %v14019_v7  ;;  %v14131_v7 = vld [vmem:[#allocation22 + $0x10] ss:$8 sps:$4 sm:$0xff]  }
 0xa1a   :  { %3283 = vmatpush1.bf16.msra.mxu1 %v14017_v53  ;;  %v14136_v53 = vld [vmem:[#allocation22 + $0x24] ss:$8 sps:$4 sm:$0xff]  }
 0xa1b   :  { %3284 = vmatprep.subr.bf16.mxu1 %v14022_v54  ;;  %v14134_v54 = vld [vmem:[#allocation22 + $0x20] ss:$8 sps:$4 sm:$0xff]  }
 0xa1e   :  { %3285 = vmatpush1.bf16.msra.mxu1 %v14020_v55  ;;  %v14139_v55 = vld [vmem:[#allocation22 + $0x34] ss:$8 sps:$4 sm:$0xff]  }
 0xa1f   :  { %3286 = vmatprep.subr.bf16.mxu1 %v14025_v56  ;;  %v14137_v56 = vld [vmem:[#allocation22 + $0x30] ss:$8 sps:$4 sm:$0xff]  }
 0xa22   :  { %3287 = vmatpush1.bf16.msra.mxu1 %v14023_v57  ;;  %v14142_v57 = vld [vmem:[#allocation22 + $0x44] ss:$8 sps:$4 sm:$0xff]  }
 0xa23   :  { %3288 = vmatprep.subr.bf16.mxu1 %v14028_v58  ;;  %v14140_v58 = vld [vmem:[#allocation22 + $0x40] ss:$8 sps:$4 sm:$0xff]  }
 0xa26   :  { %3289 = vmatpush1.bf16.msra.mxu1 %v14026_v62  ;;  %v14145_v62 = vld [vmem:[#allocation22 + $0x54] ss:$8 sps:$4 sm:$0xff]  }
 0xa27   :  { %3290 = vmatprep.subr.bf16.mxu1 %v14031_v2  ;;  %v14143_v2 = vld [vmem:[#allocation22 + $0x50] ss:$8 sps:$4 sm:$0xff]  }
 0xa2a   :  { %3291 = vmatpush1.bf16.msra.mxu1 %v14029_v3  ;;  %v14148_v3 = vld [vmem:[#allocation22 + $0x64] ss:$8 sps:$4 sm:$0xff]  }
 0xa2b   :  { %3507 = vmatprep.subr.bf16.mxu1 %v16839_v28  ;;  %v14089_v28 = vld [vmem:[#allocation19 + $0x230] ss:$8 sps:$4 sm:$0xff]  }
 0xab8   :  { %v2978_v13 = vpop.f32.mrb[36].mxu1 }
 0xab9   :  { %v2980_v14 = vpop.f32.mrb[37].mxu1  ;;  %v2985_v17 = vpack.c.bf16 %v2978_v13, %v2978_v13  ;;  %v14149_v13 = vld [vmem:[#allocation22 + $0x70] ss:$8 sps:$4 sm:$0xff]  }
 0xaba   :  { %v2986_v15 = vpack.c.bf16 %v2980_v14, %v2980_v14  ;;  %v2982_v16 = vpop.f32.mrb[38].mxu1  ;;  %v14154_v14 = vld [vmem:[#allocation22 + $0x84] ss:$8 sps:$4 sm:$0xff]  }
 0xabb   :  { %v2983_v18 = vpop.f32.mrb[39].mxu1  ;;  %v14157_v16 = vld [vmem:[#allocation22 + $0x94] ss:$8 sps:$4 sm:$0xff]  }
 0xabc   :  { %3493 = vmatprep.mubr.bf16.mxu0 %v2986_v15  ;;  %v14152_v15 = vld [vmem:[#allocation22 + $0x80] ss:$8 sps:$4 sm:$0xff]  }
 0xabd   :  { %3494 = vmatmul.mubr.bf16.vlgmr.msra.gmra.mrb[20].mxu0 %v2985_v17  ;;  %v14155_v17 = vld [vmem:[#allocation22 + $0x90] ss:$8 sps:$4 sm:$0xff]  }
 0xabe   :  { %4019 = vmatpush1.bf16.msra.mxu0 %v14128_v52  ;;  %v14196_v52 = vld [vmem:[#allocation25 + $0x64] ss:$8 sps:$4 sm:$0xff]  }
 0xabf   :  { %4020 = vmatprep.subr.bf16.mxu0 %v14133_v6  ;;  %v14199_v6 = vld [vmem:[#allocation25 + $0x74] ss:$8 sps:$4 sm:$0xff]  }
 0xac0   :  { %v3058_v19 = vpop.f32.mrb[40].mxu1 }
 0xac1   :  { %v3060_v20 = vpop.f32.mrb[41].mxu1  ;;  %v3065_v23 = vpack.c.bf16 %v3058_v19, %v3058_v19 }
 0xac2   :  { %v3066_v21 = vpack.c.bf16 %v3060_v20, %v3060_v20  ;;  %v3062_v22 = vpop.f32.mrb[42].mxu1  ;;  %4021 = vmatpush1.bf16.msra.mxu0 %v14131_v7  ;;  %v14197_v7 = vld [vmem:[#allocation25 + $0x70] ss:$8 sps:$4 sm:$0xff]  }
 0xac3   :  { %v3063_v24 = vpop.f32.mrb[43].mxu1  ;;  %4022 = vmatprep.subr.bf16.mxu0 %v14136_v53  ;;  %v14202_v53 = vld [vmem:[#allocation25 + $0x84] ss:$8 sps:$4 sm:$0xff]  }
 0xac4   :  { %3292 = vmatprep.mubr.bf16.mxu1 %v3066_v21 }
 0xac5   :  { %3293 = vmatmul.mubr.bf16.vlgmr.msra.gmra.mrb[44].mxu1 %v3065_v23 }
 0xac6   :  { %3508 = vmatpush1.bf16.msra.mxu1 %v16837_v5  ;;  %3539 = vmatprep.mubr.bf16.mxu1 %v16306_v9  ;;  %v14094_v5 = vld [vmem:[#allocation19 + $0x244] ss:$8 sps:$4 sm:$0xff]  }
 0xac7   :  { %3743 = vmatprep.subr.bf16.mxu1 %v14082_v25  ;;  %4023 = vmatpush1.bf16.msra.mxu0 %v14134_v54  ;;  %v14200_v54 = vld [vmem:[#allocation25 + $0x80] ss:$8 sps:$4 sm:$0xff]  }
 0xac8   :  { %4024 = vmatprep.subr.bf16.mxu0 %v14139_v55  ;;  %v14205_v55 = vld [vmem:[#allocation25 + $0x94] ss:$8 sps:$4 sm:$0xff]  }
 0xacb   :  { %4025 = vmatpush1.bf16.msra.mxu0 %v14137_v56  ;;  %v14203_v56 = vld [vmem:[#allocation25 + $0x90] ss:$8 sps:$4 sm:$0xff]  }
 0xacc   :  { %4026 = vmatprep.subr.bf16.mxu0 %v14142_v57  ;;  %v3786_v57 = vld [vmem:[#allocation21] sm:$0x3] }
 0xacd   :  { %12274 = vmatmul.mubr.msk.bf16.vlgmr.msra.gmra.mrb[48].mxu1 %vm2940_vm10, %v3503_v26 }
 0xace   :  { %3744 = vmatpush1.bf16.msra.mxu1 %v14080_v59 }
 0xacf   :  { %3745 = vmatprep.subr.bf16.mxu1 %v14085_v0  ;;  %4027 = vmatpush1.bf16.msra.mxu0 %v14140_v58  ;;  %v3791_v58 = vrot.slane %v3786_v57, %v16794_v61 }
 0xad0   :  { %4028 = vmatprep.subr.bf16.mxu0 %v14145_v62 }
 0xad2   :  { %3746 = vmatpush1.bf16.msra.mxu1 %v14083_v1 }
 0xad3   :  { %3747 = vmatprep.subr.bf16.mxu1 %v14088_v8  ;;  %4029 = vmatpush1.bf16.msra.mxu0 %v14143_v2  ;;  %v3795_v2 = vrot.slane %v3786_v57, %v16797_v63  ;;  %v14241_v57 = vld [vmem:[#allocation30 + $0x24c] ss:$16 sps:$4 sm:$0xff]  }
 0xad4   :  { %4030 = vmatprep.subr.bf16.mxu0 %v14148_v3 }
 0xad6   :  { %3748 = vmatpush1.bf16.msra.mxu1 %v14086_v11 }
 0xad7   :  { %3749 = vmatprep.subr.bf16.mxu1 %v14091_v27  ;;  %4031 = vmatpush1.bf16.msra.mxu0 %v14146_v10 }
 0xad8   :  { %4032 = vmatprep.subr.bf16.mxu0 %v14151_v12 }
 0xada   :  { %3750 = vmatpush1.bf16.msra.mxu1 %v14089_v28 }
 0xadb   :  { %3751 = vmatprep.subr.bf16.mxu1 %v14094_v5  ;;  %4033 = vmatpush1.bf16.msra.mxu0 %v14149_v13  ;;  %v14160_v5 = vld [vmem:[#allocation22 + $0xa4] ss:$8 sps:$4 sm:$0xff]  }
 0xadc   :  { %4034 = vmatprep.subr.bf16.mxu0 %v14154_v14 }
 0xade   :  { %3752 = vmatpush1.bf16.msra.mxu1 %v14092_v29  ;;  %v14158_v29 = vld [vmem:[#allocation22 + $0xa0] ss:$8 sps:$4 sm:$0xff]  }
 0xadf   :  { %3753 = vmatprep.subr.bf16.mxu1 %v14097_v30  ;;  %4035 = vmatpush1.bf16.msra.mxu0 %v14152_v15  ;;  %v14163_v30 = vld [vmem:[#allocation22 + $0xb4] ss:$8 sps:$4 sm:$0xff]  }
 0xae0   :  { %4036 = vmatprep.subr.bf16.mxu0 %v14157_v16 }
 0xae2   :  { %3754 = vmatpush1.bf16.msra.mxu1 %v14095_v31  ;;  %v14161_v31 = vld [vmem:[#allocation22 + $0xb0] ss:$8 sps:$4 sm:$0xff]  }
 0xae3   :  { %3755 = vmatprep.subr.bf16.mxu1 %v14100_v32  ;;  %4037 = vmatpush1.bf16.msra.mxu0 %v14155_v17  ;;  %v14166_v32 = vld [vmem:[#allocation22 + $0xc4] ss:$8 sps:$4 sm:$0xff]  }
 0xae4   :  { %4038 = vmatprep.subr.bf16.mxu0 %v14160_v5  ;;  %v14212_v5 = vld [vmem:[#allocation25 + $0xc0] ss:$8 sps:$4 sm:$0xff]  }
 0xae6   :  { %3756 = vmatpush1.bf16.msra.mxu1 %v14098_v33  ;;  %v14164_v33 = vld [vmem:[#allocation22 + $0xc0] ss:$8 sps:$4 sm:$0xff]  }
 0xae7   :  { %3757 = vmatprep.subr.bf16.mxu1 %v14103_v34  ;;  %4039 = vmatpush1.bf16.msra.mxu0 %v14158_v29  ;;  %v14169_v34 = vld [vmem:[#allocation22 + $0xd4] ss:$8 sps:$4 sm:$0xff]  }
 0xae8   :  { %4040 = vmatprep.subr.bf16.mxu0 %v14163_v30  ;;  %v14217_v29 = vld [vmem:[#allocation25 + $0xd4] ss:$8 sps:$4 sm:$0xff]   ;;  %v14215_v30 = vld [vmem:[#allocation25 + $0xd0] ss:$8 sps:$4 sm:$0xff]  }
 0xaea   :  { %3758 = vmatpush1.bf16.msra.mxu1 %v14101_v35  ;;  %v14167_v35 = vld [vmem:[#allocation22 + $0xd0] ss:$8 sps:$4 sm:$0xff]  }
 0xaeb   :  { %3759 = vmatprep.subr.bf16.mxu1 %v14106_v36  ;;  %4041 = vmatpush1.bf16.msra.mxu0 %v14161_v31  ;;  %v14172_v36 = vld [vmem:[#allocation22 + $0xe4] ss:$8 sps:$4 sm:$0xff]  }
 0xaec   :  { %4042 = vmatprep.subr.bf16.mxu0 %v14166_v32  ;;  %v14220_v31 = vld [vmem:[#allocation25 + $0xe4] ss:$8 sps:$4 sm:$0xff]   ;;  %v14218_v32 = vld [vmem:[#allocation25 + $0xe0] ss:$8 sps:$4 sm:$0xff]  }
 0xaee   :  { %3760 = vmatpush1.bf16.msra.mxu1 %v14104_v37  ;;  %v14170_v37 = vld [vmem:[#allocation22 + $0xe0] ss:$8 sps:$4 sm:$0xff]  }
 0xaef   :  { %3761 = vmatprep.subr.bf16.mxu1 %v14109_v38  ;;  %4043 = vmatpush1.bf16.msra.mxu0 %v14164_v33  ;;  %v14175_v38 = vld [vmem:[#allocation22 + $0xf4] ss:$8 sps:$4 sm:$0xff]  }
 0xaf0   :  { %4044 = vmatprep.subr.bf16.mxu0 %v14169_v34  ;;  %v14223_v33 = vld [vmem:[#allocation25 + $0xf4] ss:$8 sps:$4 sm:$0xff]   ;;  %v14221_v34 = vld [vmem:[#allocation25 + $0xf0] ss:$8 sps:$4 sm:$0xff]  }
 0xaf2   :  { %3762 = vmatpush1.bf16.msra.mxu1 %v14107_v39  ;;  %v14173_v39 = vld [vmem:[#allocation22 + $0xf0] ss:$8 sps:$4 sm:$0xff]  }
 0xaf3   :  { %3763 = vmatprep.subr.bf16.mxu1 %v14112_v40  ;;  %4045 = vmatpush1.bf16.msra.mxu0 %v14167_v35  ;;  %v14176_v40 = vld [vmem:[#allocation25] ss:$8 sps:$4 sm:$0xff]   ;;  %v3846_v35 = vld [vmem:[#allocation24] sm:$0x3] }
 0xaf4   :  { %4046 = vmatprep.subr.bf16.mxu0 %v14172_v36  ;;  %v3851_v36 = vrot.slane %v3846_v35, %v16794_v61 }
 0xaf6   :  { %3764 = vmatpush1.bf16.msra.mxu1 %v14110_v41  ;;  %v14178_v41 = vld [vmem:[#allocation25 + $0x4] ss:$8 sps:$4 sm:$0xff]  }
 0xaf7   :  { %3765 = vmatprep.subr.bf16.mxu1 %v14115_v42  ;;  %4047 = vmatpush1.bf16.msra.mxu0 %v14170_v37  ;;  %v14181_v42 = vld [vmem:[#allocation25 + $0x14] ss:$8 sps:$4 sm:$0xff]   ;;  %v3855_v37 = vrot.slane %v3846_v35, %v16797_v63 }
 0xaf8   :  { %4048 = vmatprep.subr.bf16.mxu0 %v14175_v38 }
 0xafa   :  { %3766 = vmatpush1.bf16.msra.mxu1 %v14113_v43  ;;  %v14179_v43 = vld [vmem:[#allocation25 + $0x10] ss:$8 sps:$4 sm:$0xff]  }
 0xafb   :  { %3767 = vmatprep.subr.bf16.mxu1 %v14118_v45  ;;  %4049 = vmatpush1.bf16.msra.mxu0 %v14173_v39  ;;  %v14182_v45 = vld [vmem:[#allocation25 + $0x20] ss:$8 sps:$4 sm:$0xff]  }
 0xafe   :  { %3768 = vmatpush1.bf16.msra.mxu1 %v14116_v44  ;;  %v14184_v44 = vld [vmem:[#allocation25 + $0x24] ss:$8 sps:$4 sm:$0xff]  }
 0xaff   :  { %3769 = vmatprep.subr.bf16.mxu1 %v14121_v46  ;;  %v14187_v46 = vld [vmem:[#allocation25 + $0x34] ss:$8 sps:$4 sm:$0xff]  }
 0xb02   :  { %3770 = vmatpush1.bf16.msra.mxu1 %v14119_v47  ;;  %v14185_v47 = vld [vmem:[#allocation25 + $0x30] ss:$8 sps:$4 sm:$0xff]  }
 0xb03   :  { %3771 = vmatprep.subr.bf16.mxu1 %v14124_v49  ;;  %v14188_v49 = vld [vmem:[#allocation25 + $0x40] ss:$8 sps:$4 sm:$0xff]  }
 0xb06   :  { %3772 = vmatpush1.bf16.msra.mxu1 %v14122_v48  ;;  %v14190_v48 = vld [vmem:[#allocation25 + $0x44] ss:$8 sps:$4 sm:$0xff]  }
 0xb07   :  { %3773 = vmatprep.subr.bf16.mxu1 %v14127_v50  ;;  %v14193_v50 = vld [vmem:[#allocation25 + $0x54] ss:$8 sps:$4 sm:$0xff]  }
 0xb0a   :  { %3774 = vmatpush1.bf16.msra.mxu1 %v14125_v51  ;;  %v14191_v51 = vld [vmem:[#allocation25 + $0x50] ss:$8 sps:$4 sm:$0xff]  }
 0xb0b   :  { %4277 = vmatprep.subr.bf16.mxu1 %v14178_v41 }
 0xb90   :  { %v3495_v18 = vpop.f32.mrb[20].mxu0 }
 0xb91   :  { %v3497_v19 = vpop.f32.mrb[21].mxu0 }
 0xb92   :  { %v3499_v20 = vpop.f32.mrb[22].mxu0 }
 0xb93   :  { %v3500_v21 = vpop.f32.mrb[23].mxu0 }
 0xb98   :  { %v3294_v22 = vpop.f32.mrb[44].mxu1 }
 0xb99   :  { %v16852_v23 = vadd.f32 %v3495_v18, %v3294_v22  ;;  %v3296_v24 = vpop.f32.mrb[45].mxu1 }
 0xb9a   :  { %v16854_v25 = vadd.f32 %v3497_v19, %v3296_v24  ;;  %v3298_v26 = vpop.f32.mrb[46].mxu1 }
 0xb9b   :  { %v3299_v59 = vpop.f32.mrb[47].mxu1 }
 0xba0   :  { %v3541_v0 = vpop.f32.mrb[48].mxu1 }
 0xba1   :  { %v3543_v1 = vpop.f32.mrb[49].mxu1  ;;  %v3548_v27 = vpack.c.bf16 %v3541_v0, %v3541_v0 }
 0xba2   :  { %v3549_v8 = vpack.c.bf16 %v3543_v1, %v3543_v1  ;;  %v3545_v11 = vpop.f32.mrb[50].mxu1  ;;  %v14208_v1 = vld [vmem:[#allocation25 + $0xa4] ss:$8 sps:$4 sm:$0xff]  }
 0xba3   :  { %v3546_v28 = vpop.f32.mrb[51].mxu1  ;;  %v14211_v11 = vld [vmem:[#allocation25 + $0xb4] ss:$8 sps:$4 sm:$0xff]  }
 0xba4   :  { %3775 = vmatprep.mubr.bf16.mxu1 %v3549_v8  ;;  %v14206_v8 = vld [vmem:[#allocation25 + $0xa0] ss:$8 sps:$4 sm:$0xff]   ;;  %v14214_v28 = vld [vmem:[#allocation25 + $0xc4] ss:$8 sps:$4 sm:$0xff]  }
 0xba5   :  { %3776 = vmatmul.mubr.bf16.vlgmr.msra.gmra.mrb[52].mxu1 %v3548_v27  ;;  %v14209_v27 = vld [vmem:[#allocation25 + $0xb0] ss:$8 sps:$4 sm:$0xff]  }
 0xba6   :  { %4278 = vmatpush1.bf16.msra.mxu1 %v14176_v40 }
 0xba7   :  { %4279 = vmatprep.subr.bf16.mxu1 %v14181_v42 }
 0xbaa   :  { %4280 = vmatpush1.bf16.msra.mxu1 %v14179_v43 }
 0xbab   :  { %4281 = vmatprep.subr.bf16.mxu1 %v14184_v44 }
 0xbae   :  { %4282 = vmatpush1.bf16.msra.mxu1 %v14182_v45 }
 0xbaf   :  { %4283 = vmatprep.subr.bf16.mxu1 %v14187_v46 }
 0xbb2   :  { %4284 = vmatpush1.bf16.msra.mxu1 %v14185_v47 }
 0xbb3   :  { %4285 = vmatprep.subr.bf16.mxu1 %v14190_v48 }
 0xbb6   :  { %4286 = vmatpush1.bf16.msra.mxu1 %v14188_v49 }
 0xbb7   :  { %4287 = vmatprep.subr.bf16.mxu1 %v14193_v50 }
 0xbba   :  { %4288 = vmatpush1.bf16.msra.mxu1 %v14191_v51 }
 0xbbb   :  { %4289 = vmatprep.subr.bf16.mxu1 %v14196_v52 }
 0xbbe   :  { %4290 = vmatpush1.bf16.msra.mxu1 %v14194_v4 }
 0xbbf   :  { %4291 = vmatprep.subr.bf16.mxu1 %v14199_v6 }
 0xbc2   :  { %4292 = vmatpush1.bf16.msra.mxu1 %v14197_v7 }
 0xbc3   :  { %4293 = vmatprep.subr.bf16.mxu1 %v14202_v53  ;;  %v14227_v53 = vld [vmem:[#allocation30 + $0x208] ss:$16 sps:$4 sm:$0xff]  }
 0xbc6   :  { %4294 = vmatpush1.bf16.msra.mxu1 %v14200_v54  ;;  %v14229_v54 = vld [vmem:[#allocation30 + $0x20c] ss:$16 sps:$4 sm:$0xff]  }
 0xbc7   :  { %4295 = vmatprep.subr.bf16.mxu1 %v14205_v55  ;;  %v14235_v55 = vld [vmem:[#allocation30 + $0x22c] ss:$16 sps:$4 sm:$0xff]  }
 0xbca   :  { %4296 = vmatpush1.bf16.msra.mxu1 %v14203_v56  ;;  %v14233_v56 = vld [vmem:[#allocation30 + $0x228] ss:$16 sps:$4 sm:$0xff]  }
 0xbcb   :  { %4297 = vmatprep.subr.bf16.mxu1 %v14208_v1 }
 0xbce   :  { %4298 = vmatpush1.bf16.msra.mxu1 %v14206_v8 }
 0xbcf   :  { %4299 = vmatprep.subr.bf16.mxu1 %v14211_v11 }
 0xbd2   :  { %4300 = vmatpush1.bf16.msra.mxu1 %v14209_v27 }
 0xbd3   :  { %4301 = vmatprep.subr.bf16.mxu1 %v14214_v28 }
 0xbd6   :  { %4302 = vmatpush1.bf16.msra.mxu1 %v14212_v5 }
 0xbd7   :  { %4303 = vmatprep.subr.bf16.mxu1 %v14217_v29 }
 0xbda   :  { %4304 = vmatpush1.bf16.msra.mxu1 %v14215_v30 }
 0xbdb   :  { %4305 = vmatprep.subr.bf16.mxu1 %v14220_v31 }
 0xbde   :  { %4306 = vmatpush1.bf16.msra.mxu1 %v14218_v32 }
 0xbdf   :  { %4307 = vmatprep.subr.bf16.mxu1 %v14223_v33 }
 0xbe2   :  { %4308 = vmatpush1.bf16.msra.mxu1 %v14221_v34 }
 0xbe3   :  { %4925 = vmatprep.subr.bf16.mxu1 %v14229_v54  ;;  %v14254_v54 = vld [vmem:[#allocation30 + $0x2a0] ss:$16 sps:$4 sm:$0xff]  }
 0xc78   :  { %v3777_v62 = vpop.f32.mrb[52].mxu1 }
 0xc79   :  { %v3784_v3 = vadd.f32 %v3777_v62, %v16852_v23  ;;  %v3779_v10 = vpop.f32.mrb[53].mxu1  ;;  %v14247_v62 = vld [vmem:[#allocation30 + $0x26c] ss:$16 sps:$4 sm:$0xff]  }
 0xc7a   :  { %v3785_v12 = vadd.f32 %v3779_v10, %v16854_v25  ;;  %v3781_v13 = vpop.f32.mrb[54].mxu1  ;;  %v14251_v10 = vld [vmem:[#allocation30 + $0x288] ss:$16 sps:$4 sm:$0xff]  }
 0xc7b   :  { %v3798_v14 = vadd.f32 %v3791_v58, %v3784_v3  ;;  %v3782_v15 = vpop.f32.mrb[55].mxu1  ;;  %v14239_v58 = vld [vmem:[#allocation30 + $0x248] ss:$16 sps:$4 sm:$0xff]   ;;  %v14253_v3 = vld [vmem:[#allocation30 + $0x28c] ss:$16 sps:$4 sm:$0xff]  }
 0xc7c   :  { %v3799_v16 = vadd.f32 %v3795_v2, %v3785_v12  ;;  %v14245_v2 = vld [vmem:[#allocation30 + $0x268] ss:$16 sps:$4 sm:$0xff]   ;;  %v14259_v12 = vld [vmem:[#allocation30 + $0x2ac] ss:$16 sps:$4 sm:$0xff]  }
 0xc7d   :  { %v3802_v17 = vmin.f32 %v3798_v14, 0.0  ;;  %vm3800_vm11 = vcmp.gt.f32.partialorder %v3798_v14, 0.0  ;;  %v14257_v13 = vld [vmem:[#allocation30 + $0x2a8] ss:$16 sps:$4 sm:$0xff]  }
 0xc7e   :  { %v3803_v18 = vmin.f32 %v3799_v16, 0.0  ;;  %vm3801_vm12 = vcmp.gt.f32.partialorder %v3799_v16, 0.0  ;;  %v14263_v15 = vld [vmem:[#allocation30 + $0x2c8] ss:$16 sps:$4 sm:$0xff]  }
 0xc7f   :  { %v3804_v19 = vmul.f32 1.442695, %v3802_v17  ;;  %v14269_v17 = vld [vmem:[#allocation30 + $0x2e8] ss:$16 sps:$4 sm:$0xff]  }
 0xc80   :  { %v3806_v20 = vmul.f32 1.442695, %v3803_v18  ;;  %v14277_v18 = vld [vmem:[#allocation30 + $0x30c] ss:$16 sps:$4 sm:$0xff]  }
 0xc81   :  { %15455 = vpow2.f32 %v3804_v19  ;;  %v14275_v19 = vld [vmem:[#allocation30 + $0x308] ss:$16 sps:$4 sm:$0xff]  }
 0xc82   :  { %15457 = vpow2.f32 %v3806_v20  ;;  %v14283_v20 = vld [vmem:[#allocation30 + $0x32c] ss:$16 sps:$4 sm:$0xff]  }
 0xc8b   :  { %v15456_v21 = vpop.eup %15455 }
 0xc8c   :  { %v15458_v22 = vpop.eup %15457  ;;  %v12307_v24 = vadd.f32 -1.0, %v15456_v21  ;;  %v14281_v21 = vld [vmem:[#allocation30 + $0x328] ss:$16 sps:$4 sm:$0xff]  }
 0xc8d   :  { %v12308_v26 = vadd.f32 -1.0, %v15458_v22  ;;  %v14289_v22 = vld [vmem:[#allocation30 + $0x34c] ss:$16 sps:$4 sm:$0xff]  }
 0xc8e   :  { %v3810_v59 = vsel %vm3800_vm11, %v3798_v14, %v12307_v24  ;;  %v14265_v14 = vld [vmem:[#allocation30 + $0x2cc] ss:$16 sps:$4 sm:$0xff]   ;;  %v14287_v24 = vld [vmem:[#allocation30 + $0x348] ss:$16 sps:$4 sm:$0xff]  }
 0xc8f   :  { %v3811_v23 = vsel %vm3801_vm12, %v3799_v16, %v12308_v26  ;;  %v3812_v25 = vpack.c.bf16 %v3810_v59, %v3810_v59  ;;  %v14271_v16 = vld [vmem:[#allocation30 + $0x2ec] ss:$16 sps:$4 sm:$0xff]   ;;  %v14293_v59 = vld [vmem:[#allocation30 + $0x368] ss:$16 sps:$4 sm:$0xff]  }
 0xc90   :  { %v3813_v0 = vpack.c.bf16 %v3811_v23, %v3811_v23  ;;  %v14295_v26 = vld [vmem:[#allocation30 + $0x36c] ss:$16 sps:$4 sm:$0xff]  }
 0xc91   :  { %v14301_v23 = vld [vmem:[#allocation30 + $0x38c] ss:$16 sps:$4 sm:$0xff]  }
 0xc92   :  { %4050 = vmatprep.mubr.bf16.mxu0 %v3813_v0  ;;  %v14299_v0 = vld [vmem:[#allocation30 + $0x388] ss:$16 sps:$4 sm:$0xff]  }
 0xc93   :  { %4051 = vmatmul.mubr.bf16.vlgmr.msra.gmra.mrb[24].mxu0 %v3812_v25  ;;  %v4105_v25 = vld [vmem:[#allocation27] sm:$0x3] }
 0xc94   :  { %4376 = vmatprep.mubr.bf16.mxu0 %v16306_v9  ;;  %v4110_v1 = vrot.slane %v4105_v25, %v16794_v61  ;;  %v4114_v8 = vrot.slane %v4105_v25, %v16797_v63  ;;  %v14314_v25 = vld [vmem:[#allocation30 + $0x3e0] ss:$16 sps:$4 sm:$0xff]  }
 0xd66   :  { %v4052_v38 = vpop.f32.mrb[24].mxu0 }
 0xd67   :  { %v4053_v39 = vadd.f32 %v4052_v38, %v3851_v36  ;;  %v4054_v40 = vpop.f32.mrb[25].mxu0 }
 0xd68   :  { %v4055_v41 = vadd.f32 %v4054_v40, %v3855_v37  ;;  %v4056_v42 = vpop.f32.mrb[26].mxu0 }
 0xd69   :  { %v4061_v43 = vmin.f32 %v4053_v39, 0.0  ;;  %v4057_v44 = vpop.f32.mrb[27].mxu0  ;;  %vm4059_vm13 = vcmp.gt.f32.partialorder %v4053_v39, 0.0 }
 0xd6a   :  { %v4062_v45 = vmin.f32 %v4055_v41, 0.0  ;;  %vm4060_vm14 = vcmp.gt.f32.partialorder %v4055_v41, 0.0  ;;  %v4332_v44 = vld [vmem:[#allocation28] sm:$0x1] }
 0xd6b   :  { %v4063_v46 = vmul.f32 1.442695, %v4061_v43 }
 0xd6c   :  { %v4065_v47 = vmul.f32 1.442695, %v4062_v45  ;;  %v14226_v45 = vld [vmem:[#allocation30 + $0x204] ss:$16 sps:$4 sm:$0xff]  }
 0xd6d   :  { %15459 = vpow2.f32 %v4063_v46  ;;  %v4452_v46 = vld [vmem:[#allocation28 + $0x1] sm:$0x1] }
 0xd6e   :  { %15461 = vpow2.f32 %v4065_v47  ;;  %v14224_v47 = vld [vmem:[#allocation30 + $0x200] ss:$16 sps:$4 sm:$0xff]  }
 0xd77   :  { %v15460_v48 = vpop.eup %15459 }
 0xd78   :  { %v15462_v49 = vpop.eup %15461  ;;  %v12341_v50 = vadd.f32 -1.0, %v15460_v48  ;;  %v14232_v48 = vld [vmem:[#allocation30 + $0x224] ss:$16 sps:$4 sm:$0xff]  }
 0xd79   :  { %v12342_v51 = vadd.f32 -1.0, %v15462_v49  ;;  %v14230_v49 = vld [vmem:[#allocation30 + $0x220] ss:$16 sps:$4 sm:$0xff]  }
 0xd7a   :  { %v4069_v52 = vsel %vm4059_vm13, %v4053_v39, %v12341_v50  ;;  %v14238_v50 = vld [vmem:[#allocation30 + $0x244] ss:$16 sps:$4 sm:$0xff]  }
 0xd7b   :  { %v4070_v4 = vsel %vm4060_vm14, %v4055_v41, %v12342_v51  ;;  %v4071_v7 = vpack.c.bf16 %v4069_v52, %v4069_v52  ;;  %v14236_v51 = vld [vmem:[#allocation30 + $0x240] ss:$16 sps:$4 sm:$0xff]   ;;  %v14244_v52 = vld [vmem:[#allocation30 + $0x264] ss:$16 sps:$4 sm:$0xff]   ;;  %vm7477_vm14 = vcmask 1040384  }
 0xd7c   :  { %v4072_v6 = vpack.c.bf16 %v4070_v4, %v4070_v4  ;;  %v14242_v4 = vld [vmem:[#allocation30 + $0x260] ss:$16 sps:$4 sm:$0xff]  }
 0xd7e   :  { %4309 = vmatprep.mubr.bf16.mxu1 %v4072_v6  ;;  %v14250_v6 = vld [vmem:[#allocation30 + $0x284] ss:$16 sps:$4 sm:$0xff]  }
 0xd7f   :  { %4310 = vmatmul.mubr.bf16.vlgmr.msra.gmra.mrb[56].mxu1 %v4071_v7  ;;  %v14248_v7 = vld [vmem:[#allocation30 + $0x280] ss:$16 sps:$4 sm:$0xff]  }
 0xd80   :  { %4926 = vmatpush1.bf16.msra.mxu1 %v14227_v53  ;;  %v14256_v53 = vld [vmem:[#allocation30 + $0x2a4] ss:$16 sps:$4 sm:$0xff]  }
 0xd81   :  { %4927 = vmatprep.subr.bf16.mxu1 %v14235_v55  ;;  %v14262_v55 = vld [vmem:[#allocation30 + $0x2c4] ss:$16 sps:$4 sm:$0xff]  }
 0xd84   :  { %4928 = vmatpush1.bf16.msra.mxu1 %v14233_v56  ;;  %v14260_v56 = vld [vmem:[#allocation30 + $0x2c0] ss:$16 sps:$4 sm:$0xff]  }
 0xd85   :  { %4929 = vmatprep.subr.bf16.mxu1 %v14241_v57  ;;  %v14268_v57 = vld [vmem:[#allocation30 + $0x2e4] ss:$16 sps:$4 sm:$0xff]  }
 0xd88   :  { %4930 = vmatpush1.bf16.msra.mxu1 %v14239_v58  ;;  %v14266_v58 = vld [vmem:[#allocation30 + $0x2e0] ss:$16 sps:$4 sm:$0xff]  }
 0xd89   :  { %4931 = vmatprep.subr.bf16.mxu1 %v14247_v62  ;;  %v14274_v62 = vld [vmem:[#allocation30 + $0x304] ss:$16 sps:$4 sm:$0xff]  }
 0xd8c   :  { %4932 = vmatpush1.bf16.msra.mxu1 %v14245_v2  ;;  %v14272_v2 = vld [vmem:[#allocation30 + $0x300] ss:$16 sps:$4 sm:$0xff]  }
 0xd8d   :  { %4933 = vmatprep.subr.bf16.mxu1 %v14253_v3  ;;  %v14280_v3 = vld [vmem:[#allocation30 + $0x324] ss:$16 sps:$4 sm:$0xff]  }
 0xd90   :  { %4934 = vmatpush1.bf16.msra.mxu1 %v14251_v10  ;;  %v14278_v10 = vld [vmem:[#allocation30 + $0x320] ss:$16 sps:$4 sm:$0xff]  }
 0xd91   :  { %4935 = vmatprep.subr.bf16.mxu1 %v14259_v12  ;;  %v14286_v12 = vld [vmem:[#allocation30 + $0x344] ss:$16 sps:$4 sm:$0xff]  }
 0xd94   :  { %4936 = vmatpush1.bf16.msra.mxu1 %v14257_v13  ;;  %v14284_v13 = vld [vmem:[#allocation30 + $0x340] ss:$16 sps:$4 sm:$0xff]  }
 0xd95   :  { %4937 = vmatprep.subr.bf16.mxu1 %v14265_v14  ;;  %v14292_v14 = vld [vmem:[#allocation30 + $0x364] ss:$16 sps:$4 sm:$0xff]  }
 0xd98   :  { %4938 = vmatpush1.bf16.msra.mxu1 %v14263_v15  ;;  %v14290_v15 = vld [vmem:[#allocation30 + $0x360] ss:$16 sps:$4 sm:$0xff]  }
 0xd99   :  { %4939 = vmatprep.subr.bf16.mxu1 %v14271_v16  ;;  %v14298_v16 = vld [vmem:[#allocation30 + $0x384] ss:$16 sps:$4 sm:$0xff]  }
 0xd9c   :  { %4940 = vmatpush1.bf16.msra.mxu1 %v14269_v17  ;;  %v14296_v17 = vld [vmem:[#allocation30 + $0x380] ss:$16 sps:$4 sm:$0xff]  }
 0xd9d   :  { %4941 = vmatprep.subr.bf16.mxu1 %v14277_v18  ;;  %v14304_v18 = vld [vmem:[#allocation30 + $0x3a4] ss:$16 sps:$4 sm:$0xff]  }
 0xda0   :  { %4942 = vmatpush1.bf16.msra.mxu1 %v14275_v19  ;;  %v14307_v19 = vld [vmem:[#allocation30 + $0x3ac] ss:$16 sps:$4 sm:$0xff]  }
 0xda1   :  { %4943 = vmatprep.subr.bf16.mxu1 %v14283_v20  ;;  %v14302_v20 = vld [vmem:[#allocation30 + $0x3a0] ss:$16 sps:$4 sm:$0xff]  }
 0xda4   :  { %4944 = vmatpush1.bf16.msra.mxu1 %v14281_v21  ;;  %v14305_v21 = vld [vmem:[#allocation30 + $0x3a8] ss:$16 sps:$4 sm:$0xff]  }
 0xda5   :  { %4945 = vmatprep.subr.bf16.mxu1 %v14289_v22  ;;  %v14308_v22 = vld [vmem:[#allocation30 + $0x3c0] ss:$16 sps:$4 sm:$0xff]  }
 0xda8   :  { %4946 = vmatpush1.bf16.msra.mxu1 %v14287_v24  ;;  %v14310_v24 = vld [vmem:[#allocation30 + $0x3c4] ss:$16 sps:$4 sm:$0xff]  }
 0xda9   :  { %4947 = vmatprep.subr.bf16.mxu1 %v14295_v26  ;;  %v14311_v26 = vld [vmem:[#allocation30 + $0x3c8] ss:$16 sps:$4 sm:$0xff]  }
 0xdac   :  { %4948 = vmatpush1.bf16.msra.mxu1 %v14293_v59  ;;  %v14313_v59 = vld [vmem:[#allocation30 + $0x3cc] ss:$16 sps:$4 sm:$0xff]  }
 0xdad   :  { %4949 = vmatprep.subr.bf16.mxu1 %v14301_v23  ;;  %v14316_v23 = vld [vmem:[#allocation30 + $0x3e4] ss:$16 sps:$4 sm:$0xff]  }
 0xdb0   :  { %4950 = vmatpush1.bf16.msra.mxu1 %v14299_v0  ;;  %v14319_v0 = vld [vmem:[#allocation30 + $0x3ec] ss:$16 sps:$4 sm:$0xff]  }
 0xdb1   :  { %4951 = vmatprep.subr.bf16.mxu1 %v14307_v19  ;;  %v14376_v19 = vld [vmem:[#allocation30 + $0x124] ss:$16 sps:$4 sm:$0xff]  }
 0xdb4   :  { %4952 = vmatpush1.bf16.msra.mxu1 %v14305_v21  ;;  %v14374_v21 = vld [vmem:[#allocation30 + $0x120] ss:$16 sps:$4 sm:$0xff]  }
 0xdb5   :  { %4953 = vmatprep.subr.bf16.mxu1 %v14313_v59  ;;  %v14380_v59 = vld [vmem:[#allocation30 + $0x140] ss:$16 sps:$4 sm:$0xff]  }
 0xdb8   :  { %4954 = vmatpush1.bf16.msra.mxu1 %v14311_v26  ;;  %v14385_v26 = vld [vmem:[#allocation30 + $0x14c] ss:$16 sps:$4 sm:$0xff]  }
 0xdb9   :  { %4955 = vmatprep.subr.bf16.mxu1 %v14319_v0  ;;  %v14388_v0 = vld [vmem:[#allocation30 + $0x164] ss:$16 sps:$4 sm:$0xff]  }
 0xe52   :  { %v4311_v11 = vpop.f32.mrb[56].mxu1 }
 0xe53   :  { %v4312_v27 = vadd.f32 %v4311_v11, %v4110_v1  ;;  %v4313_v28 = vpop.f32.mrb[57].mxu1  ;;  %v14317_v1 = vld [vmem:[#allocation30 + $0x3e8] ss:$16 sps:$4 sm:$0xff]   ;;  %v14325_v11 = vld [vmem:[#allocation30 + $0xc] ss:$16 sps:$4 sm:$0xff]  }
 0xe54   :  { %v4314_v5 = vadd.f32 %v4313_v28, %v4114_v8  ;;  %v4315_v29 = vpop.f32.mrb[58].mxu1  ;;  %4956 = vmatpush1.bf16.msra.mxu1 %v14317_v1  ;;  %v14322_v8 = vld [vmem:[#allocation30 + $0x4] ss:$16 sps:$4 sm:$0xff]   ;;  %v14386_v1 = vld [vmem:[#allocation30 + $0x160] ss:$16 sps:$4 sm:$0xff]  }
 0xe55   :  { %v4320_v30 = vmin.f32 %v4312_v27, 0.0  ;;  %v4316_v31 = vpop.f32.mrb[59].mxu1  ;;  %vm4318_vm15 = vcmp.gt.f32.partialorder %v4312_v27, 0.0  ;;  %5327 = vmatprep.subr.bf16.mxu1 %v14325_v11  ;;  %v14394_v11 = vld [vmem:[#allocation30 + $0x184] ss:$16 sps:$4 sm:$0xff]  }
 0xe56   :  { %v4321_v32 = vmin.f32 %v4314_v5, 0.0  ;;  %vm4319_vm2 = vcmp.gt.f32.partialorder %v4314_v5, 0.0 }
 0xe57   :  { %v4322_v33 = vmul.f32 1.442695, %v4320_v30 }
 0xe58   :  { %v4324_v34 = vmul.f32 1.442695, %v4321_v32 }
 0xe59   :  { %15463 = vpow2.f32 %v4322_v33 }
 0xe5a   :  { %15465 = vpow2.f32 %v4324_v34  ;;  %v14320_v34 = vld [vmem:[#allocation30] ss:$16 sps:$4 sm:$0xff]  }
 0xe63   :  { %v15464_v35 = vpop.eup %15463 }
 0xe64   :  { %v15466_v36 = vpop.eup %15465  ;;  %v12375_v37 = vadd.f32 -1.0, %v15464_v35  ;;  %v14323_v35 = vld [vmem:[#allocation30 + $0x8] ss:$16 sps:$4 sm:$0xff]  }
 0xe65   :  { %v12376_v38 = vadd.f32 -1.0, %v15466_v36 }
 0xe66   :  { %v4328_v39 = vsel %vm4318_vm15, %v4312_v27, %v12375_v37  ;;  %vm7473_vm15 = vcmask 15360  }
 0xe67   :  { %v4330_v40 = vpack.c.bf16 %v4328_v39, %v4328_v39  ;;  %v4329_v41 = vsel %vm4319_vm2, %v4314_v5, %v12376_v38  ;;  %v14328_v38 = vld [vmem:[#allocation30 + $0x24] ss:$16 sps:$4 sm:$0xff]   ;;  %v14331_v39 = vld [vmem:[#allocation30 + $0x2c] ss:$16 sps:$4 sm:$0xff]  }
 0xe68   :  { %v16865_v42 = vpack.c.bf16 %v4329_v41, %v4329_v41  ;;  %v14326_v41 = vld [vmem:[#allocation30 + $0x20] ss:$16 sps:$4 sm:$0xff]  }
 0xe69   :  { %v16868_v43 = vsel %vm4337_vm3, %v4330_v40, 0 }
 0xe6a   :  { %12377 = vmatprep.subr.msk.bf16.mxu0 %vm4337_vm3, %v16865_v42 }
 0xe6b   :  { %4345 = vmatpush1.bf16.msra.mxu0 %v16868_v43 }
 0xe6c   :  { %12379 = vmatprep.subr.msk.bf16.mxu0 %vm4337_vm3, %v16865_v42 }
 0xe6e   :  { %12378 = vmatmul.mubr.msk.bf16.vlgmr.msra.gmra.mrb[28].mxu0 %vm4333_vm4, %v4332_v44  ;;  %v14329_v44 = vld [vmem:[#allocation30 + $0x28] ss:$16 sps:$4 sm:$0xff]  }
 0xe6f   :  { %4457 = vmatpush1.bf16.msra.mxu0 %v16868_v43  ;;  %4488 = vmatprep.mubr.bf16.mxu0 %v16306_v9 }
 0xe70   :  { %4884 = vmatprep.subr.bf16.mxu0 %v14226_v45  ;;  %v14334_v45 = vld [vmem:[#allocation30 + $0x44] ss:$16 sps:$4 sm:$0xff]  }
 0xe76   :  { %12380 = vmatmul.mubr.msk.bf16.vlgmr.msra.gmra.mrb[32].mxu0 %vm4333_vm4, %v4452_v46  ;;  %v14337_v46 = vld [vmem:[#allocation30 + $0x4c] ss:$16 sps:$4 sm:$0xff]  }
 0xe77   :  { %4885 = vmatpush1.bf16.msra.mxu0 %v14224_v47  ;;  %v14332_v47 = vld [vmem:[#allocation30 + $0x40] ss:$16 sps:$4 sm:$0xff]  }
 0xe78   :  { %4886 = vmatprep.subr.bf16.mxu0 %v14232_v48  ;;  %v14335_v48 = vld [vmem:[#allocation30 + $0x48] ss:$16 sps:$4 sm:$0xff]  }
 0xe7b   :  { %4887 = vmatpush1.bf16.msra.mxu0 %v14230_v49  ;;  %v14340_v49 = vld [vmem:[#allocation30 + $0x64] ss:$16 sps:$4 sm:$0xff]  }
 0xe7c   :  { %4888 = vmatprep.subr.bf16.mxu0 %v14238_v50  ;;  %v14343_v50 = vld [vmem:[#allocation30 + $0x6c] ss:$16 sps:$4 sm:$0xff]  }
 0xe7f   :  { %4889 = vmatpush1.bf16.msra.mxu0 %v14236_v51  ;;  %v14338_v51 = vld [vmem:[#allocation30 + $0x60] ss:$16 sps:$4 sm:$0xff]  }
 0xe80   :  { %4890 = vmatprep.subr.bf16.mxu0 %v14244_v52  ;;  %v14341_v52 = vld [vmem:[#allocation30 + $0x68] ss:$16 sps:$4 sm:$0xff]  }
 0xe83   :  { %4891 = vmatpush1.bf16.msra.mxu0 %v14242_v4  ;;  %v14346_v4 = vld [vmem:[#allocation30 + $0x84] ss:$16 sps:$4 sm:$0xff]  }
 0xe84   :  { %4892 = vmatprep.subr.bf16.mxu0 %v14250_v6  ;;  %v14349_v6 = vld [vmem:[#allocation30 + $0x8c] ss:$16 sps:$4 sm:$0xff]  }
 0xe87   :  { %4893 = vmatpush1.bf16.msra.mxu0 %v14248_v7  ;;  %v14344_v7 = vld [vmem:[#allocation30 + $0x80] ss:$16 sps:$4 sm:$0xff]  }
 0xe88   :  { %4894 = vmatprep.subr.bf16.mxu0 %v14256_v53  ;;  %v14347_v53 = vld [vmem:[#allocation30 + $0x88] ss:$16 sps:$4 sm:$0xff]  }
 0xe8b   :  { %4895 = vmatpush1.bf16.msra.mxu0 %v14254_v54  ;;  %v14352_v54 = vld [vmem:[#allocation30 + $0xa4] ss:$16 sps:$4 sm:$0xff]  }
 0xe8c   :  { %4896 = vmatprep.subr.bf16.mxu0 %v14262_v55  ;;  %v14355_v55 = vld [vmem:[#allocation30 + $0xac] ss:$16 sps:$4 sm:$0xff]  }
 0xe8f   :  { %4897 = vmatpush1.bf16.msra.mxu0 %v14260_v56  ;;  %v14350_v56 = vld [vmem:[#allocation30 + $0xa0] ss:$16 sps:$4 sm:$0xff]  }
 0xe90   :  { %4898 = vmatprep.subr.bf16.mxu0 %v14268_v57  ;;  %v14353_v57 = vld [vmem:[#allocation30 + $0xa8] ss:$16 sps:$4 sm:$0xff]  }
 0xe93   :  { %4899 = vmatpush1.bf16.msra.mxu0 %v14266_v58  ;;  %v14358_v58 = vld [vmem:[#allocation30 + $0xc4] ss:$16 sps:$4 sm:$0xff]  }
 0xe94   :  { %4900 = vmatprep.subr.bf16.mxu0 %v14274_v62  ;;  %v14361_v62 = vld [vmem:[#allocation30 + $0xcc] ss:$16 sps:$4 sm:$0xff]  }
 0xe97   :  { %4901 = vmatpush1.bf16.msra.mxu0 %v14272_v2  ;;  %v14356_v2 = vld [vmem:[#allocation30 + $0xc0] ss:$16 sps:$4 sm:$0xff]  }
 0xe98   :  { %4902 = vmatprep.subr.bf16.mxu0 %v14280_v3  ;;  %v14359_v3 = vld [vmem:[#allocation30 + $0xc8] ss:$16 sps:$4 sm:$0xff]  }
 0xe9b   :  { %4903 = vmatpush1.bf16.msra.mxu0 %v14278_v10  ;;  %v14364_v10 = vld [vmem:[#allocation30 + $0xe4] ss:$16 sps:$4 sm:$0xff]  }
 0xe9c   :  { %4904 = vmatprep.subr.bf16.mxu0 %v14286_v12  ;;  %v14367_v12 = vld [vmem:[#allocation30 + $0xec] ss:$16 sps:$4 sm:$0xff]  }
 0xe9f   :  { %4905 = vmatpush1.bf16.msra.mxu0 %v14284_v13  ;;  %v14362_v13 = vld [vmem:[#allocation30 + $0xe0] ss:$16 sps:$4 sm:$0xff]  }
 0xea0   :  { %4906 = vmatprep.subr.bf16.mxu0 %v14292_v14  ;;  %v14365_v14 = vld [vmem:[#allocation30 + $0xe8] ss:$16 sps:$4 sm:$0xff]  }
 0xea3   :  { %4907 = vmatpush1.bf16.msra.mxu0 %v14290_v15  ;;  %v14370_v15 = vld [vmem:[#allocation30 + $0x104] ss:$16 sps:$4 sm:$0xff]  }
 0xea4   :  { %4908 = vmatprep.subr.bf16.mxu0 %v14298_v16  ;;  %v14373_v16 = vld [vmem:[#allocation30 + $0x10c] ss:$16 sps:$4 sm:$0xff]  }
 0xea7   :  { %4909 = vmatpush1.bf16.msra.mxu0 %v14296_v17  ;;  %v14368_v17 = vld [vmem:[#allocation30 + $0x100] ss:$16 sps:$4 sm:$0xff]  }
 0xea8   :  { %4910 = vmatprep.subr.bf16.mxu0 %v14304_v18  ;;  %v14371_v18 = vld [vmem:[#allocation30 + $0x108] ss:$16 sps:$4 sm:$0xff]  }
 0xeab   :  { %4911 = vmatpush1.bf16.msra.mxu0 %v14302_v20  ;;  %v14379_v20 = vld [vmem:[#allocation30 + $0x12c] ss:$16 sps:$4 sm:$0xff]  }
 0xeac   :  { %4912 = vmatprep.subr.bf16.mxu0 %v14310_v24  ;;  %v14382_v24 = vld [vmem:[#allocation30 + $0x144] ss:$16 sps:$4 sm:$0xff]  }
 0xeaf   :  { %4913 = vmatpush1.bf16.msra.mxu0 %v14308_v22  ;;  %v14377_v22 = vld [vmem:[#allocation30 + $0x128] ss:$16 sps:$4 sm:$0xff]  }
 0xeb0   :  { %4914 = vmatprep.subr.bf16.mxu0 %v14316_v23  ;;  %v14383_v23 = vld [vmem:[#allocation30 + $0x148] ss:$16 sps:$4 sm:$0xff]  }
 0xeb3   :  { %4915 = vmatpush1.bf16.msra.mxu0 %v14314_v25  ;;  %v14391_v25 = vld [vmem:[#allocation30 + $0x16c] ss:$16 sps:$4 sm:$0xff]  }
 0xeb4   :  { %5286 = vmatprep.subr.bf16.mxu0 %v14322_v8  ;;  %v14389_v8 = vld [vmem:[#allocation30 + $0x168] ss:$16 sps:$4 sm:$0xff]  }
 0xf41   :  { %v16879_v27 = vpop.f32.mrb[28].mxu0 }
 0xf42   :  { %v4380_v28 = vpop.f32.mrb[29].mxu0 }
 0xf43   :  { %v4382_v5 = vpop.f32.mrb[30].mxu0  ;;  %v4386_v40 = vpack.c.bf16 %v4380_v28, %v4380_v28  ;;  %v14397_v28 = vld [vmem:[#allocation30 + $0x18c] ss:$16 sps:$4 sm:$0xff]  }
 0xf44   :  { %v4383_v29 = vpop.f32.mrb[31].mxu0  ;;  %v14392_v5 = vld [vmem:[#allocation30 + $0x180] ss:$16 sps:$4 sm:$0xff]  }
 0xf45   :  { %v14395_v29 = vld [vmem:[#allocation30 + $0x188] ss:$16 sps:$4 sm:$0xff]  }
 0xf49   :  { %v4490_v30 = vpop.f32.mrb[32].mxu0 }
 0xf4a   :  { %v4492_v31 = vpop.f32.mrb[33].mxu0  ;;  %v4497_v36 = vpack.c.bf16 %v4490_v30, %v4490_v30  ;;  %v14400_v30 = vld [vmem:[#allocation30 + $0x1a4] ss:$16 sps:$4 sm:$0xff]  }
 0xf4b   :  { %v4498_v32 = vpack.c.bf16 %v4492_v31, %v4492_v31  ;;  %v4494_v33 = vpop.f32.mrb[34].mxu0  ;;  %v14403_v31 = vld [vmem:[#allocation30 + $0x1ac] ss:$16 sps:$4 sm:$0xff]  }
 0xf4c   :  { %v4495_v37 = vpop.f32.mrb[35].mxu0  ;;  %v14401_v33 = vld [vmem:[#allocation30 + $0x1a8] ss:$16 sps:$4 sm:$0xff]  }
 0xf4d   :  { %4916 = vmatprep.mubr.bf16.mxu0 %v4498_v32  ;;  %4957 = vmatprep.mubr.bf16.mxu1 %v4498_v32  ;;  %v14398_v32 = vld [vmem:[#allocation30 + $0x1a0] ss:$16 sps:$4 sm:$0xff]   ;;  %v14407_v37 = vld [vmem:[#allocation30 + $0x1c8] ss:$16 sps:$4 sm:$0xff]  }
 0xf4e   :  { %4917 = vmatmul.mubr.bf16.vlgmr.msra.gmra.mrb[36].mxu0 %v4497_v36  ;;  %4958 = vmatmul.mubr.bf16.vlgmr.msra.gmra.mrb[60].mxu1 %v4497_v36  ;;  %v14404_v36 = vld [vmem:[#allocation30 + $0x1c0] ss:$16 sps:$4 sm:$0xff]  }
 0xf4f   :  { %5287 = vmatpush1.bf16.msra.mxu0 %v14320_v34  ;;  %5328 = vmatpush1.bf16.msra.mxu1 %v14323_v35  ;;  %v14406_v34 = vld [vmem:[#allocation30 + $0x1c4] ss:$16 sps:$4 sm:$0xff]   ;;  %v14409_v35 = vld [vmem:[#allocation30 + $0x1cc] ss:$16 sps:$4 sm:$0xff]  }
 0xf50   :  { %5318 = vmatprep.mubr.bf16.mxu0 %v4386_v40  ;;  %5359 = vmatprep.mubr.bf16.mxu1 %v4386_v40  ;;  %v14410_v40 = vld [vmem:[#allocation30 + $0x1e0] ss:$16 sps:$4 sm:$0xff]  }
 0xf51   :  { %5288 = vmatprep.subr.bf16.mxu0 %v14328_v38  ;;  %5329 = vmatprep.subr.bf16.mxu1 %v14331_v39  ;;  %v14412_v38 = vld [vmem:[#allocation30 + $0x1e4] ss:$16 sps:$4 sm:$0xff]   ;;  %v14415_v39 = vld [vmem:[#allocation30 + $0x1ec] ss:$16 sps:$4 sm:$0xff]  }
 0xf53   :  { %5289 = vmatpush1.bf16.msra.mxu0 %v14326_v41  ;;  %5330 = vmatpush1.bf16.msra.mxu1 %v14329_v44  ;;  %v14413_v41 = vld [vmem:[#allocation30 + $0x1e8] ss:$16 sps:$4 sm:$0xff]   ;;  %v4385_v44 = vpack.c.bf16 %v16879_v27, %v16879_v27  ;;  %v14424_v27 = vld [vmem:[#allocation30 + $0x444] ss:$16 sps:$4 sm:$0xff]  }
 0xf54   :  { %5290 = vmatprep.subr.bf16.mxu0 %v14334_v45  ;;  %5331 = vmatprep.subr.bf16.mxu1 %v14337_v46  ;;  %v14418_v45 = vld [vmem:[#allocation30 + $0x404] ss:$16 sps:$4 sm:$0xff]   ;;  %v14416_v46 = vld [vmem:[#allocation30 + $0x400] ss:$16 sps:$4 sm:$0xff]  }
 0xf57   :  { %5291 = vmatpush1.bf16.msra.mxu0 %v14332_v47  ;;  %5332 = vmatpush1.bf16.msra.mxu1 %v14335_v48  ;;  %v5369_v47 = vld [vmem:[#allocation28 + $0x2] sm:$0x1]  ;;  %v14421_v48 = vld [vmem:[#allocation30 + $0x424] ss:$16 sps:$4 sm:$0xff]  }
 0xf58   :  { %5292 = vmatprep.subr.bf16.mxu0 %v14340_v49  ;;  %5333 = vmatprep.subr.bf16.mxu1 %v14343_v50  ;;  %v14419_v49 = vld [vmem:[#allocation30 + $0x420] ss:$16 sps:$4 sm:$0xff]  }
 0xf59   :  { %v14422_v50 = vld [vmem:[#allocation30 + $0x440] ss:$16 sps:$4 sm:$0xff]  }
 0xf5b   :  { %5293 = vmatpush1.bf16.msra.mxu0 %v14338_v51  ;;  %5334 = vmatpush1.bf16.msra.mxu1 %v14341_v52  ;;  %v14427_v51 = vld [vmem:[#allocation30 + $0x464] ss:$16 sps:$4 sm:$0xff]   ;;  %v14425_v52 = vld [vmem:[#allocation30 + $0x460] ss:$16 sps:$4 sm:$0xff]  }
 0xf5c   :  { %5294 = vmatprep.subr.bf16.mxu0 %v14346_v4  ;;  %5335 = vmatprep.subr.bf16.mxu1 %v14349_v6  ;;  %v14430_v4 = vld [vmem:[#allocation30 + $0x484] ss:$16 sps:$4 sm:$0xff]   ;;  %v14428_v6 = vld [vmem:[#allocation30 + $0x480] ss:$16 sps:$4 sm:$0xff]  }
 0xf5f   :  { %5295 = vmatpush1.bf16.msra.mxu0 %v14344_v7  ;;  %5336 = vmatpush1.bf16.msra.mxu1 %v14347_v53  ;;  %v14433_v7 = vld [vmem:[#allocation30 + $0x4a4] ss:$16 sps:$4 sm:$0xff]   ;;  %v14464_v53 = vld [vmem:[#allocation30 + $0x408] ss:$16 sps:$4 sm:$0xff]  }
 0xf60   :  { %5296 = vmatprep.subr.bf16.mxu0 %v14352_v54  ;;  %5337 = vmatprep.subr.bf16.mxu1 %v14355_v55  ;;  %v14466_v54 = vld [vmem:[#allocation30 + $0x40c] ss:$16 sps:$4 sm:$0xff]  }
 0xf61   :  { %v14469_v55 = vld [vmem:[#allocation30 + $0x42c] ss:$16 sps:$4 sm:$0xff]  }
 0xf63   :  { %5297 = vmatpush1.bf16.msra.mxu0 %v14350_v56  ;;  %5338 = vmatpush1.bf16.msra.mxu1 %v14353_v57  ;;  %v14431_v56 = vld [vmem:[#allocation30 + $0x4a0] ss:$16 sps:$4 sm:$0xff]   ;;  %v14467_v57 = vld [vmem:[#allocation30 + $0x428] ss:$16 sps:$4 sm:$0xff]  }
 0xf64   :  { %5298 = vmatprep.subr.bf16.mxu0 %v14358_v58  ;;  %5339 = vmatprep.subr.bf16.mxu1 %v14361_v62  ;;  %v14436_v58 = vld [vmem:[#allocation30 + $0x4c4] ss:$16 sps:$4 sm:$0xff]   ;;  %v14472_v62 = vld [vmem:[#allocation30 + $0x44c] ss:$16 sps:$4 sm:$0xff]  }
 0xf67   :  { %5299 = vmatpush1.bf16.msra.mxu0 %v14356_v2  ;;  %5340 = vmatpush1.bf16.msra.mxu1 %v14359_v3  ;;  %v14434_v2 = vld [vmem:[#allocation30 + $0x4c0] ss:$16 sps:$4 sm:$0xff]   ;;  %v14470_v3 = vld [vmem:[#allocation30 + $0x448] ss:$16 sps:$4 sm:$0xff]  }
 0xf68   :  { %5300 = vmatprep.subr.bf16.mxu0 %v14364_v10  ;;  %5341 = vmatprep.subr.bf16.mxu1 %v14367_v12  ;;  %v14439_v10 = vld [vmem:[#allocation30 + $0x4e4] ss:$16 sps:$4 sm:$0xff]   ;;  %v14475_v12 = vld [vmem:[#allocation30 + $0x46c] ss:$16 sps:$4 sm:$0xff]  }
 0xf6b   :  { %5301 = vmatpush1.bf16.msra.mxu0 %v14362_v13  ;;  %5342 = vmatpush1.bf16.msra.mxu1 %v14365_v14  ;;  %v14437_v13 = vld [vmem:[#allocation30 + $0x4e0] ss:$16 sps:$4 sm:$0xff]   ;;  %v14473_v14 = vld [vmem:[#allocation30 + $0x468] ss:$16 sps:$4 sm:$0xff]  }
 0xf6c   :  { %5302 = vmatprep.subr.bf16.mxu0 %v14370_v15  ;;  %5343 = vmatprep.subr.bf16.mxu1 %v14373_v16  ;;  %v14442_v15 = vld [vmem:[#allocation30 + $0x504] ss:$16 sps:$4 sm:$0xff]   ;;  %v14478_v16 = vld [vmem:[#allocation30 + $0x48c] ss:$16 sps:$4 sm:$0xff]  }
 0xf6f   :  { %5303 = vmatpush1.bf16.msra.mxu0 %v14368_v17  ;;  %5344 = vmatpush1.bf16.msra.mxu1 %v14371_v18  ;;  %v14440_v17 = vld [vmem:[#allocation30 + $0x500] ss:$16 sps:$4 sm:$0xff]   ;;  %v14476_v18 = vld [vmem:[#allocation30 + $0x488] ss:$16 sps:$4 sm:$0xff]  }
 0xf70   :  { %5304 = vmatprep.subr.bf16.mxu0 %v14376_v19  ;;  %5345 = vmatprep.subr.bf16.mxu1 %v14379_v20  ;;  %v14445_v19 = vld [vmem:[#allocation30 + $0x524] ss:$16 sps:$4 sm:$0xff]   ;;  %v14481_v20 = vld [vmem:[#allocation30 + $0x4ac] ss:$16 sps:$4 sm:$0xff]  }
 0xf73   :  { %5305 = vmatpush1.bf16.msra.mxu0 %v14374_v21  ;;  %5346 = vmatpush1.bf16.msra.mxu1 %v14377_v22  ;;  %v14443_v21 = vld [vmem:[#allocation30 + $0x520] ss:$16 sps:$4 sm:$0xff]   ;;  %v14479_v22 = vld [vmem:[#allocation30 + $0x4a8] ss:$16 sps:$4 sm:$0xff]  }
 0xf74   :  { %5306 = vmatprep.subr.bf16.mxu0 %v14382_v24  ;;  %5347 = vmatprep.subr.bf16.mxu1 %v14385_v26  ;;  %v14448_v24 = vld [vmem:[#allocation30 + $0x544] ss:$16 sps:$4 sm:$0xff]   ;;  %v14484_v26 = vld [vmem:[#allocation30 + $0x4cc] ss:$16 sps:$4 sm:$0xff]  }
 0xf77   :  { %5307 = vmatpush1.bf16.msra.mxu0 %v14380_v59  ;;  %5348 = vmatpush1.bf16.msra.mxu1 %v14383_v23  ;;  %v14446_v59 = vld [vmem:[#allocation30 + $0x540] ss:$16 sps:$4 sm:$0xff]   ;;  %v14482_v23 = vld [vmem:[#allocation30 + $0x4c8] ss:$16 sps:$4 sm:$0xff]  }
 0xf78   :  { %5308 = vmatprep.subr.bf16.mxu0 %v14388_v0  ;;  %5349 = vmatprep.subr.bf16.mxu1 %v14391_v25  ;;  %v14451_v0 = vld [vmem:[#allocation30 + $0x564] ss:$16 sps:$4 sm:$0xff]   ;;  %v14487_v25 = vld [vmem:[#allocation30 + $0x4ec] ss:$16 sps:$4 sm:$0xff]  }
 0xf7b   :  { %5309 = vmatpush1.bf16.msra.mxu0 %v14386_v1  ;;  %5350 = vmatpush1.bf16.msra.mxu1 %v14389_v8  ;;  %v14449_v1 = vld [vmem:[#allocation30 + $0x560] ss:$16 sps:$4 sm:$0xff]   ;;  %v14485_v8 = vld [vmem:[#allocation30 + $0x4e8] ss:$16 sps:$4 sm:$0xff]  }
 0xf7c   :  { %5310 = vmatprep.subr.bf16.mxu0 %v14394_v11  ;;  %5351 = vmatprep.subr.bf16.mxu1 %v14397_v28  ;;  %v14454_v11 = vld [vmem:[#allocation30 + $0x584] ss:$16 sps:$4 sm:$0xff]   ;;  %v14490_v28 = vld [vmem:[#allocation30 + $0x50c] ss:$16 sps:$4 sm:$0xff]  }
 0xf7f   :  { %5311 = vmatpush1.bf16.msra.mxu0 %v14392_v5  ;;  %5352 = vmatpush1.bf16.msra.mxu1 %v14395_v29  ;;  %v14452_v5 = vld [vmem:[#allocation30 + $0x580] ss:$16 sps:$4 sm:$0xff]   ;;  %v14488_v29 = vld [vmem:[#allocation30 + $0x508] ss:$16 sps:$4 sm:$0xff]  }
 0xf80   :  { %5312 = vmatprep.subr.bf16.mxu0 %v14400_v30  ;;  %5353 = vmatprep.subr.bf16.mxu1 %v14403_v31  ;;  %v14457_v30 = vld [vmem:[#allocation30 + $0x5a4] ss:$16 sps:$4 sm:$0xff]   ;;  %v14493_v31 = vld [vmem:[#allocation30 + $0x52c] ss:$16 sps:$4 sm:$0xff]  }
 0xf83   :  { %5313 = vmatpush1.bf16.msra.mxu0 %v14398_v32  ;;  %5354 = vmatpush1.bf16.msra.mxu1 %v14401_v33  ;;  %v14455_v32 = vld [vmem:[#allocation30 + $0x5a0] ss:$16 sps:$4 sm:$0xff]   ;;  %v14491_v33 = vld [vmem:[#allocation30 + $0x528] ss:$16 sps:$4 sm:$0xff]  }
 0xf84   :  { %5314 = vmatprep.subr.bf16.mxu0 %v14406_v34  ;;  %5355 = vmatprep.subr.bf16.mxu1 %v14409_v35  ;;  %v14460_v34 = vld [vmem:[#allocation30 + $0x5c4] ss:$16 sps:$4 sm:$0xff]   ;;  %v14496_v35 = vld [vmem:[#allocation30 + $0x54c] ss:$16 sps:$4 sm:$0xff]  }
 0xf87   :  { %5315 = vmatpush1.bf16.msra.mxu0 %v14404_v36  ;;  %5356 = vmatpush1.bf16.msra.mxu1 %v14407_v37  ;;  %v14458_v36 = vld [vmem:[#allocation30 + $0x5c0] ss:$16 sps:$4 sm:$0xff]   ;;  %v14494_v37 = vld [vmem:[#allocation30 + $0x548] ss:$16 sps:$4 sm:$0xff]  }
 0xf88   :  { %5316 = vmatprep.subr.bf16.mxu0 %v14412_v38  ;;  %5357 = vmatprep.subr.bf16.mxu1 %v14415_v39  ;;  %v14463_v38 = vld [vmem:[#allocation30 + $0x5e4] ss:$16 sps:$4 sm:$0xff]   ;;  %v14499_v39 = vld [vmem:[#allocation30 + $0x56c] ss:$16 sps:$4 sm:$0xff]  }
 0xf8b   :  { %5317 = vmatpush1.bf16.msra.mxu0 %v14410_v40  ;;  %5358 = vmatpush1.bf16.msra.mxu1 %v14413_v41  ;;  %v14461_v40 = vld [vmem:[#allocation30 + $0x5e0] ss:$16 sps:$4 sm:$0xff]   ;;  %v14497_v41 = vld [vmem:[#allocation30 + $0x568] ss:$16 sps:$4 sm:$0xff]  }
 0xf8c   :  { %12509 = vmatprep.subr.msk.bf16.mxu0 %vm4337_vm3, %v16865_v42  ;;  %5842 = vmatprep.subr.bf16.mxu1 %v14466_v54 }
 0xf8e   :  { %5319 = vmatmul.mubr.bf16.vlgmr.msra.gmra.mrb[40].mxu0 %v4385_v44  ;;  %5360 = vmatmul.mubr.bf16.vlgmr.msra.gmra.mrb[64].mxu1 %v4385_v44  ;;  %v14502_v44 = vld [vmem:[#allocation30 + $0x58c] ss:$16 sps:$4 sm:$0xff]  }
 0xf8f   :  { %5374 = vmatpush1.bf16.msra.mxu0 %v16868_v43  ;;  %5405 = vmatprep.mubr.bf16.mxu0 %v16306_v9 }
 0xf90   :  { %5801 = vmatprep.subr.bf16.mxu0 %v14418_v45  ;;  %5843 = vmatpush1.bf16.msra.mxu1 %v14464_v53  ;;  %v14500_v45 = vld [vmem:[#allocation30 + $0x588] ss:$16 sps:$4 sm:$0xff]  }
 0xf91   :  { %5844 = vmatprep.subr.bf16.mxu1 %v14469_v55 }
 0xf94   :  { %5845 = vmatpush1.bf16.msra.mxu1 %v14467_v57 }
 0xf95   :  { %5846 = vmatprep.subr.bf16.mxu1 %v14472_v62 }
 0xf96   :  { %12510 = vmatmul.mubr.msk.bf16.vlgmr.msra.gmra.mrb[44].mxu0 %vm4333_vm4, %v5369_v47  ;;  %v14503_v47 = vld [vmem:[#allocation30 + $0x5a8] ss:$16 sps:$4 sm:$0xff]  }
 0xf97   :  { %5802 = vmatpush1.bf16.msra.mxu0 %v14416_v46  ;;  %v14505_v46 = vld [vmem:[#allocation30 + $0x5ac] ss:$16 sps:$4 sm:$0xff]  }
 0xf98   :  { %5803 = vmatprep.subr.bf16.mxu0 %v14421_v48  ;;  %5847 = vmatpush1.bf16.msra.mxu1 %v14470_v3  ;;  %v14506_v48 = vld [vmem:[#allocation30 + $0x5c8] ss:$16 sps:$4 sm:$0xff]  }
 0xf99   :  { %5848 = vmatprep.subr.bf16.mxu1 %v14475_v12 }
 0xf9b   :  { %5804 = vmatpush1.bf16.msra.mxu0 %v14419_v49  ;;  %v14508_v49 = vld [vmem:[#allocation30 + $0x5cc] ss:$16 sps:$4 sm:$0xff]  }
 0xf9c   :  { %5805 = vmatprep.subr.bf16.mxu0 %v14424_v27  ;;  %5849 = vmatpush1.bf16.msra.mxu1 %v14473_v14  ;;  %v14511_v27 = vld [vmem:[#allocation30 + $0x5ec] ss:$16 sps:$4 sm:$0xff]  }
 0xf9d   :  { %5850 = vmatprep.subr.bf16.mxu1 %v14478_v16 }
 0xf9f   :  { %5806 = vmatpush1.bf16.msra.mxu0 %v14422_v50  ;;  %v14509_v50 = vld [vmem:[#allocation30 + $0x5e8] ss:$16 sps:$4 sm:$0xff]  }
 0xfa0   :  { %5807 = vmatprep.subr.bf16.mxu0 %v14427_v51  ;;  %5851 = vmatpush1.bf16.msra.mxu1 %v14476_v18  ;;  %v14517_v51 = vld [vmem:[#allocation30 + $0x60c] ss:$16 sps:$4 sm:$0xff]  }
 0xfa1   :  { %5852 = vmatprep.subr.bf16.mxu1 %v14481_v20 }
 0xfa3   :  { %5808 = vmatpush1.bf16.msra.mxu0 %v14425_v52 }
 0xfa4   :  { %5809 = vmatprep.subr.bf16.mxu0 %v14430_v4  ;;  %5853 = vmatpush1.bf16.msra.mxu1 %v14479_v22 }
 0xfa5   :  { %5854 = vmatprep.subr.bf16.mxu1 %v14484_v26  ;;  %v14515_v26 = vld [vmem:[#allocation30 + $0x608] ss:$16 sps:$4 sm:$0xff]  }
 0xfa7   :  { %5810 = vmatpush1.bf16.msra.mxu0 %v14428_v6 }
 0xfa8   :  { %5811 = vmatprep.subr.bf16.mxu0 %v14433_v7  ;;  %5855 = vmatpush1.bf16.msra.mxu1 %v14482_v23  ;;  %v14521_v23 = vld [vmem:[#allocation30 + $0x628] ss:$16 sps:$4 sm:$0xff]  }
 0xfa9   :  { %5856 = vmatprep.subr.bf16.mxu1 %v14487_v25  ;;  %v5888_v25 = vld [vmem:[#allocation28 + $0x3] sm:$0x1] }
 0xfab   :  { %5812 = vmatpush1.bf16.msra.mxu0 %v14431_v56 }
 0xfac   :  { %5813 = vmatprep.subr.bf16.mxu0 %v14436_v58  ;;  %5857 = vmatpush1.bf16.msra.mxu1 %v14485_v8  ;;  %v14520_v8 = vld [vmem:[#allocation30 + $0x624] ss:$16 sps:$4 sm:$0xff]  }
 0xfad   :  { %5858 = vmatprep.subr.bf16.mxu1 %v14490_v28  ;;  %v14535_v28 = vld [vmem:[#allocation30 + $0x66c] ss:$16 sps:$4 sm:$0xff]  }
 0xfaf   :  { %5814 = vmatpush1.bf16.msra.mxu0 %v14434_v2 }
 0xfb0   :  { %5815 = vmatprep.subr.bf16.mxu0 %v14439_v10  ;;  %5859 = vmatpush1.bf16.msra.mxu1 %v14488_v29  ;;  %v14533_v29 = vld [vmem:[#allocation30 + $0x668] ss:$16 sps:$4 sm:$0xff]  }
 0xfb1   :  { %5860 = vmatprep.subr.bf16.mxu1 %v14493_v31  ;;  %v14524_v31 = vld [vmem:[#allocation30 + $0x640] ss:$16 sps:$4 sm:$0xff]  }
 0xfb3   :  { %5816 = vmatpush1.bf16.msra.mxu0 %v14437_v13 }
 0xfb4   :  { %5817 = vmatprep.subr.bf16.mxu0 %v14442_v15  ;;  %5861 = vmatpush1.bf16.msra.mxu1 %v14491_v33  ;;  %v14539_v33 = vld [vmem:[#allocation30 + $0x688] ss:$16 sps:$4 sm:$0xff]  }
 0xfb5   :  { %5862 = vmatprep.subr.bf16.mxu1 %v14496_v35  ;;  %v14530_v35 = vld [vmem:[#allocation30 + $0x660] ss:$16 sps:$4 sm:$0xff]  }
 0xfb7   :  { %5818 = vmatpush1.bf16.msra.mxu0 %v14440_v17 }
 0xfb8   :  { %5819 = vmatprep.subr.bf16.mxu0 %v14445_v19  ;;  %5863 = vmatpush1.bf16.msra.mxu1 %v14494_v37  ;;  %v14545_v37 = vld [vmem:[#allocation30 + $0x6a8] ss:$16 sps:$4 sm:$0xff]  }
 0xfb9   :  { %5864 = vmatprep.subr.bf16.mxu1 %v14499_v39  ;;  %v14536_v39 = vld [vmem:[#allocation30 + $0x680] ss:$16 sps:$4 sm:$0xff]  }
 0xfbb   :  { %5820 = vmatpush1.bf16.msra.mxu0 %v14443_v21 }
 0xfbc   :  { %5821 = vmatprep.subr.bf16.mxu0 %v14448_v24  ;;  %5865 = vmatpush1.bf16.msra.mxu1 %v14497_v41  ;;  %v14514_v24 = vld [vmem:[#allocation30 + $0x604] ss:$16 sps:$4 sm:$0xff]   ;;  %v14551_v41 = vld [vmem:[#allocation30 + $0x6c8] ss:$16 sps:$4 sm:$0xff]  }
 0xfbd   :  { %5866 = vmatprep.subr.bf16.mxu1 %v14502_v44  ;;  %v14559_v44 = vld [vmem:[#allocation30 + $0x6ec] ss:$16 sps:$4 sm:$0xff]  }
 0xfbf   :  { %5822 = vmatpush1.bf16.msra.mxu0 %v14446_v59  ;;  %v14523_v59 = vld [vmem:[#allocation30 + $0x62c] ss:$16 sps:$4 sm:$0xff]  }
 0xfc0   :  { %5823 = vmatprep.subr.bf16.mxu0 %v14451_v0  ;;  %5867 = vmatpush1.bf16.msra.mxu1 %v14500_v45  ;;  %v14529_v0 = vld [vmem:[#allocation30 + $0x64c] ss:$16 sps:$4 sm:$0xff]   ;;  %v14542_v45 = vld [vmem:[#allocation30 + $0x6a0] ss:$16 sps:$4 sm:$0xff]  }
 0xfc1   :  { %5868 = vmatprep.subr.bf16.mxu1 %v14505_v46  ;;  %v14550_v46 = vld [vmem:[#allocation30 + $0x6c4] ss:$16 sps:$4 sm:$0xff]  }
 0xfc3   :  { %5824 = vmatpush1.bf16.msra.mxu0 %v14449_v1  ;;  %v14512_v1 = vld [vmem:[#allocation30 + $0x600] ss:$16 sps:$4 sm:$0xff]  }
 0xfc4   :  { %5825 = vmatprep.subr.bf16.mxu0 %v14454_v11  ;;  %5869 = vmatpush1.bf16.msra.mxu1 %v14503_v47  ;;  %v14527_v11 = vld [vmem:[#allocation30 + $0x648] ss:$16 sps:$4 sm:$0xff]  }
 0xfc5   :  { %5870 = vmatprep.subr.bf16.mxu1 %v14508_v49  ;;  %v14557_v47 = vld [vmem:[#allocation30 + $0x6e8] ss:$16 sps:$4 sm:$0xff]   ;;  %v14548_v49 = vld [vmem:[#allocation30 + $0x6c0] ss:$16 sps:$4 sm:$0xff]  }
 0xfc7   :  { %5826 = vmatpush1.bf16.msra.mxu0 %v14452_v5  ;;  %v14518_v5 = vld [vmem:[#allocation30 + $0x620] ss:$16 sps:$4 sm:$0xff]  }
 0xfc8   :  { %5827 = vmatprep.subr.bf16.mxu0 %v14457_v30  ;;  %5871 = vmatpush1.bf16.msra.mxu1 %v14506_v48  ;;  %v14541_v30 = vld [vmem:[#allocation30 + $0x68c] ss:$16 sps:$4 sm:$0xff]  }
 0xfc9   :  { %5872 = vmatprep.subr.bf16.mxu1 %v14511_v27  ;;  %v14565_v48 = vld [vmem:[#allocation30 + $0x70c] ss:$16 sps:$4 sm:$0xff]   ;;  %v14556_v27 = vld [vmem:[#allocation30 + $0x6e4] ss:$16 sps:$4 sm:$0xff]  }
 0xfcb   :  { %5828 = vmatpush1.bf16.msra.mxu0 %v14455_v32  ;;  %v14532_v32 = vld [vmem:[#allocation30 + $0x664] ss:$16 sps:$4 sm:$0xff]  }
 0xfcc   :  { %5829 = vmatprep.subr.bf16.mxu0 %v14460_v34  ;;  %5873 = vmatpush1.bf16.msra.mxu1 %v14509_v50  ;;  %v14547_v34 = vld [vmem:[#allocation30 + $0x6ac] ss:$16 sps:$4 sm:$0xff]   ;;  %v14563_v50 = vld [vmem:[#allocation30 + $0x708] ss:$16 sps:$4 sm:$0xff]  }
 0xfcd   :  { %6361 = vmatprep.subr.bf16.mxu1 %v14517_v51  ;;  %v14571_v51 = vld [vmem:[#allocation30 + $0x72c] ss:$16 sps:$4 sm:$0xff]  }
 0xfcf   :  { %5830 = vmatpush1.bf16.msra.mxu0 %v14458_v36  ;;  %v14538_v36 = vld [vmem:[#allocation30 + $0x684] ss:$16 sps:$4 sm:$0xff]  }
 0xfd0   :  { %5831 = vmatprep.subr.bf16.mxu0 %v14463_v38  ;;  %v14553_v38 = vld [vmem:[#allocation30 + $0x6cc] ss:$16 sps:$4 sm:$0xff]  }
 0xfd3   :  { %5832 = vmatpush1.bf16.msra.mxu0 %v14461_v40  ;;  %v14544_v40 = vld [vmem:[#allocation30 + $0x6a4] ss:$16 sps:$4 sm:$0xff]  }
 0xfd4   :  { %12575 = vmatprep.subr.msk.bf16.mxu0 %vm4337_vm3, %v16865_v42 }
0x1021   :  { %v4918_v52 = vpop.f32.mrb[36].mxu0  ;;  %v4959_v4 = vpop.f32.mrb[60].mxu1 }
0x1022   :  { %v4920_v6 = vpop.f32.mrb[37].mxu0  ;;  %v4961_v42 = vpop.f32.mrb[61].mxu1 }
0x1023   :  { %v4922_v7 = vpop.f32.mrb[38].mxu0  ;;  %v4963_v53 = vpop.f32.mrb[62].mxu1 }
0x1024   :  { %v4923_v54 = vpop.f32.mrb[39].mxu0  ;;  %v4964_v55 = vpop.f32.mrb[63].mxu1  ;;  %v14560_v7 = vld [vmem:[#allocation30 + $0x700] ss:$16 sps:$4 sm:$0xff]   ;;  %v14568_v53 = vld [vmem:[#allocation30 + $0x724] ss:$16 sps:$4 sm:$0xff]  }
0x1025   :  { %v14575_v54 = vld [vmem:[#allocation30 + $0x748] ss:$16 sps:$4 sm:$0xff]   ;;  %v14583_v55 = vld [vmem:[#allocation30 + $0x76c] ss:$16 sps:$4 sm:$0xff]  }
0x1061   :  { %v5320_v56 = vpop.f32.mrb[40].mxu0  ;;  %v5361_v57 = vpop.f32.mrb[64].mxu1 }
0x1062   :  { %v16890_v58 = vadd.f32 %v5320_v56, %v4918_v52  ;;  %v16892_v62 = vadd.f32 %v5361_v57, %v4959_v4  ;;  %v5322_v2 = vpop.f32.mrb[41].mxu0  ;;  %v5363_v3 = vpop.f32.mrb[65].mxu1  ;;  %v14554_v52 = vld [vmem:[#allocation30 + $0x6e0] ss:$16 sps:$4 sm:$0xff]   ;;  %v14562_v4 = vld [vmem:[#allocation30 + $0x704] ss:$16 sps:$4 sm:$0xff]  }
0x1063   :  { %v16894_v10 = vadd.f32 %v5322_v2, %v4920_v6  ;;  %v16896_v12 = vadd.f32 %v5363_v3, %v4961_v42  ;;  %v5324_v13 = vpop.f32.mrb[42].mxu0  ;;  %v5365_v14 = vpop.f32.mrb[66].mxu1  ;;  %v14569_v6 = vld [vmem:[#allocation30 + $0x728] ss:$16 sps:$4 sm:$0xff]   ;;  %v14577_v42 = vld [vmem:[#allocation30 + $0x74c] ss:$16 sps:$4 sm:$0xff]  }
0x1064   :  { %v5325_v15 = vpop.f32.mrb[43].mxu0  ;;  %v5366_v16 = vpop.f32.mrb[67].mxu1  ;;  %v14566_v56 = vld [vmem:[#allocation30 + $0x720] ss:$16 sps:$4 sm:$0xff]   ;;  %v14574_v57 = vld [vmem:[#allocation30 + $0x744] ss:$16 sps:$4 sm:$0xff]  }
0x1065   :  { %v14581_v2 = vld [vmem:[#allocation30 + $0x768] ss:$16 sps:$4 sm:$0xff]   ;;  %v14589_v3 = vld [vmem:[#allocation30 + $0x78c] ss:$16 sps:$4 sm:$0xff]   ;;  %v14572_v13 = vld [vmem:[#allocation30 + $0x740] ss:$16 sps:$4 sm:$0xff]  }
0x1066   :  { %v14580_v14 = vld [vmem:[#allocation30 + $0x764] ss:$16 sps:$4 sm:$0xff]   ;;  %v14587_v15 = vld [vmem:[#allocation30 + $0x788] ss:$16 sps:$4 sm:$0xff]   ;;  %v14578_v16 = vld [vmem:[#allocation30 + $0x760] ss:$16 sps:$4 sm:$0xff]  }
0x1069   :  { %v5407_v17 = vpop.f32.mrb[44].mxu0 }
0x106a   :  { %v5409_v18 = vpop.f32.mrb[45].mxu0  ;;  %v5414_v21 = vpack.c.bf16 %v5407_v17, %v5407_v17  ;;  %v14586_v17 = vld [vmem:[#allocation30 + $0x784] ss:$16 sps:$4 sm:$0xff]  }
0x106b   :  { %v5415_v19 = vpack.c.bf16 %v5409_v18, %v5409_v18  ;;  %v5411_v20 = vpop.f32.mrb[46].mxu0  ;;  %v14584_v18 = vld [vmem:[#allocation30 + $0x780] ss:$16 sps:$4 sm:$0xff]  }
0x106c   :  { %v5412_v22 = vpop.f32.mrb[47].mxu0  ;;  %v14595_v20 = vld [vmem:[#allocation30 + $0x7ac] ss:$16 sps:$4 sm:$0xff]  }
0x106d   :  { %5833 = vmatprep.mubr.bf16.mxu0 %v5415_v19  ;;  %5874 = vmatprep.mubr.bf16.mxu1 %v5415_v19  ;;  %v14592_v19 = vld [vmem:[#allocation30 + $0x7a4] ss:$16 sps:$4 sm:$0xff]   ;;  %v14593_v22 = vld [vmem:[#allocation30 + $0x7a8] ss:$16 sps:$4 sm:$0xff]  }
0x106e   :  { %5834 = vmatmul.mubr.bf16.vlgmr.msra.gmra.mrb[48].mxu0 %v5414_v21  ;;  %5875 = vmatmul.mubr.bf16.vlgmr.msra.gmra.mrb[68].mxu1 %v5414_v21  ;;  %v14590_v21 = vld [vmem:[#allocation30 + $0x7a0] ss:$16 sps:$4 sm:$0xff]  }
0x106f   :  { %5893 = vmatpush1.bf16.msra.mxu0 %v16868_v43  ;;  %5924 = vmatprep.mubr.bf16.mxu0 %v16306_v9  ;;  %v14526_v43 = vld [vmem:[#allocation30 + $0x644] ss:$16 sps:$4 sm:$0xff]  }
0x1070   :  { %6320 = vmatprep.subr.bf16.mxu0 %v14514_v24  ;;  %6362 = vmatpush1.bf16.msra.mxu1 %v14515_v26  ;;  %v14596_v24 = vld [vmem:[#allocation30 + $0x7c0] ss:$16 sps:$4 sm:$0xff]   ;;  %v14598_v26 = vld [vmem:[#allocation30 + $0x7c4] ss:$16 sps:$4 sm:$0xff]  }
0x1071   :  { %6363 = vmatprep.subr.bf16.mxu1 %v14523_v59  ;;  %v14599_v59 = vld [vmem:[#allocation30 + $0x7c8] ss:$16 sps:$4 sm:$0xff]  }
0x1074   :  { %6364 = vmatpush1.bf16.msra.mxu1 %v14521_v23  ;;  %v14601_v23 = vld [vmem:[#allocation30 + $0x7cc] ss:$16 sps:$4 sm:$0xff]  }
0x1075   :  { %6365 = vmatprep.subr.bf16.mxu1 %v14529_v0  ;;  %v14604_v0 = vld [vmem:[#allocation30 + $0x7e4] ss:$16 sps:$4 sm:$0xff]  }
0x1076   :  { %12576 = vmatmul.mubr.msk.bf16.vlgmr.msra.gmra.mrb[52].mxu0 %vm4333_vm4, %v5888_v25  ;;  %v14607_v25 = vld [vmem:[#allocation30 + $0x7ec] ss:$16 sps:$4 sm:$0xff]  }
0x1077   :  { %6321 = vmatpush1.bf16.msra.mxu0 %v14512_v1  ;;  %v14602_v1 = vld [vmem:[#allocation30 + $0x7e0] ss:$16 sps:$4 sm:$0xff]  }
0x1078   :  { %6322 = vmatprep.subr.bf16.mxu0 %v14520_v8  ;;  %6366 = vmatpush1.bf16.msra.mxu1 %v14527_v11  ;;  %v14605_v8 = vld [vmem:[#allocation30 + $0x7e8] ss:$16 sps:$4 sm:$0xff]  }
0x1079   :  { %6367 = vmatprep.subr.bf16.mxu1 %v14535_v28  ;;  %v14610_v11 = vld [vmem:[%s17393_s17 + $0x4] ss:$16 sps:$4 sm:$0xff]   ;;  %v14613_v28 = vld [vmem:[%s17393_s17 + $0xc] ss:$16 sps:$4 sm:$0xff]  }
0x107b   :  { %6323 = vmatpush1.bf16.msra.mxu0 %v14518_v5 }
0x107c   :  { %6324 = vmatprep.subr.bf16.mxu0 %v14526_v43  ;;  %6368 = vmatpush1.bf16.msra.mxu1 %v14533_v29 }
0x107d   :  { %6369 = vmatprep.subr.bf16.mxu1 %v14541_v30 }
0x107f   :  { %6325 = vmatpush1.bf16.msra.mxu0 %v14524_v31 }
0x1080   :  { %6326 = vmatprep.subr.bf16.mxu0 %v14532_v32  ;;  %6370 = vmatpush1.bf16.msra.mxu1 %v14539_v33 }
0x1081   :  { %6371 = vmatprep.subr.bf16.mxu1 %v14547_v34 }
0x1083   :  { %6327 = vmatpush1.bf16.msra.mxu0 %v14530_v35 }
0x1084   :  { %6328 = vmatprep.subr.bf16.mxu0 %v14538_v36  ;;  %6372 = vmatpush1.bf16.msra.mxu1 %v14545_v37 }
0x1085   :  { %6373 = vmatprep.subr.bf16.mxu1 %v14553_v38 }
0x1087   :  { %6329 = vmatpush1.bf16.msra.mxu0 %v14536_v39 }
0x1088   :  { %6330 = vmatprep.subr.bf16.mxu0 %v14544_v40  ;;  %6374 = vmatpush1.bf16.msra.mxu1 %v14551_v41  ;;  %v14608_v41 = vld [vmem:[%s17393_s17] ss:$16 sps:$4 sm:$0xff]  }
0x1089   :  { %6375 = vmatprep.subr.bf16.mxu1 %v14559_v44  ;;  %v14611_v44 = vld [vmem:[%s17393_s17 + $0x8] ss:$16 sps:$4 sm:$0xff]  }
0x108b   :  { %6331 = vmatpush1.bf16.msra.mxu0 %v14542_v45 }
0x108c   :  { %6332 = vmatprep.subr.bf16.mxu0 %v14550_v46  ;;  %6376 = vmatpush1.bf16.msra.mxu1 %v14557_v47  ;;  %v14616_v46 = vld [vmem:[%s17393_s17 + $0x24] ss:$16 sps:$4 sm:$0xff]   ;;  %v14614_v47 = vld [vmem:[%s17393_s17 + $0x20] ss:$16 sps:$4 sm:$0xff]  }
0x108d   :  { %6377 = vmatprep.subr.bf16.mxu1 %v14565_v48  ;;  %v14617_v48 = vld [vmem:[%s17393_s17 + $0x28] ss:$16 sps:$4 sm:$0xff]  }
0x108f   :  { %6333 = vmatpush1.bf16.msra.mxu0 %v14548_v49  ;;  %v14622_v49 = vld [vmem:[%s17393_s17 + $0x44] ss:$16 sps:$4 sm:$0xff]  }
0x1090   :  { %6334 = vmatprep.subr.bf16.mxu0 %v14556_v27  ;;  %6378 = vmatpush1.bf16.msra.mxu1 %v14563_v50  ;;  %v14625_v27 = vld [vmem:[%s17393_s17 + $0x4c] ss:$16 sps:$4 sm:$0xff]   ;;  %v14620_v50 = vld [vmem:[%s17393_s17 + $0x40] ss:$16 sps:$4 sm:$0xff]  }
0x1091   :  { %6379 = vmatprep.subr.bf16.mxu1 %v14571_v51  ;;  %v14623_v51 = vld [vmem:[%s17393_s17 + $0x48] ss:$16 sps:$4 sm:$0xff]  }
0x1093   :  { %6335 = vmatpush1.bf16.msra.mxu0 %v14554_v52  ;;  %v14628_v52 = vld [vmem:[%s17393_s17 + $0x64] ss:$16 sps:$4 sm:$0xff]  }
0x1094   :  { %6336 = vmatprep.subr.bf16.mxu0 %v14562_v4  ;;  %6380 = vmatpush1.bf16.msra.mxu1 %v14569_v6  ;;  %v14631_v4 = vld [vmem:[%s17393_s17 + $0x6c] ss:$16 sps:$4 sm:$0xff]   ;;  %v14626_v6 = vld [vmem:[%s17393_s17 + $0x60] ss:$16 sps:$4 sm:$0xff]  }
0x1095   :  { %6381 = vmatprep.subr.bf16.mxu1 %v14577_v42  ;;  %v14629_v42 = vld [vmem:[%s17393_s17 + $0x68] ss:$16 sps:$4 sm:$0xff]  }
0x1097   :  { %6337 = vmatpush1.bf16.msra.mxu0 %v14560_v7  ;;  %v14634_v7 = vld [vmem:[%s17393_s17 + $0x84] ss:$16 sps:$4 sm:$0xff]  }
0x1098   :  { %6338 = vmatprep.subr.bf16.mxu0 %v14568_v53  ;;  %6382 = vmatpush1.bf16.msra.mxu1 %v14575_v54  ;;  %v14637_v53 = vld [vmem:[%s17393_s17 + $0x8c] ss:$16 sps:$4 sm:$0xff]   ;;  %v14632_v54 = vld [vmem:[%s17393_s17 + $0x80] ss:$16 sps:$4 sm:$0xff]  }
0x1099   :  { %6383 = vmatprep.subr.bf16.mxu1 %v14583_v55  ;;  %v14635_v55 = vld [vmem:[%s17393_s17 + $0x88] ss:$16 sps:$4 sm:$0xff]  }
0x109b   :  { %6339 = vmatpush1.bf16.msra.mxu0 %v14566_v56  ;;  %v14640_v56 = vld [vmem:[%s17393_s17 + $0xa4] ss:$16 sps:$4 sm:$0xff]  }
0x109c   :  { %6340 = vmatprep.subr.bf16.mxu0 %v14574_v57  ;;  %6384 = vmatpush1.bf16.msra.mxu1 %v14581_v2  ;;  %v14643_v57 = vld [vmem:[%s17393_s17 + $0xac] ss:$16 sps:$4 sm:$0xff]   ;;  %v14638_v2 = vld [vmem:[%s17393_s17 + $0xa0] ss:$16 sps:$4 sm:$0xff]  }
0x109d   :  { %6385 = vmatprep.subr.bf16.mxu1 %v14589_v3  ;;  %v14641_v3 = vld [vmem:[%s17393_s17 + $0xa8] ss:$16 sps:$4 sm:$0xff]  }
0x109f   :  { %6341 = vmatpush1.bf16.msra.mxu0 %v14572_v13  ;;  %v14646_v13 = vld [vmem:[%s17393_s17 + $0xc4] ss:$16 sps:$4 sm:$0xff]  }
0x10a0   :  { %6342 = vmatprep.subr.bf16.mxu0 %v14580_v14  ;;  %6386 = vmatpush1.bf16.msra.mxu1 %v14587_v15  ;;  %v14649_v14 = vld [vmem:[%s17393_s17 + $0xcc] ss:$16 sps:$4 sm:$0xff]   ;;  %v14644_v15 = vld [vmem:[%s17393_s17 + $0xc0] ss:$16 sps:$4 sm:$0xff]  }
0x10a1   :  { %6387 = vmatprep.subr.bf16.mxu1 %v14595_v20  ;;  %v14653_v20 = vld [vmem:[%s17393_s17 + $0xe8] ss:$16 sps:$4 sm:$0xff]  }
0x10a3   :  { %6343 = vmatpush1.bf16.msra.mxu0 %v14578_v16  ;;  %v14647_v16 = vld [vmem:[%s17393_s17 + $0xc8] ss:$16 sps:$4 sm:$0xff]  }
0x10a4   :  { %6344 = vmatprep.subr.bf16.mxu0 %v14586_v17  ;;  %6388 = vmatpush1.bf16.msra.mxu1 %v14593_v22  ;;  %v14652_v17 = vld [vmem:[%s17393_s17 + $0xe4] ss:$16 sps:$4 sm:$0xff]   ;;  %v14661_v22 = vld [vmem:[%s17393_s17 + $0x10c] ss:$16 sps:$4 sm:$0xff]  }
0x10a5   :  { %6389 = vmatprep.subr.bf16.mxu1 %v14601_v23  ;;  %v14667_v23 = vld [vmem:[%s17393_s17 + $0x12c] ss:$16 sps:$4 sm:$0xff]  }
0x10a7   :  { %6345 = vmatpush1.bf16.msra.mxu0 %v14584_v18  ;;  %v14655_v18 = vld [vmem:[%s17393_s17 + $0xec] ss:$16 sps:$4 sm:$0xff]  }
0x10a8   :  { %6346 = vmatprep.subr.bf16.mxu0 %v14592_v19  ;;  %6390 = vmatpush1.bf16.msra.mxu1 %v14599_v59  ;;  %v14650_v19 = vld [vmem:[%s17393_s17 + $0xe0] ss:$16 sps:$4 sm:$0xff]   ;;  %v14664_v59 = vld [vmem:[%s17393_s17 + $0x124] ss:$16 sps:$4 sm:$0xff]  }
0x10a9   :  { %6391 = vmatprep.subr.bf16.mxu1 %v14607_v25  ;;  %v14665_v25 = vld [vmem:[%s17393_s17 + $0x128] ss:$16 sps:$4 sm:$0xff]  }
0x10ab   :  { %6347 = vmatpush1.bf16.msra.mxu0 %v14590_v21  ;;  %v14658_v21 = vld [vmem:[%s17393_s17 + $0x104] ss:$16 sps:$4 sm:$0xff]  }
0x10ac   :  { %6348 = vmatprep.subr.bf16.mxu0 %v14598_v26  ;;  %6392 = vmatpush1.bf16.msra.mxu1 %v14605_v8  ;;  %v14659_v26 = vld [vmem:[%s17393_s17 + $0x108] ss:$16 sps:$4 sm:$0xff]   ;;  %v14673_v8 = vld [vmem:[%s17393_s17 + $0x14c] ss:$16 sps:$4 sm:$0xff]  }
0x10ad   :  { %7332 = vmatprep.subr.bf16.mxu1 %v14613_v28  ;;  %v14671_v28 = vld [vmem:[%s17393_s17 + $0x148] ss:$16 sps:$4 sm:$0xff]  }
0x10af   :  { %6349 = vmatpush1.bf16.msra.mxu0 %v14596_v24  ;;  %v14656_v24 = vld [vmem:[%s17393_s17 + $0x100] ss:$16 sps:$4 sm:$0xff]  }
0x10b0   :  { %6350 = vmatprep.subr.bf16.mxu0 %v14604_v0  ;;  %v14662_v0 = vld [vmem:[%s17393_s17 + $0x120] ss:$16 sps:$4 sm:$0xff]  }
0x10b3   :  { %6351 = vmatpush1.bf16.msra.mxu0 %v14602_v1  ;;  %v14670_v1 = vld [vmem:[%s17393_s17 + $0x144] ss:$16 sps:$4 sm:$0xff]  }
0x10b4   :  { %7250 = vmatprep.subr.bf16.mxu0 %v14610_v11  ;;  %v14668_v11 = vld [vmem:[%s17393_s17 + $0x140] ss:$16 sps:$4 sm:$0xff]  }
0x1141   :  { %v5835_v5 = vpop.f32.mrb[48].mxu0  ;;  %v5876_v43 = vpop.f32.mrb[68].mxu1 }
0x1142   :  { %v16904_v29 = vadd.f32 %v5835_v5, %v16890_v58  ;;  %v16907_v30 = vadd.f32 %v5876_v43, %v16892_v62  ;;  %v5837_v31 = vpop.f32.mrb[49].mxu0  ;;  %v5878_v32 = vpop.f32.mrb[69].mxu1  ;;  %v14676_v5 = vld [vmem:[%s17393_s17 + $0x164] ss:$16 sps:$4 sm:$0xff]   ;;  %v14679_v43 = vld [vmem:[%s17393_s17 + $0x16c] ss:$16 sps:$4 sm:$0xff]  }
0x1143   :  { %v16910_v33 = vadd.f32 %v5837_v31, %v16894_v10  ;;  %v16913_v34 = vadd.f32 %v5878_v32, %v16896_v12  ;;  %v5839_v35 = vpop.f32.mrb[50].mxu0  ;;  %v5880_v36 = vpop.f32.mrb[70].mxu1  ;;  %v14619_v12 = vld [vmem:[%s17393_s17 + $0x2c] ss:$16 sps:$4 sm:$0xff]   ;;  %v14674_v31 = vld [vmem:[%s17393_s17 + $0x160] ss:$16 sps:$4 sm:$0xff]  }
0x1144   :  { %v5840_v37 = vpop.f32.mrb[51].mxu0  ;;  %v5881_v38 = vpop.f32.mrb[71].mxu1  ;;  %v14677_v32 = vld [vmem:[%s17393_s17 + $0x168] ss:$16 sps:$4 sm:$0xff]   ;;  %v14682_v35 = vld [vmem:[%s17393_s17 + $0x184] ss:$16 sps:$4 sm:$0xff]  }
0x1145   :  { %v14685_v36 = vld [vmem:[%s17393_s17 + $0x18c] ss:$16 sps:$4 sm:$0xff]   ;;  %v14680_v37 = vld [vmem:[%s17393_s17 + $0x180] ss:$16 sps:$4 sm:$0xff]   ;;  %v14683_v38 = vld [vmem:[%s17393_s17 + $0x188] ss:$16 sps:$4 sm:$0xff]  }
0x1149   :  { %v5926_v39 = vpop.f32.mrb[52].mxu0 }
0x114a   :  { %v5928_v58 = vpop.f32.mrb[53].mxu0  ;;  %v5933_v45 = vpack.c.bf16 %v5926_v39, %v5926_v39  ;;  %v14688_v39 = vld [vmem:[%s17393_s17 + $0x1a4] ss:$16 sps:$4 sm:$0xff]  }
0x114b   :  { %v5934_v62 = vpack.c.bf16 %v5928_v58, %v5928_v58  ;;  %v5930_v40 = vpop.f32.mrb[54].mxu0  ;;  %v14691_v58 = vld [vmem:[%s17393_s17 + $0x1ac] ss:$16 sps:$4 sm:$0xff]  }
0x114c   :  { %v5931_v10 = vpop.f32.mrb[55].mxu0  ;;  %v14689_v40 = vld [vmem:[%s17393_s17 + $0x1a8] ss:$16 sps:$4 sm:$0xff]  }
0x114d   :  { %6352 = vmatprep.mubr.bf16.mxu0 %v5934_v62  ;;  %6393 = vmatprep.mubr.bf16.mxu1 %v5934_v62  ;;  %v14686_v62 = vld [vmem:[%s17393_s17 + $0x1a0] ss:$16 sps:$4 sm:$0xff]   ;;  %v14695_v10 = vld [vmem:[%s17393_s17 + $0x1c8] ss:$16 sps:$4 sm:$0xff]  }
0x114e   :  { %6353 = vmatmul.mubr.bf16.vlgmr.msra.gmra.mrb[56].mxu0 %v5933_v45  ;;  %6394 = vmatmul.mubr.bf16.vlgmr.msra.gmra.mrb[72].mxu1 %v5933_v45  ;;  %v14692_v45 = vld [vmem:[%s17393_s17 + $0x1c0] ss:$16 sps:$4 sm:$0xff]  }
0x114f   :  { %7251 = vmatpush1.bf16.msra.mxu0 %v14608_v41  ;;  %7333 = vmatpush1.bf16.msra.mxu1 %v14611_v44  ;;  %v14694_v41 = vld [vmem:[%s17393_s17 + $0x1c4] ss:$16 sps:$4 sm:$0xff]   ;;  %v14697_v44 = vld [vmem:[%s17393_s17 + $0x1cc] ss:$16 sps:$4 sm:$0xff]  }
0x1150   :  { %7252 = vmatprep.subr.bf16.mxu0 %v14616_v46  ;;  %7334 = vmatprep.subr.bf16.mxu1 %v14619_v12  ;;  %v14700_v46 = vld [vmem:[%s17393_s17 + $0x1e4] ss:$16 sps:$4 sm:$0xff]   ;;  %v14703_v12 = vld [vmem:[%s17393_s17 + $0x1ec] ss:$16 sps:$4 sm:$0xff]  }
0x1153   :  { %7253 = vmatpush1.bf16.msra.mxu0 %v14614_v47  ;;  %7335 = vmatpush1.bf16.msra.mxu1 %v14617_v48  ;;  %v14698_v47 = vld [vmem:[%s17393_s17 + $0x1e0] ss:$16 sps:$4 sm:$0xff]   ;;  %v14701_v48 = vld [vmem:[%s17393_s17 + $0x1e8] ss:$16 sps:$4 sm:$0xff]  }
0x1154   :  { %7254 = vmatprep.subr.bf16.mxu0 %v14622_v49  ;;  %7336 = vmatprep.subr.bf16.mxu1 %v14625_v27  ;;  %v14706_v49 = vld [vmem:[%s17393_s17 + $0x204] ss:$16 sps:$4 sm:$0xff]   ;;  %v14709_v27 = vld [vmem:[%s17393_s17 + $0x20c] ss:$16 sps:$4 sm:$0xff]  }
0x1157   :  { %7255 = vmatpush1.bf16.msra.mxu0 %v14620_v50  ;;  %7337 = vmatpush1.bf16.msra.mxu1 %v14623_v51  ;;  %v6418_v50 = vsub.s32 2, %v16791_v60  ;;  %v6406_v51 = vld [vmem:[#allocation31] sm:$0xf] }
0x1158   :  { %7256 = vmatprep.subr.bf16.mxu0 %v14628_v52  ;;  %7338 = vmatprep.subr.bf16.mxu1 %v14631_v4  ;;  %v6422_v52 = vsub.s32 3, %v16791_v60  ;;  %v6411_v4 = vrot.slane %v6406_v51, %v16794_v61 }
0x115b   :  { %7257 = vmatpush1.bf16.msra.mxu0 %v14626_v6  ;;  %7339 = vmatpush1.bf16.msra.mxu1 %v14629_v42  ;;  %v6419_v6 = vrot.slane %v6406_v51, %v6418_v50 }
0x115c   :  { %7258 = vmatprep.subr.bf16.mxu0 %v14634_v7  ;;  %7340 = vmatprep.subr.bf16.mxu1 %v14637_v53  ;;  %v6415_v53 = vrot.slane %v6406_v51, %v16797_v63 }
0x115f   :  { %7259 = vmatpush1.bf16.msra.mxu0 %v14632_v54  ;;  %7341 = vmatpush1.bf16.msra.mxu1 %v14635_v55  ;;  %v6423_v54 = vrot.slane %v6406_v51, %v6422_v52  ;;  %v14739_v51 = vld [vmem:[%s17393_s17 + $0x2ac] ss:$16 sps:$4 sm:$0xff]  }
0x1160   :  { %7260 = vmatprep.subr.bf16.mxu0 %v14640_v56  ;;  %7342 = vmatprep.subr.bf16.mxu1 %v14643_v57 }
0x1163   :  { %7261 = vmatpush1.bf16.msra.mxu0 %v14638_v2  ;;  %7343 = vmatpush1.bf16.msra.mxu1 %v14641_v3 }
0x1164   :  { %7262 = vmatprep.subr.bf16.mxu0 %v14646_v13  ;;  %7344 = vmatprep.subr.bf16.mxu1 %v14649_v14 }
0x1167   :  { %7263 = vmatpush1.bf16.msra.mxu0 %v14644_v15  ;;  %7345 = vmatpush1.bf16.msra.mxu1 %v14647_v16 }
0x1168   :  { %7264 = vmatprep.subr.bf16.mxu0 %v14652_v17  ;;  %7346 = vmatprep.subr.bf16.mxu1 %v14655_v18 }
0x116b   :  { %7265 = vmatpush1.bf16.msra.mxu0 %v14650_v19  ;;  %7347 = vmatpush1.bf16.msra.mxu1 %v14653_v20 }
0x116c   :  { %7266 = vmatprep.subr.bf16.mxu0 %v14658_v21  ;;  %7348 = vmatprep.subr.bf16.mxu1 %v14661_v22 }
0x116f   :  { %7267 = vmatpush1.bf16.msra.mxu0 %v14656_v24  ;;  %7349 = vmatpush1.bf16.msra.mxu1 %v14659_v26 }
0x1170   :  { %7268 = vmatprep.subr.bf16.mxu0 %v14664_v59  ;;  %7350 = vmatprep.subr.bf16.mxu1 %v14667_v23 }
0x1173   :  { %7269 = vmatpush1.bf16.msra.mxu0 %v14662_v0  ;;  %7351 = vmatpush1.bf16.msra.mxu1 %v14665_v25 }
0x1174   :  { %7270 = vmatprep.subr.bf16.mxu0 %v14670_v1  ;;  %7352 = vmatprep.subr.bf16.mxu1 %v14673_v8 }
0x1177   :  { %7271 = vmatpush1.bf16.msra.mxu0 %v14668_v11  ;;  %7353 = vmatpush1.bf16.msra.mxu1 %v14671_v28 }
0x1178   :  { %7272 = vmatprep.subr.bf16.mxu0 %v14676_v5  ;;  %7354 = vmatprep.subr.bf16.mxu1 %v14679_v43  ;;  %v14704_v5 = vld [vmem:[%s17393_s17 + $0x200] ss:$16 sps:$4 sm:$0xff]   ;;  %v14707_v43 = vld [vmem:[%s17393_s17 + $0x208] ss:$16 sps:$4 sm:$0xff]  }
0x117b   :  { %7273 = vmatpush1.bf16.msra.mxu0 %v14674_v31  ;;  %7355 = vmatpush1.bf16.msra.mxu1 %v14677_v32 }
0x117c   :  { %7274 = vmatprep.subr.bf16.mxu0 %v14682_v35  ;;  %7356 = vmatprep.subr.bf16.mxu1 %v14685_v36  ;;  %v14712_v35 = vld [vmem:[%s17393_s17 + $0x224] ss:$16 sps:$4 sm:$0xff]   ;;  %v14715_v36 = vld [vmem:[%s17393_s17 + $0x22c] ss:$16 sps:$4 sm:$0xff]  }
0x117f   :  { %7275 = vmatpush1.bf16.msra.mxu0 %v14680_v37  ;;  %7357 = vmatpush1.bf16.msra.mxu1 %v14683_v38  ;;  %v14710_v38 = vld [vmem:[%s17393_s17 + $0x220] ss:$16 sps:$4 sm:$0xff]  }
0x1180   :  { %7276 = vmatprep.subr.bf16.mxu0 %v14688_v39  ;;  %7358 = vmatprep.subr.bf16.mxu1 %v14691_v58  ;;  %v14713_v39 = vld [vmem:[%s17393_s17 + $0x228] ss:$16 sps:$4 sm:$0xff]   ;;  %v14718_v58 = vld [vmem:[%s17393_s17 + $0x244] ss:$16 sps:$4 sm:$0xff]  }
0x1183   :  { %7277 = vmatpush1.bf16.msra.mxu0 %v14686_v62  ;;  %7359 = vmatpush1.bf16.msra.mxu1 %v14689_v40  ;;  %v14721_v62 = vld [vmem:[%s17393_s17 + $0x24c] ss:$16 sps:$4 sm:$0xff]   ;;  %v14716_v40 = vld [vmem:[%s17393_s17 + $0x240] ss:$16 sps:$4 sm:$0xff]  }
0x1184   :  { %7278 = vmatprep.subr.bf16.mxu0 %v14694_v41  ;;  %7360 = vmatprep.subr.bf16.mxu1 %v14697_v44  ;;  %v14719_v41 = vld [vmem:[%s17393_s17 + $0x248] ss:$16 sps:$4 sm:$0xff]   ;;  %v14724_v44 = vld [vmem:[%s17393_s17 + $0x264] ss:$16 sps:$4 sm:$0xff]  }
0x1187   :  { %7279 = vmatpush1.bf16.msra.mxu0 %v14692_v45  ;;  %7361 = vmatpush1.bf16.msra.mxu1 %v14695_v10  ;;  %v14727_v45 = vld [vmem:[%s17393_s17 + $0x26c] ss:$16 sps:$4 sm:$0xff]   ;;  %v14722_v10 = vld [vmem:[%s17393_s17 + $0x260] ss:$16 sps:$4 sm:$0xff]  }
0x1188   :  { %7280 = vmatprep.subr.bf16.mxu0 %v14700_v46  ;;  %7362 = vmatprep.subr.bf16.mxu1 %v14703_v12  ;;  %v14725_v46 = vld [vmem:[%s17393_s17 + $0x268] ss:$16 sps:$4 sm:$0xff]   ;;  %v14730_v12 = vld [vmem:[%s17393_s17 + $0x284] ss:$16 sps:$4 sm:$0xff]  }
0x118b   :  { %7281 = vmatpush1.bf16.msra.mxu0 %v14698_v47  ;;  %7363 = vmatpush1.bf16.msra.mxu1 %v14701_v48  ;;  %v14733_v47 = vld [vmem:[%s17393_s17 + $0x28c] ss:$16 sps:$4 sm:$0xff]   ;;  %v14728_v48 = vld [vmem:[%s17393_s17 + $0x280] ss:$16 sps:$4 sm:$0xff]  }
0x118c   :  { %7291 = vmatprep.subr.bf16.mxu0 %v14706_v49  ;;  %7373 = vmatprep.subr.bf16.mxu1 %v14709_v27  ;;  %v14731_v49 = vld [vmem:[%s17393_s17 + $0x288] ss:$16 sps:$4 sm:$0xff]   ;;  %v14736_v27 = vld [vmem:[%s17393_s17 + $0x2a4] ss:$16 sps:$4 sm:$0xff]  }
0x1221   :  { %v6354_v42 = vpop.f32.mrb[56].mxu0  ;;  %v6395_v7 = vpop.f32.mrb[72].mxu1 }
0x1222   :  { %v6402_v55 = vadd.f32 %v6354_v42, %v16904_v29  ;;  %v6404_v56 = vadd.f32 %v6395_v7, %v16907_v30  ;;  %v6356_v57 = vpop.f32.mrb[57].mxu0  ;;  %v6397_v2 = vpop.f32.mrb[73].mxu1  ;;  %v14742_v42 = vld [vmem:[%s17393_s17 + $0x2c4] ss:$16 sps:$4 sm:$0xff]   ;;  %v14745_v7 = vld [vmem:[%s17393_s17 + $0x2cc] ss:$16 sps:$4 sm:$0xff]  }
0x1223   :  { %v6403_v3 = vadd.f32 %v6356_v57, %v16910_v33  ;;  %v6405_v13 = vadd.f32 %v6397_v2, %v16913_v34  ;;  %v6358_v14 = vpop.f32.mrb[58].mxu0  ;;  %v6399_v15 = vpop.f32.mrb[74].mxu1  ;;  %v14746_v57 = vld [vmem:[%s17393_s17 + $0x2e0] ss:$16 sps:$4 sm:$0xff]   ;;  %v14749_v2 = vld [vmem:[%s17393_s17 + $0x2e8] ss:$16 sps:$4 sm:$0xff]  }
0x1224   :  { %v6428_v16 = vadd.f32 %v6411_v4, %v6402_v55  ;;  %v16991_v17 = vadd.f32 %v6419_v6, %v6404_v56  ;;  %v6359_v18 = vpop.f32.mrb[59].mxu0  ;;  %v6400_v19 = vpop.f32.mrb[75].mxu1  ;;  %v14734_v4 = vld [vmem:[%s17393_s17 + $0x2a0] ss:$16 sps:$4 sm:$0xff]   ;;  %v14737_v6 = vld [vmem:[%s17393_s17 + $0x2a8] ss:$16 sps:$4 sm:$0xff]  }
0x1225   :  { %v6429_v20 = vadd.f32 %v6415_v53, %v6403_v3  ;;  %v6431_v21 = vadd.f32 %v6423_v54, %v6405_v13  ;;  %v14740_v53 = vld [vmem:[%s17393_s17 + $0x2c0] ss:$16 sps:$4 sm:$0xff]   ;;  %v14743_v54 = vld [vmem:[%s17393_s17 + $0x2c8] ss:$16 sps:$4 sm:$0xff]   ;;  %v14748_v55 = vld [vmem:[%s17393_s17 + $0x2e4] ss:$16 sps:$4 sm:$0xff]  }
0x1226   :  { %v6436_v22 = vmin.f32 %v6428_v16, 0.0  ;;  %vm6432_vm5 = vcmp.gt.f32.partialorder %v6428_v16, 0.0  ;;  %v14751_v56 = vld [vmem:[%s17393_s17 + $0x2ec] ss:$16 sps:$4 sm:$0xff]   ;;  %v14754_v3 = vld [vmem:[%s17393_s17 + $0x304] ss:$16 sps:$4 sm:$0xff]  }
0x1227   :  { %v6437_v24 = vmin.f32 %v6429_v20, 0.0  ;;  %v6439_v29 = vmin.f32 %v6431_v21, 0.0  ;;  %vm6433_vm6 = vcmp.gt.f32.partialorder %v6429_v20, 0.0  ;;  %vm6435_vm7 = vcmp.gt.f32.partialorder %v6431_v21, 0.0  ;;  %v14757_v13 = vld [vmem:[%s17393_s17 + $0x30c] ss:$16 sps:$4 sm:$0xff]  }
0x1228   :  { %v6440_v26 = vmul.f32 1.442695, %v6436_v22  ;;  %v14752_v14 = vld [vmem:[%s17393_s17 + $0x300] ss:$16 sps:$4 sm:$0xff]   ;;  %v14755_v15 = vld [vmem:[%s17393_s17 + $0x308] ss:$16 sps:$4 sm:$0xff]  }
0x1229   :  { %v6442_v30 = vmul.f32 1.442695, %v6437_v24  ;;  %v6446_v59 = vmul.f32 1.442695, %v6439_v29  ;;  %v14763_v18 = vld [vmem:[%s17393_s17 + $0x32c] ss:$16 sps:$4 sm:$0xff]  }
0x122a   :  { %15467 = vpow2.f32 %v6440_v26  ;;  %v14758_v19 = vld [vmem:[%s17393_s17 + $0x320] ss:$16 sps:$4 sm:$0xff]   ;;  %v14766_v22 = vld [vmem:[%s17393_s17 + $0x344] ss:$16 sps:$4 sm:$0xff]   ;;  %v14769_v24 = vld [vmem:[%s17393_s17 + $0x34c] ss:$16 sps:$4 sm:$0xff]  }
0x122b   :  { %15469 = vpow2.f32 %v6442_v30  ;;  %v14764_v29 = vld [vmem:[%s17393_s17 + $0x340] ss:$16 sps:$4 sm:$0xff]   ;;  %v14767_v26 = vld [vmem:[%s17393_s17 + $0x348] ss:$16 sps:$4 sm:$0xff]   ;;  %vm6434_vm8 = vcmp.gt.f32.partialorder %v16991_v17, 0.0 }
0x122c   :  { %15471 = vpow2.f32 %v6446_v59  ;;  %v14772_v59 = vld [vmem:[%s17393_s17 + $0x364] ss:$16 sps:$4 sm:$0xff]  }
0x1234   :  { %v15468_v33 = vpop.eup %15467 }
0x1235   :  { %v12641_v34 = vadd.f32 -1.0, %v15468_v33  ;;  %v15470_v23 = vpop.eup %15469  ;;  %v14775_v33 = vld [vmem:[%s17393_s17 + $0x36c] ss:$16 sps:$4 sm:$0xff]  }
0x1236   :  { %v15472_v0 = vpop.eup %15471  ;;  %v12642_v25 = vadd.f32 -1.0, %v15470_v23  ;;  %v14773_v23 = vld [vmem:[%s17393_s17 + $0x368] ss:$16 sps:$4 sm:$0xff]  }
0x1237   :  { %v6452_v1 = vsel %vm6432_vm5, %v6428_v16, %v12641_v34  ;;  %v12644_v8 = vadd.f32 -1.0, %v15472_v0  ;;  %v14760_v16 = vld [vmem:[%s17393_s17 + $0x324] ss:$16 sps:$4 sm:$0xff]   ;;  %v14770_v34 = vld [vmem:[%s17393_s17 + $0x360] ss:$16 sps:$4 sm:$0xff]  }
0x1238   :  { %v6453_v11 = vsel %vm6433_vm6, %v6429_v20, %v12642_v25  ;;  %v6456_v32 = vpack.c.bf16 %v6452_v1, %v6452_v1  ;;  %v14761_v20 = vld [vmem:[%s17393_s17 + $0x328] ss:$16 sps:$4 sm:$0xff]   ;;  %v14778_v0 = vld [vmem:[%s17393_s17 + $0x384] ss:$16 sps:$4 sm:$0xff]   ;;  %v14781_v25 = vld [vmem:[%s17393_s17 + $0x38c] ss:$16 sps:$4 sm:$0xff]  }
0x1239   :  { %v6457_v28 = vpack.c.bf16 %v6453_v11, %v6453_v11  ;;  %v6455_v31 = vsel %vm6435_vm7, %v6431_v21, %v12644_v8  ;;  %v6438_v21 = vmin.f32 %v16991_v17, 0.0  ;;  %v14776_v1 = vld [vmem:[%s17393_s17 + $0x380] ss:$16 sps:$4 sm:$0xff]   ;;  %v14779_v8 = vld [vmem:[%s17393_s17 + $0x388] ss:$16 sps:$4 sm:$0xff]  }
0x123a   :  { %v6459_v37 = vpack.c.bf16 %v6455_v31, %v6455_v31  ;;  %v14784_v11 = vld [vmem:[%s17393_s17 + $0x3a4] ss:$16 sps:$4 sm:$0xff]  }
0x123b   :  { %7282 = vmatprep.mubr.bf16.mxu0 %v6457_v28  ;;  %7364 = vmatprep.mubr.bf16.mxu1 %v6457_v28  ;;  %v6444_v30 = vmul.f32 1.442695, %v6438_v21  ;;  %v14787_v28 = vld [vmem:[%s17393_s17 + $0x3ac] ss:$16 sps:$4 sm:$0xff]   ;;  %v14790_v31 = vld [vmem:[%s17393_s17 + $0x3c4] ss:$16 sps:$4 sm:$0xff]  }
0x123c   :  { %7283 = vmatmul.mubr.bf16.vlgmr.msra.gmra.mrb[60].mxu0 %v6456_v32  ;;  %7365 = vmatmul.mubr.bf16.vlgmr.msra.gmra.mrb[76].mxu1 %v6456_v32  ;;  %v14793_v32 = vld [vmem:[%s17393_s17 + $0x3cc] ss:$16 sps:$4 sm:$0xff]  }
0x123d   :  { %7292 = vmatpush1.bf16.msra.mxu0 %v14704_v5  ;;  %7374 = vmatpush1.bf16.msra.mxu1 %v14707_v43  ;;  %15473 = vpow2.f32 %v6444_v30  ;;  %v14782_v5 = vld [vmem:[%s17393_s17 + $0x3a0] ss:$16 sps:$4 sm:$0xff]   ;;  %v14785_v43 = vld [vmem:[%s17393_s17 + $0x3a8] ss:$16 sps:$4 sm:$0xff]  }
0x123e   :  { %7323 = vmatprep.mubr.bf16.mxu0 %v6459_v37  ;;  %7405 = vmatprep.mubr.bf16.mxu1 %v6459_v37  ;;  %v14791_v37 = vld [vmem:[%s17393_s17 + $0x3c8] ss:$16 sps:$4 sm:$0xff]  }
0x123f   :  { %7293 = vmatprep.subr.bf16.mxu0 %v14712_v35  ;;  %7375 = vmatprep.subr.bf16.mxu1 %v14715_v36  ;;  %v14788_v36 = vld [vmem:[%s17393_s17 + $0x3c0] ss:$16 sps:$4 sm:$0xff]  }
0x1241   :  { %7294 = vmatpush1.bf16.msra.mxu0 %v14710_v38  ;;  %7376 = vmatpush1.bf16.msra.mxu1 %v14713_v39  ;;  %v14796_v38 = vld [vmem:[%s17393_s17 + $0x3e4] ss:$16 sps:$4 sm:$0xff]   ;;  %v14799_v39 = vld [vmem:[%s17393_s17 + $0x3ec] ss:$16 sps:$4 sm:$0xff]  }
0x1242   :  { %7295 = vmatprep.subr.bf16.mxu0 %v14718_v58  ;;  %7377 = vmatprep.subr.bf16.mxu1 %v14721_v62  ;;  %v14794_v62 = vld [vmem:[%s17393_s17 + $0x3e0] ss:$16 sps:$4 sm:$0xff]  }
0x1245   :  { %7296 = vmatpush1.bf16.msra.mxu0 %v14716_v40  ;;  %7378 = vmatpush1.bf16.msra.mxu1 %v14719_v41  ;;  %v14797_v40 = vld [vmem:[%s17393_s17 + $0x3e8] ss:$16 sps:$4 sm:$0xff]  }
0x1246   :  { %7297 = vmatprep.subr.bf16.mxu0 %v14724_v44  ;;  %7379 = vmatprep.subr.bf16.mxu1 %v14727_v45  ;;  %v6588_v45 = vld [vmem:[#allocation33] sm:$0xf] }
0x1247   :  { %v15474_v35 = vpop.eup %15473 }
0x1248   :  { %v12643_v58 = vadd.f32 -1.0, %v15474_v35  ;;  %v7438_v35 = vld [vmem:[%s17394_s1] sm:$0xf] }
0x1249   :  { %7298 = vmatpush1.bf16.msra.mxu0 %v14722_v10  ;;  %7380 = vmatpush1.bf16.msra.mxu1 %v14725_v46  ;;  %v6593_v10 = vrot.slane %v6588_v45, %v16794_v61  ;;  %v6601_v46 = vrot.slane %v6588_v45, %v6418_v50 }
0x124a   :  { %7299 = vmatprep.subr.bf16.mxu0 %v14730_v12  ;;  %7381 = vmatprep.subr.bf16.mxu1 %v14733_v47  ;;  %v6454_v41 = vsel %vm6434_vm8, %v16991_v17, %v12643_v58  ;;  %v6597_v12 = vrot.slane %v6588_v45, %v16797_v63  ;;  %v6605_v17 = vrot.slane %v6588_v45, %v6422_v52  ;;  %v14850_v45 = vld [vmem:[#allocation34 + $0x4] ss:$8 sps:$4 sm:$0xff]  }
0x124b   :  { %v6458_v44 = vpack.c.bf16 %v6454_v41, %v6454_v41 }
0x124d   :  { %7300 = vmatpush1.bf16.msra.mxu0 %v14728_v48  ;;  %7382 = vmatpush1.bf16.msra.mxu1 %v14731_v49 }
0x124e   :  { %7301 = vmatprep.subr.bf16.mxu0 %v14736_v27  ;;  %7383 = vmatprep.subr.bf16.mxu1 %v14739_v51 }
0x1251   :  { %7302 = vmatpush1.bf16.msra.mxu0 %v14734_v4  ;;  %7384 = vmatpush1.bf16.msra.mxu1 %v14737_v6 }
0x1252   :  { %7303 = vmatprep.subr.bf16.mxu0 %v14742_v42  ;;  %7385 = vmatprep.subr.bf16.mxu1 %v14745_v7 }
0x1255   :  { %7304 = vmatpush1.bf16.msra.mxu0 %v14740_v53  ;;  %7386 = vmatpush1.bf16.msra.mxu1 %v14743_v54 }
0x1256   :  { %7305 = vmatprep.subr.bf16.mxu0 %v14748_v55  ;;  %7387 = vmatprep.subr.bf16.mxu1 %v14751_v56 }
0x1259   :  { %7306 = vmatpush1.bf16.msra.mxu0 %v14746_v57  ;;  %7388 = vmatpush1.bf16.msra.mxu1 %v14749_v2 }
0x125a   :  { %7307 = vmatprep.subr.bf16.mxu0 %v14754_v3  ;;  %7389 = vmatprep.subr.bf16.mxu1 %v14757_v13 }
0x125d   :  { %7308 = vmatpush1.bf16.msra.mxu0 %v14752_v14  ;;  %7390 = vmatpush1.bf16.msra.mxu1 %v14755_v15 }
0x125e   :  { %7309 = vmatprep.subr.bf16.mxu0 %v14760_v16  ;;  %7391 = vmatprep.subr.bf16.mxu1 %v14763_v18 }
0x1261   :  { %7310 = vmatpush1.bf16.msra.mxu0 %v14758_v19  ;;  %7392 = vmatpush1.bf16.msra.mxu1 %v14761_v20 }
0x1262   :  { %7311 = vmatprep.subr.bf16.mxu0 %v14766_v22  ;;  %7393 = vmatprep.subr.bf16.mxu1 %v14769_v24 }
0x1265   :  { %7312 = vmatpush1.bf16.msra.mxu0 %v14764_v29  ;;  %7394 = vmatpush1.bf16.msra.mxu1 %v14767_v26 }
0x1266   :  { %7313 = vmatprep.subr.bf16.mxu0 %v14772_v59  ;;  %7395 = vmatprep.subr.bf16.mxu1 %v14775_v33 }
0x1269   :  { %7314 = vmatpush1.bf16.msra.mxu0 %v14770_v34  ;;  %7396 = vmatpush1.bf16.msra.mxu1 %v14773_v23 }
0x126a   :  { %7315 = vmatprep.subr.bf16.mxu0 %v14778_v0  ;;  %7397 = vmatprep.subr.bf16.mxu1 %v14781_v25 }
0x126d   :  { %7316 = vmatpush1.bf16.msra.mxu0 %v14776_v1  ;;  %7398 = vmatpush1.bf16.msra.mxu1 %v14779_v8  ;;  %v16307_v8 = vmov 1983009808  }
0x126e   :  { %7317 = vmatprep.subr.bf16.mxu0 %v14784_v11  ;;  %7399 = vmatprep.subr.bf16.mxu1 %v14787_v28  ;;  %v7449_v11 = vunpack.c.l.s4 %v16307_v8  ;;  %v14830_v8 = vld [vmem:[#allocation34 + $0x1a0] ss:$8 sps:$4 sm:$0xff]  }
0x1270   :  { %v7450_v28 = vunpack.c.0.s8 %v7449_v11  ;;  %v14878_v11 = vld [vmem:[#allocation34 + $0xa0] ss:$8 sps:$4 sm:$0xff]  }
0x1271   :  { %7318 = vmatpush1.bf16.msra.mxu0 %v14782_v5  ;;  %7400 = vmatpush1.bf16.msra.mxu1 %v14785_v43 }
0x1272   :  { %7319 = vmatprep.subr.bf16.mxu0 %v14790_v31  ;;  %7401 = vmatprep.subr.bf16.mxu1 %v14793_v32  ;;  %v7453_v43 = vsub.s32 %v7450_v28, %v16791_v60  ;;  %v14835_v28 = vld [vmem:[#allocation34 + $0x1b4] ss:$8 sps:$4 sm:$0xff]  }
0x1275   :  { %7320 = vmatpush1.bf16.msra.mxu0 %v14788_v36  ;;  %7402 = vmatpush1.bf16.msra.mxu1 %v14791_v37 }
0x1276   :  { %7321 = vmatprep.subr.bf16.mxu0 %v14796_v38  ;;  %7403 = vmatprep.subr.bf16.mxu1 %v14799_v39 }
0x1279   :  { %7322 = vmatpush1.bf16.msra.mxu0 %v14794_v62  ;;  %7404 = vmatpush1.bf16.msra.mxu1 %v14797_v40 }
0x127c   :  { %7324 = vmatmul.mubr.bf16.vlgmr.msra.gmra.mrb[60].mxu0 %v6458_v44  ;;  %7406 = vmatmul.mubr.bf16.vlgmr.msra.gmra.mrb[76].mxu1 %v6458_v44  ;;  %v14802_v44 = vld [vmem:[#allocation34 + $0x104] ss:$8 sps:$4 sm:$0xff]  }
0x127d   :  { %7516 = vmatprep.mubr.bf16.mxu0 %v16306_v9  ;;  %7596 = vmatprep.mubr.bf16.mxu1 %v16306_v9 }
0x134f   :  { %v7325_v47 = vpop.f32.mrb[60].mxu0  ;;  %v7407_v48 = vpop.f32.mrb[76].mxu1 }
0x1350   :  { %v13545_v49 = vadd.f32 %v7325_v47, %v6593_v10  ;;  %v13547_v27 = vadd.f32 %v7407_v48, %v6601_v46  ;;  %v7327_v51 = vpop.f32.mrb[61].mxu0  ;;  %v7409_v4 = vpop.f32.mrb[77].mxu1  ;;  %v7472_v10 = vld [vmem:[%s17395_s16] sm:$0xf]  ;;  %v12779_v46 = vld [vmem:[%s17395_s16 + $0x4] sm:$0xf] }
0x1351   :  { %v13546_v6 = vadd.f32 %v7327_v51, %v6597_v12  ;;  %v13548_v42 = vadd.f32 %v7409_v4, %v6605_v17  ;;  %v7329_v7 = vpop.f32.mrb[62].mxu0  ;;  %v7411_v53 = vpop.f32.mrb[78].mxu1  ;;  %v14800_v12 = vld [vmem:[#allocation34 + $0x100] ss:$8 sps:$4 sm:$0xff]   ;;  %v14805_v47 = vld [vmem:[#allocation34 + $0x114] ss:$8 sps:$4 sm:$0xff]  }
0x1352   :  { %v7418_v54 = vmin.f32 %v13545_v49, 0.0  ;;  %v7420_v55 = vmin.f32 %v13547_v27, 0.0  ;;  %v7330_v56 = vpop.f32.mrb[63].mxu0  ;;  %v7412_v57 = vpop.f32.mrb[79].mxu1  ;;  %vm7414_vm9 = vcmp.gt.f32.partialorder %v13545_v49, 0.0  ;;  %vm7416_vm11 = vcmp.gt.f32.partialorder %v13547_v27, 0.0 }
0x1353   :  { %v7419_v50 = vmin.f32 %v13546_v6, 0.0  ;;  %v7421_v2 = vmin.f32 %v13548_v42, 0.0  ;;  %vm7415_vm12 = vcmp.gt.f32.partialorder %v13546_v6, 0.0  ;;  %vm7417_vm13 = vcmp.gt.f32.partialorder %v13548_v42, 0.0  ;;  %v14848_v17 = vld [vmem:[#allocation34] ss:$8 sps:$4 sm:$0xff]  }
0x1354   :  { %v7422_v3 = vmul.f32 1.442695, %v7418_v54  ;;  %v7426_v13 = vmul.f32 1.442695, %v7420_v55  ;;  %v14853_v48 = vld [vmem:[#allocation34 + $0x14] ss:$8 sps:$4 sm:$0xff]  }
0x1355   :  { %v7424_v14 = vmul.f32 1.442695, %v7419_v50  ;;  %v7428_v52 = vmul.f32 1.442695, %v7421_v2  ;;  %v14808_v51 = vld [vmem:[#allocation34 + $0x124] ss:$8 sps:$4 sm:$0xff]  }
0x1356   :  { %15475 = vpow2.f32 %v7422_v3  ;;  %v14856_v4 = vld [vmem:[#allocation34 + $0x24] ss:$8 sps:$4 sm:$0xff]   ;;  %v14811_v7 = vld [vmem:[#allocation34 + $0x134] ss:$8 sps:$4 sm:$0xff]   ;;  %v14809_v54 = vld [vmem:[#allocation34 + $0x130] ss:$8 sps:$4 sm:$0xff]  }
0x1357   :  { %15477 = vpow2.f32 %v7426_v13  ;;  %v14859_v53 = vld [vmem:[#allocation34 + $0x34] ss:$8 sps:$4 sm:$0xff]   ;;  %v14857_v55 = vld [vmem:[#allocation34 + $0x30] ss:$8 sps:$4 sm:$0xff]   ;;  %v14814_v56 = vld [vmem:[#allocation34 + $0x144] ss:$8 sps:$4 sm:$0xff]  }
0x1358   :  { %15479 = vpow2.f32 %v7424_v14  ;;  %v14862_v57 = vld [vmem:[#allocation34 + $0x44] ss:$8 sps:$4 sm:$0xff]   ;;  %v14812_v50 = vld [vmem:[#allocation34 + $0x140] ss:$8 sps:$4 sm:$0xff]   ;;  %v14817_v3 = vld [vmem:[#allocation34 + $0x154] ss:$8 sps:$4 sm:$0xff]  }
0x1359   :  { %15481 = vpow2.f32 %v7428_v52  ;;  %v14860_v2 = vld [vmem:[#allocation34 + $0x40] ss:$8 sps:$4 sm:$0xff]   ;;  %v14865_v13 = vld [vmem:[#allocation34 + $0x54] ss:$8 sps:$4 sm:$0xff]   ;;  %v14815_v14 = vld [vmem:[#allocation34 + $0x150] ss:$8 sps:$4 sm:$0xff]  }
0x135a   :  { %v14863_v52 = vld [vmem:[#allocation34 + $0x50] ss:$8 sps:$4 sm:$0xff]  }
0x1360   :  { %v15476_v15 = vpop.eup %15475 }
0x1361   :  { %v15478_v16 = vpop.eup %15477  ;;  %v12773_v18 = vadd.f32 -1.0, %v15476_v15  ;;  %v14820_v15 = vld [vmem:[#allocation34 + $0x164] ss:$8 sps:$4 sm:$0xff]  }
0x1362   :  { %v15480_v19 = vpop.eup %15479  ;;  %v12775_v20 = vadd.f32 -1.0, %v15478_v16  ;;  %v14868_v16 = vld [vmem:[#allocation34 + $0x64] ss:$8 sps:$4 sm:$0xff]  }
0x1363   :  { %v15482_v21 = vpop.eup %15481  ;;  %v7434_v22 = vsel %vm7414_vm9, %v13545_v49, %v12773_v18  ;;  %v12774_v24 = vadd.f32 -1.0, %v15480_v19  ;;  %v14803_v49 = vld [vmem:[#allocation34 + $0x110] ss:$8 sps:$4 sm:$0xff]   ;;  %v14818_v18 = vld [vmem:[#allocation34 + $0x160] ss:$8 sps:$4 sm:$0xff]  }
0x1364   :  { %v7436_v29 = vsel %vm7416_vm11, %v13547_v27, %v12775_v20  ;;  %v12776_v26 = vadd.f32 -1.0, %v15482_v21  ;;  %v14851_v27 = vld [vmem:[#allocation34 + $0x10] ss:$8 sps:$4 sm:$0xff]   ;;  %v14866_v19 = vld [vmem:[#allocation34 + $0x60] ss:$8 sps:$4 sm:$0xff]  }
0x1365   :  { %v7439_v30 = vmul.f32 0.5, %v7436_v29  ;;  %v7435_v59 = vsel %vm7415_vm12, %v13546_v6, %v12774_v24  ;;  %v14806_v6 = vld [vmem:[#allocation34 + $0x120] ss:$8 sps:$4 sm:$0xff]   ;;  %v14823_v20 = vld [vmem:[#allocation34 + $0x174] ss:$8 sps:$4 sm:$0xff]  }
0x1366   :  { %v11885_v33 = vcombine.low %v7434_v22, %v7435_v59  ;;  %v7437_v34 = vsel %vm7417_vm13, %v13548_v42, %v12776_v26  ;;  %v14854_v42 = vld [vmem:[#allocation34 + $0x20] ss:$8 sps:$4 sm:$0xff]   ;;  %v14871_v21 = vld [vmem:[#allocation34 + $0x74] ss:$8 sps:$4 sm:$0xff]   ;;  %v14869_v24 = vld [vmem:[#allocation34 + $0x70] ss:$8 sps:$4 sm:$0xff]  }
0x1367   :  { %v7441_v23 = vmul.f32 1.442695, %v7439_v30  ;;  %v7440_v0 = vmul.f32 0.5, %v7437_v34  ;;  %v11897_v25 = vcombine.low %v7436_v29, %v7437_v34  ;;  %v14826_v29 = vld [vmem:[#allocation34 + $0x184] ss:$8 sps:$4 sm:$0xff]  }
0x1368   :  { %13342 = vst.sshfl [vmem:[%s16526_s14] sm:$0x33 pattern:$0x76325410] %v11885_v33  ;;  %v14874_v26 = vld [vmem:[#allocation34 + $0x84] ss:$8 sps:$4 sm:$0xff]   ;;  %s17397_s14 = sld [smem:[#allocation86_spill]] }
0x1369   :  { %15483 = vpow2.f32 %v7441_v23  ;;  %v7443_v1 = vmul.f32 1.442695, %v7440_v0  ;;  %13343 = vst.sshfl [vmem:[%s16531_s25] sm:$0x33 pattern:$0x76325410] %v11897_v25  ;;  %s17396_s25 = sld [smem:[#allocation83_spill]] }
0x136a   :  { %v14824_v30 = vld [vmem:[#allocation34 + $0x180] ss:$8 sps:$4 sm:$0xff]   ;;  %v14829_v33 = vld [vmem:[#allocation34 + $0x194] ss:$8 sps:$4 sm:$0xff]   ;;  %v14827_v23 = vld [vmem:[#allocation34 + $0x190] ss:$8 sps:$4 sm:$0xff]  }
0x136b   :  { %15485 = vpow2.f32 %v7443_v1  ;;  %v14877_v34 = vld [vmem:[#allocation34 + $0x94] ss:$8 sps:$4 sm:$0xff]   ;;  %v14875_v0 = vld [vmem:[#allocation34 + $0x90] ss:$8 sps:$4 sm:$0xff]   ;;  %v14832_v25 = vld [vmem:[#allocation34 + $0x1a4] ss:$8 sps:$4 sm:$0xff]  }
0x136c   :  { %v14880_v1 = vld [vmem:[#allocation34 + $0xa4] ss:$8 sps:$4 sm:$0xff]  }
0x1373   :  { %v15484_v5 = vpop.eup %15483 }
0x1375   :  { %v15486_v31 = vpop.eup %15485 }
0x1376   :  { %v7447_v32 = vcombine.low %v15484_v5, %v15486_v31  ;;  %v14883_v5 = vld [vmem:[#allocation34 + $0xb4] ss:$8 sps:$4 sm:$0xff]   ;;  %v14881_v31 = vld [vmem:[#allocation34 + $0xb0] ss:$8 sps:$4 sm:$0xff]  }
0x1378   :  { %v7454_v36 = vrot.slane %v7447_v32, %v7453_v43  ;;  %v14838_v32 = vld [vmem:[#allocation34 + $0x1c4] ss:$8 sps:$4 sm:$0xff]  }
0x137a   :  { %v7456_v37 = vmul.f32 %v7454_v36, %v7438_v35  ;;  %v14886_v35 = vld [vmem:[#allocation34 + $0xc4] ss:$8 sps:$4 sm:$0xff]   ;;  %v14836_v36 = vld [vmem:[#allocation34 + $0x1c0] ss:$8 sps:$4 sm:$0xff]  }
0x137c   :  { %v7464_v38 = vrot.slane %v7456_v37, %v7453_v43  ;;  %v14833_v43 = vld [vmem:[#allocation34 + $0x1b0] ss:$8 sps:$4 sm:$0xff]   ;;  %v14884_v37 = vld [vmem:[#allocation34 + $0xc0] ss:$8 sps:$4 sm:$0xff]  }
0x137e   :  { %v7465_v39 = vcombine.high %v7464_v38, %v7464_v38  ;;  %v7468_v58 = vadd.f32 %v7464_v38, %v7434_v22  ;;  %v14821_v22 = vld [vmem:[#allocation34 + $0x170] ss:$8 sps:$4 sm:$0xff]   ;;  %v14841_v38 = vld [vmem:[#allocation34 + $0x1d4] ss:$8 sps:$4 sm:$0xff]  }
0x1380   :  { %v7469_v62 = vadd.f32 %v7465_v39, %v7435_v59  ;;  %v7470_v40 = vpack.c.bf16 %v7468_v58, %v7468_v58  ;;  %v14872_v59 = vld [vmem:[#allocation34 + $0x80] ss:$8 sps:$4 sm:$0xff]   ;;  %v14889_v39 = vld [vmem:[#allocation34 + $0xd4] ss:$8 sps:$4 sm:$0xff]   ;;  %v14839_v58 = vld [vmem:[#allocation34 + $0x1d0] ss:$8 sps:$4 sm:$0xff]  }
0x1382   :  { %v17070_v41 = vpack.c.bf16 %v7469_v62, %v7469_v62  ;;  %v17077_v60 = vsel %vm7477_vm14, %v7470_v40, 0  ;;  %v14887_v62 = vld [vmem:[#allocation34 + $0xd0] ss:$8 sps:$4 sm:$0xff]   ;;  %v14844_v40 = vld [vmem:[#allocation34 + $0x1e4] ss:$8 sps:$4 sm:$0xff]  }
0x1384   :  { %12777 = vmatprep.subr.msk.bf16.mxu0 %vm7477_vm14, %v17070_v41  ;;  %12780 = vmatprep.subr.msk.bf16.mxu1 %vm7477_vm14, %v17070_v41 }
0x1385   :  { %7485 = vmatpush1.bf16.msra.mxu0 %v17077_v60  ;;  %7565 = vmatpush1.bf16.msra.mxu1 %v17077_v60 }
0x1386   :  { %7800 = vmatprep.subr.bf16.mxu0 %v14802_v44  ;;  %8001 = vmatprep.subr.bf16.mxu1 %v14850_v45  ;;  %v14892_v44 = vld [vmem:[#allocation34 + $0xe4] ss:$8 sps:$4 sm:$0xff]   ;;  %v14842_v45 = vld [vmem:[#allocation34 + $0x1e0] ss:$8 sps:$4 sm:$0xff]  }
0x1388   :  { %12778 = vmatmul.mubr.msk.bf16.vlgmr.msra.gmra.mrb[64].mxu0 %vm7473_vm15, %v7472_v10  ;;  %12781 = vmatmul.mubr.msk.bf16.vlgmr.msra.gmra.mrb[80].mxu1 %vm7473_vm15, %v12779_v46  ;;  %v14890_v10 = vld [vmem:[#allocation34 + $0xe0] ss:$8 sps:$4 sm:$0xff]   ;;  %v14847_v46 = vld [vmem:[#allocation34 + $0x1f4] ss:$8 sps:$4 sm:$0xff]  }
0x1389   :  { %7801 = vmatpush1.bf16.msra.mxu0 %v14800_v12  ;;  %8002 = vmatpush1.bf16.msra.mxu1 %v14848_v17  ;;  %v14845_v12 = vld [vmem:[#allocation34 + $0x1f0] ss:$8 sps:$4 sm:$0xff]   ;;  %v14895_v17 = vld [vmem:[#allocation34 + $0xf4] ss:$8 sps:$4 sm:$0xff]  }
0x138a   :  { %7802 = vmatprep.subr.bf16.mxu0 %v14805_v47  ;;  %8003 = vmatprep.subr.bf16.mxu1 %v14853_v48  ;;  %v14893_v47 = vld [vmem:[#allocation34 + $0xf0] ss:$8 sps:$4 sm:$0xff]   ;;  %v14898_v48 = vld [vmem:[#allocation34 + $0x204] ss:$8 sps:$4 sm:$0xff]  }
0x138d   :  { %7803 = vmatpush1.bf16.msra.mxu0 %v14803_v49  ;;  %8004 = vmatpush1.bf16.msra.mxu1 %v14851_v27 }
0x138e   :  { %7804 = vmatprep.subr.bf16.mxu0 %v14808_v51  ;;  %8005 = vmatprep.subr.bf16.mxu1 %v14856_v4 }
0x1391   :  { %7805 = vmatpush1.bf16.msra.mxu0 %v14806_v6  ;;  %8006 = vmatpush1.bf16.msra.mxu1 %v14854_v42 }
0x1392   :  { %7806 = vmatprep.subr.bf16.mxu0 %v14811_v7  ;;  %8007 = vmatprep.subr.bf16.mxu1 %v14859_v53 }
0x1395   :  { %7807 = vmatpush1.bf16.msra.mxu0 %v14809_v54  ;;  %8008 = vmatpush1.bf16.msra.mxu1 %v14857_v55 }
0x1396   :  { %7808 = vmatprep.subr.bf16.mxu0 %v14814_v56  ;;  %8009 = vmatprep.subr.bf16.mxu1 %v14862_v57 }
0x1399   :  { %7809 = vmatpush1.bf16.msra.mxu0 %v14812_v50  ;;  %8010 = vmatpush1.bf16.msra.mxu1 %v14860_v2  ;;  %v14896_v50 = vld [vmem:[#allocation34 + $0x200] ss:$8 sps:$4 sm:$0xff]   ;;  %v14901_v2 = vld [vmem:[#allocation34 + $0x214] ss:$8 sps:$4 sm:$0xff]  }
0x139a   :  { %7810 = vmatprep.subr.bf16.mxu0 %v14817_v3  ;;  %8011 = vmatprep.subr.bf16.mxu1 %v14865_v13  ;;  %v14899_v3 = vld [vmem:[#allocation34 + $0x210] ss:$8 sps:$4 sm:$0xff]   ;;  %v14904_v13 = vld [vmem:[#allocation34 + $0x224] ss:$8 sps:$4 sm:$0xff]  }
0x139d   :  { %7811 = vmatpush1.bf16.msra.mxu0 %v14815_v14  ;;  %8012 = vmatpush1.bf16.msra.mxu1 %v14863_v52  ;;  %v12846_v14 = vld [vmem:[%s17395_s16 + $0x8] sm:$0xf]  ;;  %v14902_v52 = vld [vmem:[#allocation34 + $0x220] ss:$8 sps:$4 sm:$0xff]  }
0x139e   :  { %7812 = vmatprep.subr.bf16.mxu0 %v14820_v15  ;;  %8013 = vmatprep.subr.bf16.mxu1 %v14868_v16  ;;  %v14907_v15 = vld [vmem:[#allocation34 + $0x304] ss:$8 sps:$4 sm:$0xff]   ;;  %v14910_v16 = vld [vmem:[#allocation34 + $0x234] ss:$8 sps:$4 sm:$0xff]  }
0x13a1   :  { %7813 = vmatpush1.bf16.msra.mxu0 %v14818_v18  ;;  %8014 = vmatpush1.bf16.msra.mxu1 %v14866_v19  ;;  %v14916_v18 = vld [vmem:[#allocation34 + $0x244] ss:$8 sps:$4 sm:$0xff]   ;;  %v12881_v19 = vld [vmem:[%s17395_s16 + $0xc] sm:$0xf] }
0x13a2   :  { %7814 = vmatprep.subr.bf16.mxu0 %v14823_v20  ;;  %8015 = vmatprep.subr.bf16.mxu1 %v14871_v21  ;;  %v14905_v20 = vld [vmem:[#allocation34 + $0x300] ss:$8 sps:$4 sm:$0xff]   ;;  %v14913_v21 = vld [vmem:[#allocation34 + $0x314] ss:$8 sps:$4 sm:$0xff]  }
0x13a5   :  { %7815 = vmatpush1.bf16.msra.mxu0 %v14821_v22  ;;  %8016 = vmatpush1.bf16.msra.mxu1 %v14869_v24  ;;  %v14914_v22 = vld [vmem:[#allocation34 + $0x240] ss:$8 sps:$4 sm:$0xff]   ;;  %v14922_v24 = vld [vmem:[#allocation34 + $0x254] ss:$8 sps:$4 sm:$0xff]  }
0x13a6   :  { %7816 = vmatprep.subr.bf16.mxu0 %v14826_v29  ;;  %8017 = vmatprep.subr.bf16.mxu1 %v14874_v26  ;;  %v14911_v29 = vld [vmem:[#allocation34 + $0x310] ss:$8 sps:$4 sm:$0xff]  }
0x13a7   :  { %v14920_v26 = vld [vmem:[#allocation34 + $0x250] ss:$8 sps:$4 sm:$0xff]  }
0x13a9   :  { %7817 = vmatpush1.bf16.msra.mxu0 %v14824_v30  ;;  %8018 = vmatpush1.bf16.msra.mxu1 %v14872_v59  ;;  %v14928_v30 = vld [vmem:[#allocation34 + $0x264] ss:$8 sps:$4 sm:$0xff]   ;;  %v14917_v59 = vld [vmem:[#allocation34 + $0x320] ss:$8 sps:$4 sm:$0xff]  }
0x13aa   :  { %7818 = vmatprep.subr.bf16.mxu0 %v14829_v33  ;;  %8019 = vmatprep.subr.bf16.mxu1 %v14877_v34  ;;  %v14925_v33 = vld [vmem:[#allocation34 + $0x334] ss:$8 sps:$4 sm:$0xff]   ;;  %v14926_v34 = vld [vmem:[#allocation34 + $0x260] ss:$8 sps:$4 sm:$0xff]  }
0x13ad   :  { %7819 = vmatpush1.bf16.msra.mxu0 %v14827_v23  ;;  %8020 = vmatpush1.bf16.msra.mxu1 %v14875_v0  ;;  %v14934_v23 = vld [vmem:[#allocation34 + $0x274] ss:$8 sps:$4 sm:$0xff]   ;;  %v14923_v0 = vld [vmem:[#allocation34 + $0x330] ss:$8 sps:$4 sm:$0xff]  }
0x13ae   :  { %7820 = vmatprep.subr.bf16.mxu0 %v14832_v25  ;;  %8021 = vmatprep.subr.bf16.mxu1 %v14880_v1  ;;  %v14931_v25 = vld [vmem:[#allocation34 + $0x344] ss:$8 sps:$4 sm:$0xff]   ;;  %v14932_v1 = vld [vmem:[#allocation34 + $0x270] ss:$8 sps:$4 sm:$0xff]  }
0x13b1   :  { %7821 = vmatpush1.bf16.msra.mxu0 %v14830_v8  ;;  %8022 = vmatpush1.bf16.msra.mxu1 %v14878_v11  ;;  %v14940_v8 = vld [vmem:[#allocation34 + $0x284] ss:$8 sps:$4 sm:$0xff]   ;;  %v14929_v11 = vld [vmem:[#allocation34 + $0x340] ss:$8 sps:$4 sm:$0xff]  }
0x13b2   :  { %7822 = vmatprep.subr.bf16.mxu0 %v14835_v28  ;;  %8023 = vmatprep.subr.bf16.mxu1 %v14883_v5  ;;  %v14937_v28 = vld [vmem:[#allocation34 + $0x354] ss:$8 sps:$4 sm:$0xff]   ;;  %v14938_v5 = vld [vmem:[#allocation34 + $0x280] ss:$8 sps:$4 sm:$0xff]  }
0x13b5   :  { %7823 = vmatpush1.bf16.msra.mxu0 %v14833_v43  ;;  %8024 = vmatpush1.bf16.msra.mxu1 %v14881_v31  ;;  %v14946_v43 = vld [vmem:[#allocation34 + $0x294] ss:$8 sps:$4 sm:$0xff]   ;;  %v14935_v31 = vld [vmem:[#allocation34 + $0x350] ss:$8 sps:$4 sm:$0xff]  }
0x13b6   :  { %7824 = vmatprep.subr.bf16.mxu0 %v14838_v32  ;;  %8025 = vmatprep.subr.bf16.mxu1 %v14886_v35  ;;  %v14943_v32 = vld [vmem:[#allocation34 + $0x364] ss:$8 sps:$4 sm:$0xff]   ;;  %v14944_v35 = vld [vmem:[#allocation34 + $0x290] ss:$8 sps:$4 sm:$0xff]  }
0x13b9   :  { %7825 = vmatpush1.bf16.msra.mxu0 %v14836_v36  ;;  %8026 = vmatpush1.bf16.msra.mxu1 %v14884_v37  ;;  %v14952_v36 = vld [vmem:[#allocation34 + $0x2a4] ss:$8 sps:$4 sm:$0xff]   ;;  %v14941_v37 = vld [vmem:[#allocation34 + $0x360] ss:$8 sps:$4 sm:$0xff]  }
0x13ba   :  { %7826 = vmatprep.subr.bf16.mxu0 %v14841_v38  ;;  %8027 = vmatprep.subr.bf16.mxu1 %v14889_v39  ;;  %v14949_v38 = vld [vmem:[#allocation34 + $0x374] ss:$8 sps:$4 sm:$0xff]   ;;  %v14950_v39 = vld [vmem:[#allocation34 + $0x2a0] ss:$8 sps:$4 sm:$0xff]  }
0x13bd   :  { %7827 = vmatpush1.bf16.msra.mxu0 %v14839_v58  ;;  %8028 = vmatpush1.bf16.msra.mxu1 %v14887_v62  ;;  %v14958_v58 = vld [vmem:[#allocation34 + $0x2b4] ss:$8 sps:$4 sm:$0xff]   ;;  %v14947_v62 = vld [vmem:[#allocation34 + $0x370] ss:$8 sps:$4 sm:$0xff]  }
0x13be   :  { %7828 = vmatprep.subr.bf16.mxu0 %v14844_v40  ;;  %8029 = vmatprep.subr.bf16.mxu1 %v14892_v44  ;;  %v14955_v40 = vld [vmem:[#allocation34 + $0x384] ss:$8 sps:$4 sm:$0xff]   ;;  %v14956_v44 = vld [vmem:[#allocation34 + $0x2b0] ss:$8 sps:$4 sm:$0xff]  }
0x13c1   :  { %7829 = vmatpush1.bf16.msra.mxu0 %v14842_v45  ;;  %8030 = vmatpush1.bf16.msra.mxu1 %v14890_v10  ;;  %v14964_v45 = vld [vmem:[#allocation34 + $0x2c4] ss:$8 sps:$4 sm:$0xff]   ;;  %v14953_v10 = vld [vmem:[#allocation34 + $0x380] ss:$8 sps:$4 sm:$0xff]  }
0x13c2   :  { %7830 = vmatprep.subr.bf16.mxu0 %v14847_v46  ;;  %8031 = vmatprep.subr.bf16.mxu1 %v14895_v17  ;;  %v14961_v46 = vld [vmem:[#allocation34 + $0x394] ss:$8 sps:$4 sm:$0xff]   ;;  %v14959_v17 = vld [vmem:[#allocation34 + $0x390] ss:$8 sps:$4 sm:$0xff]  }
0x13c5   :  { %7831 = vmatpush1.bf16.msra.mxu0 %v14845_v12  ;;  %8032 = vmatpush1.bf16.msra.mxu1 %v14893_v47  ;;  %v14962_v12 = vld [vmem:[#allocation34 + $0x2c0] ss:$8 sps:$4 sm:$0xff]   ;;  %v14967_v47 = vld [vmem:[#allocation34 + $0x3a4] ss:$8 sps:$4 sm:$0xff]  }
0x13c6   :  { %12847 = vmatprep.subr.msk.bf16.mxu0 %vm7477_vm14, %v17070_v41  ;;  %8283 = vmatprep.subr.bf16.mxu1 %v14898_v48  ;;  %v14965_v48 = vld [vmem:[#allocation34 + $0x3a0] ss:$8 sps:$4 sm:$0xff]  }
0x145b   :  { %v7518_v49 = vpop.f32.mrb[64].mxu0  ;;  %v7598_v27 = vpop.f32.mrb[80].mxu1 }
0x145c   :  { %v7525_v51 = vpack.c.bf16 %v7518_v49, %v7518_v49  ;;  %v7520_v4 = vpop.f32.mrb[65].mxu0  ;;  %v7600_v6 = vpop.f32.mrb[81].mxu1  ;;  %v7605_v55 = vpack.c.bf16 %v7598_v27, %v7598_v27  ;;  %v14970_v49 = vld [vmem:[#allocation34 + $0x2d4] ss:$8 sps:$4 sm:$0xff]  }
0x145d   :  { %v7526_v42 = vpack.c.bf16 %v7520_v4, %v7520_v4  ;;  %v7606_v7 = vpack.c.bf16 %v7600_v6, %v7600_v6  ;;  %v7602_v53 = vpop.f32.mrb[82].mxu1  ;;  %v7522_v54 = vpop.f32.mrb[66].mxu0  ;;  %v14973_v27 = vld [vmem:[#allocation34 + $0x3b4] ss:$8 sps:$4 sm:$0xff]   ;;  %v14971_v4 = vld [vmem:[#allocation34 + $0x3b0] ss:$8 sps:$4 sm:$0xff]  }
0x145e   :  { %v7603_v56 = vpop.f32.mrb[83].mxu1  ;;  %v7523_v57 = vpop.f32.mrb[67].mxu0  ;;  %v14974_v6 = vld [vmem:[#allocation34 + $0x2e0] ss:$8 sps:$4 sm:$0xff]   ;;  %v14979_v53 = vld [vmem:[#allocation34 + $0x3c4] ss:$8 sps:$4 sm:$0xff]  }
0x145f   :  { %7832 = vmatprep.mubr.bf16.mxu0 %v7606_v7  ;;  %8033 = vmatprep.mubr.bf16.mxu1 %v7526_v42  ;;  %v14976_v42 = vld [vmem:[#allocation34 + $0x2e4] ss:$8 sps:$4 sm:$0xff]   ;;  %v14977_v7 = vld [vmem:[#allocation34 + $0x3c0] ss:$8 sps:$4 sm:$0xff]   ;;  %v14982_v54 = vld [vmem:[#allocation34 + $0x2f4] ss:$8 sps:$4 sm:$0xff]  }
0x1460   :  { %7833 = vmatmul.mubr.bf16.vlgmr.msra.gmra.mrb[68].mxu0 %v7605_v55  ;;  %8034 = vmatmul.mubr.bf16.vlgmr.msra.gmra.mrb[84].mxu1 %v7525_v51  ;;  %v14968_v51 = vld [vmem:[#allocation34 + $0x2d0] ss:$8 sps:$4 sm:$0xff]   ;;  %v14985_v55 = vld [vmem:[#allocation34 + $0x3d4] ss:$8 sps:$4 sm:$0xff]  }
0x1461   :  { %8048 = vmatpush1.bf16.msra.mxu0 %v17077_v60  ;;  %8079 = vmatprep.mubr.bf16.mxu0 %v16306_v9  ;;  %v14980_v56 = vld [vmem:[#allocation34 + $0x2f0] ss:$8 sps:$4 sm:$0xff]  }
0x1462   :  { %12882 = vmatprep.subr.msk.bf16.mxu0 %vm7477_vm14, %v17070_v41  ;;  %8284 = vmatpush1.bf16.msra.mxu1 %v14896_v50  ;;  %v14908_v41 = vld [vmem:[#allocation34 + $0x230] ss:$8 sps:$4 sm:$0xff]   ;;  %v14988_v50 = vld [vmem:[#allocation34 + $0x3e4] ss:$8 sps:$4 sm:$0xff]  }
0x1463   :  { %8285 = vmatprep.subr.bf16.mxu1 %v14901_v2  ;;  %v14983_v57 = vld [vmem:[#allocation34 + $0x3d0] ss:$8 sps:$4 sm:$0xff]   ;;  %v14986_v2 = vld [vmem:[#allocation34 + $0x3e0] ss:$8 sps:$4 sm:$0xff]  }
0x1466   :  { %8286 = vmatpush1.bf16.msra.mxu1 %v14899_v3  ;;  %v14991_v3 = vld [vmem:[#allocation34 + $0x3f4] ss:$8 sps:$4 sm:$0xff]  }
0x1467   :  { %8287 = vmatprep.subr.bf16.mxu1 %v14904_v13  ;;  %v14989_v13 = vld [vmem:[#allocation34 + $0x3f0] ss:$8 sps:$4 sm:$0xff]  }
0x1468   :  { %12848 = vmatmul.mubr.msk.bf16.vlgmr.msra.gmra.mrb[72].mxu0 %vm7473_vm15, %v12846_v14  ;;  %v14994_v14 = vld [vmem:[#allocation37 + $0x4] ss:$8 sps:$4 sm:$0xff]  }
0x1469   :  { %8332 = vmatpush1.bf16.msra.mxu0 %v17077_v60  ;;  %8363 = vmatprep.mubr.bf16.mxu0 %v16306_v9  ;;  %v14919_v60 = vld [vmem:[#allocation34 + $0x324] ss:$8 sps:$4 sm:$0xff]  }
0x146a   :  { %8567 = vmatprep.subr.bf16.mxu0 %v14907_v15  ;;  %8288 = vmatpush1.bf16.msra.mxu1 %v14902_v52 }
0x146b   :  { %8289 = vmatprep.subr.bf16.mxu1 %v14910_v16 }
0x146e   :  { %8290 = vmatpush1.bf16.msra.mxu1 %v14908_v41 }
0x146f   :  { %8291 = vmatprep.subr.bf16.mxu1 %v14916_v18 }
0x1470   :  { %12883 = vmatmul.mubr.msk.bf16.vlgmr.msra.gmra.mrb[76].mxu0 %vm7473_vm15, %v12881_v19 }
0x1471   :  { %8568 = vmatpush1.bf16.msra.mxu0 %v14905_v20 }
0x1472   :  { %8569 = vmatprep.subr.bf16.mxu0 %v14913_v21  ;;  %8292 = vmatpush1.bf16.msra.mxu1 %v14914_v22 }
0x1473   :  { %8293 = vmatprep.subr.bf16.mxu1 %v14922_v24 }
0x1475   :  { %8570 = vmatpush1.bf16.msra.mxu0 %v14911_v29 }
0x1476   :  { %8571 = vmatprep.subr.bf16.mxu0 %v14919_v60  ;;  %8294 = vmatpush1.bf16.msra.mxu1 %v14920_v26 }
0x1477   :  { %8295 = vmatprep.subr.bf16.mxu1 %v14928_v30 }
0x1479   :  { %8572 = vmatpush1.bf16.msra.mxu0 %v14917_v59  ;;  %v14992_v59 = vld [vmem:[#allocation37] ss:$8 sps:$4 sm:$0xff]  }
0x147a   :  { %8573 = vmatprep.subr.bf16.mxu0 %v14925_v33  ;;  %8296 = vmatpush1.bf16.msra.mxu1 %v14926_v34 }
0x147b   :  { %8297 = vmatprep.subr.bf16.mxu1 %v14934_v23  ;;  %v14997_v23 = vld [vmem:[#allocation37 + $0x14] ss:$8 sps:$4 sm:$0xff]  }
0x147d   :  { %8574 = vmatpush1.bf16.msra.mxu0 %v14923_v0  ;;  %v14995_v0 = vld [vmem:[#allocation37 + $0x10] ss:$8 sps:$4 sm:$0xff]  }
0x147e   :  { %8575 = vmatprep.subr.bf16.mxu0 %v14931_v25  ;;  %8298 = vmatpush1.bf16.msra.mxu1 %v14932_v1  ;;  %v15000_v25 = vld [vmem:[#allocation37 + $0x24] ss:$8 sps:$4 sm:$0xff]  }
0x147f   :  { %8299 = vmatprep.subr.bf16.mxu1 %v14940_v8 }
0x1481   :  { %8576 = vmatpush1.bf16.msra.mxu0 %v14929_v11 }
0x1482   :  { %8577 = vmatprep.subr.bf16.mxu0 %v14937_v28  ;;  %8300 = vmatpush1.bf16.msra.mxu1 %v14938_v5  ;;  %v14998_v5 = vld [vmem:[#allocation37 + $0x20] ss:$8 sps:$4 sm:$0xff]  }
0x1483   :  { %8301 = vmatprep.subr.bf16.mxu1 %v14946_v43 }
0x1485   :  { %8578 = vmatpush1.bf16.msra.mxu0 %v14935_v31 }
0x1486   :  { %8579 = vmatprep.subr.bf16.mxu0 %v14943_v32  ;;  %8302 = vmatpush1.bf16.msra.mxu1 %v14944_v35  ;;  %v15003_v32 = vld [vmem:[#allocation37 + $0x34] ss:$8 sps:$4 sm:$0xff]   ;;  %v15001_v35 = vld [vmem:[#allocation37 + $0x30] ss:$8 sps:$4 sm:$0xff]  }
0x1487   :  { %8303 = vmatprep.subr.bf16.mxu1 %v14952_v36  ;;  %v15006_v36 = vld [vmem:[#allocation37 + $0x44] ss:$8 sps:$4 sm:$0xff]  }
0x1489   :  { %8580 = vmatpush1.bf16.msra.mxu0 %v14941_v37  ;;  %v15004_v37 = vld [vmem:[#allocation37 + $0x40] ss:$8 sps:$4 sm:$0xff]  }
0x148a   :  { %8581 = vmatprep.subr.bf16.mxu0 %v14949_v38  ;;  %8304 = vmatpush1.bf16.msra.mxu1 %v14950_v39  ;;  %v15009_v38 = vld [vmem:[#allocation37 + $0x54] ss:$8 sps:$4 sm:$0xff]   ;;  %v15007_v39 = vld [vmem:[#allocation37 + $0x50] ss:$8 sps:$4 sm:$0xff]  }
0x148b   :  { %8305 = vmatprep.subr.bf16.mxu1 %v14958_v58  ;;  %v15012_v58 = vld [vmem:[#allocation37 + $0x64] ss:$8 sps:$4 sm:$0xff]  }
0x148d   :  { %8582 = vmatpush1.bf16.msra.mxu0 %v14947_v62  ;;  %v15010_v62 = vld [vmem:[#allocation37 + $0x60] ss:$8 sps:$4 sm:$0xff]  }
0x148e   :  { %8583 = vmatprep.subr.bf16.mxu0 %v14955_v40  ;;  %8306 = vmatpush1.bf16.msra.mxu1 %v14956_v44  ;;  %v15015_v40 = vld [vmem:[#allocation37 + $0x74] ss:$8 sps:$4 sm:$0xff]   ;;  %v15013_v44 = vld [vmem:[#allocation37 + $0x70] ss:$8 sps:$4 sm:$0xff]  }
0x148f   :  { %8307 = vmatprep.subr.bf16.mxu1 %v14964_v45  ;;  %v15018_v45 = vld [vmem:[#allocation37 + $0x84] ss:$8 sps:$4 sm:$0xff]  }
0x1491   :  { %8584 = vmatpush1.bf16.msra.mxu0 %v14953_v10  ;;  %v15016_v10 = vld [vmem:[#allocation37 + $0x80] ss:$8 sps:$4 sm:$0xff]  }
0x1492   :  { %8585 = vmatprep.subr.bf16.mxu0 %v14961_v46  ;;  %8308 = vmatpush1.bf16.msra.mxu1 %v14962_v12  ;;  %v15021_v46 = vld [vmem:[#allocation37 + $0x94] ss:$8 sps:$4 sm:$0xff]   ;;  %v15019_v12 = vld [vmem:[#allocation37 + $0x90] ss:$8 sps:$4 sm:$0xff]  }
0x1493   :  { %8309 = vmatprep.subr.bf16.mxu1 %v14970_v49  ;;  %v15025_v49 = vld [vmem:[#allocation37 + $0xb0] ss:$8 sps:$4 sm:$0xff]  }
0x1495   :  { %8586 = vmatpush1.bf16.msra.mxu0 %v14959_v17  ;;  %v15024_v17 = vld [vmem:[#allocation37 + $0xa4] ss:$8 sps:$4 sm:$0xff]  }
0x1496   :  { %8587 = vmatprep.subr.bf16.mxu0 %v14967_v47  ;;  %8310 = vmatpush1.bf16.msra.mxu1 %v14968_v51  ;;  %v15022_v47 = vld [vmem:[#allocation37 + $0xa0] ss:$8 sps:$4 sm:$0xff]  }
0x1497   :  { %8311 = vmatprep.subr.bf16.mxu1 %v14976_v42  ;;  %v15028_v51 = vld [vmem:[#allocation37 + $0xc0] ss:$8 sps:$4 sm:$0xff]   ;;  %v15036_v42 = vld [vmem:[#allocation37 + $0xe4] ss:$8 sps:$4 sm:$0xff]  }
0x1499   :  { %8588 = vmatpush1.bf16.msra.mxu0 %v14965_v48  ;;  %v15027_v48 = vld [vmem:[#allocation37 + $0xb4] ss:$8 sps:$4 sm:$0xff]  }
0x149a   :  { %8589 = vmatprep.subr.bf16.mxu0 %v14973_v27  ;;  %8312 = vmatpush1.bf16.msra.mxu1 %v14974_v6  ;;  %v15030_v27 = vld [vmem:[#allocation37 + $0xc4] ss:$8 sps:$4 sm:$0xff]   ;;  %v15031_v6 = vld [vmem:[#allocation37 + $0xd0] ss:$8 sps:$4 sm:$0xff]  }
0x149b   :  { %8313 = vmatprep.subr.bf16.mxu1 %v14982_v54  ;;  %v15037_v54 = vld [vmem:[#allocation37 + $0xf0] ss:$8 sps:$4 sm:$0xff]  }
0x149d   :  { %8590 = vmatpush1.bf16.msra.mxu0 %v14971_v4  ;;  %v15033_v4 = vld [vmem:[#allocation37 + $0xd4] ss:$8 sps:$4 sm:$0xff]  }
0x149e   :  { %8591 = vmatprep.subr.bf16.mxu0 %v14979_v53  ;;  %8314 = vmatpush1.bf16.msra.mxu1 %v14980_v56  ;;  %v15039_v53 = vld [vmem:[#allocation37 + $0xf4] ss:$8 sps:$4 sm:$0xff]  }
0x149f   :  { %8842 = vmatprep.subr.bf16.mxu1 %v14994_v14 }
0x14a1   :  { %8592 = vmatpush1.bf16.msra.mxu0 %v14977_v7  ;;  %v15034_v7 = vld [vmem:[#allocation37 + $0xe0] ss:$8 sps:$4 sm:$0xff]  }
0x14a2   :  { %8593 = vmatprep.subr.bf16.mxu0 %v14985_v55 }
0x14a5   :  { %8594 = vmatpush1.bf16.msra.mxu0 %v14983_v57 }
0x14a6   :  { %8595 = vmatprep.subr.bf16.mxu0 %v14988_v50 }
0x14a9   :  { %8596 = vmatpush1.bf16.msra.mxu0 %v14986_v2 }
0x14aa   :  { %8597 = vmatprep.subr.bf16.mxu0 %v14991_v3 }
0x14ad   :  { %8598 = vmatpush1.bf16.msra.mxu0 %v14989_v13  ;;  %v8610_v13 = vld [vmem:[#allocation36] sm:$0x3] }
0x14ae   :  { %v8615_v14 = vrot.slane %v8610_v13, %v16794_v61 }
0x1533   :  { %v7834_v52 = vpop.f32.mrb[68].mxu0  ;;  %v8035_v15 = vpop.f32.mrb[84].mxu1 }
0x1534   :  { %v17097_v16 = vadd.f32 %v8035_v15, %v7834_v52  ;;  %v7836_v41 = vpop.f32.mrb[69].mxu0  ;;  %v8037_v18 = vpop.f32.mrb[85].mxu1  ;;  %v8619_v15 = vrot.slane %v8610_v13, %v16797_v63  ;;  %v15061_v13 = vld [vmem:[#allocation40 + $0x160] ss:$8 sps:$4 sm:$0xff]  }
0x1535   :  { %v17099_v19 = vadd.f32 %v8037_v18, %v7836_v41  ;;  %v7838_v20 = vpop.f32.mrb[70].mxu0  ;;  %v8039_v21 = vpop.f32.mrb[86].mxu1 }
0x1536   :  { %v7839_v22 = vpop.f32.mrb[71].mxu0  ;;  %v8040_v24 = vpop.f32.mrb[87].mxu1 }
0x153b   :  { %v8081_v29 = vpop.f32.mrb[72].mxu0 }
0x153c   :  { %v8083_v60 = vpop.f32.mrb[73].mxu0  ;;  %v8088_v33 = vpack.c.bf16 %v8081_v29, %v8081_v29 }
0x153d   :  { %v8089_v26 = vpack.c.bf16 %v8083_v60, %v8083_v60  ;;  %v8085_v30 = vpop.f32.mrb[74].mxu0 }
0x153e   :  { %v8086_v34 = vpop.f32.mrb[75].mxu0 }
0x153f   :  { %8315 = vmatprep.mubr.bf16.mxu1 %v8089_v26 }
0x1540   :  { %8316 = vmatmul.mubr.bf16.vlgmr.msra.gmra.mrb[88].mxu1 %v8088_v33 }
0x1541   :  { %8843 = vmatpush1.bf16.msra.mxu1 %v14992_v59 }
0x1542   :  { %8844 = vmatprep.subr.bf16.mxu1 %v14997_v23 }
0x1543   :  { %v8365_v1 = vpop.f32.mrb[76].mxu0 }
0x1544   :  { %v8367_v8 = vpop.f32.mrb[77].mxu0  ;;  %v8372_v43 = vpack.c.bf16 %v8365_v1, %v8365_v1 }
0x1545   :  { %v8373_v11 = vpack.c.bf16 %v8367_v8, %v8367_v8  ;;  %v8369_v28 = vpop.f32.mrb[78].mxu0  ;;  %8845 = vmatpush1.bf16.msra.mxu1 %v14995_v0  ;;  %v8670_v8 = vld [vmem:[#allocation39] sm:$0x3] }
0x1546   :  { %v8370_v31 = vpop.f32.mrb[79].mxu0  ;;  %8846 = vmatprep.subr.bf16.mxu1 %v15000_v25  ;;  %v8679_v28 = vrot.slane %v8670_v8, %v16797_v63 }
0x1547   :  { %8599 = vmatprep.mubr.bf16.mxu0 %v8373_v11  ;;  %v8675_v11 = vrot.slane %v8670_v8, %v16794_v61 }
0x1548   :  { %8600 = vmatmul.mubr.bf16.vlgmr.msra.gmra.mrb[80].mxu0 %v8372_v43 }
0x1549   :  { %8847 = vmatpush1.bf16.msra.mxu1 %v14998_v5  ;;  %8945 = vmatprep.mubr.bf16.mxu0 %v16306_v9 }
0x154a   :  { %8848 = vmatprep.subr.bf16.mxu1 %v15003_v32 }
0x154d   :  { %8849 = vmatpush1.bf16.msra.mxu1 %v15001_v35 }
0x154e   :  { %8850 = vmatprep.subr.bf16.mxu1 %v15006_v36 }
0x1551   :  { %8851 = vmatpush1.bf16.msra.mxu1 %v15004_v37 }
0x1552   :  { %8852 = vmatprep.subr.bf16.mxu1 %v15009_v38 }
0x1555   :  { %8853 = vmatpush1.bf16.msra.mxu1 %v15007_v39 }
0x1556   :  { %8854 = vmatprep.subr.bf16.mxu1 %v15012_v58 }
0x1559   :  { %8855 = vmatpush1.bf16.msra.mxu1 %v15010_v62 }
0x155a   :  { %8856 = vmatprep.subr.bf16.mxu1 %v15015_v40 }
0x155d   :  { %8857 = vmatpush1.bf16.msra.mxu1 %v15013_v44 }
0x155e   :  { %8858 = vmatprep.subr.bf16.mxu1 %v15018_v45 }
0x1561   :  { %8859 = vmatpush1.bf16.msra.mxu1 %v15016_v10 }
0x1562   :  { %8860 = vmatprep.subr.bf16.mxu1 %v15021_v46 }
0x1565   :  { %8861 = vmatpush1.bf16.msra.mxu1 %v15019_v12 }
0x1566   :  { %8862 = vmatprep.subr.bf16.mxu1 %v15024_v17 }
0x1569   :  { %8863 = vmatpush1.bf16.msra.mxu1 %v15022_v47 }
0x156a   :  { %8864 = vmatprep.subr.bf16.mxu1 %v15027_v48  ;;  %v15040_v48 = vld [vmem:[%s17396_s25] sm:$0xff]  }
0x156d   :  { %8865 = vmatpush1.bf16.msra.mxu1 %v15025_v49  ;;  %v15042_v49 = vld [vmem:[%s17396_s25 + $0x10] sm:$0xff]  }
0x156e   :  { %8866 = vmatprep.subr.bf16.mxu1 %v15030_v27  ;;  %v15045_v27 = vld [vmem:[#allocation40 + $0x104] ss:$8 sps:$4 sm:$0xff]  }
0x1571   :  { %8867 = vmatpush1.bf16.msra.mxu1 %v15028_v51  ;;  %v15041_v51 = vld [vmem:[%s17396_s25 + $0x8] sm:$0xff]  }
0x1572   :  { %8868 = vmatprep.subr.bf16.mxu1 %v15033_v4  ;;  %v15043_v4 = vld [vmem:[#allocation40 + $0x100] ss:$8 sps:$4 sm:$0xff]  }
0x1575   :  { %8869 = vmatpush1.bf16.msra.mxu1 %v15031_v6  ;;  %v15048_v6 = vld [vmem:[#allocation40 + $0x114] ss:$8 sps:$4 sm:$0xff]  }
0x1576   :  { %8870 = vmatprep.subr.bf16.mxu1 %v15036_v42  ;;  %v15046_v42 = vld [vmem:[#allocation40 + $0x110] ss:$8 sps:$4 sm:$0xff]  }
0x1579   :  { %8871 = vmatpush1.bf16.msra.mxu1 %v15034_v7  ;;  %v15051_v7 = vld [vmem:[#allocation40 + $0x124] ss:$8 sps:$4 sm:$0xff]  }
0x157a   :  { %8872 = vmatprep.subr.bf16.mxu1 %v15039_v53  ;;  %v15049_v53 = vld [vmem:[#allocation40 + $0x120] ss:$8 sps:$4 sm:$0xff]  }
0x157d   :  { %8873 = vmatpush1.bf16.msra.mxu1 %v15037_v54  ;;  %v15054_v54 = vld [vmem:[#allocation40 + $0x134] ss:$8 sps:$4 sm:$0xff]  }
0x1613   :  { %v8317_v55 = vpop.f32.mrb[88].mxu1 }
0x1614   :  { %v8324_v56 = vadd.f32 %v8317_v55, %v17097_v16  ;;  %v8319_v57 = vpop.f32.mrb[89].mxu1  ;;  %v15052_v55 = vld [vmem:[#allocation40 + $0x130] ss:$8 sps:$4 sm:$0xff]  }
0x1615   :  { %v8325_v50 = vadd.f32 %v8319_v57, %v17099_v19  ;;  %v8321_v2 = vpop.f32.mrb[90].mxu1  ;;  %v15055_v57 = vld [vmem:[#allocation40 + $0x140] ss:$8 sps:$4 sm:$0xff]  }
0x1616   :  { %v8322_v3 = vpop.f32.mrb[91].mxu1  ;;  %v15058_v2 = vld [vmem:[#allocation40 + $0x150] ss:$8 sps:$4 sm:$0xff]  }
0x1617   :  { %v15063_v3 = vld [vmem:[#allocation40 + $0x164] ss:$8 sps:$4 sm:$0xff]  }
0x161b   :  { %v8601_v52 = vpop.f32.mrb[80].mxu0 }
0x161c   :  { %v8608_v41 = vadd.f32 %v8601_v52, %v8324_v56  ;;  %v8603_v18 = vpop.f32.mrb[81].mxu0  ;;  %v15057_v56 = vld [vmem:[#allocation40 + $0x144] ss:$8 sps:$4 sm:$0xff]   ;;  %v15064_v52 = vld [vmem:[#allocation40 + $0x170] ss:$8 sps:$4 sm:$0xff]  }
0x161d   :  { %v8609_v20 = vadd.f32 %v8603_v18, %v8325_v50  ;;  %v8605_v21 = vpop.f32.mrb[82].mxu0  ;;  %v15060_v50 = vld [vmem:[#allocation40 + $0x154] ss:$8 sps:$4 sm:$0xff]  }
0x161e   :  { %v8622_v22 = vadd.f32 %v8615_v14, %v8608_v41  ;;  %v8606_v24 = vpop.f32.mrb[83].mxu0  ;;  %v15066_v14 = vld [vmem:[#allocation40 + $0x174] ss:$8 sps:$4 sm:$0xff]   ;;  %v15067_v41 = vld [vmem:[#allocation40 + $0x180] ss:$8 sps:$4 sm:$0xff]  }
0x161f   :  { %v8623_v29 = vadd.f32 %v8619_v15, %v8609_v20  ;;  %v15069_v15 = vld [vmem:[#allocation40 + $0x184] ss:$8 sps:$4 sm:$0xff]   ;;  %v15072_v18 = vld [vmem:[#allocation40 + $0x194] ss:$8 sps:$4 sm:$0xff]   ;;  %v15070_v20 = vld [vmem:[#allocation40 + $0x190] ss:$8 sps:$4 sm:$0xff]  }
0x1620   :  { %v8626_v60 = vmin.f32 %v8622_v22, 0.0  ;;  %vm8624_vm2 = vcmp.gt.f32.partialorder %v8622_v22, 0.0  ;;  %v15075_v21 = vld [vmem:[#allocation40 + $0x1a4] ss:$8 sps:$4 sm:$0xff]   ;;  %v15078_v24 = vld [vmem:[#allocation40 + $0x1b4] ss:$8 sps:$4 sm:$0xff]  }
0x1621   :  { %v8627_v16 = vmin.f32 %v8623_v29, 0.0  ;;  %vm8625_vm5 = vcmp.gt.f32.partialorder %v8623_v29, 0.0 }
0x1622   :  { %v8628_v26 = vmul.f32 1.442695, %v8626_v60  ;;  %v15081_v60 = vld [vmem:[#allocation40 + $0x1c4] ss:$8 sps:$4 sm:$0xff]  }
0x1623   :  { %v8630_v30 = vmul.f32 1.442695, %v8627_v16  ;;  %v15079_v16 = vld [vmem:[#allocation40 + $0x1c0] ss:$8 sps:$4 sm:$0xff]  }
0x1624   :  { %15487 = vpow2.f32 %v8628_v26  ;;  %v15084_v26 = vld [vmem:[#allocation40 + $0x1d4] ss:$8 sps:$4 sm:$0xff]  }
0x1625   :  { %15489 = vpow2.f32 %v8630_v30  ;;  %v15082_v30 = vld [vmem:[#allocation40 + $0x1d0] ss:$8 sps:$4 sm:$0xff]  }
0x162e   :  { %v15488_v19 = vpop.eup %15487 }
0x162f   :  { %v15490_v59 = vpop.eup %15489  ;;  %v12916_v33 = vadd.f32 -1.0, %v15488_v19  ;;  %v15085_v19 = vld [vmem:[#allocation40 + $0x1e0] ss:$8 sps:$4 sm:$0xff]  }
0x1630   :  { %v12917_v34 = vadd.f32 -1.0, %v15490_v59  ;;  %v15087_v59 = vld [vmem:[#allocation40 + $0x1e4] ss:$8 sps:$4 sm:$0xff]  }
0x1631   :  { %v8634_v23 = vsel %vm8624_vm2, %v8622_v22, %v12916_v33  ;;  %v15073_v22 = vld [vmem:[#allocation40 + $0x1a0] ss:$8 sps:$4 sm:$0xff]   ;;  %v15090_v33 = vld [vmem:[#allocation40 + $0x1f4] ss:$8 sps:$4 sm:$0xff]  }
0x1632   :  { %v8635_v0 = vsel %vm8625_vm5, %v8623_v29, %v12917_v34  ;;  %v8636_v1 = vpack.c.bf16 %v8634_v23, %v8634_v23  ;;  %v15076_v29 = vld [vmem:[#allocation40 + $0x1b0] ss:$8 sps:$4 sm:$0xff]   ;;  %v15093_v23 = vld [vmem:[#allocation40 + $0x4] ss:$8 sps:$4 sm:$0xff]  }
0x1633   :  { %v8637_v25 = vpack.c.bf16 %v8635_v0, %v8635_v0  ;;  %v15088_v34 = vld [vmem:[#allocation40 + $0x1f0] ss:$8 sps:$4 sm:$0xff]  }
0x1635   :  { %8874 = vmatprep.mubr.bf16.mxu1 %v8637_v25 }
0x1636   :  { %8875 = vmatmul.mubr.bf16.vlgmr.msra.gmra.mrb[92].mxu1 %v8636_v1 }
0x1637   :  { %9528 = vmatprep.mubr.bf16.mxu1 %v16306_v9 }
0x1709   :  { %v8876_v5 = vpop.f32.mrb[92].mxu1 }
0x170a   :  { %v8877_v43 = vadd.f32 %v8876_v5, %v8675_v11  ;;  %v8878_v31 = vpop.f32.mrb[93].mxu1 }
0x170b   :  { %v8879_v32 = vadd.f32 %v8878_v31, %v8679_v28  ;;  %v8880_v35 = vpop.f32.mrb[94].mxu1 }
0x170c   :  { %v8885_v36 = vmin.f32 %v8877_v43, 0.0  ;;  %v8881_v37 = vpop.f32.mrb[95].mxu1  ;;  %vm8883_vm6 = vcmp.gt.f32.partialorder %v8877_v43, 0.0 }
0x170d   :  { %v8886_v38 = vmin.f32 %v8879_v32, 0.0  ;;  %vm8884_vm7 = vcmp.gt.f32.partialorder %v8879_v32, 0.0 }
0x170e   :  { %v8887_v39 = vmul.f32 1.442695, %v8885_v36 }
0x170f   :  { %v8889_v58 = vmul.f32 1.442695, %v8886_v38 }
0x1710   :  { %15491 = vpow2.f32 %v8887_v39 }
0x1711   :  { %15493 = vpow2.f32 %v8889_v58 }
0x171a   :  { %v15492_v62 = vpop.eup %15491 }
0x171b   :  { %v15494_v40 = vpop.eup %15493  ;;  %v12950_v44 = vadd.f32 -1.0, %v15492_v62 }
0x171c   :  { %v12951_v45 = vadd.f32 -1.0, %v15494_v40 }
0x171d   :  { %v8893_v10 = vsel %vm8883_vm6, %v8877_v43, %v12950_v44  ;;  %v15091_v44 = vld [vmem:[#allocation40] ss:$8 sps:$4 sm:$0xff]  }
0x171e   :  { %v8895_v46 = vpack.c.bf16 %v8893_v10, %v8893_v10  ;;  %v8894_v12 = vsel %vm8884_vm7, %v8879_v32, %v12951_v45  ;;  %v15096_v45 = vld [vmem:[#allocation40 + $0x14] ss:$8 sps:$4 sm:$0xff]   ;;  %v15187_v10 = vld [vmem:[#allocation43] ss:$8 sps:$4 sm:$0xff]  }
0x171f   :  { %v8896_v17 = vpack.c.bf16 %v8894_v12, %v8894_v12  ;;  %v15094_v12 = vld [vmem:[#allocation40 + $0x10] ss:$8 sps:$4 sm:$0xff]  }
0x1720   :  { %v8908_v47 = vsel %vm4337_vm3, %v8895_v46, 0  ;;  %v15189_v46 = vld [vmem:[#allocation43 + $0x4] ss:$8 sps:$4 sm:$0xff]  }
0x1721   :  { %12953 = vmatprep.subr.msk.bf16.mxu0 %vm4337_vm3, %v8896_v17  ;;  %13027 = vmatprep.subr.msk.bf16.mxu1 %vm4337_vm3, %v8896_v17 }
0x1722   :  { %8914 = vmatpush1.bf16.msra.mxu0 %v8908_v47  ;;  %9497 = vmatpush1.bf16.msra.mxu1 %v8908_v47 }
0x1723   :  { %12958 = vmatprep.subr.msk.bf16.mxu0 %vm4337_vm3, %v8896_v17  ;;  %v15192_v17 = vld [vmem:[#allocation43 + $0x14] ss:$8 sps:$4 sm:$0xff]   ;;  %10027 = vmatprep.subr.bf16.mxu1 %v15189_v46  ;;  %v15147_v46 = vld [vmem:[#allocation40 + $0x224] ss:$8 sps:$4 sm:$0xff]  }
0x1725   :  { %12954 = vmatmul.mubr.msk.bf16.vlgmr.msra.gmra.mrb[84].mxu0 %vm4333_vm4, %v15040_v48  ;;  %13028 = vmatmul.mubr.msk.bf16.vlgmr.msra.gmra.mrb[96].mxu1 %vm4333_vm4, %v15042_v49  ;;  %v15190_v48 = vld [vmem:[#allocation43 + $0x10] ss:$8 sps:$4 sm:$0xff]   ;;  %v15195_v49 = vld [vmem:[#allocation43 + $0x24] ss:$8 sps:$4 sm:$0xff]  }
0x1726   :  { %9002 = vmatpush1.bf16.msra.mxu0 %v8908_v47  ;;  %9033 = vmatprep.mubr.bf16.mxu0 %v16306_v9  ;;  %v15099_v47 = vld [vmem:[#allocation40 + $0x24] ss:$8 sps:$4 sm:$0xff]  }
0x1727   :  { %9239 = vmatprep.subr.bf16.mxu0 %v15045_v27  ;;  %10028 = vmatpush1.bf16.msra.mxu1 %v15187_v10  ;;  %v15097_v27 = vld [vmem:[#allocation40 + $0x20] ss:$8 sps:$4 sm:$0xff]   ;;  %v15142_v10 = vld [vmem:[#allocation40 + $0x210] ss:$8 sps:$4 sm:$0xff]  }
0x1728   :  { %10029 = vmatprep.subr.bf16.mxu1 %v15192_v17  ;;  %v15150_v17 = vld [vmem:[#allocation40 + $0x234] ss:$8 sps:$4 sm:$0xff]  }
0x172b   :  { %10030 = vmatpush1.bf16.msra.mxu1 %v15190_v48  ;;  %v15153_v48 = vld [vmem:[#allocation40 + $0x244] ss:$8 sps:$4 sm:$0xff]  }
0x172c   :  { %10031 = vmatprep.subr.bf16.mxu1 %v15195_v49  ;;  %v15151_v49 = vld [vmem:[#allocation40 + $0x240] ss:$8 sps:$4 sm:$0xff]  }
0x172d   :  { %12959 = vmatmul.mubr.msk.bf16.vlgmr.msra.gmra.mrb[88].mxu0 %vm4333_vm4, %v15041_v51  ;;  %v15102_v51 = vld [vmem:[#allocation40 + $0x34] ss:$8 sps:$4 sm:$0xff]  }
0x172e   :  { %9240 = vmatpush1.bf16.msra.mxu0 %v15043_v4  ;;  %v15193_v4 = vld [vmem:[#allocation43 + $0x20] ss:$8 sps:$4 sm:$0xff]  }
0x172f   :  { %9241 = vmatprep.subr.bf16.mxu0 %v15048_v6  ;;  %v15198_v6 = vld [vmem:[#allocation43 + $0x34] ss:$8 sps:$4 sm:$0xff]   ;;  %10032 = vmatpush1.bf16.msra.mxu1 %v15193_v4 }
0x1730   :  { %10033 = vmatprep.subr.bf16.mxu1 %v15198_v6  ;;  %v15168_v4 = vld [vmem:[#allocation40 + $0x294] ss:$8 sps:$4 sm:$0xff]   ;;  %v15166_v6 = vld [vmem:[#allocation40 + $0x290] ss:$8 sps:$4 sm:$0xff]  }
0x1732   :  { %9242 = vmatpush1.bf16.msra.mxu0 %v15046_v42  ;;  %v15100_v42 = vld [vmem:[#allocation40 + $0x30] ss:$8 sps:$4 sm:$0xff]  }
0x1733   :  { %9243 = vmatprep.subr.bf16.mxu0 %v15051_v7  ;;  %v15105_v7 = vld [vmem:[#allocation40 + $0x44] ss:$8 sps:$4 sm:$0xff]  }
0x1736   :  { %9244 = vmatpush1.bf16.msra.mxu0 %v15049_v53  ;;  %v15196_v53 = vld [vmem:[#allocation43 + $0x30] ss:$8 sps:$4 sm:$0xff]  }
0x1737   :  { %9245 = vmatprep.subr.bf16.mxu0 %v15054_v54  ;;  %v15201_v54 = vld [vmem:[#allocation43 + $0x44] ss:$8 sps:$4 sm:$0xff]   ;;  %10034 = vmatpush1.bf16.msra.mxu1 %v15196_v53  ;;  %v15174_v53 = vld [vmem:[#allocation40 + $0x2b4] ss:$8 sps:$4 sm:$0xff]  }
0x1738   :  { %10035 = vmatprep.subr.bf16.mxu1 %v15201_v54  ;;  %v15172_v54 = vld [vmem:[#allocation40 + $0x2b0] ss:$8 sps:$4 sm:$0xff]  }
0x173a   :  { %9246 = vmatpush1.bf16.msra.mxu0 %v15052_v55  ;;  %v15103_v55 = vld [vmem:[#allocation40 + $0x40] ss:$8 sps:$4 sm:$0xff]  }
0x173b   :  { %9247 = vmatprep.subr.bf16.mxu0 %v15057_v56  ;;  %v15108_v56 = vld [vmem:[#allocation40 + $0x54] ss:$8 sps:$4 sm:$0xff]  }
0x173e   :  { %9248 = vmatpush1.bf16.msra.mxu0 %v15055_v57  ;;  %v15199_v57 = vld [vmem:[#allocation43 + $0x40] ss:$8 sps:$4 sm:$0xff]  }
0x173f   :  { %9249 = vmatprep.subr.bf16.mxu0 %v15060_v50  ;;  %v15204_v50 = vld [vmem:[#allocation43 + $0x54] ss:$8 sps:$4 sm:$0xff]   ;;  %10036 = vmatpush1.bf16.msra.mxu1 %v15199_v57 }
0x1740   :  { %10037 = vmatprep.subr.bf16.mxu1 %v15204_v50  ;;  %v15180_v57 = vld [vmem:[#allocation40 + $0x2d4] ss:$8 sps:$4 sm:$0xff]   ;;  %v15178_v50 = vld [vmem:[#allocation40 + $0x2d0] ss:$8 sps:$4 sm:$0xff]  }
0x1742   :  { %9250 = vmatpush1.bf16.msra.mxu0 %v15058_v2  ;;  %v15106_v2 = vld [vmem:[#allocation40 + $0x50] ss:$8 sps:$4 sm:$0xff]  }
0x1743   :  { %9251 = vmatprep.subr.bf16.mxu0 %v15063_v3  ;;  %v15111_v3 = vld [vmem:[#allocation40 + $0x64] ss:$8 sps:$4 sm:$0xff]  }
0x1746   :  { %9252 = vmatpush1.bf16.msra.mxu0 %v15061_v13  ;;  %v15202_v13 = vld [vmem:[#allocation43 + $0x50] ss:$8 sps:$4 sm:$0xff]  }
0x1747   :  { %9253 = vmatprep.subr.bf16.mxu0 %v15066_v14  ;;  %v15207_v14 = vld [vmem:[#allocation43 + $0x64] ss:$8 sps:$4 sm:$0xff]   ;;  %10038 = vmatpush1.bf16.msra.mxu1 %v15202_v13  ;;  %v15186_v13 = vld [vmem:[#allocation40 + $0x2f4] ss:$8 sps:$4 sm:$0xff]  }
0x1748   :  { %10039 = vmatprep.subr.bf16.mxu1 %v15207_v14  ;;  %v15184_v14 = vld [vmem:[#allocation40 + $0x2f0] ss:$8 sps:$4 sm:$0xff]  }
0x174a   :  { %9254 = vmatpush1.bf16.msra.mxu0 %v15064_v52  ;;  %v15109_v52 = vld [vmem:[#allocation40 + $0x60] ss:$8 sps:$4 sm:$0xff]  }
0x174b   :  { %9255 = vmatprep.subr.bf16.mxu0 %v15069_v15  ;;  %v15114_v15 = vld [vmem:[#allocation40 + $0x74] ss:$8 sps:$4 sm:$0xff]  }
0x174e   :  { %9256 = vmatpush1.bf16.msra.mxu0 %v15067_v41  ;;  %v15205_v41 = vld [vmem:[#allocation43 + $0x60] ss:$8 sps:$4 sm:$0xff]  }
0x174f   :  { %9257 = vmatprep.subr.bf16.mxu0 %v15072_v18  ;;  %v15210_v18 = vld [vmem:[#allocation43 + $0x74] ss:$8 sps:$4 sm:$0xff]   ;;  %10040 = vmatpush1.bf16.msra.mxu1 %v15205_v41 }
0x1750   :  { %10041 = vmatprep.subr.bf16.mxu1 %v15210_v18  ;;  %v15222_v41 = vld [vmem:[#allocation43 + $0xb4] ss:$8 sps:$4 sm:$0xff]   ;;  %v15220_v18 = vld [vmem:[#allocation43 + $0xb0] ss:$8 sps:$4 sm:$0xff]  }
0x1752   :  { %9258 = vmatpush1.bf16.msra.mxu0 %v15070_v20  ;;  %v15112_v20 = vld [vmem:[#allocation40 + $0x70] ss:$8 sps:$4 sm:$0xff]  }
0x1753   :  { %9259 = vmatprep.subr.bf16.mxu0 %v15075_v21  ;;  %v15117_v21 = vld [vmem:[#allocation40 + $0x84] ss:$8 sps:$4 sm:$0xff]  }
0x1756   :  { %9260 = vmatpush1.bf16.msra.mxu0 %v15073_v22  ;;  %v15208_v22 = vld [vmem:[#allocation43 + $0x70] ss:$8 sps:$4 sm:$0xff]  }
0x1757   :  { %9261 = vmatprep.subr.bf16.mxu0 %v15078_v24  ;;  %v15213_v24 = vld [vmem:[#allocation43 + $0x84] ss:$8 sps:$4 sm:$0xff]   ;;  %10042 = vmatpush1.bf16.msra.mxu1 %v15208_v22  ;;  %v15228_v22 = vld [vmem:[#allocation43 + $0xd4] ss:$8 sps:$4 sm:$0xff]  }
0x1758   :  { %10043 = vmatprep.subr.bf16.mxu1 %v15213_v24  ;;  %v15226_v24 = vld [vmem:[#allocation43 + $0xd0] ss:$8 sps:$4 sm:$0xff]  }
0x175a   :  { %9262 = vmatpush1.bf16.msra.mxu0 %v15076_v29  ;;  %v15115_v29 = vld [vmem:[#allocation40 + $0x80] ss:$8 sps:$4 sm:$0xff]  }
0x175b   :  { %9263 = vmatprep.subr.bf16.mxu0 %v15081_v60  ;;  %v15120_v60 = vld [vmem:[#allocation40 + $0x94] ss:$8 sps:$4 sm:$0xff]  }
0x175e   :  { %9264 = vmatpush1.bf16.msra.mxu0 %v15079_v16  ;;  %v15211_v16 = vld [vmem:[#allocation43 + $0x80] ss:$8 sps:$4 sm:$0xff]  }
0x175f   :  { %9265 = vmatprep.subr.bf16.mxu0 %v15084_v26  ;;  %v15216_v26 = vld [vmem:[#allocation43 + $0x94] ss:$8 sps:$4 sm:$0xff]   ;;  %10044 = vmatpush1.bf16.msra.mxu1 %v15211_v16 }
0x1760   :  { %10045 = vmatprep.subr.bf16.mxu1 %v15216_v26 }
0x1762   :  { %9266 = vmatpush1.bf16.msra.mxu0 %v15082_v30  ;;  %v15118_v30 = vld [vmem:[#allocation40 + $0x90] ss:$8 sps:$4 sm:$0xff]  }
0x1763   :  { %9267 = vmatprep.subr.bf16.mxu0 %v15087_v59  ;;  %v15214_v59 = vld [vmem:[#allocation43 + $0x90] ss:$8 sps:$4 sm:$0xff]  }
0x1764   :  { %10046 = vmatpush1.bf16.msra.mxu1 %v15214_v59 }
0x1766   :  { %9268 = vmatpush1.bf16.msra.mxu0 %v15085_v19  ;;  %v15123_v19 = vld [vmem:[#allocation40 + $0xa4] ss:$8 sps:$4 sm:$0xff]  }
0x1767   :  { %9269 = vmatprep.subr.bf16.mxu0 %v15090_v33  ;;  %v15121_v33 = vld [vmem:[#allocation40 + $0xa0] ss:$8 sps:$4 sm:$0xff]  }
0x176a   :  { %9270 = vmatpush1.bf16.msra.mxu0 %v15088_v34  ;;  %v15126_v34 = vld [vmem:[#allocation40 + $0xb4] ss:$8 sps:$4 sm:$0xff]  }
0x176b   :  { %9442 = vmatprep.subr.bf16.mxu0 %v15093_v23  ;;  %v15124_v23 = vld [vmem:[#allocation40 + $0xb0] ss:$8 sps:$4 sm:$0xff]  }
0x17f8   :  { %v17120_v0 = vpop.f32.mrb[84].mxu0  ;;  %v17126_v5 = vpop.f32.mrb[96].mxu1 }
0x17f9   :  { %v8949_v25 = vpop.f32.mrb[85].mxu0  ;;  %v17128_v43 = vpop.f32.mrb[97].mxu1 }
0x17fa   :  { %v17122_v1 = vpop.f32.mrb[86].mxu0  ;;  %v17130_v31 = vpop.f32.mrb[98].mxu1 }
0x17fb   :  { %v8956_v8 = vpack.c.bf16 %v17122_v1, %v17120_v0  ;;  %v8953_v11 = vpop.f32.mrb[87].mxu0  ;;  %v9539_v32 = vpack.c.bf16 %v17130_v31, %v17126_v5  ;;  %v17134_v35 = vpop.f32.mrb[99].mxu1  ;;  %v15156_v0 = vld [vmem:[#allocation40 + $0x254] ss:$8 sps:$4 sm:$0xff]   ;;  %v15154_v1 = vld [vmem:[#allocation40 + $0x250] ss:$8 sps:$4 sm:$0xff]  }
0x17fc   :  { %v8957_v28 = vpack.c.bf16 %v8953_v11, %v8949_v25  ;;  %v9540_v37 = vpack.c.bf16 %v17134_v35, %v17128_v43  ;;  %v15129_v25 = vld [vmem:[#allocation40 + $0xc4] ss:$8 sps:$4 sm:$0xff]   ;;  %v15127_v11 = vld [vmem:[#allocation40 + $0xc0] ss:$8 sps:$4 sm:$0xff]   ;;  %v15162_v35 = vld [vmem:[#allocation40 + $0x274] ss:$8 sps:$4 sm:$0xff]  }
0x17fd   :  { %v15157_v43 = vld [vmem:[#allocation40 + $0x260] ss:$8 sps:$4 sm:$0xff]  }
0x17fe   :  { %v15231_v5 = vld [vmem:[#allocation43 + $0xe4] ss:$8 sps:$4 sm:$0xff]   ;;  %v15229_v31 = vld [vmem:[#allocation43 + $0xe0] ss:$8 sps:$4 sm:$0xff]  }
0x1800   :  { %v9035_v36 = vpop.f32.mrb[88].mxu0 }
0x1801   :  { %v9037_v38 = vpop.f32.mrb[89].mxu0 }
0x1802   :  { %v9039_v39 = vpop.f32.mrb[90].mxu0 }
0x1803   :  { %v9044_v58 = vpack.c.bf16 %v9039_v39, %v9035_v36  ;;  %v9041_v62 = vpop.f32.mrb[91].mxu0  ;;  %v15130_v36 = vld [vmem:[#allocation40 + $0xd0] ss:$8 sps:$4 sm:$0xff]   ;;  %v15133_v39 = vld [vmem:[#allocation40 + $0xe0] ss:$8 sps:$4 sm:$0xff]  }
0x1804   :  { %v9045_v40 = vpack.c.bf16 %v9041_v62, %v9037_v38  ;;  %v15135_v38 = vld [vmem:[#allocation40 + $0xe4] ss:$8 sps:$4 sm:$0xff]   ;;  %v15136_v62 = vld [vmem:[#allocation40 + $0xf0] ss:$8 sps:$4 sm:$0xff]  }
0x1806   :  { %9271 = vmatprep.mubr.bf16.mxu0 %v9045_v40  ;;  %v15141_v40 = vld [vmem:[#allocation40 + $0x204] ss:$8 sps:$4 sm:$0xff]  }
0x1807   :  { %9272 = vmatmul.mubr.bf16.vlgmr.msra.gmra.mrb[92].mxu0 %v9044_v58  ;;  %v15138_v58 = vld [vmem:[#allocation40 + $0xf4] ss:$8 sps:$4 sm:$0xff]  }
0x1808   :  { %9443 = vmatpush1.bf16.msra.mxu0 %v15091_v44  ;;  %9474 = vmatprep.mubr.bf16.mxu0 %v8957_v28  ;;  %v15132_v28 = vld [vmem:[#allocation40 + $0xd4] ss:$8 sps:$4 sm:$0xff]   ;;  %v15139_v44 = vld [vmem:[#allocation40 + $0x200] ss:$8 sps:$4 sm:$0xff]  }
0x1809   :  { %9444 = vmatprep.subr.bf16.mxu0 %v15096_v45  ;;  %v15144_v45 = vld [vmem:[#allocation40 + $0x214] ss:$8 sps:$4 sm:$0xff]  }
0x180c   :  { %9445 = vmatpush1.bf16.msra.mxu0 %v15094_v12  ;;  %v15145_v12 = vld [vmem:[#allocation40 + $0x220] ss:$8 sps:$4 sm:$0xff]  }
0x180d   :  { %9446 = vmatprep.subr.bf16.mxu0 %v15099_v47  ;;  %v15148_v47 = vld [vmem:[#allocation40 + $0x230] ss:$8 sps:$4 sm:$0xff]  }
0x1810   :  { %9447 = vmatpush1.bf16.msra.mxu0 %v15097_v27  ;;  %v15165_v27 = vld [vmem:[#allocation40 + $0x284] ss:$8 sps:$4 sm:$0xff]  }
0x1811   :  { %9448 = vmatprep.subr.bf16.mxu0 %v15102_v51  ;;  %v15163_v51 = vld [vmem:[#allocation40 + $0x280] ss:$8 sps:$4 sm:$0xff]  }
0x1814   :  { %9449 = vmatpush1.bf16.msra.mxu0 %v15100_v42  ;;  %v15171_v42 = vld [vmem:[#allocation40 + $0x2a4] ss:$8 sps:$4 sm:$0xff]  }
0x1815   :  { %9450 = vmatprep.subr.bf16.mxu0 %v15105_v7  ;;  %v15169_v7 = vld [vmem:[#allocation40 + $0x2a0] ss:$8 sps:$4 sm:$0xff]  }
0x1818   :  { %9451 = vmatpush1.bf16.msra.mxu0 %v15103_v55  ;;  %v15177_v55 = vld [vmem:[#allocation40 + $0x2c4] ss:$8 sps:$4 sm:$0xff]  }
0x1819   :  { %9452 = vmatprep.subr.bf16.mxu0 %v15108_v56  ;;  %v15175_v56 = vld [vmem:[#allocation40 + $0x2c0] ss:$8 sps:$4 sm:$0xff]  }
0x181c   :  { %9453 = vmatpush1.bf16.msra.mxu0 %v15106_v2  ;;  %v15183_v2 = vld [vmem:[#allocation40 + $0x2e4] ss:$8 sps:$4 sm:$0xff]  }
0x181d   :  { %9454 = vmatprep.subr.bf16.mxu0 %v15111_v3  ;;  %v15181_v3 = vld [vmem:[#allocation40 + $0x2e0] ss:$8 sps:$4 sm:$0xff]  }
0x1820   :  { %9455 = vmatpush1.bf16.msra.mxu0 %v15109_v52  ;;  %v15219_v52 = vld [vmem:[#allocation43 + $0xa4] ss:$8 sps:$4 sm:$0xff]  }
0x1821   :  { %9456 = vmatprep.subr.bf16.mxu0 %v15114_v15  ;;  %v15217_v15 = vld [vmem:[#allocation43 + $0xa0] ss:$8 sps:$4 sm:$0xff]   ;;  %10047 = vmatprep.subr.bf16.mxu1 %v15219_v52 }
0x1822   :  { %10048 = vmatpush1.bf16.msra.mxu1 %v15217_v15 }
0x1823   :  { %10049 = vmatprep.subr.bf16.mxu1 %v15222_v41 }
0x1824   :  { %9457 = vmatpush1.bf16.msra.mxu0 %v15112_v20  ;;  %v15225_v20 = vld [vmem:[#allocation43 + $0xc4] ss:$8 sps:$4 sm:$0xff]  }
0x1825   :  { %9458 = vmatprep.subr.bf16.mxu0 %v15117_v21  ;;  %v15223_v21 = vld [vmem:[#allocation43 + $0xc0] ss:$8 sps:$4 sm:$0xff]  }
0x1826   :  { %10050 = vmatpush1.bf16.msra.mxu1 %v15220_v18 }
0x1827   :  { %10051 = vmatprep.subr.bf16.mxu1 %v15225_v20 }
0x1828   :  { %9459 = vmatpush1.bf16.msra.mxu0 %v15115_v29  ;;  %v15232_v29 = vld [vmem:[#allocation43 + $0xf0] ss:$8 sps:$4 sm:$0xff]  }
0x1829   :  { %9460 = vmatprep.subr.bf16.mxu0 %v15120_v60  ;;  %v9781_v60 = vld [vmem:[#allocation42] sm:$0x3] }
0x182a   :  { %10052 = vmatpush1.bf16.msra.mxu1 %v15223_v21  ;;  %v9786_v16 = vrot.slane %v9781_v60, %v16794_v61  ;;  %v9790_v26 = vrot.slane %v9781_v60, %v16797_v63 }
0x182b   :  { %10053 = vmatprep.subr.bf16.mxu1 %v15228_v22 }
0x182c   :  { %9461 = vmatpush1.bf16.msra.mxu0 %v15118_v30 }
0x182d   :  { %9462 = vmatprep.subr.bf16.mxu0 %v15123_v19 }
0x182e   :  { %10054 = vmatpush1.bf16.msra.mxu1 %v15226_v24 }
0x182f   :  { %10055 = vmatprep.subr.bf16.mxu1 %v15231_v5 }
0x1830   :  { %9463 = vmatpush1.bf16.msra.mxu0 %v15121_v33 }
0x1831   :  { %9464 = vmatprep.subr.bf16.mxu0 %v15126_v34 }
0x1832   :  { %10056 = vmatpush1.bf16.msra.mxu1 %v15229_v31 }
0x1834   :  { %9465 = vmatpush1.bf16.msra.mxu0 %v15124_v23 }
0x1835   :  { %9466 = vmatprep.subr.bf16.mxu0 %v15129_v25 }
0x1838   :  { %9467 = vmatpush1.bf16.msra.mxu0 %v15127_v11 }
0x1839   :  { %9468 = vmatprep.subr.bf16.mxu0 %v15132_v28 }
0x183c   :  { %9469 = vmatpush1.bf16.msra.mxu0 %v15130_v36 }
0x183d   :  { %9470 = vmatprep.subr.bf16.mxu0 %v15135_v38 }
0x1840   :  { %9471 = vmatpush1.bf16.msra.mxu0 %v15133_v39 }
0x1841   :  { %9472 = vmatprep.subr.bf16.mxu0 %v15138_v58 }
0x1844   :  { %9473 = vmatpush1.bf16.msra.mxu0 %v15136_v62 }
0x1845   :  { %9734 = vmatprep.subr.bf16.mxu0 %v15141_v40 }
0x1847   :  { %9475 = vmatmul.mubr.bf16.vlgmr.msra.gmra.mrb[92].mxu0 %v8956_v8  ;;  %v15159_v8 = vld [vmem:[#allocation40 + $0x264] ss:$8 sps:$4 sm:$0xff]  }
0x1848   :  { %9735 = vmatpush1.bf16.msra.mxu0 %v15139_v44  ;;  %9766 = vmatprep.mubr.bf16.mxu0 %v9540_v37  ;;  %v15160_v37 = vld [vmem:[#allocation40 + $0x270] ss:$8 sps:$4 sm:$0xff]  }
0x1849   :  { %9736 = vmatprep.subr.bf16.mxu0 %v15144_v45 }
0x184c   :  { %9737 = vmatpush1.bf16.msra.mxu0 %v15142_v10 }
0x184d   :  { %9738 = vmatprep.subr.bf16.mxu0 %v15147_v46 }
0x1850   :  { %9739 = vmatpush1.bf16.msra.mxu0 %v15145_v12 }
0x1851   :  { %9740 = vmatprep.subr.bf16.mxu0 %v15150_v17 }
0x1854   :  { %9741 = vmatpush1.bf16.msra.mxu0 %v15148_v47 }
0x1855   :  { %9742 = vmatprep.subr.bf16.mxu0 %v15153_v48 }
0x1858   :  { %9743 = vmatpush1.bf16.msra.mxu0 %v15151_v49 }
0x1859   :  { %9744 = vmatprep.subr.bf16.mxu0 %v15156_v0 }
0x185c   :  { %9745 = vmatpush1.bf16.msra.mxu0 %v15154_v1 }
0x185d   :  { %9746 = vmatprep.subr.bf16.mxu0 %v15159_v8 }
0x1860   :  { %9747 = vmatpush1.bf16.msra.mxu0 %v15157_v43 }
0x1861   :  { %9748 = vmatprep.subr.bf16.mxu0 %v15162_v35 }
0x1864   :  { %9749 = vmatpush1.bf16.msra.mxu0 %v15160_v37 }
0x1865   :  { %9750 = vmatprep.subr.bf16.mxu0 %v15165_v27  ;;  %v9855_v27 = vld [vmem:[#allocation45] sm:$0x3] }
0x1868   :  { %9751 = vmatpush1.bf16.msra.mxu0 %v15163_v51  ;;  %v9860_v51 = vrot.slane %v9855_v27, %v16794_v61 }
0x1869   :  { %9752 = vmatprep.subr.bf16.mxu0 %v15168_v4  ;;  %v9864_v4 = vrot.slane %v9855_v27, %v16797_v63  ;;  %v15276_v27 = vld [vmem:[#allocation46 + $0x1b4] ss:$8 sps:$4 sm:$0xff]  }
0x186c   :  { %9753 = vmatpush1.bf16.msra.mxu0 %v15166_v6 }
0x186d   :  { %9754 = vmatprep.subr.bf16.mxu0 %v15171_v42 }
0x1870   :  { %9755 = vmatpush1.bf16.msra.mxu0 %v15169_v7 }
0x1871   :  { %9756 = vmatprep.subr.bf16.mxu0 %v15174_v53 }
0x1874   :  { %9757 = vmatpush1.bf16.msra.mxu0 %v15172_v54 }
0x1875   :  { %9758 = vmatprep.subr.bf16.mxu0 %v15177_v55 }
0x1878   :  { %9759 = vmatpush1.bf16.msra.mxu0 %v15175_v56 }
0x1879   :  { %9760 = vmatprep.subr.bf16.mxu0 %v15180_v57 }
0x187c   :  { %9761 = vmatpush1.bf16.msra.mxu0 %v15178_v50 }
0x187d   :  { %9762 = vmatprep.subr.bf16.mxu0 %v15183_v2 }
0x1880   :  { %9763 = vmatpush1.bf16.msra.mxu0 %v15181_v3 }
0x1881   :  { %9764 = vmatprep.subr.bf16.mxu0 %v15186_v13 }
0x1884   :  { %9765 = vmatpush1.bf16.msra.mxu0 %v15184_v14 }
0x1887   :  { %9767 = vmatmul.mubr.bf16.vlgmr.msra.gmra.mrb[92].mxu0 %v9539_v32  ;;  %v15234_v32 = vld [vmem:[#allocation43 + $0xf4] ss:$8 sps:$4 sm:$0xff]  }
0x1888   :  { %10795 = vmatprep.mubr.bf16.mxu0 %v16306_v9  ;;  %10057 = vmatprep.subr.bf16.mxu1 %v15234_v32 }
0x1889   :  { %10058 = vmatpush1.bf16.msra.mxu1 %v15232_v29 }
0x195a   :  { %v9768_v30 = vpop.f32.mrb[92].mxu0 }
0x195b   :  { %v9793_v19 = vadd.f32 %v9786_v16, %v9768_v30  ;;  %v9770_v59 = vpop.f32.mrb[93].mxu0 }
0x195c   :  { %v9794_v33 = vadd.f32 %v9790_v26, %v9770_v59  ;;  %v9772_v34 = vpop.f32.mrb[94].mxu0  ;;  %v15235_v59 = vld [vmem:[%s17397_s14] sm:$0xff]  }
0x195d   :  { %v9801_v23 = vmin.f32 %v9793_v19, 0.0  ;;  %v9795_v25 = vadd.f32 %v9786_v16, %v9772_v34  ;;  %v9774_v11 = vpop.f32.mrb[95].mxu0  ;;  %vm9797_vm3 = vcmp.gt.f32.partialorder %v9793_v19, 0.0  ;;  %v15243_v34 = vld [vmem:[#allocation46 + $0x104] ss:$8 sps:$4 sm:$0xff]  }
0x195e   :  { %v9802_v28 = vmin.f32 %v9794_v33, 0.0  ;;  %v9796_v36 = vadd.f32 %v9790_v26, %v9774_v11  ;;  %vm9798_vm8 = vcmp.gt.f32.partialorder %v9794_v33, 0.0  ;;  %v15237_v11 = vld [vmem:[%s17397_s14 + $0x10] sm:$0xff]  }
0x195f   :  { %v9805_v38 = vmul.f32 1.442695, %v9801_v23  ;;  %v9803_v39 = vmin.f32 %v9795_v25, 0.0  ;;  %vm9799_vm4 = vcmp.gt.f32.partialorder %v9795_v25, 0.0  ;;  %v15236_v23 = vld [vmem:[%s17397_s14 + $0x8] sm:$0xff]  }
0x1960   :  { %v9807_v58 = vmul.f32 1.442695, %v9802_v28  ;;  %v9804_v62 = vmin.f32 %v9796_v36, 0.0  ;;  %vm9800_vm9 = vcmp.gt.f32.partialorder %v9796_v36, 0.0  ;;  %v15241_v28 = vld [vmem:[#allocation46 + $0x100] ss:$8 sps:$4 sm:$0xff]  }
0x1961   :  { %15495 = vpow2.f32 %v9805_v38  ;;  %v9809_v40 = vmul.f32 1.442695, %v9803_v39  ;;  %v15244_v38 = vld [vmem:[#allocation46 + $0x110] ss:$8 sps:$4 sm:$0xff]   ;;  %v15249_v39 = vld [vmem:[#allocation46 + $0x124] ss:$8 sps:$4 sm:$0xff]  }
0x1962   :  { %15497 = vpow2.f32 %v9807_v58  ;;  %v9811_v44 = vmul.f32 1.442695, %v9804_v62  ;;  %v15238_v58 = vld [vmem:[%s17397_s14 + $0x18] sm:$0xff]   ;;  %v15247_v62 = vld [vmem:[#allocation46 + $0x120] ss:$8 sps:$4 sm:$0xff]  }
0x1963   :  { %15499 = vpow2.f32 %v9809_v40  ;;  %v15252_v40 = vld [vmem:[#allocation46 + $0x134] ss:$8 sps:$4 sm:$0xff]  }
0x1964   :  { %15501 = vpow2.f32 %v9811_v44  ;;  %v15250_v44 = vld [vmem:[#allocation46 + $0x130] ss:$8 sps:$4 sm:$0xff]  }
0x196b   :  { %v15496_v45 = vpop.eup %15495 }
0x196c   :  { %v15498_v10 = vpop.eup %15497  ;;  %v13061_v46 = vadd.f32 -1.0, %v15496_v45  ;;  %v15255_v45 = vld [vmem:[#allocation46 + $0x144] ss:$8 sps:$4 sm:$0xff]  }
0x196d   :  { %v15500_v12 = vpop.eup %15499  ;;  %v13062_v17 = vadd.f32 -1.0, %v15498_v10  ;;  %v15253_v10 = vld [vmem:[#allocation46 + $0x140] ss:$8 sps:$4 sm:$0xff]  }
0x196e   :  { %v15502_v47 = vpop.eup %15501  ;;  %v13063_v48 = vadd.f32 -1.0, %v15500_v12  ;;  %v9817_v0 = vsel %vm9797_vm3, %v9793_v19, %v13061_v46  ;;  %v15258_v46 = vld [vmem:[#allocation46 + $0x154] ss:$8 sps:$4 sm:$0xff]   ;;  %v15256_v12 = vld [vmem:[#allocation46 + $0x150] ss:$8 sps:$4 sm:$0xff]  }
0x196f   :  { %v13064_v49 = vadd.f32 -1.0, %v15502_v47  ;;  %v9818_v43 = vsel %vm9798_vm8, %v9794_v33, %v13062_v17  ;;  %v15239_v33 = vld [vmem:[%s17397_s14 + $0x20] sm:$0xff]   ;;  %v15261_v17 = vld [vmem:[#allocation46 + $0x164] ss:$8 sps:$4 sm:$0xff]   ;;  %v15259_v47 = vld [vmem:[#allocation46 + $0x160] ss:$8 sps:$4 sm:$0xff]  }
0x1970   :  { %v9819_v1 = vsel %vm9799_vm4, %v9795_v25, %v13063_v48  ;;  %v15240_v25 = vld [vmem:[%s17397_s14 + $0x28] sm:$0xff]  }
0x1971   :  { %v9821_v8 = vpack.c.bf16 %v9819_v1, %v9817_v0  ;;  %v9820_v35 = vsel %vm9800_vm9, %v9796_v36, %v13064_v49  ;;  %v15246_v36 = vld [vmem:[#allocation46 + $0x114] ss:$8 sps:$4 sm:$0xff]   ;;  %v15262_v49 = vld [vmem:[#allocation46 + $0x170] ss:$8 sps:$4 sm:$0xff]   ;;  %v15267_v0 = vld [vmem:[#allocation46 + $0x184] ss:$8 sps:$4 sm:$0xff]  }
0x1972   :  { %v9822_v37 = vpack.c.bf16 %v9820_v35, %v9818_v43  ;;  %v15264_v48 = vld [vmem:[#allocation46 + $0x174] ss:$8 sps:$4 sm:$0xff]   ;;  %v15265_v1 = vld [vmem:[#allocation46 + $0x180] ss:$8 sps:$4 sm:$0xff]   ;;  %v15268_v43 = vld [vmem:[#allocation46 + $0x190] ss:$8 sps:$4 sm:$0xff]  }
0x1973   :  { %v15273_v35 = vld [vmem:[#allocation46 + $0x1a4] ss:$8 sps:$4 sm:$0xff]  }
0x1974   :  { %10059 = vmatprep.mubr.bf16.mxu1 %v9822_v37  ;;  %v15271_v37 = vld [vmem:[#allocation46 + $0x1a0] ss:$8 sps:$4 sm:$0xff]  }
0x1975   :  { %10060 = vmatmul.mubr.bf16.vlgmr.msra.gmra.mrb[100].mxu1 %v9821_v8  ;;  %v15270_v8 = vld [vmem:[#allocation46 + $0x194] ss:$8 sps:$4 sm:$0xff]  }
0x1976   :  { %10148 = vmatprep.mubr.bf16.mxu1 %v16306_v9 }
0x1a48   :  { %v10061_v6 = vpop.f32.mrb[100].mxu1 }
0x1a49   :  { %v10062_v42 = vadd.f32 %v10061_v6, %v9860_v51  ;;  %v10063_v7 = vpop.f32.mrb[101].mxu1  ;;  %v15279_v6 = vld [vmem:[#allocation46 + $0x1c4] ss:$8 sps:$4 sm:$0xff]  }
0x1a4a   :  { %v10064_v53 = vadd.f32 %v10063_v7, %v9864_v4  ;;  %v10065_v54 = vpop.f32.mrb[102].mxu1  ;;  %v15280_v7 = vld [vmem:[#allocation46 + $0x1d0] ss:$8 sps:$4 sm:$0xff]  }
0x1a4b   :  { %v10074_v55 = vmin.f32 %v10062_v42, 0.0  ;;  %v10066_v56 = vadd.f32 %v10065_v54, %v9860_v51  ;;  %v10067_v57 = vpop.f32.mrb[103].mxu1  ;;  %vm10070_vm11 = vcmp.gt.f32.partialorder %v10062_v42, 0.0  ;;  %v15274_v51 = vld [vmem:[#allocation46 + $0x1b0] ss:$8 sps:$4 sm:$0xff]  }
0x1a4c   :  { %v10075_v50 = vmin.f32 %v10064_v53, 0.0  ;;  %v10068_v2 = vadd.f32 %v10067_v57, %v9864_v4  ;;  %vm10071_vm13 = vcmp.gt.f32.partialorder %v10064_v53, 0.0  ;;  %v15277_v4 = vld [vmem:[#allocation46 + $0x1c0] ss:$8 sps:$4 sm:$0xff]   ;;  %v15285_v54 = vld [vmem:[#allocation46 + $0x1e4] ss:$8 sps:$4 sm:$0xff]  }
0x1a4d   :  { %v10078_v3 = vmul.f32 1.442695, %v10074_v55  ;;  %v10076_v13 = vmin.f32 %v10066_v56, 0.0  ;;  %vm10072_vm12 = vcmp.gt.f32.partialorder %v10066_v56, 0.0  ;;  %v15288_v55 = vld [vmem:[#allocation46 + $0x1f4] ss:$8 sps:$4 sm:$0xff]  }
0x1a4e   :  { %v10080_v14 = vmul.f32 1.442695, %v10075_v50  ;;  %v10077_v52 = vmin.f32 %v10068_v2, 0.0  ;;  %vm10073_vm14 = vcmp.gt.f32.partialorder %v10068_v2, 0.0  ;;  %v15291_v57 = vld [vmem:[#allocation46 + $0x4] ss:$8 sps:$4 sm:$0xff]  }
0x1a4f   :  { %15503 = vpow2.f32 %v10078_v3  ;;  %v10082_v15 = vmul.f32 1.442695, %v10076_v13 }
0x1a50   :  { %15505 = vpow2.f32 %v10080_v14  ;;  %v10084_v41 = vmul.f32 1.442695, %v10077_v52 }
0x1a51   :  { %15507 = vpow2.f32 %v10082_v15 }
0x1a52   :  { %15509 = vpow2.f32 %v10084_v41 }
0x1a59   :  { %v15504_v18 = vpop.eup %15503 }
0x1a5a   :  { %v15506_v20 = vpop.eup %15505  ;;  %v13097_v21 = vadd.f32 -1.0, %v15504_v18 }
0x1a5b   :  { %v15508_v22 = vpop.eup %15507  ;;  %v13098_v24 = vadd.f32 -1.0, %v15506_v20 }
0x1a5c   :  { %v15510_v5 = vpop.eup %15509  ;;  %v13099_v31 = vadd.f32 -1.0, %v15508_v22  ;;  %v10090_v29 = vsel %vm10070_vm11, %v10062_v42, %v13097_v21  ;;  %v15282_v42 = vld [vmem:[#allocation46 + $0x1d4] ss:$8 sps:$4 sm:$0xff]  }
0x1a5d   :  { %v13100_v32 = vadd.f32 -1.0, %v15510_v5  ;;  %v10091_v26 = vsel %vm10071_vm13, %v10064_v53, %v13098_v24  ;;  %v15283_v53 = vld [vmem:[#allocation46 + $0x1e0] ss:$8 sps:$4 sm:$0xff]  }
0x1a5e   :  { %v10092_v60 = vsel %vm10072_vm12, %v10066_v56, %v13099_v31  ;;  %v15286_v56 = vld [vmem:[#allocation46 + $0x1f0] ss:$8 sps:$4 sm:$0xff]  }
0x1a5f   :  { %v10094_v16 = vpack.c.bf16 %v10092_v60, %v10090_v29  ;;  %v10093_v30 = vsel %vm10073_vm14, %v10068_v2, %v13100_v32 }
0x1a60   :  { %v10095_v19 = vpack.c.bf16 %v10093_v30, %v10091_v26 }
0x1a62   :  { %10116 = vmatprep.subr.bf16.mxu1 %v10095_v19  ;;  %10763 = vmatprep.subr.bf16.mxu0 %v10095_v19 }
0x1a63   :  { %10117 = vmatpush1.bf16.msra.mxu1 %v10094_v16  ;;  %10764 = vmatpush1.bf16.msra.mxu0 %v10094_v16 }
0x1a64   :  { %10226 = vmatprep.subr.bf16.mxu1 %v10095_v19 }
0x1a66   :  { %13103 = vmatmul.mubr.msk.bf16.vlgmr.msra.gmra.mrb[104].mxu1 %vm2940_vm10, %v15235_v59  ;;  %13183 = vmatmul.mubr.msk.bf16.vlgmr.msra.gmra.mrb[96].mxu0 %vm2940_vm10, %v15239_v33 }
0x1a67   :  { %10227 = vmatpush1.bf16.msra.mxu1 %v10094_v16  ;;  %10158 = vmatprep.mubr.bf16.mxu1 %v16306_v9 }
0x1a68   :  { %10805 = vmatprep.mubr.bf16.mxu0 %v16306_v9  ;;  %10476 = vmatprep.subr.bf16.mxu1 %v15243_v34  ;;  %v15289_v34 = vld [vmem:[#allocation46] ss:$8 sps:$4 sm:$0xff]  }
0x1a6e   :  { %13104 = vmatmul.mubr.msk.bf16.gmra.mrb[108].mxu1 %vm2940_vm10, %v15236_v23  ;;  %13184 = vmatmul.mubr.msk.bf16.gmra.mrb[100].mxu0 %vm2940_vm10, %v15240_v25  ;;  %v15294_v25 = vld [vmem:[#allocation46 + $0x14] ss:$8 sps:$4 sm:$0xff]  }
0x1a6f   :  { %10258 = vmatprep.mubr.bf16.mxu1 %v16306_v9  ;;  %11150 = vmatprep.mubr.bf16.mxu0 %v16306_v9 }
0x1a76   :  { %13111 = vmatmul.mubr.msk.bf16.vlgmr.msra.gmra.mrb[112].mxu1 %vm2940_vm10, %v15237_v11 }
0x1a77   :  { %10268 = vmatprep.mubr.bf16.mxu1 %v16306_v9  ;;  %10477 = vmatpush1.bf16.msra.mxu1 %v15241_v28 }
0x1a78   :  { %10478 = vmatprep.subr.bf16.mxu1 %v15246_v36 }
0x1a7b   :  { %10479 = vmatpush1.bf16.msra.mxu1 %v15244_v38 }
0x1a7c   :  { %10480 = vmatprep.subr.bf16.mxu1 %v15249_v39 }
0x1a7e   :  { %13112 = vmatmul.mubr.msk.bf16.gmra.mrb[116].mxu1 %vm2940_vm10, %v15238_v58  ;;  %v15292_v58 = vld [vmem:[#allocation46 + $0x10] ss:$8 sps:$4 sm:$0xff]  }
0x1a7f   :  { %10481 = vmatpush1.bf16.msra.mxu1 %v15247_v62 }
0x1a80   :  { %10482 = vmatprep.subr.bf16.mxu1 %v15252_v40 }
0x1a83   :  { %10483 = vmatpush1.bf16.msra.mxu1 %v15250_v44  ;;  %v15297_v44 = vld [vmem:[#allocation46 + $0x24] ss:$8 sps:$4 sm:$0xff]  }
0x1a84   :  { %10484 = vmatprep.subr.bf16.mxu1 %v15255_v45 }
0x1a87   :  { %10485 = vmatpush1.bf16.msra.mxu1 %v15253_v10 }
0x1a88   :  { %10486 = vmatprep.subr.bf16.mxu1 %v15258_v46 }
0x1a8b   :  { %10487 = vmatpush1.bf16.msra.mxu1 %v15256_v12 }
0x1a8c   :  { %10488 = vmatprep.subr.bf16.mxu1 %v15261_v17  ;;  %v15295_v17 = vld [vmem:[#allocation46 + $0x20] ss:$8 sps:$4 sm:$0xff]  }
0x1a8f   :  { %10489 = vmatpush1.bf16.msra.mxu1 %v15259_v47  ;;  %v15300_v47 = vld [vmem:[#allocation46 + $0x34] ss:$8 sps:$4 sm:$0xff]  }
0x1a90   :  { %10490 = vmatprep.subr.bf16.mxu1 %v15264_v48  ;;  %v15298_v48 = vld [vmem:[#allocation46 + $0x30] ss:$8 sps:$4 sm:$0xff]  }
0x1a93   :  { %10491 = vmatpush1.bf16.msra.mxu1 %v15262_v49  ;;  %v15303_v49 = vld [vmem:[#allocation46 + $0x44] ss:$8 sps:$4 sm:$0xff]  }
0x1a94   :  { %10492 = vmatprep.subr.bf16.mxu1 %v15267_v0  ;;  %v15301_v0 = vld [vmem:[#allocation46 + $0x40] ss:$8 sps:$4 sm:$0xff]  }
0x1a97   :  { %10493 = vmatpush1.bf16.msra.mxu1 %v15265_v1  ;;  %v15306_v1 = vld [vmem:[#allocation46 + $0x54] ss:$8 sps:$4 sm:$0xff]  }
0x1a98   :  { %10494 = vmatprep.subr.bf16.mxu1 %v15270_v8  ;;  %v15304_v8 = vld [vmem:[#allocation46 + $0x50] ss:$8 sps:$4 sm:$0xff]  }
0x1a9b   :  { %10495 = vmatpush1.bf16.msra.mxu1 %v15268_v43  ;;  %v15309_v43 = vld [vmem:[#allocation46 + $0x64] ss:$8 sps:$4 sm:$0xff]  }
0x1a9c   :  { %10496 = vmatprep.subr.bf16.mxu1 %v15273_v35  ;;  %v15307_v35 = vld [vmem:[#allocation46 + $0x60] ss:$8 sps:$4 sm:$0xff]  }
0x1a9f   :  { %10497 = vmatpush1.bf16.msra.mxu1 %v15271_v37  ;;  %v15312_v37 = vld [vmem:[#allocation46 + $0x74] ss:$8 sps:$4 sm:$0xff]  }
0x1aa0   :  { %10498 = vmatprep.subr.bf16.mxu1 %v15276_v27  ;;  %v15310_v27 = vld [vmem:[#allocation46 + $0x70] ss:$8 sps:$4 sm:$0xff]  }
0x1aa3   :  { %10499 = vmatpush1.bf16.msra.mxu1 %v15274_v51  ;;  %v15315_v51 = vld [vmem:[#allocation46 + $0x84] ss:$8 sps:$4 sm:$0xff]  }
0x1aa4   :  { %10500 = vmatprep.subr.bf16.mxu1 %v15279_v6  ;;  %v15318_v6 = vld [vmem:[#allocation46 + $0x94] ss:$8 sps:$4 sm:$0xff]  }
0x1aa7   :  { %10501 = vmatpush1.bf16.msra.mxu1 %v15277_v4  ;;  %v15313_v4 = vld [vmem:[#allocation46 + $0x80] ss:$8 sps:$4 sm:$0xff]  }
0x1aa8   :  { %10502 = vmatprep.subr.bf16.mxu1 %v15282_v42  ;;  %v15316_v42 = vld [vmem:[#allocation46 + $0x90] ss:$8 sps:$4 sm:$0xff]  }
0x1aab   :  { %10503 = vmatpush1.bf16.msra.mxu1 %v15280_v7  ;;  %v15321_v7 = vld [vmem:[#allocation46 + $0xa4] ss:$8 sps:$4 sm:$0xff]  }
0x1aac   :  { %10504 = vmatprep.subr.bf16.mxu1 %v15285_v54  ;;  %v15324_v54 = vld [vmem:[#allocation46 + $0xb4] ss:$8 sps:$4 sm:$0xff]  }
0x1aaf   :  { %10505 = vmatpush1.bf16.msra.mxu1 %v15283_v53  ;;  %v15319_v53 = vld [vmem:[#allocation46 + $0xa0] ss:$8 sps:$4 sm:$0xff]  }
0x1ab0   :  { %10506 = vmatprep.subr.bf16.mxu1 %v15288_v55  ;;  %v15322_v55 = vld [vmem:[#allocation46 + $0xb0] ss:$8 sps:$4 sm:$0xff]  }
0x1ab3   :  { %10507 = vmatpush1.bf16.msra.mxu1 %v15286_v56  ;;  %v15327_v56 = vld [vmem:[#allocation46 + $0xc4] ss:$8 sps:$4 sm:$0xff]  }
0x1ab4   :  { %10689 = vmatprep.subr.bf16.mxu1 %v15291_v57  ;;  %v15325_v57 = vld [vmem:[#allocation46 + $0xc0] ss:$8 sps:$4 sm:$0xff]  }
0x1b39   :  { %v17170_v50 = vpop.f32.mrb[104].mxu1  ;;  %v17188_v24 = vpop.f32.mrb[96].mxu0 }
0x1b3a   :  { %v10152_v2 = vpop.f32.mrb[105].mxu1  ;;  %v17190_v5 = vpop.f32.mrb[97].mxu0 }
0x1b3b   :  { %v17172_v3 = vpop.f32.mrb[106].mxu1  ;;  %v17192_v31 = vpop.f32.mrb[98].mxu0 }
0x1b3c   :  { %v10169_v13 = vpack.c.bf16 %v17172_v3, %v17170_v50  ;;  %v10156_v14 = vpop.f32.mrb[107].mxu1  ;;  %v10816_v32 = vpack.c.bf16 %v17192_v31, %v17188_v24  ;;  %v17196_v29 = vpop.f32.mrb[99].mxu0  ;;  %v15351_v50 = vld [vmem:[#allocation46 + $0x244] ss:$8 sps:$4 sm:$0xff]   ;;  %v15349_v3 = vld [vmem:[#allocation46 + $0x240] ss:$8 sps:$4 sm:$0xff]  }
0x1b3d   :  { %v10170_v52 = vpack.c.bf16 %v10156_v14, %v10152_v2  ;;  %v10817_v16 = vpack.c.bf16 %v17196_v29, %v17190_v5  ;;  %v15330_v2 = vld [vmem:[#allocation46 + $0xd4] ss:$8 sps:$4 sm:$0xff]   ;;  %v15328_v14 = vld [vmem:[#allocation46 + $0xd0] ss:$8 sps:$4 sm:$0xff]   ;;  %v15361_v5 = vld [vmem:[#allocation46 + $0x280] ss:$8 sps:$4 sm:$0xff]  }
0x1b3e   :  { %v15366_v29 = vld [vmem:[#allocation46 + $0x294] ss:$8 sps:$4 sm:$0xff]  }
0x1b41   :  { %v17176_v15 = vpop.f32.mrb[108].mxu1  ;;  %v17200_v23 = vpop.f32.mrb[100].mxu0 }
0x1b42   :  { %v17178_v41 = vpop.f32.mrb[109].mxu1  ;;  %v17202_v11 = vpop.f32.mrb[101].mxu0 }
0x1b43   :  { %v17180_v18 = vpop.f32.mrb[110].mxu1  ;;  %v17204_v28 = vpop.f32.mrb[102].mxu0 }
0x1b44   :  { %v10171_v20 = vpack.c.bf16 %v17180_v18, %v17176_v15  ;;  %v17184_v21 = vpop.f32.mrb[111].mxu1  ;;  %v10818_v36 = vpack.c.bf16 %v17204_v28, %v17200_v23  ;;  %v17208_v38 = vpop.f32.mrb[103].mxu0  ;;  %v15360_v15 = vld [vmem:[#allocation46 + $0x274] ss:$8 sps:$4 sm:$0xff]   ;;  %v15358_v18 = vld [vmem:[#allocation46 + $0x270] ss:$8 sps:$4 sm:$0xff]  }
0x1b45   :  { %v10172_v22 = vpack.c.bf16 %v17184_v21, %v17178_v41  ;;  %v10819_v62 = vpack.c.bf16 %v17208_v38, %v17202_v11  ;;  %v15352_v41 = vld [vmem:[#allocation46 + $0x250] ss:$8 sps:$4 sm:$0xff]   ;;  %v15357_v21 = vld [vmem:[#allocation46 + $0x264] ss:$8 sps:$4 sm:$0xff]  }
0x1b49   :  { %v10260_v60 = vpop.f32.mrb[112].mxu1 }
0x1b4a   :  { %v10262_v26 = vpop.f32.mrb[113].mxu1 }
0x1b4b   :  { %v10264_v30 = vpop.f32.mrb[114].mxu1 }
0x1b4c   :  { %v10279_v19 = vpack.c.bf16 %v10264_v30, %v10260_v60  ;;  %v10266_v59 = vpop.f32.mrb[115].mxu1  ;;  %v15331_v60 = vld [vmem:[#allocation46 + $0xe0] ss:$8 sps:$4 sm:$0xff]   ;;  %v15334_v30 = vld [vmem:[#allocation46 + $0xf0] ss:$8 sps:$4 sm:$0xff]  }
0x1b4d   :  { %v10280_v33 = vpack.c.bf16 %v10266_v59, %v10262_v26  ;;  %v15336_v26 = vld [vmem:[#allocation46 + $0xf4] ss:$8 sps:$4 sm:$0xff]   ;;  %v15337_v59 = vld [vmem:[#allocation46 + $0x200] ss:$8 sps:$4 sm:$0xff]  }
0x1b4f   :  { %10508 = vmatprep.mubr.bf16.mxu1 %v10280_v33  ;;  %v15342_v33 = vld [vmem:[#allocation46 + $0x214] ss:$8 sps:$4 sm:$0xff]  }
0x1b50   :  { %10509 = vmatmul.mubr.bf16.vlgmr.msra.gmra.mrb[120].mxu1 %v10279_v19  ;;  %v15339_v19 = vld [vmem:[#allocation46 + $0x204] ss:$8 sps:$4 sm:$0xff]  }
0x1b51   :  { %10690 = vmatpush1.bf16.msra.mxu1 %v15289_v34  ;;  %v10270_v39 = vpop.f32.mrb[116].mxu1  ;;  %v15340_v34 = vld [vmem:[#allocation46 + $0x210] ss:$8 sps:$4 sm:$0xff]  }
0x1b52   :  { %v10272_v40 = vpop.f32.mrb[117].mxu1  ;;  %10691 = vmatprep.subr.bf16.mxu1 %v15294_v25  ;;  %v15345_v25 = vld [vmem:[#allocation46 + $0x224] ss:$8 sps:$4 sm:$0xff]  }
0x1b53   :  { %v10274_v45 = vpop.f32.mrb[118].mxu1 }
0x1b54   :  { %v10281_v10 = vpack.c.bf16 %v10274_v45, %v10270_v39  ;;  %v10276_v46 = vpop.f32.mrb[119].mxu1  ;;  %v15343_v39 = vld [vmem:[#allocation46 + $0x220] ss:$8 sps:$4 sm:$0xff]  }
0x1b55   :  { %v10282_v12 = vpack.c.bf16 %v10276_v46, %v10272_v40  ;;  %10692 = vmatpush1.bf16.msra.mxu1 %v15292_v58  ;;  %v15348_v58 = vld [vmem:[#allocation46 + $0x234] ss:$8 sps:$4 sm:$0xff]   ;;  %v15346_v40 = vld [vmem:[#allocation46 + $0x230] ss:$8 sps:$4 sm:$0xff]   ;;  %v15367_v45 = vld [vmem:[#allocation46 + $0x2a0] ss:$8 sps:$4 sm:$0xff]  }
0x1b56   :  { %10693 = vmatprep.subr.bf16.mxu1 %v15297_v44  ;;  %v15369_v44 = vld [vmem:[#allocation46 + $0x2a4] ss:$8 sps:$4 sm:$0xff]   ;;  %v15370_v46 = vld [vmem:[#allocation46 + $0x2b0] ss:$8 sps:$4 sm:$0xff]  }
0x1b57   :  { %10518 = vmatprep.mubr.bf16.mxu1 %v10282_v12  ;;  %v15375_v12 = vld [vmem:[#allocation46 + $0x2c4] ss:$8 sps:$4 sm:$0xff]  }
0x1b58   :  { %10519 = vmatmul.mubr.bf16.gmra.mrb[124].mxu1 %v10281_v10  ;;  %v15372_v10 = vld [vmem:[#allocation46 + $0x2b4] ss:$8 sps:$4 sm:$0xff]  }
0x1b59   :  { %10694 = vmatpush1.bf16.msra.mxu1 %v15295_v17  ;;  %10721 = vmatprep.mubr.bf16.mxu1 %v10170_v52  ;;  %v15333_v52 = vld [vmem:[#allocation46 + $0xe4] ss:$8 sps:$4 sm:$0xff]   ;;  %v15373_v17 = vld [vmem:[#allocation46 + $0x2c0] ss:$8 sps:$4 sm:$0xff]  }
0x1b5a   :  { %10695 = vmatprep.subr.bf16.mxu1 %v15300_v47  ;;  %v15378_v47 = vld [vmem:[#allocation46 + $0x2d4] ss:$8 sps:$4 sm:$0xff]  }
0x1b5d   :  { %10696 = vmatpush1.bf16.msra.mxu1 %v15298_v48  ;;  %v15376_v48 = vld [vmem:[#allocation46 + $0x2d0] ss:$8 sps:$4 sm:$0xff]  }
0x1b5e   :  { %10697 = vmatprep.subr.bf16.mxu1 %v15303_v49  ;;  %v15381_v49 = vld [vmem:[#allocation46 + $0x2e4] ss:$8 sps:$4 sm:$0xff]  }
0x1b61   :  { %10698 = vmatpush1.bf16.msra.mxu1 %v15301_v0  ;;  %v15379_v0 = vld [vmem:[#allocation46 + $0x2e0] ss:$8 sps:$4 sm:$0xff]  }
0x1b62   :  { %10699 = vmatprep.subr.bf16.mxu1 %v15306_v1  ;;  %v15384_v1 = vld [vmem:[#allocation46 + $0x2f4] ss:$8 sps:$4 sm:$0xff]  }
0x1b65   :  { %10700 = vmatpush1.bf16.msra.mxu1 %v15304_v8  ;;  %v15382_v8 = vld [vmem:[#allocation46 + $0x2f0] ss:$8 sps:$4 sm:$0xff]  }
0x1b66   :  { %10701 = vmatprep.subr.bf16.mxu1 %v15309_v43  ;;  %v11074_v43 = vld [vmem:[%s17398_s27] sm:$0x3] }
0x1b69   :  { %10702 = vmatpush1.bf16.msra.mxu1 %v15307_v35  ;;  %v11079_v35 = vrot.slane %v11074_v43, %v16794_v61 }
0x1b6a   :  { %10703 = vmatprep.subr.bf16.mxu1 %v15312_v37 }
0x1b6d   :  { %10704 = vmatpush1.bf16.msra.mxu1 %v15310_v27  ;;  %v11083_v27 = vrot.slane %v11074_v43, %v16797_v63  ;;  %v15407_v43 = vld [vmem:[%s17399_s24 + $0x48] sm:$0xff]  }
0x1b6e   :  { %10705 = vmatprep.subr.bf16.mxu1 %v15315_v51 }
0x1b71   :  { %10706 = vmatpush1.bf16.msra.mxu1 %v15313_v4 }
0x1b72   :  { %10707 = vmatprep.subr.bf16.mxu1 %v15318_v6 }
0x1b75   :  { %10708 = vmatpush1.bf16.msra.mxu1 %v15316_v42 }
0x1b76   :  { %10709 = vmatprep.subr.bf16.mxu1 %v15321_v7 }
0x1b79   :  { %10710 = vmatpush1.bf16.msra.mxu1 %v15319_v53 }
0x1b7a   :  { %10711 = vmatprep.subr.bf16.mxu1 %v15324_v54 }
0x1b7d   :  { %10712 = vmatpush1.bf16.msra.mxu1 %v15322_v55 }
0x1b7e   :  { %10713 = vmatprep.subr.bf16.mxu1 %v15327_v56  ;;  %v15385_v56 = vld [vmem:[#allocation48] sm:$0xff]  }
0x1b81   :  { %10714 = vmatpush1.bf16.msra.mxu1 %v15325_v57  ;;  %v15389_v57 = vld [vmem:[%s17399_s24 + $0xc0] sm:$0xff]  }
0x1b82   :  { %10715 = vmatprep.subr.bf16.mxu1 %v15330_v2  ;;  %v15386_v2 = vld [vmem:[#allocation48 + $0x8] sm:$0xff]  }
0x1b85   :  { %10716 = vmatpush1.bf16.msra.mxu1 %v15328_v14  ;;  %v15387_v14 = vld [vmem:[#allocation48 + $0x10] sm:$0xff]  }
0x1b86   :  { %10717 = vmatprep.subr.bf16.mxu1 %v15333_v52  ;;  %v15390_v52 = vld [vmem:[%s17399_s24 + $0x80] sm:$0xff]  }
0x1b89   :  { %10718 = vmatpush1.bf16.msra.mxu1 %v15331_v60  ;;  %v15391_v60 = vld [vmem:[%s17399_s24 + $0xc8] sm:$0xff]  }
0x1b8a   :  { %10719 = vmatprep.subr.bf16.mxu1 %v15336_v26  ;;  %v15392_v26 = vld [vmem:[%s17399_s24 + $0x88] sm:$0xff]  }
0x1b8d   :  { %10720 = vmatpush1.bf16.msra.mxu1 %v15334_v30  ;;  %v15393_v30 = vld [vmem:[%s17399_s24 + $0xd0] sm:$0xff]  }
0x1b8e   :  { %11013 = vmatprep.subr.bf16.mxu1 %v15339_v19  ;;  %v15388_v19 = vld [vmem:[#allocation48 + $0x18] sm:$0xff]  }
0x1b90   :  { %10722 = vmatmul.mubr.bf16.vlgmr.msra.gmra.mrb[120].mxu1 %v10169_v13  ;;  %v15354_v13 = vld [vmem:[#allocation46 + $0x254] ss:$8 sps:$4 sm:$0xff]  }
0x1b91   :  { %10731 = vmatprep.mubr.bf16.mxu1 %v10172_v22  ;;  %11014 = vmatpush1.bf16.msra.mxu1 %v15337_v59  ;;  %v15355_v22 = vld [vmem:[#allocation46 + $0x260] ss:$8 sps:$4 sm:$0xff]  }
0x1b92   :  { %11015 = vmatprep.subr.bf16.mxu1 %v15342_v33  ;;  %v15394_v59 = vld [vmem:[%s17399_s24 + $0x90] sm:$0xff]   ;;  %v15395_v33 = vld [vmem:[%s17399_s24 + $0xd8] sm:$0xff]  }
0x1b95   :  { %11016 = vmatpush1.bf16.msra.mxu1 %v15340_v34  ;;  %v15396_v34 = vld [vmem:[%s17399_s24 + $0x98] sm:$0xff]  }
0x1b96   :  { %11017 = vmatprep.subr.bf16.mxu1 %v15345_v25  ;;  %v15397_v25 = vld [vmem:[%s17399_s24 + $0xe0] sm:$0xff]  }
0x1b98   :  { %10732 = vmatmul.mubr.bf16.gmra.mrb[124].mxu1 %v10171_v20  ;;  %v15363_v20 = vld [vmem:[#allocation46 + $0x284] ss:$8 sps:$4 sm:$0xff]  }
0x1b99   :  { %11018 = vmatpush1.bf16.msra.mxu1 %v15343_v39  ;;  %11045 = vmatprep.mubr.bf16.mxu1 %v10817_v16  ;;  %v15364_v16 = vld [vmem:[#allocation46 + $0x290] ss:$8 sps:$4 sm:$0xff]  }
0x1b9a   :  { %11019 = vmatprep.subr.bf16.mxu1 %v15348_v58  ;;  %v15398_v39 = vld [vmem:[%s17399_s24 + $0xa0] sm:$0xff]   ;;  %v15399_v58 = vld [vmem:[%s17399_s24 + $0xe8] sm:$0xff]  }
0x1b9d   :  { %11020 = vmatpush1.bf16.msra.mxu1 %v15346_v40  ;;  %v15400_v40 = vld [vmem:[%s17399_s24 + $0xa8] sm:$0xff]  }
0x1b9e   :  { %11021 = vmatprep.subr.bf16.mxu1 %v15351_v50  ;;  %v15401_v50 = vld [vmem:[%s17399_s24 + $0xf0] sm:$0xff]  }
0x1ba1   :  { %11022 = vmatpush1.bf16.msra.mxu1 %v15349_v3  ;;  %v15402_v3 = vld [vmem:[%s17399_s24 + $0xb0] sm:$0xff]  }
0x1ba2   :  { %11023 = vmatprep.subr.bf16.mxu1 %v15354_v13  ;;  %v15403_v13 = vld [vmem:[%s17399_s24 + $0xf8] sm:$0xff]  }
0x1ba5   :  { %11024 = vmatpush1.bf16.msra.mxu1 %v15352_v41  ;;  %v15404_v41 = vld [vmem:[%s17399_s24 + $0xb8] sm:$0xff]  }
0x1ba6   :  { %11025 = vmatprep.subr.bf16.mxu1 %v15357_v21  ;;  %v15405_v21 = vld [vmem:[%s17399_s24 + $0x40] sm:$0xff]  }
0x1ba9   :  { %11026 = vmatpush1.bf16.msra.mxu1 %v15355_v22 }
0x1baa   :  { %11027 = vmatprep.subr.bf16.mxu1 %v15360_v15 }
0x1bad   :  { %11028 = vmatpush1.bf16.msra.mxu1 %v15358_v18 }
0x1bae   :  { %11029 = vmatprep.subr.bf16.mxu1 %v15363_v20 }
0x1bb1   :  { %11030 = vmatpush1.bf16.msra.mxu1 %v15361_v5 }
0x1bb2   :  { %11031 = vmatprep.subr.bf16.mxu1 %v15366_v29 }
0x1bb5   :  { %11032 = vmatpush1.bf16.msra.mxu1 %v15364_v16 }
0x1bb6   :  { %11033 = vmatprep.subr.bf16.mxu1 %v15369_v44 }
0x1bb9   :  { %11034 = vmatpush1.bf16.msra.mxu1 %v15367_v45 }
0x1bba   :  { %11035 = vmatprep.subr.bf16.mxu1 %v15372_v10 }
0x1bbd   :  { %11036 = vmatpush1.bf16.msra.mxu1 %v15370_v46 }
0x1bbe   :  { %11037 = vmatprep.subr.bf16.mxu1 %v15375_v12 }
0x1bc1   :  { %11038 = vmatpush1.bf16.msra.mxu1 %v15373_v17 }
0x1bc2   :  { %11039 = vmatprep.subr.bf16.mxu1 %v15378_v47 }
0x1bc5   :  { %11040 = vmatpush1.bf16.msra.mxu1 %v15376_v48 }
0x1bc6   :  { %11041 = vmatprep.subr.bf16.mxu1 %v15381_v49 }
0x1bc9   :  { %11042 = vmatpush1.bf16.msra.mxu1 %v15379_v0 }
0x1bca   :  { %11043 = vmatprep.subr.bf16.mxu1 %v15384_v1 }
0x1bcd   :  { %11044 = vmatpush1.bf16.msra.mxu1 %v15382_v8  ;;  %v15406_v8 = vld [vmem:[%s17399_s24] sm:$0xff]  }
0x1bd0   :  { %11046 = vmatmul.mubr.bf16.vlgmr.msra.gmra.mrb[120].mxu1 %v10816_v32 }
0x1bd1   :  { %11055 = vmatprep.mubr.bf16.mxu1 %v10819_v62 }
0x1bd8   :  { %11056 = vmatmul.mubr.bf16.gmra.mrb[124].mxu1 %v10818_v36 }
0x1ca3   :  { %v11047_v37 = vpop.f32.mrb[120].mxu1 }
0x1ca4   :  { %v11049_v51 = vpop.f32.mrb[121].mxu1  ;;  %v11086_v6 = vadd.f32 %v11079_v35, %v11047_v37  ;;  %v15408_v37 = vld [vmem:[%s17399_s24 + $0x8] sm:$0xff]  }
0x1ca5   :  { %v11051_v4 = vpop.f32.mrb[122].mxu1  ;;  %v11087_v31 = vadd.f32 %v11083_v27, %v11049_v51  ;;  %v15409_v51 = vld [vmem:[%s17399_s24 + $0x50] sm:$0xff]  }
0x1ca6   :  { %v11088_v42 = vadd.f32 %v11079_v35, %v11051_v4  ;;  %v11053_v24 = vpop.f32.mrb[123].mxu1 }
0x1ca7   :  { %v11089_v32 = vadd.f32 %v11083_v27, %v11053_v24 }
0x1ca8   :  { %v17236_v7 = vpack.c.bf16 %v11088_v42, %v11086_v6 }
0x1ca9   :  { %v17238_v11 = vpack.c.bf16 %v11089_v32, %v11087_v31  ;;  %v15410_v31 = vld [vmem:[%s17399_s24 + $0x10] sm:$0xff]   ;;  %v15411_v32 = vld [vmem:[%s17399_s24 + $0x58] sm:$0xff]  }
0x1cab   :  { %v11057_v38 = vpop.f32.mrb[124].mxu1  ;;  %11118 = vmatprep.subr.bf16.mxu0 %v17238_v11 }
0x1cac   :  { %v11059_v23 = vpop.f32.mrb[125].mxu1  ;;  %11119 = vmatpush1.bf16.msra.mxu0 %v17236_v7  ;;  %v11090_v63 = vadd.f32 %v11079_v35, %v11057_v38  ;;  %v15412_v38 = vld [vmem:[%s17399_s24 + $0x18] sm:$0xff]  }
0x1cad   :  { %v11061_v61 = vpop.f32.mrb[126].mxu1  ;;  %v11091_v62 = vadd.f32 %v11083_v27, %v11059_v23  ;;  %v15413_v23 = vld [vmem:[%s17399_s24 + $0x60] sm:$0xff]  }
0x1cae   :  { %v11092_v28 = vadd.f32 %v11079_v35, %v11061_v61  ;;  %v11063_v36 = vpop.f32.mrb[127].mxu1  ;;  %v15414_v61 = vld [vmem:[%s17399_s24 + $0x20] sm:$0xff]  }
0x1caf   :  { %v11093_v53 = vadd.f32 %v11083_v27, %v11063_v36  ;;  %v15417_v36 = vld [vmem:[%s17399_s24 + $0x70] sm:$0xff]  }
0x1cb0   :  { %v17242_v54 = vpack.c.bf16 %v11092_v28, %v11090_v63  ;;  %v15415_v63 = vld [vmem:[%s17399_s24 + $0x68] sm:$0xff]  }
0x1cb1   :  { %v17244_v55 = vpack.c.bf16 %v11093_v53, %v11091_v62  ;;  %v15416_v28 = vld [vmem:[%s17399_s24 + $0x28] sm:$0xff]   ;;  %v15418_v62 = vld [vmem:[%s17399_s24 + $0x30] sm:$0xff]   ;;  %v15419_v53 = vld [vmem:[%s17399_s24 + $0x78] sm:$0xff]  }
0x1cb3   :  { %11120 = vmatprep.subr.bf16.mxu0 %v17244_v55 }
0x1cb4   :  { %11121 = vmatpush1.bf16.msra.mxu0 %v17242_v54 }
0x1cb5   :  { %11228 = vmatprep.subr.bf16.mxu0 %v17238_v11 }
0x1cb7   :  { %13219 = vmatmul.mubr.msk.bf16.vlgmr.msra.gmra.mrb[104].mxu0 %vm591_vm0, %v15385_v56  ;;  %v15420_v56 = vld [vmem:[%s17399_s24 + $0x38] sm:$0xff]  }
0x1cb8   :  { %11229 = vmatpush1.bf16.msra.mxu0 %v17236_v7  ;;  %11160 = vmatprep.mubr.bf16.mxu0 %v16306_v9 }
0x1cb9   :  { %11230 = vmatprep.subr.bf16.mxu0 %v17244_v55 }
0x1cbc   :  { %11231 = vmatpush1.bf16.msra.mxu0 %v17242_v54 }
0x1cbd   :  { %13383 = vmatprep.subr.bf16.mxu0 %v15389_v57  ;;  %v15421_v57 = vld [vmem:[#allocation48 + $0x20] sm:$0xff]  }
0x1cbf   :  { %13220 = vmatmul.mubr.msk.bf16.gmra.mrb[108].mxu0 %vm591_vm0, %v15386_v2  ;;  %v15426_v2 = vld [vmem:[%s17399_s24 + $0x108] sm:$0xff]  }
0x1cc0   :  { %11260 = vmatprep.mubr.bf16.mxu0 %v16306_v9 }
0x1cc7   :  { %13223 = vmatmul.mubr.msk.bf16.vlgmr.msra.gmra.mrb[112].mxu0 %vm591_vm0, %v15387_v14  ;;  %v15427_v14 = vld [vmem:[%s17399_s24 + $0x150] sm:$0xff]  }
0x1cc8   :  { %11270 = vmatprep.mubr.bf16.mxu0 %v16306_v9  ;;  %13384 = vmatpush3.bf16.msra.mxu0 %v15390_v52  ;;  %v15429_v52 = vld [vmem:[%s17399_s24 + $0x158] sm:$0xff]  }
0x1cc9   :  { %13385 = vmatprep.subr.bf16.mxu0 %v15391_v60  ;;  %v15430_v60 = vld [vmem:[%s17399_s24 + $0x118] sm:$0xff]  }
0x1ccc   :  { %13386 = vmatpush3.bf16.msra.mxu0 %v15392_v26  ;;  %v15431_v26 = vld [vmem:[%s17399_s24 + $0x160] sm:$0xff]  }
0x1ccd   :  { %13387 = vmatprep.subr.bf16.mxu0 %v15393_v30  ;;  %v15432_v30 = vld [vmem:[%s17399_s24 + $0x120] sm:$0xff]  }
0x1ccf   :  { %13224 = vmatmul.mubr.msk.bf16.gmra.mrb[116].mxu0 %vm591_vm0, %v15388_v19  ;;  %v15433_v19 = vld [vmem:[%s17399_s24 + $0x168] sm:$0xff]  }
0x1cd0   :  { %13388 = vmatpush3.bf16.msra.mxu0 %v15394_v59  ;;  %v15434_v59 = vld [vmem:[%s17399_s24 + $0x128] sm:$0xff]  }
0x1cd1   :  { %13389 = vmatprep.subr.bf16.mxu0 %v15395_v33  ;;  %v15435_v33 = vld [vmem:[%s17399_s24 + $0x170] sm:$0xff]  }
0x1cd4   :  { %13390 = vmatpush3.bf16.msra.mxu0 %v15396_v34  ;;  %v15436_v34 = vld [vmem:[%s17399_s24 + $0x130] sm:$0xff]  }
0x1cd5   :  { %13391 = vmatprep.subr.bf16.mxu0 %v15397_v25  ;;  %v15437_v25 = vld [vmem:[%s17399_s24 + $0x178] sm:$0xff]  }
0x1cd8   :  { %13392 = vmatpush3.bf16.msra.mxu0 %v15398_v39  ;;  %v15438_v39 = vld [vmem:[%s17399_s24 + $0x138] sm:$0xff]  }
0x1cd9   :  { %13393 = vmatprep.subr.bf16.mxu0 %v15399_v58 }
0x1cdc   :  { %13394 = vmatpush3.bf16.msra.mxu0 %v15400_v40 }
0x1cdd   :  { %13395 = vmatprep.subr.bf16.mxu0 %v15401_v50 }
0x1ce0   :  { %13396 = vmatpush3.bf16.msra.mxu0 %v15402_v3 }
0x1ce1   :  { %13397 = vmatprep.subr.bf16.mxu0 %v15403_v13 }
0x1ce4   :  { %13398 = vmatpush3.bf16.msra.mxu0 %v15404_v41 }
0x1ce5   :  { %13411 = vmatprep.subr.bf16.mxu0 %v15405_v21 }
0x1d8a   :  { %v11152_v22 = vpop.f32.mrb[104].mxu0 }
0x1d8b   :  { %v11154_v15 = vpop.f32.mrb[105].mxu0 }
0x1d8c   :  { %v11156_v18 = vpop.f32.mrb[106].mxu0 }
0x1d8d   :  { %v11171_v20 = vpack.c.bf16 %v11156_v18, %v11152_v22  ;;  %v11158_v5 = vpop.f32.mrb[107].mxu0 }
0x1d8e   :  { %v11172_v29 = vpack.c.bf16 %v11158_v5, %v11154_v15 }
0x1d92   :  { %v11162_v16 = vpop.f32.mrb[108].mxu0 }
0x1d93   :  { %v11164_v44 = vpop.f32.mrb[109].mxu0 }
0x1d94   :  { %v11166_v45 = vpop.f32.mrb[110].mxu0 }
0x1d95   :  { %v11173_v10 = vpack.c.bf16 %v11166_v45, %v11162_v16  ;;  %v11168_v46 = vpop.f32.mrb[111].mxu0 }
0x1d96   :  { %v11174_v12 = vpack.c.bf16 %v11168_v46, %v11164_v44 }
0x1d9a   :  { %v11262_v17 = vpop.f32.mrb[112].mxu0 }
0x1d9b   :  { %v11264_v47 = vpop.f32.mrb[113].mxu0 }
0x1d9c   :  { %v11266_v48 = vpop.f32.mrb[114].mxu0 }
0x1d9d   :  { %v11281_v49 = vpack.c.bf16 %v11266_v48, %v11262_v17  ;;  %v11268_v0 = vpop.f32.mrb[115].mxu0 }
0x1d9e   :  { %v11282_v1 = vpack.c.bf16 %v11268_v0, %v11264_v47 }
0x1da0   :  { %11446 = vmatprep.mubr.bf16.mxu0 %v11282_v1 }
0x1da1   :  { %11447 = vmatmul.mubr.bf16.vlgmr.msra.gmra.mrb[120].mxu0 %v11281_v49 }
0x1da2   :  { %13412 = vmatpush3.bf16.msra.mxu0 %v15406_v8  ;;  %v11272_v35 = vpop.f32.mrb[116].mxu0 }
0x1da3   :  { %v11274_v27 = vpop.f32.mrb[117].mxu0  ;;  %13413 = vmatprep.subr.bf16.mxu0 %v15407_v43 }
0x1da4   :  { %v11276_v4 = vpop.f32.mrb[118].mxu0 }
0x1da5   :  { %v11283_v6 = vpack.c.bf16 %v11276_v4, %v11272_v35  ;;  %v11278_v42 = vpop.f32.mrb[119].mxu0 }
0x1da6   :  { %v11284_v24 = vpack.c.bf16 %v11278_v42, %v11274_v27  ;;  %13414 = vmatpush3.bf16.msra.mxu0 %v15408_v37 }
0x1da7   :  { %13415 = vmatprep.subr.bf16.mxu0 %v15409_v51 }
0x1da8   :  { %11454 = vmatprep.mubr.bf16.mxu0 %v11284_v24 }
0x1da9   :  { %11455 = vmatmul.mubr.bf16.gmra.mrb[124].mxu0 %v11283_v6 }
0x1daa   :  { %13416 = vmatpush3.bf16.msra.mxu0 %v15410_v31  ;;  %11591 = vmatprep.mubr.bf16.mxu0 %v11172_v29 }
0x1dab   :  { %13417 = vmatprep.subr.bf16.mxu0 %v15411_v32 }
0x1dae   :  { %13418 = vmatpush3.bf16.msra.mxu0 %v15412_v38 }
0x1daf   :  { %13419 = vmatprep.subr.bf16.mxu0 %v15413_v23 }
0x1db2   :  { %13420 = vmatpush3.bf16.msra.mxu0 %v15414_v61 }
0x1db3   :  { %13421 = vmatprep.subr.bf16.mxu0 %v15415_v63 }
0x1db6   :  { %13422 = vmatpush3.bf16.msra.mxu0 %v15416_v28 }
0x1db7   :  { %13423 = vmatprep.subr.bf16.mxu0 %v15417_v36 }
0x1dba   :  { %13424 = vmatpush3.bf16.msra.mxu0 %v15418_v62 }
0x1dbb   :  { %13425 = vmatprep.subr.bf16.mxu0 %v15419_v53  ;;  %v13341_v53 = vld [vmem:[%s16516_s3] ss:$0 sm:$0xff] }
0x1dbe   :  { %13426 = vmatpush3.bf16.msra.mxu0 %v15420_v56 }
0x1dbf   :  { %11629 = vmatprep.subr.bf16.mxu0 %v17238_v11  ;;  %v15422_v11 = vld [vmem:[#allocation48 + $0x28] sm:$0xff]  }
0x1dc1   :  { %11592 = vmatmul.mubr.bf16.vlgmr.msra.gmra.mrb[128].mxu0 %v11171_v20 }
0x1dc2   :  { %11599 = vmatprep.mubr.bf16.mxu0 %v11174_v12  ;;  %11630 = vmatpush1.bf16.msra.mxu0 %v17236_v7  ;;  %v15423_v7 = vld [vmem:[%s17399_s24 + $0x140] sm:$0xff]  }
0x1dc3   :  { %11631 = vmatprep.subr.bf16.mxu0 %v17244_v55  ;;  %v15424_v55 = vld [vmem:[%s17399_s24 + $0x100] sm:$0xff]  }
0x1dc6   :  { %11632 = vmatpush1.bf16.msra.mxu0 %v17242_v54  ;;  %v15425_v54 = vld [vmem:[%s17399_s24 + $0x148] sm:$0xff]  }
0x1dc7   :  { %13439 = vmatprep.subr.bf16.mxu0 %v15423_v7 }
0x1dc9   :  { %11600 = vmatmul.mubr.bf16.gmra.mrb[132].mxu0 %v11173_v10 }
0x1dca   :  { %11661 = vmatprep.mubr.bf16.mxu0 %v16306_v9 }
0x1dd1   :  { %13291 = vmatmul.mubr.msk.bf16.vlgmr.msra.gmra.mrb[136].mxu0 %vm591_vm0, %v15421_v57 }
0x1dd2   :  { %11671 = vmatprep.mubr.bf16.mxu0 %v16306_v9  ;;  %13440 = vmatpush3.bf16.msra.mxu0 %v15424_v55  ;;  %v15428_v9 = vld [vmem:[%s17399_s24 + $0x110] sm:$0xff]  }
0x1dd3   :  { %13441 = vmatprep.subr.bf16.mxu0 %v15425_v54 }
0x1dd6   :  { %13442 = vmatpush3.bf16.msra.mxu0 %v15426_v2 }
0x1dd7   :  { %13443 = vmatprep.subr.bf16.mxu0 %v15427_v14 }
0x1dd9   :  { %13292 = vmatmul.mubr.msk.bf16.gmra.mrb[140].mxu0 %vm591_vm0, %v15422_v11 }
0x1dda   :  { %13444 = vmatpush3.bf16.msra.mxu0 %v15428_v9 }
0x1ddb   :  { %13445 = vmatprep.subr.bf16.mxu0 %v15429_v52 }
0x1dde   :  { %13446 = vmatpush3.bf16.msra.mxu0 %v15430_v60 }
0x1ddf   :  { %13447 = vmatprep.subr.bf16.mxu0 %v15431_v26 }
0x1de2   :  { %13448 = vmatpush3.bf16.msra.mxu0 %v15432_v30 }
0x1de3   :  { %13449 = vmatprep.subr.bf16.mxu0 %v15433_v19 }
0x1de6   :  { %13450 = vmatpush3.bf16.msra.mxu0 %v15434_v59 }
0x1de7   :  { %13451 = vmatprep.subr.bf16.mxu0 %v15435_v33 }
0x1dea   :  { %13452 = vmatpush3.bf16.msra.mxu0 %v15436_v34 }
0x1deb   :  { %13453 = vmatprep.subr.bf16.mxu0 %v15437_v25 }
0x1dee   :  { %13454 = vmatpush3.bf16.msra.mxu0 %v15438_v39 }
0x1e74   :  { %v13399_v58 = vpop.f32.mrb[120].mxu0 }
0x1e75   :  { %v13400_v40 = vpop.f32.mrb[121].mxu0 }
0x1e76   :  { %v13401_v50 = vadd.f32 %v13400_v40, %v13399_v58  ;;  %v13402_v3 = vpop.f32.mrb[122].mxu0 }
0x1e77   :  { %v13403_v13 = vpop.f32.mrb[123].mxu0 }
0x1e78   :  { %v13404_v41 = vadd.f32 %v13403_v13, %v13402_v3 }
0x1e7c   :  { %v13405_v21 = vpop.f32.mrb[124].mxu0 }
0x1e7d   :  { %v13406_v22 = vpop.f32.mrb[125].mxu0 }
0x1e7e   :  { %v13407_v15 = vadd.f32 %v13406_v22, %v13405_v21  ;;  %v13408_v18 = vpop.f32.mrb[126].mxu0 }
0x1e7f   :  { %v13409_v20 = vpop.f32.mrb[127].mxu0 }
0x1e80   :  { %v13410_v5 = vadd.f32 %v13409_v20, %v13408_v18 }
0x1e94   :  { %v13427_v29 = vpop.f32.mrb[128].mxu0 }
0x1e95   :  { %v13428_v16 = vpop.f32.mrb[129].mxu0 }
0x1e96   :  { %v13429_v44 = vadd.f32 %v13428_v16, %v13427_v29  ;;  %v13430_v45 = vpop.f32.mrb[130].mxu0 }
0x1e97   :  { %v13431_v10 = vpop.f32.mrb[131].mxu0 }
0x1e98   :  { %v11594_v46 = vadd.f32 %v13429_v44, %v13401_v50  ;;  %v13432_v12 = vadd.f32 %v13431_v10, %v13430_v45 }
0x1e9a   :  { %v11597_v17 = vadd.f32 %v13432_v12, %v13404_v41 }
0x1e9c   :  { %v13433_v47 = vpop.f32.mrb[132].mxu0 }
0x1e9d   :  { %v13434_v48 = vpop.f32.mrb[133].mxu0 }
0x1e9e   :  { %v13435_v49 = vadd.f32 %v13434_v48, %v13433_v47  ;;  %v13436_v0 = vpop.f32.mrb[134].mxu0 }
0x1e9f   :  { %v13437_v1 = vpop.f32.mrb[135].mxu0 }
0x1ea0   :  { %v11602_v8 = vadd.f32 %v13435_v49, %v13407_v15  ;;  %v13438_v43 = vadd.f32 %v13437_v1, %v13436_v0 }
0x1ea2   :  { %v11605_v35 = vadd.f32 %v13438_v43, %v13410_v5 }
0x1ea4   :  { %v11663_v37 = vpop.f32.mrb[136].mxu0 }
0x1ea5   :  { %v11665_v27 = vpop.f32.mrb[137].mxu0 }
0x1ea6   :  { %v11667_v51 = vpop.f32.mrb[138].mxu0 }
0x1ea7   :  { %v11682_v4 = vpack.c.bf16 %v11667_v51, %v11663_v37  ;;  %v11669_v6 = vpop.f32.mrb[139].mxu0 }
0x1ea8   :  { %v11683_v42 = vpack.c.bf16 %v11669_v6, %v11665_v27 }
0x1eaa   :  { %11847 = vmatprep.mubr.bf16.mxu0 %v11683_v42 }
0x1eab   :  { %11848 = vmatmul.mubr.bf16.vlgmr.msra.gmra.mrb[144].mxu0 %v11682_v4 }
0x1eac   :  { %v11673_v24 = vpop.f32.mrb[140].mxu0 }
0x1ead   :  { %v11675_v31 = vpop.f32.mrb[141].mxu0 }
0x1eae   :  { %v11677_v32 = vpop.f32.mrb[142].mxu0 }
0x1eaf   :  { %v11684_v38 = vpack.c.bf16 %v11677_v32, %v11673_v24  ;;  %v11679_v23 = vpop.f32.mrb[143].mxu0 }
0x1eb0   :  { %v11685_v61 = vpack.c.bf16 %v11679_v23, %v11675_v31 }
0x1eb2   :  { %11855 = vmatprep.mubr.bf16.mxu0 %v11685_v61 }
0x1eb3   :  { %11856 = vmatmul.mubr.bf16.gmra.mrb[148].mxu0 %v11684_v38 }
0x1f7e   :  { %v13455_v63 = vpop.f32.mrb[144].mxu0 }
0x1f7f   :  { %v13456_v28 = vpop.f32.mrb[145].mxu0 }
0x1f80   :  { %v13457_v36 = vadd.f32 %v13456_v28, %v13455_v63  ;;  %v13458_v62 = vpop.f32.mrb[146].mxu0 }
0x1f81   :  { %v13459_v56 = vpop.f32.mrb[147].mxu0 }
0x1f82   :  { %v11864_v57 = vadd.f32 %v13457_v36, %v11594_v46  ;;  %v13460_v11 = vadd.f32 %v13459_v56, %v13458_v62 }
0x1f84   :  { %v11875_v7 = vadd.f32 %v13341_v53, %v11864_v57  ;;  %v11865_v55 = vadd.f32 %v13460_v11, %v11597_v17 }
0x1f86   :  { %11879 = vst.msk [vmem:[%s16521_s13] sm:$0xff] %vm752_vm1, %v11875_v7  ;;  %v11876_v54 = vadd.f32 %v13341_v53, %v11865_v55  ;;  %v13461_v2 = vpop.f32.mrb[148].mxu0 }
0x1f87   :  { %v13462_v14 = vpop.f32.mrb[149].mxu0 }
0x1f88   :  { %11880 = vst.msk [vmem:[%s16521_s13 + $0x8] sm:$0xff] %vm752_vm1, %v11876_v54  ;;  %v13463_v9 = vadd.f32 %v13462_v14, %v13461_v2  ;;  %v13464_v52 = vpop.f32.mrb[150].mxu0 }
0x1f89   :  { %v13465_v60 = vpop.f32.mrb[151].mxu0 }
0x1f8a   :  { %v11866_v26 = vadd.f32 %v13463_v9, %v11602_v8  ;;  %v13466_v30 = vadd.f32 %v13465_v60, %v13464_v52 }
0x1f8c   :  { %v11877_v19 = vadd.f32 %v13341_v53, %v11866_v26  ;;  %v11867_v59 = vadd.f32 %v13466_v30, %v11605_v35 }
0x1f8e   :  { %11881 = vst.msk [vmem:[%s16521_s13 + $0x10] sm:$0xff] %vm752_vm1, %v11877_v19  ;;  %v11878_v33 = vadd.f32 %v13341_v53, %v11867_v59 }
0x1f90   :  { %11882 = vst.msk [vmem:[%s16521_s13 + $0x18] sm:$0xff] %vm752_vm1, %v11878_v33 }
0x1f91   :  { %11919 = vsyncpa [#allocation3], 1 }
0x1f92   :  { %11920 = vsyncpa [#allocation5], 1 }
0x1f93   :  { %11921 = vsyncpa [#allocation8], 1 }
0x1f94   :  { %11922 = vsyncpa [#allocation11], 1 }
0x1f95   :  { %11923 = vsyncpa [#allocation14], 1 }
0x1f96   :  { %11924 = vsyncpa [#allocation17], 1 }
0x1f97   :  { %11925 = vsyncpa [#allocation20], 1 }
0x1f98   :  { %11926 = vsyncpa [#allocation23], 1 }
0x1f99   :  { %11927 = vsyncpa [#allocation26], 1 }
0x1f9a   :  { %11928 = vsyncpa [#allocation29], 1 }
0x1f9b   :  { %11929 = vsyncpa [#allocation32], 1 }
0x1f9c   :  { %11930 = vsyncpa [#allocation35], 1 }
0x1f9d   :  { %11931 = vsyncpa [#allocation38], 1 }
0x1f9e   :  { %11932 = vsyncpa [#allocation41], 1 }
0x1f9f   :  { %11933 = vsyncpa [#allocation44], 1 }
0x1fa0   :  { %11934 = vsyncpa [#allocation47], 1 }

</bundles_post_ra>
